<compile_context>
chip_gen: v7x
topology: tpu7x:2x2x1
jax: 0.10.0
libtpu: 0.0.40
codegen_flags: <defaults>
</compile_context>

<pallas_src>
import functools

import numpy as np

import jax
import jax.numpy as jnp
from jax.experimental import pallas as pl
from jax.experimental.pallas import tpu as pltpu


_BPAD = 8  # batch rows are padded to one full sublane tile for the articulation stage


# ---------------------------------------------------------------------------
# In-kernel helpers
# ---------------------------------------------------------------------------
def _conv_stage(a, w_ref, bias, *, s_in, inner, kh, stride):
    """One conv+ReLU layer expressed as per-tap matmuls (padding=1 on the conv axis).

    a      : (s_in * inner, cin) f32 activation, spatial-major rows.
    w_ref  : (kh, cin, cout) bf16 per-tap weight ref (tap-major).
    bias   : (1, cout) f32.
    Returns ((s_out * inner, cout) f32 activation, s_out).
    """
    cin = w_ref.shape[1]
    s_out = (s_in + 2 - kh) // stride + 1
    acc = None
    for t in range(kh):
        pieces = []
        nonzero = False
        for so in range(s_out):
            i = stride * so + t                      # index into the padded spatial axis
            if 1 <= i <= s_in:
                pieces.append(a[(i - 1) * inner: i * inner, :])
                nonzero = True
            else:                                    # this tap reads the zero padding
                pieces.append(jnp.zeros((inner, cin), a.dtype))
        if not nonzero:                              # tap reads only padding -> skip
            continue
        x_t = pieces[0] if len(pieces) == 1 else jnp.concatenate(pieces, axis=0)
        w_t = w_ref[t]                               # (cin, cout)
        if cin == 1:
            # K == 1: cheaper as a VPU broadcast multiply than an MXU matmul.
            term = x_t * w_t.astype(jnp.float32)
        else:
            term = jnp.dot(x_t.astype(jnp.bfloat16), w_t,
                           preferred_element_type=jnp.float32)
        acc = term if acc is None else acc + term
    return jnp.maximum(acc + bias, 0.0), s_out


def _fused_forward_kernel(*refs, B, H, W, n_analysis, n_artic):
    x_ref, sel_ref = refs[0], refs[1]
    out_ref = refs[-1]
    p = 2
    analysis = [(refs[p + 2 * i], refs[p + 2 * i + 1]) for i in range(n_analysis)]
    p += 2 * n_analysis
    artic = [(refs[p + 2 * i], refs[p + 2 * i + 1]) for i in range(n_artic)]
    p += 2 * n_artic
    w1_ref, b1_ref, w2_ref, b2_ref = refs[p], refs[p + 1], refs[p + 2], refs[p + 3]

    # ---- analysis stage: conv along W; rows ordered (w, h, b), inner = H * B ----
    inner = H * B
    a = x_ref[...]                                   # (W * H * B, 1) f32
    s = W
    for w_ref, b_ref in analysis:
        a, s = _conv_stage(a, w_ref, b_ref[...], s_in=s, inner=inner, kh=3, stride=2)
    # a: (H * B, 256), rows = h * B + b

    # ---- relayout rows (h*B + b) -> (h*8 + b) via a 0/1 selection matmul (MXU) ----
    a = jnp.dot(sel_ref[...], a.astype(jnp.bfloat16),
                preferred_element_type=jnp.float32)  # (H * 8, 256); pad rows are 0

    # ---- articulation stage: conv along H; rows ordered (h, b_pad), inner = 8 ----
    s = H
    for w_ref, b_ref in artic:
        kh = w_ref.shape[0]
        a, s = _conv_stage(a, w_ref, b_ref[...], s_in=s, inner=_BPAD,
                           kh=kh, stride=(4 if kh == 4 else 2))
    # a: (8, 256); rows [0, B) are the real batch rows (padded rows are harmless junk)

    # ---- linear head (no activation between the two linears, matching torch) ----
    h1 = jnp.dot(a.astype(jnp.bfloat16), w1_ref[...],
                 preferred_element_type=jnp.float32) + b1_ref[...]
    y = jnp.dot(h1.astype(jnp.bfloat16), w2_ref[...],
                preferred_element_type=jnp.float32) + b2_ref[...]
    out_ref[...] = y[:B, :].astype(out_ref.dtype)


# ---------------------------------------------------------------------------
# Parameters (deterministic init mirroring the torch module), stored kernel-ready
# ---------------------------------------------------------------------------
def init_params(key, output_dim=52):
    """Conv taps as (kh, Cin, Cout) bf16, biases as (1, Cout) f32, linear weights
    pre-transposed to (K, N) bf16 — all layout prep happens once, here."""
    params = {"analysis": [], "articulation": []}

    analysis_dims = [(1, 72), (72, 108), (108, 162), (162, 243), (243, 256)]
    for cin, cout in analysis_dims:
        key, k1, k2 = jax.random.split(key, 3)
        fan_in = cin * 1 * 3
        w = jax.random.normal(k1, (cout, cin, 1, 3), jnp.float32) * np.sqrt(2.0 / fan_in)
        bound = 1.0 / np.sqrt(fan_in)
        b = jax.random.uniform(k2, (cout,), jnp.float32, -bound, bound)
        w_taps = jnp.transpose(w[:, :, 0, :], (2, 1, 0)).astype(jnp.bfloat16)   # (3,cin,cout)
        params["analysis"].append((w_taps, b.reshape(1, cout)))

    for i in range(5):
        kh = 4 if i == 4 else 3
        cin = cout = 256
        key, k1, k2 = jax.random.split(key, 3)
        fan_in = cin * kh * 1
        w = jax.random.normal(k1, (cout, cin, kh, 1), jnp.float32) * np.sqrt(2.0 / fan_in)
        bound = 1.0 / np.sqrt(fan_in)
        b = jax.random.uniform(k2, (cout,), jnp.float32, -bound, bound)
        w_taps = jnp.transpose(w[:, :, :, 0], (2, 1, 0)).astype(jnp.bfloat16)   # (kh,cin,cout)
        params["articulation"].append((w_taps, b.reshape(1, cout)))

    key, k1 = jax.random.split(key)
    w1 = jax.random.normal(k1, (150, 256), jnp.float32) * np.sqrt(2.0 / (256 + 150))
    key, k2 = jax.random.split(key)
    w2 = jax.random.normal(k2, (output_dim, 150), jnp.float32) * np.sqrt(2.0 / (150 + output_dim))
    params["linear1"] = (jnp.transpose(w1).astype(jnp.bfloat16),
                         jnp.zeros((1, 150), jnp.float32))
    params["linear2"] = (jnp.transpose(w2).astype(jnp.bfloat16),
                         jnp.zeros((1, output_dim), jnp.float32))
    return params


# ---------------------------------------------------------------------------
# Forward pass: one fused pallas_call
# ---------------------------------------------------------------------------
def forward(params, x):
    """x: (1, B, 32, 32, 1) float32 -> (B, output_dim) float32."""
    assert x.shape[0] == 1 and x.shape[-1] == 1, x.shape
    B, W, H = x.shape[1], x.shape[2], x.shape[3]
    assert B <= _BPAD, "batch is padded to 8 sublane rows inside the kernel"
    assert W == 32 and H == 32, "architecture collapses 32 -> 1 over 5 stride-2 convs"

    # torch permute(0,3,2,1) => NCHW with H = input dim3, W = input dim2.
    # The kernel wants rows ordered (w, h, b) with the single input channel on lanes.
    x0 = x[0, :, :, :, 0]                                            # (B, W, H)
    x_in = jnp.transpose(x0, (1, 2, 0)).reshape(W * H * B, 1).astype(jnp.float32)

    # Compile-time constant 0/1 matrix re-laying rows (h*B + b) -> (h*8 + b).
    sel_np = np.zeros((H * _BPAD, H * B), np.float32)
    for h in range(H):
        for b in range(B):
            sel_np[h * _BPAD + b, h * B + b] = 1.0
    sel = jnp.asarray(sel_np, dtype=jnp.bfloat16)

    inputs = [x_in, sel]
    for w, b in params["analysis"]:
        inputs += [w, b]
    for w, b in params["articulation"]:
        inputs += [w, b]
    inputs += [params["linear1"][0], params["linear1"][1],
               params["linear2"][0], params["linear2"][1]]

    out_dim = params["linear2"][1].shape[-1]
    kernel = functools.partial(
        _fused_forward_kernel, B=B, H=H, W=W,
        n_analysis=len(params["analysis"]), n_artic=len(params["articulation"]))

    # TODO(synk): on v7x a leading batch-parallel grid axis could split work over the
    # two TensorCores; omitted since B=2 and the fused kernel is overhead-bound.
    return pl.pallas_call(
        kernel,
        out_shape=jax.ShapeDtypeStruct((B, out_dim), jnp.float32),
        in_specs=[pl.BlockSpec(memory_space=pltpu.MemorySpace.VMEM)] * len(inputs),
        out_specs=pl.BlockSpec(memory_space=pltpu.MemorySpace.VMEM),
        compiler_params=pltpu.CompilerParams(vmem_limit_bytes=32 * 1024 * 1024),
    )(*inputs)


if __name__ == "__main__":
    key = jax.random.PRNGKey(0)
    pkey, xkey = jax.random.split(key)
    params = init_params(pkey, output_dim=52)

    # Input consistent with the forward: (1, B, 32, 32, 1).
    x = jax.random.normal(xkey, (1, 2, 32, 32, 1), jnp.float32)

    fwd = jax.jit(forward)
    out = jax.block_until_ready(fwd(params, x))
    assert out.shape == (2, 52), out.shape
    assert out.dtype == jnp.float32
    print("KERNEL_OK")
</pallas_src>

<mosaic_0001>
module attributes {stable_mosaic.version = 11 : i64} {
  func.func @_fused_forward_kernel(%arg0: memref<2048x1xf32, #tpu.memory_space<vmem>>, %arg1: memref<256x64xbf16, #tpu.memory_space<vmem>>, %arg2: memref<3x1x72xbf16, #tpu.memory_space<vmem>>, %arg3: memref<1x72xf32, #tpu.memory_space<vmem>>, %arg4: memref<3x72x108xbf16, #tpu.memory_space<vmem>>, %arg5: memref<1x108xf32, #tpu.memory_space<vmem>>, %arg6: memref<3x108x162xbf16, #tpu.memory_space<vmem>>, %arg7: memref<1x162xf32, #tpu.memory_space<vmem>>, %arg8: memref<3x162x243xbf16, #tpu.memory_space<vmem>>, %arg9: memref<1x243xf32, #tpu.memory_space<vmem>>, %arg10: memref<3x243x256xbf16, #tpu.memory_space<vmem>>, %arg11: memref<1x256xf32, #tpu.memory_space<vmem>>, %arg12: memref<3x256x256xbf16, #tpu.memory_space<vmem>>, %arg13: memref<1x256xf32, #tpu.memory_space<vmem>>, %arg14: memref<3x256x256xbf16, #tpu.memory_space<vmem>>, %arg15: memref<1x256xf32, #tpu.memory_space<vmem>>, %arg16: memref<3x256x256xbf16, #tpu.memory_space<vmem>>, %arg17: memref<1x256xf32, #tpu.memory_space<vmem>>, %arg18: memref<3x256x256xbf16, #tpu.memory_space<vmem>>, %arg19: memref<1x256xf32, #tpu.memory_space<vmem>>, %arg20: memref<4x256x256xbf16, #tpu.memory_space<vmem>>, %arg21: memref<1x256xf32, #tpu.memory_space<vmem>>, %arg22: memref<256x150xbf16, #tpu.memory_space<vmem>>, %arg23: memref<1x150xf32, #tpu.memory_space<vmem>>, %arg24: memref<150x52xbf16, #tpu.memory_space<vmem>>, %arg25: memref<1x52xf32, #tpu.memory_space<vmem>>, %arg26: memref<2x52xf32, #tpu.memory_space<vmem>>) attributes {dimension_semantics = [], scalar_prefetch = 0 : i64, scratch_operands = 0 : i64, tpu.core_type = #tpu.core_type<tc>} {
    %c0 = arith.constant 0 : index
    %c0_0 = arith.constant 0 : index
    %0 = vector.load %arg0[%c0, %c0_0] : memref<2048x1xf32, #tpu.memory_space<vmem>>, vector<2048x1xf32>
    %c0_1 = arith.constant 0 : index
    %c0_2 = arith.constant 0 : index
    %1 = vector.load %arg3[%c0_1, %c0_2] : memref<1x72xf32, #tpu.memory_space<vmem>>, vector<1x72xf32>
    %cst = arith.constant 0.000000e+00 : f32
    %2 = vector.broadcast %cst : f32 to vector<64x1xf32>
    %3 = vector.extract_strided_slice %0 {offsets = [64, 0], sizes = [64, 1], strides = [1, 1]} : vector<2048x1xf32> to vector<64x1xf32>
    %4 = vector.extract_strided_slice %0 {offsets = [192, 0], sizes = [64, 1], strides = [1, 1]} : vector<2048x1xf32> to vector<64x1xf32>
    %5 = vector.extract_strided_slice %0 {offsets = [320, 0], sizes = [64, 1], strides = [1, 1]} : vector<2048x1xf32> to vector<64x1xf32>
    %6 = vector.extract_strided_slice %0 {offsets = [448, 0], sizes = [64, 1], strides = [1, 1]} : vector<2048x1xf32> to vector<64x1xf32>
    %7 = vector.extract_strided_slice %0 {offsets = [576, 0], sizes = [64, 1], strides = [1, 1]} : vector<2048x1xf32> to vector<64x1xf32>
    %8 = vector.extract_strided_slice %0 {offsets = [704, 0], sizes = [64, 1], strides = [1, 1]} : vector<2048x1xf32> to vector<64x1xf32>
    %9 = vector.extract_strided_slice %0 {offsets = [832, 0], sizes = [64, 1], strides = [1, 1]} : vector<2048x1xf32> to vector<64x1xf32>
    %10 = vector.extract_strided_slice %0 {offsets = [960, 0], sizes = [64, 1], strides = [1, 1]} : vector<2048x1xf32> to vector<64x1xf32>
    %11 = vector.extract_strided_slice %0 {offsets = [1088, 0], sizes = [64, 1], strides = [1, 1]} : vector<2048x1xf32> to vector<64x1xf32>
    %12 = vector.extract_strided_slice %0 {offsets = [1216, 0], sizes = [64, 1], strides = [1, 1]} : vector<2048x1xf32> to vector<64x1xf32>
    %13 = vector.extract_strided_slice %0 {offsets = [1344, 0], sizes = [64, 1], strides = [1, 1]} : vector<2048x1xf32> to vector<64x1xf32>
    %14 = vector.extract_strided_slice %0 {offsets = [1472, 0], sizes = [64, 1], strides = [1, 1]} : vector<2048x1xf32> to vector<64x1xf32>
    %15 = vector.extract_strided_slice %0 {offsets = [1600, 0], sizes = [64, 1], strides = [1, 1]} : vector<2048x1xf32> to vector<64x1xf32>
    %16 = vector.extract_strided_slice %0 {offsets = [1728, 0], sizes = [64, 1], strides = [1, 1]} : vector<2048x1xf32> to vector<64x1xf32>
    %17 = vector.extract_strided_slice %0 {offsets = [1856, 0], sizes = [64, 1], strides = [1, 1]} : vector<2048x1xf32> to vector<64x1xf32>
    %18 = tpu.concatenate %2, %3, %4, %5, %6, %7, %8, %9, %10, %11, %12, %13, %14, %15, %16, %17 in 0 : vector<64x1xf32>, vector<64x1xf32>, vector<64x1xf32>, vector<64x1xf32>, vector<64x1xf32>, vector<64x1xf32>, vector<64x1xf32>, vector<64x1xf32>, vector<64x1xf32>, vector<64x1xf32>, vector<64x1xf32>, vector<64x1xf32>, vector<64x1xf32>, vector<64x1xf32>, vector<64x1xf32>, vector<64x1xf32> -> vector<1024x1xf32>
    %c0_3 = arith.constant 0 : index
    %c0_4 = arith.constant 0 : index
    %c0_5 = arith.constant 0 : index
    %19 = vector.load %arg2[%c0_3, %c0_4, %c0_5] : memref<3x1x72xbf16, #tpu.memory_space<vmem>>, vector<1x1x72xbf16>
    %20 = vector.shape_cast %19 : vector<1x1x72xbf16> to vector<1x72xbf16>
    %21 = arith.extf %20 : vector<1x72xbf16> to vector<1x72xf32>
    %22 = vector.broadcast %18 : vector<1024x1xf32> to vector<1024x72xf32>
    %23 = vector.broadcast %21 : vector<1x72xf32> to vector<1024x72xf32>
    %24 = arith.mulf %22, %23 : vector<1024x72xf32>
    %25 = vector.extract_strided_slice %0 {offsets = [0, 0], sizes = [64, 1], strides = [1, 1]} : vector<2048x1xf32> to vector<64x1xf32>
    %26 = vector.extract_strided_slice %0 {offsets = [128, 0], sizes = [64, 1], strides = [1, 1]} : vector<2048x1xf32> to vector<64x1xf32>
    %27 = vector.extract_strided_slice %0 {offsets = [256, 0], sizes = [64, 1], strides = [1, 1]} : vector<2048x1xf32> to vector<64x1xf32>
    %28 = vector.extract_strided_slice %0 {offsets = [384, 0], sizes = [64, 1], strides = [1, 1]} : vector<2048x1xf32> to vector<64x1xf32>
    %29 = vector.extract_strided_slice %0 {offsets = [512, 0], sizes = [64, 1], strides = [1, 1]} : vector<2048x1xf32> to vector<64x1xf32>
    %30 = vector.extract_strided_slice %0 {offsets = [640, 0], sizes = [64, 1], strides = [1, 1]} : vector<2048x1xf32> to vector<64x1xf32>
    %31 = vector.extract_strided_slice %0 {offsets = [768, 0], sizes = [64, 1], strides = [1, 1]} : vector<2048x1xf32> to vector<64x1xf32>
    %32 = vector.extract_strided_slice %0 {offsets = [896, 0], sizes = [64, 1], strides = [1, 1]} : vector<2048x1xf32> to vector<64x1xf32>
    %33 = vector.extract_strided_slice %0 {offsets = [1024, 0], sizes = [64, 1], strides = [1, 1]} : vector<2048x1xf32> to vector<64x1xf32>
    %34 = vector.extract_strided_slice %0 {offsets = [1152, 0], sizes = [64, 1], strides = [1, 1]} : vector<2048x1xf32> to vector<64x1xf32>
    %35 = vector.extract_strided_slice %0 {offsets = [1280, 0], sizes = [64, 1], strides = [1, 1]} : vector<2048x1xf32> to vector<64x1xf32>
    %36 = vector.extract_strided_slice %0 {offsets = [1408, 0], sizes = [64, 1], strides = [1, 1]} : vector<2048x1xf32> to vector<64x1xf32>
    %37 = vector.extract_strided_slice %0 {offsets = [1536, 0], sizes = [64, 1], strides = [1, 1]} : vector<2048x1xf32> to vector<64x1xf32>
    %38 = vector.extract_strided_slice %0 {offsets = [1664, 0], sizes = [64, 1], strides = [1, 1]} : vector<2048x1xf32> to vector<64x1xf32>
    %39 = vector.extract_strided_slice %0 {offsets = [1792, 0], sizes = [64, 1], strides = [1, 1]} : vector<2048x1xf32> to vector<64x1xf32>
    %40 = vector.extract_strided_slice %0 {offsets = [1920, 0], sizes = [64, 1], strides = [1, 1]} : vector<2048x1xf32> to vector<64x1xf32>
    %41 = tpu.concatenate %25, %26, %27, %28, %29, %30, %31, %32, %33, %34, %35, %36, %37, %38, %39, %40 in 0 : vector<64x1xf32>, vector<64x1xf32>, vector<64x1xf32>, vector<64x1xf32>, vector<64x1xf32>, vector<64x1xf32>, vector<64x1xf32>, vector<64x1xf32>, vector<64x1xf32>, vector<64x1xf32>, vector<64x1xf32>, vector<64x1xf32>, vector<64x1xf32>, vector<64x1xf32>, vector<64x1xf32>, vector<64x1xf32> -> vector<1024x1xf32>
    %c1 = arith.constant 1 : index
    %c0_6 = arith.constant 0 : index
    %c0_7 = arith.constant 0 : index
    %42 = vector.load %arg2[%c1, %c0_6, %c0_7] : memref<3x1x72xbf16, #tpu.memory_space<vmem>>, vector<1x1x72xbf16>
    %43 = vector.shape_cast %42 : vector<1x1x72xbf16> to vector<1x72xbf16>
    %44 = arith.extf %43 : vector<1x72xbf16> to vector<1x72xf32>
    %45 = vector.broadcast %41 : vector<1024x1xf32> to vector<1024x72xf32>
    %46 = vector.broadcast %44 : vector<1x72xf32> to vector<1024x72xf32>
    %47 = arith.mulf %45, %46 : vector<1024x72xf32>
    %48 = arith.addf %24, %47 : vector<1024x72xf32>
    %49 = vector.extract_strided_slice %0 {offsets = [64, 0], sizes = [64, 1], strides = [1, 1]} : vector<2048x1xf32> to vector<64x1xf32>
    %50 = vector.extract_strided_slice %0 {offsets = [192, 0], sizes = [64, 1], strides = [1, 1]} : vector<2048x1xf32> to vector<64x1xf32>
    %51 = vector.extract_strided_slice %0 {offsets = [320, 0], sizes = [64, 1], strides = [1, 1]} : vector<2048x1xf32> to vector<64x1xf32>
    %52 = vector.extract_strided_slice %0 {offsets = [448, 0], sizes = [64, 1], strides = [1, 1]} : vector<2048x1xf32> to vector<64x1xf32>
    %53 = vector.extract_strided_slice %0 {offsets = [576, 0], sizes = [64, 1], strides = [1, 1]} : vector<2048x1xf32> to vector<64x1xf32>
    %54 = vector.extract_strided_slice %0 {offsets = [704, 0], sizes = [64, 1], strides = [1, 1]} : vector<2048x1xf32> to vector<64x1xf32>
    %55 = vector.extract_strided_slice %0 {offsets = [832, 0], sizes = [64, 1], strides = [1, 1]} : vector<2048x1xf32> to vector<64x1xf32>
    %56 = vector.extract_strided_slice %0 {offsets = [960, 0], sizes = [64, 1], strides = [1, 1]} : vector<2048x1xf32> to vector<64x1xf32>
    %57 = vector.extract_strided_slice %0 {offsets = [1088, 0], sizes = [64, 1], strides = [1, 1]} : vector<2048x1xf32> to vector<64x1xf32>
    %58 = vector.extract_strided_slice %0 {offsets = [1216, 0], sizes = [64, 1], strides = [1, 1]} : vector<2048x1xf32> to vector<64x1xf32>
    %59 = vector.extract_strided_slice %0 {offsets = [1344, 0], sizes = [64, 1], strides = [1, 1]} : vector<2048x1xf32> to vector<64x1xf32>
    %60 = vector.extract_strided_slice %0 {offsets = [1472, 0], sizes = [64, 1], strides = [1, 1]} : vector<2048x1xf32> to vector<64x1xf32>
    %61 = vector.extract_strided_slice %0 {offsets = [1600, 0], sizes = [64, 1], strides = [1, 1]} : vector<2048x1xf32> to vector<64x1xf32>
    %62 = vector.extract_strided_slice %0 {offsets = [1728, 0], sizes = [64, 1], strides = [1, 1]} : vector<2048x1xf32> to vector<64x1xf32>
    %63 = vector.extract_strided_slice %0 {offsets = [1856, 0], sizes = [64, 1], strides = [1, 1]} : vector<2048x1xf32> to vector<64x1xf32>
    %64 = vector.extract_strided_slice %0 {offsets = [1984, 0], sizes = [64, 1], strides = [1, 1]} : vector<2048x1xf32> to vector<64x1xf32>
    %65 = tpu.concatenate %49, %50, %51, %52, %53, %54, %55, %56, %57, %58, %59, %60, %61, %62, %63, %64 in 0 : vector<64x1xf32>, vector<64x1xf32>, vector<64x1xf32>, vector<64x1xf32>, vector<64x1xf32>, vector<64x1xf32>, vector<64x1xf32>, vector<64x1xf32>, vector<64x1xf32>, vector<64x1xf32>, vector<64x1xf32>, vector<64x1xf32>, vector<64x1xf32>, vector<64x1xf32>, vector<64x1xf32>, vector<64x1xf32> -> vector<1024x1xf32>
    %c2 = arith.constant 2 : index
    %c0_8 = arith.constant 0 : index
    %c0_9 = arith.constant 0 : index
    %66 = vector.load %arg2[%c2, %c0_8, %c0_9] : memref<3x1x72xbf16, #tpu.memory_space<vmem>>, vector<1x1x72xbf16>
    %67 = vector.shape_cast %66 : vector<1x1x72xbf16> to vector<1x72xbf16>
    %68 = arith.extf %67 : vector<1x72xbf16> to vector<1x72xf32>
    %69 = vector.broadcast %65 : vector<1024x1xf32> to vector<1024x72xf32>
    %70 = vector.broadcast %68 : vector<1x72xf32> to vector<1024x72xf32>
    %71 = arith.mulf %69, %70 : vector<1024x72xf32>
    %72 = arith.addf %48, %71 : vector<1024x72xf32>
    %73 = vector.broadcast %1 : vector<1x72xf32> to vector<1024x72xf32>
    %74 = arith.addf %72, %73 : vector<1024x72xf32>
    %cst_10 = arith.constant 0.000000e+00 : f32
    %75 = vector.broadcast %cst_10 : f32 to vector<1024x72xf32>
    %76 = arith.maximumf %74, %75 : vector<1024x72xf32>
    %c0_11 = arith.constant 0 : index
    %c0_12 = arith.constant 0 : index
    %77 = vector.load %arg5[%c0_11, %c0_12] : memref<1x108xf32, #tpu.memory_space<vmem>>, vector<1x108xf32>
    %cst_13 = arith.constant 0.000000e+00 : f32
    %78 = vector.broadcast %cst_13 : f32 to vector<64x72xf32>
    %79 = vector.extract_strided_slice %76 {offsets = [64, 0], sizes = [64, 72], strides = [1, 1]} : vector<1024x72xf32> to vector<64x72xf32>
    %80 = vector.extract_strided_slice %76 {offsets = [192, 0], sizes = [64, 72], strides = [1, 1]} : vector<1024x72xf32> to vector<64x72xf32>
    %81 = vector.extract_strided_slice %76 {offsets = [320, 0], sizes = [64, 72], strides = [1, 1]} : vector<1024x72xf32> to vector<64x72xf32>
    %82 = vector.extract_strided_slice %76 {offsets = [448, 0], sizes = [64, 72], strides = [1, 1]} : vector<1024x72xf32> to vector<64x72xf32>
    %83 = vector.extract_strided_slice %76 {offsets = [576, 0], sizes = [64, 72], strides = [1, 1]} : vector<1024x72xf32> to vector<64x72xf32>
    %84 = vector.extract_strided_slice %76 {offsets = [704, 0], sizes = [64, 72], strides = [1, 1]} : vector<1024x72xf32> to vector<64x72xf32>
    %85 = vector.extract_strided_slice %76 {offsets = [832, 0], sizes = [64, 72], strides = [1, 1]} : vector<1024x72xf32> to vector<64x72xf32>
    %86 = tpu.concatenate %78, %79, %80, %81, %82, %83, %84, %85 in 0 : vector<64x72xf32>, vector<64x72xf32>, vector<64x72xf32>, vector<64x72xf32>, vector<64x72xf32>, vector<64x72xf32>, vector<64x72xf32>, vector<64x72xf32> -> vector<512x72xf32>
    %c0_14 = arith.constant 0 : index
    %c0_15 = arith.constant 0 : index
    %c0_16 = arith.constant 0 : index
    %87 = vector.load %arg4[%c0_14, %c0_15, %c0_16] : memref<3x72x108xbf16, #tpu.memory_space<vmem>>, vector<1x72x108xbf16>
    %88 = vector.shape_cast %87 : vector<1x72x108xbf16> to vector<72x108xbf16>
    %89 = arith.truncf %86 : vector<512x72xf32> to vector<512x72xbf16>
    %cst_17 = arith.constant dense<0.000000e+00> : vector<512x108xf32>
    %90 = tpu.matmul %89, %88, %cst_17 {dimension_numbers = #tpu.dot_dimension_numbers<[1], [0], [0], [1], [0, 0, 1, 1], [], []>} : vector<512x72xbf16>, vector<72x108xbf16>, vector<512x108xf32> -> vector<512x108xf32>
    %91 = vector.extract_strided_slice %76 {offsets = [0, 0], sizes = [64, 72], strides = [1, 1]} : vector<1024x72xf32> to vector<64x72xf32>
    %92 = vector.extract_strided_slice %76 {offsets = [128, 0], sizes = [64, 72], strides = [1, 1]} : vector<1024x72xf32> to vector<64x72xf32>
    %93 = vector.extract_strided_slice %76 {offsets = [256, 0], sizes = [64, 72], strides = [1, 1]} : vector<1024x72xf32> to vector<64x72xf32>
    %94 = vector.extract_strided_slice %76 {offsets = [384, 0], sizes = [64, 72], strides = [1, 1]} : vector<1024x72xf32> to vector<64x72xf32>
    %95 = vector.extract_strided_slice %76 {offsets = [512, 0], sizes = [64, 72], strides = [1, 1]} : vector<1024x72xf32> to vector<64x72xf32>
    %96 = vector.extract_strided_slice %76 {offsets = [640, 0], sizes = [64, 72], strides = [1, 1]} : vector<1024x72xf32> to vector<64x72xf32>
    %97 = vector.extract_strided_slice %76 {offsets = [768, 0], sizes = [64, 72], strides = [1, 1]} : vector<1024x72xf32> to vector<64x72xf32>
    %98 = vector.extract_strided_slice %76 {offsets = [896, 0], sizes = [64, 72], strides = [1, 1]} : vector<1024x72xf32> to vector<64x72xf32>
    %99 = tpu.concatenate %91, %92, %93, %94, %95, %96, %97, %98 in 0 : vector<64x72xf32>, vector<64x72xf32>, vector<64x72xf32>, vector<64x72xf32>, vector<64x72xf32>, vector<64x72xf32>, vector<64x72xf32>, vector<64x72xf32> -> vector<512x72xf32>
    %c1_18 = arith.constant 1 : index
    %c0_19 = arith.constant 0 : index
    %c0_20 = arith.constant 0 : index
    %100 = vector.load %arg4[%c1_18, %c0_19, %c0_20] : memref<3x72x108xbf16, #tpu.memory_space<vmem>>, vector<1x72x108xbf16>
    %101 = vector.shape_cast %100 : vector<1x72x108xbf16> to vector<72x108xbf16>
    %102 = arith.truncf %99 : vector<512x72xf32> to vector<512x72xbf16>
    %cst_21 = arith.constant dense<0.000000e+00> : vector<512x108xf32>
    %103 = tpu.matmul %102, %101, %cst_21 {dimension_numbers = #tpu.dot_dimension_numbers<[1], [0], [0], [1], [0, 0, 1, 1], [], []>} : vector<512x72xbf16>, vector<72x108xbf16>, vector<512x108xf32> -> vector<512x108xf32>
    %104 = arith.addf %90, %103 : vector<512x108xf32>
    %105 = vector.extract_strided_slice %76 {offsets = [64, 0], sizes = [64, 72], strides = [1, 1]} : vector<1024x72xf32> to vector<64x72xf32>
    %106 = vector.extract_strided_slice %76 {offsets = [192, 0], sizes = [64, 72], strides = [1, 1]} : vector<1024x72xf32> to vector<64x72xf32>
    %107 = vector.extract_strided_slice %76 {offsets = [320, 0], sizes = [64, 72], strides = [1, 1]} : vector<1024x72xf32> to vector<64x72xf32>
    %108 = vector.extract_strided_slice %76 {offsets = [448, 0], sizes = [64, 72], strides = [1, 1]} : vector<1024x72xf32> to vector<64x72xf32>
    %109 = vector.extract_strided_slice %76 {offsets = [576, 0], sizes = [64, 72], strides = [1, 1]} : vector<1024x72xf32> to vector<64x72xf32>
    %110 = vector.extract_strided_slice %76 {offsets = [704, 0], sizes = [64, 72], strides = [1, 1]} : vector<1024x72xf32> to vector<64x72xf32>
    %111 = vector.extract_strided_slice %76 {offsets = [832, 0], sizes = [64, 72], strides = [1, 1]} : vector<1024x72xf32> to vector<64x72xf32>
    %112 = vector.extract_strided_slice %76 {offsets = [960, 0], sizes = [64, 72], strides = [1, 1]} : vector<1024x72xf32> to vector<64x72xf32>
    %113 = tpu.concatenate %105, %106, %107, %108, %109, %110, %111, %112 in 0 : vector<64x72xf32>, vector<64x72xf32>, vector<64x72xf32>, vector<64x72xf32>, vector<64x72xf32>, vector<64x72xf32>, vector<64x72xf32>, vector<64x72xf32> -> vector<512x72xf32>
    %c2_22 = arith.constant 2 : index
    %c0_23 = arith.constant 0 : index
    %c0_24 = arith.constant 0 : index
    %114 = vector.load %arg4[%c2_22, %c0_23, %c0_24] : memref<3x72x108xbf16, #tpu.memory_space<vmem>>, vector<1x72x108xbf16>
    %115 = vector.shape_cast %114 : vector<1x72x108xbf16> to vector<72x108xbf16>
    %116 = arith.truncf %113 : vector<512x72xf32> to vector<512x72xbf16>
    %cst_25 = arith.constant dense<0.000000e+00> : vector<512x108xf32>
    %117 = tpu.matmul %116, %115, %cst_25 {dimension_numbers = #tpu.dot_dimension_numbers<[1], [0], [0], [1], [0, 0, 1, 1], [], []>} : vector<512x72xbf16>, vector<72x108xbf16>, vector<512x108xf32> -> vector<512x108xf32>
    %118 = arith.addf %104, %117 : vector<512x108xf32>
    %119 = vector.broadcast %77 : vector<1x108xf32> to vector<512x108xf32>
    %120 = arith.addf %118, %119 : vector<512x108xf32>
    %cst_26 = arith.constant 0.000000e+00 : f32
    %121 = vector.broadcast %cst_26 : f32 to vector<512x108xf32>
    %122 = arith.maximumf %120, %121 : vector<512x108xf32>
    %c0_27 = arith.constant 0 : index
    %c0_28 = arith.constant 0 : index
    %123 = vector.load %arg7[%c0_27, %c0_28] : memref<1x162xf32, #tpu.memory_space<vmem>>, vector<1x162xf32>
    %cst_29 = arith.constant 0.000000e+00 : f32
    %124 = vector.broadcast %cst_29 : f32 to vector<64x108xf32>
    %125 = vector.extract_strided_slice %122 {offsets = [64, 0], sizes = [64, 108], strides = [1, 1]} : vector<512x108xf32> to vector<64x108xf32>
    %126 = vector.extract_strided_slice %122 {offsets = [192, 0], sizes = [64, 108], strides = [1, 1]} : vector<512x108xf32> to vector<64x108xf32>
    %127 = vector.extract_strided_slice %122 {offsets = [320, 0], sizes = [64, 108], strides = [1, 1]} : vector<512x108xf32> to vector<64x108xf32>
    %128 = tpu.concatenate %124, %125, %126, %127 in 0 : vector<64x108xf32>, vector<64x108xf32>, vector<64x108xf32>, vector<64x108xf32> -> vector<256x108xf32>
    %c0_30 = arith.constant 0 : index
    %c0_31 = arith.constant 0 : index
    %c0_32 = arith.constant 0 : index
    %129 = vector.load %arg6[%c0_30, %c0_31, %c0_32] : memref<3x108x162xbf16, #tpu.memory_space<vmem>>, vector<1x108x162xbf16>
    %130 = vector.shape_cast %129 : vector<1x108x162xbf16> to vector<108x162xbf16>
    %131 = arith.truncf %128 : vector<256x108xf32> to vector<256x108xbf16>
    %cst_33 = arith.constant dense<0.000000e+00> : vector<256x162xf32>
    %132 = tpu.matmul %131, %130, %cst_33 {dimension_numbers = #tpu.dot_dimension_numbers<[1], [0], [0], [1], [0, 0, 1, 1], [], []>} : vector<256x108xbf16>, vector<108x162xbf16>, vector<256x162xf32> -> vector<256x162xf32>
    %133 = vector.extract_strided_slice %122 {offsets = [0, 0], sizes = [64, 108], strides = [1, 1]} : vector<512x108xf32> to vector<64x108xf32>
    %134 = vector.extract_strided_slice %122 {offsets = [128, 0], sizes = [64, 108], strides = [1, 1]} : vector<512x108xf32> to vector<64x108xf32>
    %135 = vector.extract_strided_slice %122 {offsets = [256, 0], sizes = [64, 108], strides = [1, 1]} : vector<512x108xf32> to vector<64x108xf32>
    %136 = vector.extract_strided_slice %122 {offsets = [384, 0], sizes = [64, 108], strides = [1, 1]} : vector<512x108xf32> to vector<64x108xf32>
    %137 = tpu.concatenate %133, %134, %135, %136 in 0 : vector<64x108xf32>, vector<64x108xf32>, vector<64x108xf32>, vector<64x108xf32> -> vector<256x108xf32>
    %c1_34 = arith.constant 1 : index
    %c0_35 = arith.constant 0 : index
    %c0_36 = arith.constant 0 : index
    %138 = vector.load %arg6[%c1_34, %c0_35, %c0_36] : memref<3x108x162xbf16, #tpu.memory_space<vmem>>, vector<1x108x162xbf16>
    %139 = vector.shape_cast %138 : vector<1x108x162xbf16> to vector<108x162xbf16>
    %140 = arith.truncf %137 : vector<256x108xf32> to vector<256x108xbf16>
    %cst_37 = arith.constant dense<0.000000e+00> : vector<256x162xf32>
    %141 = tpu.matmul %140, %139, %cst_37 {dimension_numbers = #tpu.dot_dimension_numbers<[1], [0], [0], [1], [0, 0, 1, 1], [], []>} : vector<256x108xbf16>, vector<108x162xbf16>, vector<256x162xf32> -> vector<256x162xf32>
    %142 = arith.addf %132, %141 : vector<256x162xf32>
    %143 = vector.extract_strided_slice %122 {offsets = [64, 0], sizes = [64, 108], strides = [1, 1]} : vector<512x108xf32> to vector<64x108xf32>
    %144 = vector.extract_strided_slice %122 {offsets = [192, 0], sizes = [64, 108], strides = [1, 1]} : vector<512x108xf32> to vector<64x108xf32>
    %145 = vector.extract_strided_slice %122 {offsets = [320, 0], sizes = [64, 108], strides = [1, 1]} : vector<512x108xf32> to vector<64x108xf32>
    %146 = vector.extract_strided_slice %122 {offsets = [448, 0], sizes = [64, 108], strides = [1, 1]} : vector<512x108xf32> to vector<64x108xf32>
    %147 = tpu.concatenate %143, %144, %145, %146 in 0 : vector<64x108xf32>, vector<64x108xf32>, vector<64x108xf32>, vector<64x108xf32> -> vector<256x108xf32>
    %c2_38 = arith.constant 2 : index
    %c0_39 = arith.constant 0 : index
    %c0_40 = arith.constant 0 : index
    %148 = vector.load %arg6[%c2_38, %c0_39, %c0_40] : memref<3x108x162xbf16, #tpu.memory_space<vmem>>, vector<1x108x162xbf16>
    %149 = vector.shape_cast %148 : vector<1x108x162xbf16> to vector<108x162xbf16>
    %150 = arith.truncf %147 : vector<256x108xf32> to vector<256x108xbf16>
    %cst_41 = arith.constant dense<0.000000e+00> : vector<256x162xf32>
    %151 = tpu.matmul %150, %149, %cst_41 {dimension_numbers = #tpu.dot_dimension_numbers<[1], [0], [0], [1], [0, 0, 1, 1], [], []>} : vector<256x108xbf16>, vector<108x162xbf16>, vector<256x162xf32> -> vector<256x162xf32>
    %152 = arith.addf %142, %151 : vector<256x162xf32>
    %153 = vector.broadcast %123 : vector<1x162xf32> to vector<256x162xf32>
    %154 = arith.addf %152, %153 : vector<256x162xf32>
    %cst_42 = arith.constant 0.000000e+00 : f32
    %155 = vector.broadcast %cst_42 : f32 to vector<256x162xf32>
    %156 = arith.maximumf %154, %155 : vector<256x162xf32>
    %c0_43 = arith.constant 0 : index
    %c0_44 = arith.constant 0 : index
    %157 = vector.load %arg9[%c0_43, %c0_44] : memref<1x243xf32, #tpu.memory_space<vmem>>, vector<1x243xf32>
    %cst_45 = arith.constant 0.000000e+00 : f32
    %158 = vector.broadcast %cst_45 : f32 to vector<64x162xf32>
    %159 = vector.extract_strided_slice %156 {offsets = [64, 0], sizes = [64, 162], strides = [1, 1]} : vector<256x162xf32> to vector<64x162xf32>
    %160 = tpu.concatenate %158, %159 in 0 : vector<64x162xf32>, vector<64x162xf32> -> vector<128x162xf32>
    %c0_46 = arith.constant 0 : index
    %c0_47 = arith.constant 0 : index
    %c0_48 = arith.constant 0 : index
    %161 = vector.load %arg8[%c0_46, %c0_47, %c0_48] : memref<3x162x243xbf16, #tpu.memory_space<vmem>>, vector<1x162x243xbf16>
    %162 = vector.shape_cast %161 : vector<1x162x243xbf16> to vector<162x243xbf16>
    %163 = arith.truncf %160 : vector<128x162xf32> to vector<128x162xbf16>
    %cst_49 = arith.constant dense<0.000000e+00> : vector<128x243xf32>
    %164 = tpu.matmul %163, %162, %cst_49 {dimension_numbers = #tpu.dot_dimension_numbers<[1], [0], [0], [1], [0, 0, 1, 1], [], []>} : vector<128x162xbf16>, vector<162x243xbf16>, vector<128x243xf32> -> vector<128x243xf32>
    %165 = vector.extract_strided_slice %156 {offsets = [0, 0], sizes = [64, 162], strides = [1, 1]} : vector<256x162xf32> to vector<64x162xf32>
    %166 = vector.extract_strided_slice %156 {offsets = [128, 0], sizes = [64, 162], strides = [1, 1]} : vector<256x162xf32> to vector<64x162xf32>
    %167 = tpu.concatenate %165, %166 in 0 : vector<64x162xf32>, vector<64x162xf32> -> vector<128x162xf32>
    %c1_50 = arith.constant 1 : index
    %c0_51 = arith.constant 0 : index
    %c0_52 = arith.constant 0 : index
    %168 = vector.load %arg8[%c1_50, %c0_51, %c0_52] : memref<3x162x243xbf16, #tpu.memory_space<vmem>>, vector<1x162x243xbf16>
    %169 = vector.shape_cast %168 : vector<1x162x243xbf16> to vector<162x243xbf16>
    %170 = arith.truncf %167 : vector<128x162xf32> to vector<128x162xbf16>
    %cst_53 = arith.constant dense<0.000000e+00> : vector<128x243xf32>
    %171 = tpu.matmul %170, %169, %cst_53 {dimension_numbers = #tpu.dot_dimension_numbers<[1], [0], [0], [1], [0, 0, 1, 1], [], []>} : vector<128x162xbf16>, vector<162x243xbf16>, vector<128x243xf32> -> vector<128x243xf32>
    %172 = arith.addf %164, %171 : vector<128x243xf32>
    %173 = vector.extract_strided_slice %156 {offsets = [64, 0], sizes = [64, 162], strides = [1, 1]} : vector<256x162xf32> to vector<64x162xf32>
    %174 = vector.extract_strided_slice %156 {offsets = [192, 0], sizes = [64, 162], strides = [1, 1]} : vector<256x162xf32> to vector<64x162xf32>
    %175 = tpu.concatenate %173, %174 in 0 : vector<64x162xf32>, vector<64x162xf32> -> vector<128x162xf32>
    %c2_54 = arith.constant 2 : index
    %c0_55 = arith.constant 0 : index
    %c0_56 = arith.constant 0 : index
    %176 = vector.load %arg8[%c2_54, %c0_55, %c0_56] : memref<3x162x243xbf16, #tpu.memory_space<vmem>>, vector<1x162x243xbf16>
    %177 = vector.shape_cast %176 : vector<1x162x243xbf16> to vector<162x243xbf16>
    %178 = arith.truncf %175 : vector<128x162xf32> to vector<128x162xbf16>
    %cst_57 = arith.constant dense<0.000000e+00> : vector<128x243xf32>
    %179 = tpu.matmul %178, %177, %cst_57 {dimension_numbers = #tpu.dot_dimension_numbers<[1], [0], [0], [1], [0, 0, 1, 1], [], []>} : vector<128x162xbf16>, vector<162x243xbf16>, vector<128x243xf32> -> vector<128x243xf32>
    %180 = arith.addf %172, %179 : vector<128x243xf32>
    %181 = vector.broadcast %157 : vector<1x243xf32> to vector<128x243xf32>
    %182 = arith.addf %180, %181 : vector<128x243xf32>
    %cst_58 = arith.constant 0.000000e+00 : f32
    %183 = vector.broadcast %cst_58 : f32 to vector<128x243xf32>
    %184 = arith.maximumf %182, %183 : vector<128x243xf32>
    %c0_59 = arith.constant 0 : index
    %c0_60 = arith.constant 0 : index
    %185 = vector.load %arg11[%c0_59, %c0_60] : memref<1x256xf32, #tpu.memory_space<vmem>>, vector<1x256xf32>
    %186 = vector.extract_strided_slice %184 {offsets = [0, 0], sizes = [64, 243], strides = [1, 1]} : vector<128x243xf32> to vector<64x243xf32>
    %c1_61 = arith.constant 1 : index
    %c0_62 = arith.constant 0 : index
    %c0_63 = arith.constant 0 : index
    %187 = vector.load %arg10[%c1_61, %c0_62, %c0_63] : memref<3x243x256xbf16, #tpu.memory_space<vmem>>, vector<1x243x256xbf16>
    %188 = vector.shape_cast %187 : vector<1x243x256xbf16> to vector<243x256xbf16>
    %189 = arith.truncf %186 : vector<64x243xf32> to vector<64x243xbf16>
    %cst_64 = arith.constant dense<0.000000e+00> : vector<64x256xf32>
    %190 = tpu.matmul %189, %188, %cst_64 {dimension_numbers = #tpu.dot_dimension_numbers<[1], [0], [0], [1], [0, 0, 1, 1], [], []>} : vector<64x243xbf16>, vector<243x256xbf16>, vector<64x256xf32> -> vector<64x256xf32>
    %191 = vector.extract_strided_slice %184 {offsets = [64, 0], sizes = [64, 243], strides = [1, 1]} : vector<128x243xf32> to vector<64x243xf32>
    %c2_65 = arith.constant 2 : index
    %c0_66 = arith.constant 0 : index
    %c0_67 = arith.constant 0 : index
    %192 = vector.load %arg10[%c2_65, %c0_66, %c0_67] : memref<3x243x256xbf16, #tpu.memory_space<vmem>>, vector<1x243x256xbf16>
    %193 = vector.shape_cast %192 : vector<1x243x256xbf16> to vector<243x256xbf16>
    %194 = arith.truncf %191 : vector<64x243xf32> to vector<64x243xbf16>
    %cst_68 = arith.constant dense<0.000000e+00> : vector<64x256xf32>
    %195 = tpu.matmul %194, %193, %cst_68 {dimension_numbers = #tpu.dot_dimension_numbers<[1], [0], [0], [1], [0, 0, 1, 1], [], []>} : vector<64x243xbf16>, vector<243x256xbf16>, vector<64x256xf32> -> vector<64x256xf32>
    %196 = arith.addf %190, %195 : vector<64x256xf32>
    %197 = vector.broadcast %185 : vector<1x256xf32> to vector<64x256xf32>
    %198 = arith.addf %196, %197 : vector<64x256xf32>
    %cst_69 = arith.constant 0.000000e+00 : f32
    %199 = vector.broadcast %cst_69 : f32 to vector<64x256xf32>
    %200 = arith.maximumf %198, %199 : vector<64x256xf32>
    %c0_70 = arith.constant 0 : index
    %c0_71 = arith.constant 0 : index
    %201 = vector.load %arg1[%c0_70, %c0_71] : memref<256x64xbf16, #tpu.memory_space<vmem>>, vector<256x64xbf16>
    %202 = arith.truncf %200 : vector<64x256xf32> to vector<64x256xbf16>
    %cst_72 = arith.constant dense<0.000000e+00> : vector<256x256xf32>
    %203 = tpu.matmul %201, %202, %cst_72 {dimension_numbers = #tpu.dot_dimension_numbers<[1], [0], [0], [1], [0, 0, 1, 1], [], []>} : vector<256x64xbf16>, vector<64x256xbf16>, vector<256x256xf32> -> vector<256x256xf32>
    %c0_73 = arith.constant 0 : index
    %c0_74 = arith.constant 0 : index
    %204 = vector.load %arg13[%c0_73, %c0_74] : memref<1x256xf32, #tpu.memory_space<vmem>>, vector<1x256xf32>
    %cst_75 = arith.constant 0.000000e+00 : f32
    %205 = vector.broadcast %cst_75 : f32 to vector<8x256xf32>
    %206 = vector.extract_strided_slice %203 {offsets = [8, 0], sizes = [8, 256], strides = [1, 1]} : vector<256x256xf32> to vector<8x256xf32>
    %207 = vector.extract_strided_slice %203 {offsets = [24, 0], sizes = [8, 256], strides = [1, 1]} : vector<256x256xf32> to vector<8x256xf32>
    %208 = vector.extract_strided_slice %203 {offsets = [40, 0], sizes = [8, 256], strides = [1, 1]} : vector<256x256xf32> to vector<8x256xf32>
    %209 = vector.extract_strided_slice %203 {offsets = [56, 0], sizes = [8, 256], strides = [1, 1]} : vector<256x256xf32> to vector<8x256xf32>
    %210 = vector.extract_strided_slice %203 {offsets = [72, 0], sizes = [8, 256], strides = [1, 1]} : vector<256x256xf32> to vector<8x256xf32>
    %211 = vector.extract_strided_slice %203 {offsets = [88, 0], sizes = [8, 256], strides = [1, 1]} : vector<256x256xf32> to vector<8x256xf32>
    %212 = vector.extract_strided_slice %203 {offsets = [104, 0], sizes = [8, 256], strides = [1, 1]} : vector<256x256xf32> to vector<8x256xf32>
    %213 = vector.extract_strided_slice %203 {offsets = [120, 0], sizes = [8, 256], strides = [1, 1]} : vector<256x256xf32> to vector<8x256xf32>
    %214 = vector.extract_strided_slice %203 {offsets = [136, 0], sizes = [8, 256], strides = [1, 1]} : vector<256x256xf32> to vector<8x256xf32>
    %215 = vector.extract_strided_slice %203 {offsets = [152, 0], sizes = [8, 256], strides = [1, 1]} : vector<256x256xf32> to vector<8x256xf32>
    %216 = vector.extract_strided_slice %203 {offsets = [168, 0], sizes = [8, 256], strides = [1, 1]} : vector<256x256xf32> to vector<8x256xf32>
    %217 = vector.extract_strided_slice %203 {offsets = [184, 0], sizes = [8, 256], strides = [1, 1]} : vector<256x256xf32> to vector<8x256xf32>
    %218 = vector.extract_strided_slice %203 {offsets = [200, 0], sizes = [8, 256], strides = [1, 1]} : vector<256x256xf32> to vector<8x256xf32>
    %219 = vector.extract_strided_slice %203 {offsets = [216, 0], sizes = [8, 256], strides = [1, 1]} : vector<256x256xf32> to vector<8x256xf32>
    %220 = vector.extract_strided_slice %203 {offsets = [232, 0], sizes = [8, 256], strides = [1, 1]} : vector<256x256xf32> to vector<8x256xf32>
    %221 = tpu.concatenate %205, %206, %207, %208, %209, %210, %211, %212, %213, %214, %215, %216, %217, %218, %219, %220 in 0 : vector<8x256xf32>, vector<8x256xf32>, vector<8x256xf32>, vector<8x256xf32>, vector<8x256xf32>, vector<8x256xf32>, vector<8x256xf32>, vector<8x256xf32>, vector<8x256xf32>, vector<8x256xf32>, vector<8x256xf32>, vector<8x256xf32>, vector<8x256xf32>, vector<8x256xf32>, vector<8x256xf32>, vector<8x256xf32> -> vector<128x256xf32>
    %c0_76 = arith.constant 0 : index
    %c0_77 = arith.constant 0 : index
    %c0_78 = arith.constant 0 : index
    %222 = vector.load %arg12[%c0_76, %c0_77, %c0_78] : memref<3x256x256xbf16, #tpu.memory_space<vmem>>, vector<1x256x256xbf16>
    %223 = vector.shape_cast %222 : vector<1x256x256xbf16> to vector<256x256xbf16>
    %224 = arith.truncf %221 : vector<128x256xf32> to vector<128x256xbf16>
    %cst_79 = arith.constant dense<0.000000e+00> : vector<128x256xf32>
    %225 = tpu.matmul %224, %223, %cst_79 {dimension_numbers = #tpu.dot_dimension_numbers<[1], [0], [0], [1], [0, 0, 1, 1], [], []>} : vector<128x256xbf16>, vector<256x256xbf16>, vector<128x256xf32> -> vector<128x256xf32>
    %226 = vector.extract_strided_slice %203 {offsets = [0, 0], sizes = [8, 256], strides = [1, 1]} : vector<256x256xf32> to vector<8x256xf32>
    %227 = vector.extract_strided_slice %203 {offsets = [16, 0], sizes = [8, 256], strides = [1, 1]} : vector<256x256xf32> to vector<8x256xf32>
    %228 = vector.extract_strided_slice %203 {offsets = [32, 0], sizes = [8, 256], strides = [1, 1]} : vector<256x256xf32> to vector<8x256xf32>
    %229 = vector.extract_strided_slice %203 {offsets = [48, 0], sizes = [8, 256], strides = [1, 1]} : vector<256x256xf32> to vector<8x256xf32>
    %230 = vector.extract_strided_slice %203 {offsets = [64, 0], sizes = [8, 256], strides = [1, 1]} : vector<256x256xf32> to vector<8x256xf32>
    %231 = vector.extract_strided_slice %203 {offsets = [80, 0], sizes = [8, 256], strides = [1, 1]} : vector<256x256xf32> to vector<8x256xf32>
    %232 = vector.extract_strided_slice %203 {offsets = [96, 0], sizes = [8, 256], strides = [1, 1]} : vector<256x256xf32> to vector<8x256xf32>
    %233 = vector.extract_strided_slice %203 {offsets = [112, 0], sizes = [8, 256], strides = [1, 1]} : vector<256x256xf32> to vector<8x256xf32>
    %234 = vector.extract_strided_slice %203 {offsets = [128, 0], sizes = [8, 256], strides = [1, 1]} : vector<256x256xf32> to vector<8x256xf32>
    %235 = vector.extract_strided_slice %203 {offsets = [144, 0], sizes = [8, 256], strides = [1, 1]} : vector<256x256xf32> to vector<8x256xf32>
    %236 = vector.extract_strided_slice %203 {offsets = [160, 0], sizes = [8, 256], strides = [1, 1]} : vector<256x256xf32> to vector<8x256xf32>
    %237 = vector.extract_strided_slice %203 {offsets = [176, 0], sizes = [8, 256], strides = [1, 1]} : vector<256x256xf32> to vector<8x256xf32>
    %238 = vector.extract_strided_slice %203 {offsets = [192, 0], sizes = [8, 256], strides = [1, 1]} : vector<256x256xf32> to vector<8x256xf32>
    %239 = vector.extract_strided_slice %203 {offsets = [208, 0], sizes = [8, 256], strides = [1, 1]} : vector<256x256xf32> to vector<8x256xf32>
    %240 = vector.extract_strided_slice %203 {offsets = [224, 0], sizes = [8, 256], strides = [1, 1]} : vector<256x256xf32> to vector<8x256xf32>
    %241 = vector.extract_strided_slice %203 {offsets = [240, 0], sizes = [8, 256], strides = [1, 1]} : vector<256x256xf32> to vector<8x256xf32>
    %242 = tpu.concatenate %226, %227, %228, %229, %230, %231, %232, %233, %234, %235, %236, %237, %238, %239, %240, %241 in 0 : vector<8x256xf32>, vector<8x256xf32>, vector<8x256xf32>, vector<8x256xf32>, vector<8x256xf32>, vector<8x256xf32>, vector<8x256xf32>, vector<8x256xf32>, vector<8x256xf32>, vector<8x256xf32>, vector<8x256xf32>, vector<8x256xf32>, vector<8x256xf32>, vector<8x256xf32>, vector<8x256xf32>, vector<8x256xf32> -> vector<128x256xf32>
    %c1_80 = arith.constant 1 : index
    %c0_81 = arith.constant 0 : index
    %c0_82 = arith.constant 0 : index
    %243 = vector.load %arg12[%c1_80, %c0_81, %c0_82] : memref<3x256x256xbf16, #tpu.memory_space<vmem>>, vector<1x256x256xbf16>
    %244 = vector.shape_cast %243 : vector<1x256x256xbf16> to vector<256x256xbf16>
    %245 = arith.truncf %242 : vector<128x256xf32> to vector<128x256xbf16>
    %cst_83 = arith.constant dense<0.000000e+00> : vector<128x256xf32>
    %246 = tpu.matmul %245, %244, %cst_83 {dimension_numbers = #tpu.dot_dimension_numbers<[1], [0], [0], [1], [0, 0, 1, 1], [], []>} : vector<128x256xbf16>, vector<256x256xbf16>, vector<128x256xf32> -> vector<128x256xf32>
    %247 = arith.addf %225, %246 : vector<128x256xf32>
    %248 = vector.extract_strided_slice %203 {offsets = [8, 0], sizes = [8, 256], strides = [1, 1]} : vector<256x256xf32> to vector<8x256xf32>
    %249 = vector.extract_strided_slice %203 {offsets = [24, 0], sizes = [8, 256], strides = [1, 1]} : vector<256x256xf32> to vector<8x256xf32>
    %250 = vector.extract_strided_slice %203 {offsets = [40, 0], sizes = [8, 256], strides = [1, 1]} : vector<256x256xf32> to vector<8x256xf32>
    %251 = vector.extract_strided_slice %203 {offsets = [56, 0], sizes = [8, 256], strides = [1, 1]} : vector<256x256xf32> to vector<8x256xf32>
    %252 = vector.extract_strided_slice %203 {offsets = [72, 0], sizes = [8, 256], strides = [1, 1]} : vector<256x256xf32> to vector<8x256xf32>
    %253 = vector.extract_strided_slice %203 {offsets = [88, 0], sizes = [8, 256], strides = [1, 1]} : vector<256x256xf32> to vector<8x256xf32>
    %254 = vector.extract_strided_slice %203 {offsets = [104, 0], sizes = [8, 256], strides = [1, 1]} : vector<256x256xf32> to vector<8x256xf32>
    %255 = vector.extract_strided_slice %203 {offsets = [120, 0], sizes = [8, 256], strides = [1, 1]} : vector<256x256xf32> to vector<8x256xf32>
    %256 = vector.extract_strided_slice %203 {offsets = [136, 0], sizes = [8, 256], strides = [1, 1]} : vector<256x256xf32> to vector<8x256xf32>
    %257 = vector.extract_strided_slice %203 {offsets = [152, 0], sizes = [8, 256], strides = [1, 1]} : vector<256x256xf32> to vector<8x256xf32>
    %258 = vector.extract_strided_slice %203 {offsets = [168, 0], sizes = [8, 256], strides = [1, 1]} : vector<256x256xf32> to vector<8x256xf32>
    %259 = vector.extract_strided_slice %203 {offsets = [184, 0], sizes = [8, 256], strides = [1, 1]} : vector<256x256xf32> to vector<8x256xf32>
    %260 = vector.extract_strided_slice %203 {offsets = [200, 0], sizes = [8, 256], strides = [1, 1]} : vector<256x256xf32> to vector<8x256xf32>
    %261 = vector.extract_strided_slice %203 {offsets = [216, 0], sizes = [8, 256], strides = [1, 1]} : vector<256x256xf32> to vector<8x256xf32>
    %262 = vector.extract_strided_slice %203 {offsets = [232, 0], sizes = [8, 256], strides = [1, 1]} : vector<256x256xf32> to vector<8x256xf32>
    %263 = vector.extract_strided_slice %203 {offsets = [248, 0], sizes = [8, 256], strides = [1, 1]} : vector<256x256xf32> to vector<8x256xf32>
    %264 = tpu.concatenate %248, %249, %250, %251, %252, %253, %254, %255, %256, %257, %258, %259, %260, %261, %262, %263 in 0 : vector<8x256xf32>, vector<8x256xf32>, vector<8x256xf32>, vector<8x256xf32>, vector<8x256xf32>, vector<8x256xf32>, vector<8x256xf32>, vector<8x256xf32>, vector<8x256xf32>, vector<8x256xf32>, vector<8x256xf32>, vector<8x256xf32>, vector<8x256xf32>, vector<8x256xf32>, vector<8x256xf32>, vector<8x256xf32> -> vector<128x256xf32>
    %c2_84 = arith.constant 2 : index
    %c0_85 = arith.constant 0 : index
    %c0_86 = arith.constant 0 : index
    %265 = vector.load %arg12[%c2_84, %c0_85, %c0_86] : memref<3x256x256xbf16, #tpu.memory_space<vmem>>, vector<1x256x256xbf16>
    %266 = vector.shape_cast %265 : vector<1x256x256xbf16> to vector<256x256xbf16>
    %267 = arith.truncf %264 : vector<128x256xf32> to vector<128x256xbf16>
    %cst_87 = arith.constant dense<0.000000e+00> : vector<128x256xf32>
    %268 = tpu.matmul %267, %266, %cst_87 {dimension_numbers = #tpu.dot_dimension_numbers<[1], [0], [0], [1], [0, 0, 1, 1], [], []>} : vector<128x256xbf16>, vector<256x256xbf16>, vector<128x256xf32> -> vector<128x256xf32>
    %269 = arith.addf %247, %268 : vector<128x256xf32>
    %270 = vector.broadcast %204 : vector<1x256xf32> to vector<128x256xf32>
    %271 = arith.addf %269, %270 : vector<128x256xf32>
    %cst_88 = arith.constant 0.000000e+00 : f32
    %272 = vector.broadcast %cst_88 : f32 to vector<128x256xf32>
    %273 = arith.maximumf %271, %272 : vector<128x256xf32>
    %c0_89 = arith.constant 0 : index
    %c0_90 = arith.constant 0 : index
    %274 = vector.load %arg15[%c0_89, %c0_90] : memref<1x256xf32, #tpu.memory_space<vmem>>, vector<1x256xf32>
    %cst_91 = arith.constant 0.000000e+00 : f32
    %275 = vector.broadcast %cst_91 : f32 to vector<8x256xf32>
    %276 = vector.extract_strided_slice %273 {offsets = [8, 0], sizes = [8, 256], strides = [1, 1]} : vector<128x256xf32> to vector<8x256xf32>
    %277 = vector.extract_strided_slice %273 {offsets = [24, 0], sizes = [8, 256], strides = [1, 1]} : vector<128x256xf32> to vector<8x256xf32>
    %278 = vector.extract_strided_slice %273 {offsets = [40, 0], sizes = [8, 256], strides = [1, 1]} : vector<128x256xf32> to vector<8x256xf32>
    %279 = vector.extract_strided_slice %273 {offsets = [56, 0], sizes = [8, 256], strides = [1, 1]} : vector<128x256xf32> to vector<8x256xf32>
    %280 = vector.extract_strided_slice %273 {offsets = [72, 0], sizes = [8, 256], strides = [1, 1]} : vector<128x256xf32> to vector<8x256xf32>
    %281 = vector.extract_strided_slice %273 {offsets = [88, 0], sizes = [8, 256], strides = [1, 1]} : vector<128x256xf32> to vector<8x256xf32>
    %282 = vector.extract_strided_slice %273 {offsets = [104, 0], sizes = [8, 256], strides = [1, 1]} : vector<128x256xf32> to vector<8x256xf32>
    %283 = tpu.concatenate %275, %276, %277, %278, %279, %280, %281, %282 in 0 : vector<8x256xf32>, vector<8x256xf32>, vector<8x256xf32>, vector<8x256xf32>, vector<8x256xf32>, vector<8x256xf32>, vector<8x256xf32>, vector<8x256xf32> -> vector<64x256xf32>
    %c0_92 = arith.constant 0 : index
    %c0_93 = arith.constant 0 : index
    %c0_94 = arith.constant 0 : index
    %284 = vector.load %arg14[%c0_92, %c0_93, %c0_94] : memref<3x256x256xbf16, #tpu.memory_space<vmem>>, vector<1x256x256xbf16>
    %285 = vector.shape_cast %284 : vector<1x256x256xbf16> to vector<256x256xbf16>
    %286 = arith.truncf %283 : vector<64x256xf32> to vector<64x256xbf16>
    %cst_95 = arith.constant dense<0.000000e+00> : vector<64x256xf32>
    %287 = tpu.matmul %286, %285, %cst_95 {dimension_numbers = #tpu.dot_dimension_numbers<[1], [0], [0], [1], [0, 0, 1, 1], [], []>} : vector<64x256xbf16>, vector<256x256xbf16>, vector<64x256xf32> -> vector<64x256xf32>
    %288 = vector.extract_strided_slice %273 {offsets = [0, 0], sizes = [8, 256], strides = [1, 1]} : vector<128x256xf32> to vector<8x256xf32>
    %289 = vector.extract_strided_slice %273 {offsets = [16, 0], sizes = [8, 256], strides = [1, 1]} : vector<128x256xf32> to vector<8x256xf32>
    %290 = vector.extract_strided_slice %273 {offsets = [32, 0], sizes = [8, 256], strides = [1, 1]} : vector<128x256xf32> to vector<8x256xf32>
    %291 = vector.extract_strided_slice %273 {offsets = [48, 0], sizes = [8, 256], strides = [1, 1]} : vector<128x256xf32> to vector<8x256xf32>
    %292 = vector.extract_strided_slice %273 {offsets = [64, 0], sizes = [8, 256], strides = [1, 1]} : vector<128x256xf32> to vector<8x256xf32>
    %293 = vector.extract_strided_slice %273 {offsets = [80, 0], sizes = [8, 256], strides = [1, 1]} : vector<128x256xf32> to vector<8x256xf32>
    %294 = vector.extract_strided_slice %273 {offsets = [96, 0], sizes = [8, 256], strides = [1, 1]} : vector<128x256xf32> to vector<8x256xf32>
    %295 = vector.extract_strided_slice %273 {offsets = [112, 0], sizes = [8, 256], strides = [1, 1]} : vector<128x256xf32> to vector<8x256xf32>
    %296 = tpu.concatenate %288, %289, %290, %291, %292, %293, %294, %295 in 0 : vector<8x256xf32>, vector<8x256xf32>, vector<8x256xf32>, vector<8x256xf32>, vector<8x256xf32>, vector<8x256xf32>, vector<8x256xf32>, vector<8x256xf32> -> vector<64x256xf32>
    %c1_96 = arith.constant 1 : index
    %c0_97 = arith.constant 0 : index
    %c0_98 = arith.constant 0 : index
    %297 = vector.load %arg14[%c1_96, %c0_97, %c0_98] : memref<3x256x256xbf16, #tpu.memory_space<vmem>>, vector<1x256x256xbf16>
    %298 = vector.shape_cast %297 : vector<1x256x256xbf16> to vector<256x256xbf16>
    %299 = arith.truncf %296 : vector<64x256xf32> to vector<64x256xbf16>
    %cst_99 = arith.constant dense<0.000000e+00> : vector<64x256xf32>
    %300 = tpu.matmul %299, %298, %cst_99 {dimension_numbers = #tpu.dot_dimension_numbers<[1], [0], [0], [1], [0, 0, 1, 1], [], []>} : vector<64x256xbf16>, vector<256x256xbf16>, vector<64x256xf32> -> vector<64x256xf32>
    %301 = arith.addf %287, %300 : vector<64x256xf32>
    %302 = vector.extract_strided_slice %273 {offsets = [8, 0], sizes = [8, 256], strides = [1, 1]} : vector<128x256xf32> to vector<8x256xf32>
    %303 = vector.extract_strided_slice %273 {offsets = [24, 0], sizes = [8, 256], strides = [1, 1]} : vector<128x256xf32> to vector<8x256xf32>
    %304 = vector.extract_strided_slice %273 {offsets = [40, 0], sizes = [8, 256], strides = [1, 1]} : vector<128x256xf32> to vector<8x256xf32>
    %305 = vector.extract_strided_slice %273 {offsets = [56, 0], sizes = [8, 256], strides = [1, 1]} : vector<128x256xf32> to vector<8x256xf32>
    %306 = vector.extract_strided_slice %273 {offsets = [72, 0], sizes = [8, 256], strides = [1, 1]} : vector<128x256xf32> to vector<8x256xf32>
    %307 = vector.extract_strided_slice %273 {offsets = [88, 0], sizes = [8, 256], strides = [1, 1]} : vector<128x256xf32> to vector<8x256xf32>
    %308 = vector.extract_strided_slice %273 {offsets = [104, 0], sizes = [8, 256], strides = [1, 1]} : vector<128x256xf32> to vector<8x256xf32>
    %309 = vector.extract_strided_slice %273 {offsets = [120, 0], sizes = [8, 256], strides = [1, 1]} : vector<128x256xf32> to vector<8x256xf32>
    %310 = tpu.concatenate %302, %303, %304, %305, %306, %307, %308, %309 in 0 : vector<8x256xf32>, vector<8x256xf32>, vector<8x256xf32>, vector<8x256xf32>, vector<8x256xf32>, vector<8x256xf32>, vector<8x256xf32>, vector<8x256xf32> -> vector<64x256xf32>
    %c2_100 = arith.constant 2 : index
    %c0_101 = arith.constant 0 : index
    %c0_102 = arith.constant 0 : index
    %311 = vector.load %arg14[%c2_100, %c0_101, %c0_102] : memref<3x256x256xbf16, #tpu.memory_space<vmem>>, vector<1x256x256xbf16>
    %312 = vector.shape_cast %311 : vector<1x256x256xbf16> to vector<256x256xbf16>
    %313 = arith.truncf %310 : vector<64x256xf32> to vector<64x256xbf16>
    %cst_103 = arith.constant dense<0.000000e+00> : vector<64x256xf32>
    %314 = tpu.matmul %313, %312, %cst_103 {dimension_numbers = #tpu.dot_dimension_numbers<[1], [0], [0], [1], [0, 0, 1, 1], [], []>} : vector<64x256xbf16>, vector<256x256xbf16>, vector<64x256xf32> -> vector<64x256xf32>
    %315 = arith.addf %301, %314 : vector<64x256xf32>
    %316 = vector.broadcast %274 : vector<1x256xf32> to vector<64x256xf32>
    %317 = arith.addf %315, %316 : vector<64x256xf32>
    %cst_104 = arith.constant 0.000000e+00 : f32
    %318 = vector.broadcast %cst_104 : f32 to vector<64x256xf32>
    %319 = arith.maximumf %317, %318 : vector<64x256xf32>
    %c0_105 = arith.constant 0 : index
    %c0_106 = arith.constant 0 : index
    %320 = vector.load %arg17[%c0_105, %c0_106] : memref<1x256xf32, #tpu.memory_space<vmem>>, vector<1x256xf32>
    %cst_107 = arith.constant 0.000000e+00 : f32
    %321 = vector.broadcast %cst_107 : f32 to vector<8x256xf32>
    %322 = vector.extract_strided_slice %319 {offsets = [8, 0], sizes = [8, 256], strides = [1, 1]} : vector<64x256xf32> to vector<8x256xf32>
    %323 = vector.extract_strided_slice %319 {offsets = [24, 0], sizes = [8, 256], strides = [1, 1]} : vector<64x256xf32> to vector<8x256xf32>
    %324 = vector.extract_strided_slice %319 {offsets = [40, 0], sizes = [8, 256], strides = [1, 1]} : vector<64x256xf32> to vector<8x256xf32>
    %325 = tpu.concatenate %321, %322, %323, %324 in 0 : vector<8x256xf32>, vector<8x256xf32>, vector<8x256xf32>, vector<8x256xf32> -> vector<32x256xf32>
    %c0_108 = arith.constant 0 : index
    %c0_109 = arith.constant 0 : index
    %c0_110 = arith.constant 0 : index
    %326 = vector.load %arg16[%c0_108, %c0_109, %c0_110] : memref<3x256x256xbf16, #tpu.memory_space<vmem>>, vector<1x256x256xbf16>
    %327 = vector.shape_cast %326 : vector<1x256x256xbf16> to vector<256x256xbf16>
    %328 = arith.truncf %325 : vector<32x256xf32> to vector<32x256xbf16>
    %cst_111 = arith.constant dense<0.000000e+00> : vector<32x256xf32>
    %329 = tpu.matmul %328, %327, %cst_111 {dimension_numbers = #tpu.dot_dimension_numbers<[1], [0], [0], [1], [0, 0, 1, 1], [], []>} : vector<32x256xbf16>, vector<256x256xbf16>, vector<32x256xf32> -> vector<32x256xf32>
    %330 = vector.extract_strided_slice %319 {offsets = [0, 0], sizes = [8, 256], strides = [1, 1]} : vector<64x256xf32> to vector<8x256xf32>
    %331 = vector.extract_strided_slice %319 {offsets = [16, 0], sizes = [8, 256], strides = [1, 1]} : vector<64x256xf32> to vector<8x256xf32>
    %332 = vector.extract_strided_slice %319 {offsets = [32, 0], sizes = [8, 256], strides = [1, 1]} : vector<64x256xf32> to vector<8x256xf32>
    %333 = vector.extract_strided_slice %319 {offsets = [48, 0], sizes = [8, 256], strides = [1, 1]} : vector<64x256xf32> to vector<8x256xf32>
    %334 = tpu.concatenate %330, %331, %332, %333 in 0 : vector<8x256xf32>, vector<8x256xf32>, vector<8x256xf32>, vector<8x256xf32> -> vector<32x256xf32>
    %c1_112 = arith.constant 1 : index
    %c0_113 = arith.constant 0 : index
    %c0_114 = arith.constant 0 : index
    %335 = vector.load %arg16[%c1_112, %c0_113, %c0_114] : memref<3x256x256xbf16, #tpu.memory_space<vmem>>, vector<1x256x256xbf16>
    %336 = vector.shape_cast %335 : vector<1x256x256xbf16> to vector<256x256xbf16>
    %337 = arith.truncf %334 : vector<32x256xf32> to vector<32x256xbf16>
    %cst_115 = arith.constant dense<0.000000e+00> : vector<32x256xf32>
    %338 = tpu.matmul %337, %336, %cst_115 {dimension_numbers = #tpu.dot_dimension_numbers<[1], [0], [0], [1], [0, 0, 1, 1], [], []>} : vector<32x256xbf16>, vector<256x256xbf16>, vector<32x256xf32> -> vector<32x256xf32>
    %339 = arith.addf %329, %338 : vector<32x256xf32>
    %340 = vector.extract_strided_slice %319 {offsets = [8, 0], sizes = [8, 256], strides = [1, 1]} : vector<64x256xf32> to vector<8x256xf32>
    %341 = vector.extract_strided_slice %319 {offsets = [24, 0], sizes = [8, 256], strides = [1, 1]} : vector<64x256xf32> to vector<8x256xf32>
    %342 = vector.extract_strided_slice %319 {offsets = [40, 0], sizes = [8, 256], strides = [1, 1]} : vector<64x256xf32> to vector<8x256xf32>
    %343 = vector.extract_strided_slice %319 {offsets = [56, 0], sizes = [8, 256], strides = [1, 1]} : vector<64x256xf32> to vector<8x256xf32>
    %344 = tpu.concatenate %340, %341, %342, %343 in 0 : vector<8x256xf32>, vector<8x256xf32>, vector<8x256xf32>, vector<8x256xf32> -> vector<32x256xf32>
    %c2_116 = arith.constant 2 : index
    %c0_117 = arith.constant 0 : index
    %c0_118 = arith.constant 0 : index
    %345 = vector.load %arg16[%c2_116, %c0_117, %c0_118] : memref<3x256x256xbf16, #tpu.memory_space<vmem>>, vector<1x256x256xbf16>
    %346 = vector.shape_cast %345 : vector<1x256x256xbf16> to vector<256x256xbf16>
    %347 = arith.truncf %344 : vector<32x256xf32> to vector<32x256xbf16>
    %cst_119 = arith.constant dense<0.000000e+00> : vector<32x256xf32>
    %348 = tpu.matmul %347, %346, %cst_119 {dimension_numbers = #tpu.dot_dimension_numbers<[1], [0], [0], [1], [0, 0, 1, 1], [], []>} : vector<32x256xbf16>, vector<256x256xbf16>, vector<32x256xf32> -> vector<32x256xf32>
    %349 = arith.addf %339, %348 : vector<32x256xf32>
    %350 = vector.broadcast %320 : vector<1x256xf32> to vector<32x256xf32>
    %351 = arith.addf %349, %350 : vector<32x256xf32>
    %cst_120 = arith.constant 0.000000e+00 : f32
    %352 = vector.broadcast %cst_120 : f32 to vector<32x256xf32>
    %353 = arith.maximumf %351, %352 : vector<32x256xf32>
    %c0_121 = arith.constant 0 : index
    %c0_122 = arith.constant 0 : index
    %354 = vector.load %arg19[%c0_121, %c0_122] : memref<1x256xf32, #tpu.memory_space<vmem>>, vector<1x256xf32>
    %cst_123 = arith.constant 0.000000e+00 : f32
    %355 = vector.broadcast %cst_123 : f32 to vector<8x256xf32>
    %356 = vector.extract_strided_slice %353 {offsets = [8, 0], sizes = [8, 256], strides = [1, 1]} : vector<32x256xf32> to vector<8x256xf32>
    %357 = tpu.concatenate %355, %356 in 0 : vector<8x256xf32>, vector<8x256xf32> -> vector<16x256xf32>
    %c0_124 = arith.constant 0 : index
    %c0_125 = arith.constant 0 : index
    %c0_126 = arith.constant 0 : index
    %358 = vector.load %arg18[%c0_124, %c0_125, %c0_126] : memref<3x256x256xbf16, #tpu.memory_space<vmem>>, vector<1x256x256xbf16>
    %359 = vector.shape_cast %358 : vector<1x256x256xbf16> to vector<256x256xbf16>
    %360 = arith.truncf %357 : vector<16x256xf32> to vector<16x256xbf16>
    %cst_127 = arith.constant dense<0.000000e+00> : vector<16x256xf32>
    %361 = tpu.matmul %360, %359, %cst_127 {dimension_numbers = #tpu.dot_dimension_numbers<[1], [0], [0], [1], [0, 0, 1, 1], [], []>} : vector<16x256xbf16>, vector<256x256xbf16>, vector<16x256xf32> -> vector<16x256xf32>
    %362 = vector.extract_strided_slice %353 {offsets = [0, 0], sizes = [8, 256], strides = [1, 1]} : vector<32x256xf32> to vector<8x256xf32>
    %363 = vector.extract_strided_slice %353 {offsets = [16, 0], sizes = [8, 256], strides = [1, 1]} : vector<32x256xf32> to vector<8x256xf32>
    %364 = tpu.concatenate %362, %363 in 0 : vector<8x256xf32>, vector<8x256xf32> -> vector<16x256xf32>
    %c1_128 = arith.constant 1 : index
    %c0_129 = arith.constant 0 : index
    %c0_130 = arith.constant 0 : index
    %365 = vector.load %arg18[%c1_128, %c0_129, %c0_130] : memref<3x256x256xbf16, #tpu.memory_space<vmem>>, vector<1x256x256xbf16>
    %366 = vector.shape_cast %365 : vector<1x256x256xbf16> to vector<256x256xbf16>
    %367 = arith.truncf %364 : vector<16x256xf32> to vector<16x256xbf16>
    %cst_131 = arith.constant dense<0.000000e+00> : vector<16x256xf32>
    %368 = tpu.matmul %367, %366, %cst_131 {dimension_numbers = #tpu.dot_dimension_numbers<[1], [0], [0], [1], [0, 0, 1, 1], [], []>} : vector<16x256xbf16>, vector<256x256xbf16>, vector<16x256xf32> -> vector<16x256xf32>
    %369 = arith.addf %361, %368 : vector<16x256xf32>
    %370 = vector.extract_strided_slice %353 {offsets = [8, 0], sizes = [8, 256], strides = [1, 1]} : vector<32x256xf32> to vector<8x256xf32>
    %371 = vector.extract_strided_slice %353 {offsets = [24, 0], sizes = [8, 256], strides = [1, 1]} : vector<32x256xf32> to vector<8x256xf32>
    %372 = tpu.concatenate %370, %371 in 0 : vector<8x256xf32>, vector<8x256xf32> -> vector<16x256xf32>
    %c2_132 = arith.constant 2 : index
    %c0_133 = arith.constant 0 : index
    %c0_134 = arith.constant 0 : index
    %373 = vector.load %arg18[%c2_132, %c0_133, %c0_134] : memref<3x256x256xbf16, #tpu.memory_space<vmem>>, vector<1x256x256xbf16>
    %374 = vector.shape_cast %373 : vector<1x256x256xbf16> to vector<256x256xbf16>
    %375 = arith.truncf %372 : vector<16x256xf32> to vector<16x256xbf16>
    %cst_135 = arith.constant dense<0.000000e+00> : vector<16x256xf32>
    %376 = tpu.matmul %375, %374, %cst_135 {dimension_numbers = #tpu.dot_dimension_numbers<[1], [0], [0], [1], [0, 0, 1, 1], [], []>} : vector<16x256xbf16>, vector<256x256xbf16>, vector<16x256xf32> -> vector<16x256xf32>
    %377 = arith.addf %369, %376 : vector<16x256xf32>
    %378 = vector.broadcast %354 : vector<1x256xf32> to vector<16x256xf32>
    %379 = arith.addf %377, %378 : vector<16x256xf32>
    %cst_136 = arith.constant 0.000000e+00 : f32
    %380 = vector.broadcast %cst_136 : f32 to vector<16x256xf32>
    %381 = arith.maximumf %379, %380 : vector<16x256xf32>
    %c0_137 = arith.constant 0 : index
    %c0_138 = arith.constant 0 : index
    %382 = vector.load %arg21[%c0_137, %c0_138] : memref<1x256xf32, #tpu.memory_space<vmem>>, vector<1x256xf32>
    %383 = vector.extract_strided_slice %381 {offsets = [0, 0], sizes = [8, 256], strides = [1, 1]} : vector<16x256xf32> to vector<8x256xf32>
    %c1_139 = arith.constant 1 : index
    %c0_140 = arith.constant 0 : index
    %c0_141 = arith.constant 0 : index
    %384 = vector.load %arg20[%c1_139, %c0_140, %c0_141] : memref<4x256x256xbf16, #tpu.memory_space<vmem>>, vector<1x256x256xbf16>
    %385 = vector.shape_cast %384 : vector<1x256x256xbf16> to vector<256x256xbf16>
    %386 = arith.truncf %383 : vector<8x256xf32> to vector<8x256xbf16>
    %cst_142 = arith.constant dense<0.000000e+00> : vector<8x256xf32>
    %387 = tpu.matmul %386, %385, %cst_142 {dimension_numbers = #tpu.dot_dimension_numbers<[1], [0], [0], [1], [0, 0, 1, 1], [], []>} : vector<8x256xbf16>, vector<256x256xbf16>, vector<8x256xf32> -> vector<8x256xf32>
    %388 = vector.extract_strided_slice %381 {offsets = [8, 0], sizes = [8, 256], strides = [1, 1]} : vector<16x256xf32> to vector<8x256xf32>
    %c2_143 = arith.constant 2 : index
    %c0_144 = arith.constant 0 : index
    %c0_145 = arith.constant 0 : index
    %389 = vector.load %arg20[%c2_143, %c0_144, %c0_145] : memref<4x256x256xbf16, #tpu.memory_space<vmem>>, vector<1x256x256xbf16>
    %390 = vector.shape_cast %389 : vector<1x256x256xbf16> to vector<256x256xbf16>
    %391 = arith.truncf %388 : vector<8x256xf32> to vector<8x256xbf16>
    %cst_146 = arith.constant dense<0.000000e+00> : vector<8x256xf32>
    %392 = tpu.matmul %391, %390, %cst_146 {dimension_numbers = #tpu.dot_dimension_numbers<[1], [0], [0], [1], [0, 0, 1, 1], [], []>} : vector<8x256xbf16>, vector<256x256xbf16>, vector<8x256xf32> -> vector<8x256xf32>
    %393 = arith.addf %387, %392 : vector<8x256xf32>
    %394 = vector.broadcast %382 : vector<1x256xf32> to vector<8x256xf32>
    %395 = arith.addf %393, %394 : vector<8x256xf32>
    %cst_147 = arith.constant 0.000000e+00 : f32
    %396 = vector.broadcast %cst_147 : f32 to vector<8x256xf32>
    %397 = arith.maximumf %395, %396 : vector<8x256xf32>
    %398 = arith.truncf %397 : vector<8x256xf32> to vector<8x256xbf16>
    %c0_148 = arith.constant 0 : index
    %c0_149 = arith.constant 0 : index
    %399 = vector.load %arg22[%c0_148, %c0_149] : memref<256x150xbf16, #tpu.memory_space<vmem>>, vector<256x150xbf16>
    %cst_150 = arith.constant dense<0.000000e+00> : vector<8x150xf32>
    %400 = tpu.matmul %398, %399, %cst_150 {dimension_numbers = #tpu.dot_dimension_numbers<[1], [0], [0], [1], [0, 0, 1, 1], [], []>} : vector<8x256xbf16>, vector<256x150xbf16>, vector<8x150xf32> -> vector<8x150xf32>
    %c0_151 = arith.constant 0 : index
    %c0_152 = arith.constant 0 : index
    %401 = vector.load %arg23[%c0_151, %c0_152] : memref<1x150xf32, #tpu.memory_space<vmem>>, vector<1x150xf32>
    %402 = vector.broadcast %401 : vector<1x150xf32> to vector<8x150xf32>
    %403 = arith.addf %400, %402 : vector<8x150xf32>
    %404 = arith.truncf %403 : vector<8x150xf32> to vector<8x150xbf16>
    %c0_153 = arith.constant 0 : index
    %c0_154 = arith.constant 0 : index
    %405 = vector.load %arg24[%c0_153, %c0_154] : memref<150x52xbf16, #tpu.memory_space<vmem>>, vector<150x52xbf16>
    %cst_155 = arith.constant dense<0.000000e+00> : vector<8x52xf32>
    %406 = tpu.matmul %404, %405, %cst_155 {dimension_numbers = #tpu.dot_dimension_numbers<[1], [0], [0], [1], [0, 0, 1, 1], [], []>} : vector<8x150xbf16>, vector<150x52xbf16>, vector<8x52xf32> -> vector<8x52xf32>
    %c0_156 = arith.constant 0 : index
    %c0_157 = arith.constant 0 : index
    %407 = vector.load %arg25[%c0_156, %c0_157] : memref<1x52xf32, #tpu.memory_space<vmem>>, vector<1x52xf32>
    %408 = vector.broadcast %407 : vector<1x52xf32> to vector<8x52xf32>
    %409 = arith.addf %406, %408 : vector<8x52xf32>
    %410 = vector.extract_strided_slice %409 {offsets = [0, 0], sizes = [2, 52], strides = [1, 1]} : vector<8x52xf32> to vector<2x52xf32>
    %c0_158 = arith.constant 0 : index
    %c0_159 = arith.constant 0 : index
    %411 = vector.load %arg26[%c0_158, %c0_159] : memref<2x52xf32, #tpu.memory_space<vmem>>, vector<2x52xf32>
    tpu.vector_store %arg26[%c0_158, %c0_159], %410 {strides = array<i32>} : memref<2x52xf32, #tpu.memory_space<vmem>>, vector<2x52xf32>,
    return
  }
}

</mosaic_0001>

<bundles_post_ra>
// kernel: forward.1
= control target key start
LH: loop header
LB: loop body
LE: loop exit
PB: predicated region body
PF: predicated region fallthrough
CT: control target
= control target key end

     0   :  { %s20221_s0 = inlined_call_operand.vmem [shape: f32[2048,1], index: 0, kind: input, shape index: {}]   ;;  %s20222_s1 = inlined_call_operand.hbm [shape: bf16[256,64], index: 1, kind: input, shape index: {}]   ;;  %s20223_s2 = inlined_call_operand.vmem [shape: bf16[3,1,72], index: 2, kind: input, shape index: {}]   ;;  %s20224_s3 = inlined_call_operand.vmem [shape: f32[1,72], index: 3, kind: input, shape index: {}]   ;;  %s20225_s4 = inlined_call_operand.hbm [shape: bf16[3,72,108], index: 4, kind: input, shape index: {}]   ;;  %s20226_s5 = inlined_call_operand.hbm [shape: f32[1,108], index: 5, kind: input, shape index: {}]   ;;  %s20227_s6 = inlined_call_operand.vmem [shape: bf16[3,108,162], index: 6, kind: input, shape index: {}]   ;;  %s20228_s7 = inlined_call_operand.vmem [shape: f32[1,162], index: 7, kind: input, shape index: {}]   ;;  %s20229_s8 = inlined_call_operand.vmem [shape: bf16[3,162,243], index: 8, kind: input, shape index: {}]   ;;  %s20230_s9 = inlined_call_operand.vmem [shape: f32[1,243], index: 9, kind: input, shape index: {}]   ;;  %s20231_s10 = inlined_call_operand.vmem [shape: bf16[3,243,256], index: 10, kind: input, shape index: {}]   ;;  %s20232_s11 = inlined_call_operand.vmem [shape: f32[1,256], index: 11, kind: input, shape index: {}]   ;;  %s20233_s12 = inlined_call_operand.vmem [shape: bf16[3,256,256], index: 12, kind: input, shape index: {}]   ;;  %s20234_s13 = inlined_call_operand.vmem [shape: f32[1,256], index: 13, kind: input, shape index: {}]   ;;  %s20235_s14 = inlined_call_operand.vmem [shape: bf16[3,256,256], index: 14, kind: input, shape index: {}]   ;;  %s20236_s15 = inlined_call_operand.hbm [shape: f32[1,256], index: 15, kind: input, shape index: {}]   ;;  %s20237_s16 = inlined_call_operand.vmem [shape: bf16[3,256,256], index: 16, kind: input, shape index: {}]   ;;  %s20238_s17 = inlined_call_operand.hbm [shape: f32[1,256], index: 17, kind: input, shape index: {}]   ;;  %s20239_s18 = inlined_call_operand.vmem [shape: bf16[3,256,256], index: 18, kind: input, shape index: {}]   ;;  %s20240_s19 = inlined_call_operand.hbm [shape: f32[1,256], index: 19, kind: input, shape index: {}]   ;;  %s20241_s20 = inlined_call_operand.vmem [shape: bf16[4,256,256], index: 20, kind: input, shape index: {}]   ;;  %s20242_s21 = inlined_call_operand.hbm [shape: f32[1,256], index: 21, kind: input, shape index: {}]   ;;  %s20243_s22 = inlined_call_operand.vmem [shape: bf16[256,150], index: 22, kind: input, shape index: {}]   ;;  %s20244_s23 = inlined_call_operand.hbm [shape: f32[1,150], index: 23, kind: input, shape index: {}]   ;;  %s20245_s24 = inlined_call_operand.vmem [shape: bf16[150,52], index: 24, kind: input, shape index: {}]   ;;  %s20246_s25 = inlined_call_operand.hbm [shape: f32[1,52], index: 25, kind: input, shape index: {}]   ;;  %s20247_s26 = inlined_call_operand.hbm [shape: f32[2,52], index: 26, kind: output, shape index: {}]  }
   0x1   :  { %20350 = sst [smem:[#allocation105_spill]] %s20221_s0 }
   0x2   :  { %20351 = sst [smem:[#allocation106_spill]] %s20222_s1 }
   0x3   :  { %20352 = sst [smem:[#allocation107_spill]] %s20223_s2 }
   0x4   :  { %20353 = sst [smem:[#allocation108_spill]] %s20224_s3 }
   0x5   :  { %20354 = sst [smem:[#allocation109_spill]] %s20225_s4 }
   0x6   :  { %20355 = sst [smem:[#allocation110_spill]] %s20226_s5 }
   0x7   :  { %20356 = sst [smem:[#allocation111_spill]] %s20227_s6 }
   0x8   :  { %20357 = sst [smem:[#allocation112_spill]] %s20228_s7 }
   0x9   :  { %20358 = sst [smem:[#allocation113_spill]] %s20229_s8 }
   0xa   :  { %20359 = sst [smem:[#allocation114_spill]] %s20230_s9 }
   0xb   :  { %20360 = sst [smem:[#allocation115_spill]] %s20231_s10 }
   0xc   :  { %31 = vsyncpa [#allocation3], 0 }
   0xd   :  { %32 = vsyncpa [#allocation6], 0 }
   0xe   :  { %33 = vsyncpa [#allocation9], 0 }
   0xf   :  { %34 = vsyncpa [#allocation12], 0 }
  0x10   :  { %35 = vsyncpa [#allocation15], 0 }
  0x11   :  { %36 = vsyncpa [#allocation4], 0  ;;  %s14951_s27 = smov [#allocation5]   ;;  %s14952_s7 = smov [#allocation8]  }
  0x12   :  { %s60_s3 = sshll.u32 %s14951_s27, 4  ;;  %s101_s28 = sshll.u32 %s14952_s7, 4  ;;  %s61_s3 = int_to_ptr.vmem [resolvable:$true] %s60_s3  ;;  %s102_s28 = int_to_ptr.vmem [resolvable:$true] %s101_s28 }
  0x13   :  { %s20361_s29 = sld [smem:[#allocation109_spill]] }
  0x19   :  { %s14719_s0 = scalar_lea.hbm %s20361_s29, 1728 }
  0x1a   :  { %p14720_p0 = scmp.ne.s32.totalorder %s20361_s29, %s14719_s0  ;;  %p14723_p1 = scmp.lt.u32.totalorder %s14719_s0, %s20361_s29 }
  0x1c   :  { %p14725_p2 = pnand %p14723_p1, %p14720_p0 }
  0x1e   :  { %14728 = shalt.err (!%p14725_p2)
}
  0x1f   :  { %s14729_s10 = scalar_lea.vmem %s61_s3, 1728  ;;  %p14734_p4 = scmp.lt.s32.totalorder %s61_s3, %s61_s3 }
  0x20   :  { %p14730_p3 = scmp.ne.s32.totalorder %s61_s3, %s14729_s10  ;;  %p14735_p5 = scmp.lt.s32.totalorder %s14729_s10, %s14729_s10 }
  0x22   :  { %p14736_p6 = por %p14735_p5, %p14734_p4 }
  0x24   :  { %p14737_p7 = pnand %p14736_p6, %p14730_p3 }
  0x26   :  { %14740 = shalt.err (!%p14737_p7)
}
  0x27   :  { %s20257_s6 = smov 64   ;;  %s14954_s1 = smov 4  }
  0x28   :  { %66 = dma.hbm_to_vmem [thread:$0]  %s20361_s29, 1728, %s61_s3, [#allocation6], %s20257_s6, %s20257_s6, %s14954_s1  }
  0x29   :  { %s14741_s0 = scalar_lea.hbm %s20236_s15, 32 }
  0x2a   :  { %p14742_p8 = scmp.ne.s32.totalorder %s20236_s15, %s14741_s0  ;;  %p14745_p9 = scmp.lt.u32.totalorder %s14741_s0, %s20236_s15 }
  0x2c   :  { %p14747_p10 = pnand %p14745_p9, %p14742_p8 }
  0x2e   :  { %14750 = shalt.err (!%p14747_p10)
}
  0x2f   :  { %s14751_s10 = scalar_lea.vmem %s102_s28, 32  ;;  %p14756_p12 = scmp.lt.s32.totalorder %s102_s28, %s102_s28 }
  0x30   :  { %p14752_p11 = scmp.ne.s32.totalorder %s102_s28, %s14751_s10  ;;  %p14757_p13 = scmp.lt.s32.totalorder %s14751_s10, %s14751_s10 }
  0x32   :  { %p14758_p0 = por %p14757_p13, %p14756_p12 }
  0x34   :  { %p14759_p1 = pnand %p14758_p0, %p14752_p11 }
  0x36   :  { %14762 = shalt.err (!%p14759_p1)
}
  0x37   :  { %104 = dma.hbm_to_vmem [thread:$0]  %s20236_s15, 32, %s102_s28, [#allocation9]  }
  0x38   :  { %s14955_s27 = smov [#allocation11]   ;;  %s14956_s8 = smov [#allocation14]  }
  0x39   :  { %s125_s7 = sshll.u32 %s14955_s27, 4  ;;  %s149_s4 = sshll.u32 %s14956_s8, 4  ;;  %s126_s7 = int_to_ptr.vmem [resolvable:$true] %s125_s7  ;;  %s150_s4 = int_to_ptr.vmem [resolvable:$true] %s149_s4 }
  0x3a   :  { %s14763_s30 = scalar_lea.hbm %s20240_s19, 32 }
  0x3b   :  { %p14764_p2 = scmp.ne.s32.totalorder %s20240_s19, %s14763_s30  ;;  %p14767_p3 = scmp.lt.u32.totalorder %s14763_s30, %s20240_s19 }
  0x3d   :  { %p14769_p4 = pnand %p14767_p3, %p14764_p2 }
  0x3f   :  { %14772 = shalt.err (!%p14769_p4)
}
  0x40   :  { %s14773_s15 = scalar_lea.vmem %s126_s7, 32  ;;  %p14778_p6 = scmp.lt.s32.totalorder %s126_s7, %s126_s7 }
  0x41   :  { %p14774_p5 = scmp.ne.s32.totalorder %s126_s7, %s14773_s15  ;;  %p14779_p7 = scmp.lt.s32.totalorder %s14773_s15, %s14773_s15 }
  0x43   :  { %p14780_p8 = por %p14779_p7, %p14778_p6 }
  0x45   :  { %p14781_p9 = pnand %p14780_p8, %p14774_p5 }
  0x47   :  { %14784 = shalt.err (!%p14781_p9)
}
  0x48   :  { %128 = dma.hbm_to_vmem [thread:$0]  %s20240_s19, 32, %s126_s7, [#allocation12]  }
  0x49   :  { %s14785_s8 = scalar_lea.hbm %s20244_s23, 32 }
  0x4a   :  { %p14786_p10 = scmp.ne.s32.totalorder %s20244_s23, %s14785_s8  ;;  %p14789_p11 = scmp.lt.u32.totalorder %s14785_s8, %s20244_s23 }
  0x4c   :  { %p14791_p12 = pnand %p14789_p11, %p14786_p10 }
  0x4e   :  { %14794 = shalt.err (!%p14791_p12)
}
  0x4f   :  { %s14795_s2 = scalar_lea.vmem %s150_s4, 32  ;;  %p14800_p0 = scmp.lt.s32.totalorder %s150_s4, %s150_s4 }
  0x50   :  { %p14796_p13 = scmp.ne.s32.totalorder %s150_s4, %s14795_s2  ;;  %p14801_p1 = scmp.lt.s32.totalorder %s14795_s2, %s14795_s2 }
  0x52   :  { %p14802_p2 = por %p14801_p1, %p14800_p0 }
  0x54   :  { %p14803_p3 = pnand %p14802_p2, %p14796_p13 }
  0x56   :  { %14806 = shalt.err (!%p14803_p3)
}
  0x57   :  { %152 = dma.hbm_to_vmem [thread:$0]  %s20244_s23, 32, %s150_s4, [#allocation15]  }
  0x58   :  { %s14957_s5 = smov [#allocation2]   ;;  %s14958_s15 = smov [#allocation7]  }
  0x59   :  { %s44_s10 = sshll.u32 %s14957_s5, 4  ;;  %s73_s28 = sshll.u32 %s14958_s15, 4  ;;  %s45_s10 = int_to_ptr.vmem [resolvable:$true] %s44_s10  ;;  %s74_s28 = int_to_ptr.vmem [resolvable:$true] %s73_s28 }
  0x5a   :  { %s20362_s27 = sld [smem:[#allocation106_spill]] }
  0x60   :  { %s14807_s8 = scalar_lea.hbm %s20362_s27, 2048 }
  0x61   :  { %p14808_p4 = scmp.ne.s32.totalorder %s20362_s27, %s14807_s8  ;;  %p14811_p5 = scmp.lt.u32.totalorder %s14807_s8, %s20362_s27 }
  0x63   :  { %p14813_p6 = pnand %p14811_p5, %p14808_p4 }
  0x65   :  { %14816 = shalt.err (!%p14813_p6)
}
  0x66   :  { %s14817_s23 = scalar_lea.vmem %s45_s10, 2048  ;;  %p14822_p8 = scmp.lt.s32.totalorder %s45_s10, %s45_s10 }
  0x67   :  { %p14818_p7 = scmp.ne.s32.totalorder %s45_s10, %s14817_s23  ;;  %p14823_p9 = scmp.lt.s32.totalorder %s14817_s23, %s14817_s23 }
  0x69   :  { %p14824_p10 = por %p14823_p9, %p14822_p8 }
  0x6b   :  { %p14825_p11 = pnand %p14824_p10, %p14818_p7 }
  0x6d   :  { %14828 = shalt.err (!%p14825_p11)
}
  0x6e   :  { %s20363_s4 = smov 64   ;;  %s20364_s15 = sld [smem:[#allocation110_spill]] }
  0x6f   :  { %50 = dma.hbm_to_vmem [thread:$0]  %s20362_s27, 2048, %s45_s10, [#allocation3], %s20363_s4, %s20363_s4, %s14954_s1  }
  0x74   :  { %s14829_s3 = scalar_lea.hbm %s20364_s15, 16 }
  0x75   :  { %p14830_p12 = scmp.ne.s32.totalorder %s20364_s15, %s14829_s3  ;;  %p14833_p13 = scmp.lt.u32.totalorder %s14829_s3, %s20364_s15 }
  0x77   :  { %p14835_p0 = pnand %p14833_p13, %p14830_p12 }
  0x79   :  { %14838 = shalt.err (!%p14835_p0)
}
  0x7a   :  { %s14839_s9 = scalar_lea.vmem %s74_s28, 16  ;;  %s14843_s30 = scalar_lea.vmem %s74_s28, 32 }
  0x7b   :  { %p14840_p1 = scmp.ne.s32.totalorder %s74_s28, %s14839_s9  ;;  %p14844_p2 = scmp.lt.s32.totalorder %s74_s28, %s74_s28 }
  0x7c   :  { %p14845_p3 = scmp.lt.s32.totalorder %s14843_s30, %s14839_s9 }
  0x7e   :  { %p14846_p4 = por %p14845_p3, %p14844_p2 }
  0x80   :  { %p14847_p5 = pnand %p14846_p4, %p14840_p1 }
  0x82   :  { %14850 = shalt.err (!%p14847_p5)
}
  0x83   :  { %76 = dma.hbm_to_vmem [thread:$0]  %s20364_s15, 16, %s74_s28, [#allocation6]  }
  0x84   :  { %s14959_s27 = smov [#allocation10]   ;;  %s14960_s4 = smov [#allocation13]  }
  0x85   :  { %s113_s23 = sshll.u32 %s14959_s27, 4  ;;  %s137_s2 = sshll.u32 %s14960_s4, 4  ;;  %s114_s23 = int_to_ptr.vmem [resolvable:$true] %s113_s23  ;;  %s138_s2 = int_to_ptr.vmem [resolvable:$true] %s137_s2 }
  0x86   :  { %s14851_s5 = scalar_lea.hbm %s20238_s17, 32 }
  0x87   :  { %p14852_p6 = scmp.ne.s32.totalorder %s20238_s17, %s14851_s5  ;;  %p14855_p7 = scmp.lt.u32.totalorder %s14851_s5, %s20238_s17 }
  0x89   :  { %p14857_p8 = pnand %p14855_p7, %p14852_p6 }
  0x8b   :  { %14860 = shalt.err (!%p14857_p8)
}
  0x8c   :  { %s14861_s28 = scalar_lea.vmem %s114_s23, 32  ;;  %p14866_p10 = scmp.lt.s32.totalorder %s114_s23, %s114_s23 }
  0x8d   :  { %p14862_p9 = scmp.ne.s32.totalorder %s114_s23, %s14861_s28  ;;  %p14867_p11 = scmp.lt.s32.totalorder %s14861_s28, %s14861_s28 }
  0x8f   :  { %p14868_p12 = por %p14867_p11, %p14866_p10 }
  0x91   :  { %p14869_p13 = pnand %p14868_p12, %p14862_p9 }
  0x93   :  { %14872 = shalt.err (!%p14869_p13)
}
  0x94   :  { %116 = dma.hbm_to_vmem [thread:$0]  %s20238_s17, 32, %s114_s23, [#allocation9]  }
  0x95   :  { %s14873_s1 = scalar_lea.hbm %s20242_s21, 32 }
  0x96   :  { %p14874_p0 = scmp.ne.s32.totalorder %s20242_s21, %s14873_s1  ;;  %p14877_p1 = scmp.lt.u32.totalorder %s14873_s1, %s20242_s21 }
  0x98   :  { %p14879_p2 = pnand %p14877_p1, %p14874_p0 }
  0x9a   :  { %14882 = shalt.err (!%p14879_p2)
}
  0x9b   :  { %s14883_s7 = scalar_lea.vmem %s138_s2, 32  ;;  %p14888_p4 = scmp.lt.s32.totalorder %s138_s2, %s138_s2 }
  0x9c   :  { %p14884_p3 = scmp.ne.s32.totalorder %s138_s2, %s14883_s7  ;;  %p14889_p5 = scmp.lt.s32.totalorder %s14883_s7, %s14883_s7 }
  0x9e   :  { %p14890_p6 = por %p14889_p5, %p14888_p4 }
  0xa0   :  { %p14891_p7 = pnand %p14890_p6, %p14884_p3 }
  0xa2   :  { %14894 = shalt.err (!%p14891_p7)
}
  0xa3   :  { %140 = dma.hbm_to_vmem [thread:$0]  %s20242_s21, 32, %s138_s2, [#allocation12]  }
  0xa4   :  { %s14961_s5 = smov [#allocation16]   ;;  %s14895_s0 = scalar_lea.hbm %s20246_s25, 16 }
  0xa5   :  { %s161_s3 = sshll.u32 %s14961_s5, 4  ;;  %p14896_p8 = scmp.ne.s32.totalorder %s20246_s25, %s14895_s0  ;;  %s162_s3 = int_to_ptr.vmem [resolvable:$true] %s161_s3 }
  0xa6   :  { %p14899_p9 = scmp.lt.u32.totalorder %s14895_s0, %s20246_s25 }
  0xa8   :  { %p14901_p10 = pnand %p14899_p9, %p14896_p8 }
  0xaa   :  { %14904 = shalt.err (!%p14901_p10)
}
  0xab   :  { %s14905_s30 = scalar_lea.vmem %s162_s3, 16  ;;  %s14909_s21 = scalar_lea.vmem %s162_s3, 32 }
  0xac   :  { %p14906_p11 = scmp.ne.s32.totalorder %s162_s3, %s14905_s30  ;;  %p14910_p12 = scmp.lt.s32.totalorder %s162_s3, %s162_s3 }
  0xad   :  { %p14911_p13 = scmp.lt.s32.totalorder %s14909_s21, %s14905_s30 }
  0xaf   :  { %p14912_p0 = por %p14911_p13, %p14910_p12 }
  0xb1   :  { %p14913_p1 = pnand %p14912_p0, %p14906_p11 }
  0xb3   :  { %14916 = shalt.err (!%p14913_p1)
}
  0xb4   :  { %164 = dma.hbm_to_vmem [thread:$0]  %s20246_s25, 16, %s162_s3, [#allocation15]  }
  0xb5   :  { %14939 = dma.done.wait [#allocation3], 2048  }
  0xb6   :  { %14940 = vsyncadd [#allocation3], 4294965248 }
  0xb7   :  { %14941 = dma.done.wait [#allocation6], 1744  }
  0xb8   :  { %14942 = vsyncadd [#allocation6], 4294965552 }
  0xb9   :  { %14943 = dma.done.wait [#allocation9], 64  }
  0xba   :  { %14944 = vsyncadd [#allocation9], 4294967232 }
  0xbb   :  { %14945 = dma.done.wait [#allocation12], 64  }
  0xbc   :  { %14946 = vsyncadd [#allocation12], 4294967232 }
  0xbd   :  { %14947 = dma.done.wait [#allocation15], 48  }
  0xbe   :  { %14948 = vsyncadd [#allocation15], 4294967248  ;;  %v20258_v0 = vmov 0   ;;  %s20365_s25 = sld [smem:[#allocation105_spill]]  ;;  %v13701_v15 = vld [vmem:[#allocation5 + $0x24] sm:$0xff]   ;;  %v13702_v17 = vld [vmem:[#allocation5 + $0x2c] sm:$0xff]  }
  0xbf   :  { %13700 = vset.pattern.permute.xlu1 %v20258_v0  ;;  %13699 = vset.pattern.permute.xlu0 %v20258_v0  ;;  %v13703_v19 = vld [vmem:[#allocation5 + $0x34] sm:$0xff]   ;;  %v13704_v22 = vld [vmem:[#allocation5 + $0x3c] sm:$0xff]   ;;  %v13705_v25 = vld [vmem:[#allocation5 + $0x44] ss:$0 sps:$4 sm:$0xff]   ;;  %vm2855_vm0 = vcmask 1043456   ;;  %s20367_s8 = sld [smem:[#allocation107_spill]] }
  0xc0   :  { %4311 = vmatprep.mubr.bf16.mxu1 %v20258_v0  ;;  %13002 = vmatprep.subr.bf16.mxu0 %v13701_v15  ;;  %v2857_v28 = vsel %vm2855_vm0, %v13705_v25, 0  ;;  %s20369_s29 = sld [smem:[#allocation108_spill]]  ;;  %vm2758_vm1 = vcmask 588800   ;;  %s20530_s3 = sld [smem:[#allocation111_spill]]  ;;  %vm4272_vm2 = vcmask 1045504   ;;  %vm4223_vm3 = vcmask 883712  }
  0xc1   :  { %13003 = vmatpush3.bf16.msra.mxu0 %v13701_v15  ;;  %s20539_s9 = sld [smem:[#allocation113_spill]]  ;;  %vm5476_vm4 = vcmask 1040384   ;;  %s20540_s10 = sld [smem:[#allocation112_spill]]  ;;  %vm5451_vm5 = vcmask 277504   ;;  %vm6456_vm6 = vcmask 1041408   ;;  %vm6443_vm7 = vcmask 941056  }
  0xc2   :  { %13004 = vmatprep.subr.bf16.mxu0 %v13702_v17  ;;  %s20543_s7 = sld [smem:[#allocation115_spill]]  ;;  %s20544_s15 = sld [smem:[#allocation114_spill]]  ;;  %vm6947_vm8 = vcmask 523264   ;;  %vm11489_vm9 = vcmask 1042432   ;;  %vm11485_vm10 = vcmask 179200   ;;  %vm11533_vm11 = vcmask 418816  }
  0xc4   :  { %v195_v1 = vld [vmem:[%s20365_s25 + $0x10] sm:$0xff]  ;;  %v193_v2 = vld [vmem:[%s20365_s25] sm:$0xff]  ;;  %v196_v3 = vld [vmem:[%s20365_s25 + $0x18] sm:$0xff] }
  0xc5   :  { %1197 = vperm.xlu1 %13700, %v195_v1   ;;  %1187 = vperm.xlu0 %13699, %v193_v2   ;;  %v194_v4 = vld [vmem:[%s20365_s25 + $0x8] sm:$0xff]  ;;  %v201_v6 = vld [vmem:[%s20365_s25 + $0x40] sm:$0xff]  ;;  %v204_v7 = vld [vmem:[%s20365_s25 + $0x58] sm:$0xff] }
  0xc6   :  { %v202_v5 = vld [vmem:[%s20365_s25 + $0x48] sm:$0xff]  ;;  %v203_v8 = vld [vmem:[%s20365_s25 + $0x50] sm:$0xff]  ;;  %v197_v10 = vld [vmem:[%s20365_s25 + $0x20] sm:$0xff]  ;;  %13005 = vmatpush3.bf16.msra.mxu0 %v13702_v17 }
  0xc7   :  { %v198_v9 = vld [vmem:[%s20365_s25 + $0x28] sm:$0xff]  ;;  %v200_v11 = vld [vmem:[%s20365_s25 + $0x38] sm:$0xff]  ;;  %v199_v12 = vld [vmem:[%s20365_s25 + $0x30] sm:$0xff]  ;;  %13006 = vmatprep.subr.bf16.mxu0 %v13703_v19 }
  0xc8   :  { %v206_v13 = vld [vmem:[%s20365_s25 + $0x68] sm:$0xff]  ;;  %v205_v14 = vld [vmem:[%s20365_s25 + $0x60] sm:$0xff]  ;;  %v208_v16 = vld [vmem:[%s20365_s25 + $0x78] sm:$0xff] }
  0xc9   :  { %1202 = vperm.xlu1 %13700, %v196_v3   ;;  %1192 = vperm.xlu0 %13699, %v194_v4   ;;  %v207_v18 = vld [vmem:[%s20365_s25 + $0x70] sm:$0xff]  ;;  %v218_v20 = vld [vmem:[%s20365_s25 + $0xc8] sm:$0xff]  ;;  %v217_v21 = vld [vmem:[%s20365_s25 + $0xc0] sm:$0xff]  ;;  %v1057_v4 = vlaneseq }
  0xca   :  { %v226_v23 = vld [vmem:[%s20365_s25 + $0x108] sm:$0xff]  ;;  %v225_v24 = vld [vmem:[%s20365_s25 + $0x100] sm:$0xff]  ;;  %13007 = vmatpush3.bf16.msra.mxu0 %v13703_v19  ;;  %v220_v26 = vld [vmem:[%s20365_s25 + $0xd8] sm:$0xff] }
  0xcb   :  { %13008 = vmatprep.subr.bf16.mxu0 %v13704_v22  ;;  %v219_v27 = vld [vmem:[%s20365_s25 + $0xd0] sm:$0xff]  ;;  %v228_v29 = vld [vmem:[%s20365_s25 + $0x118] sm:$0xff]  ;;  %v234_v31 = vld [vmem:[%s20365_s25 + $0x148] sm:$0xff] }
  0xcc   :  { %v227_v30 = vld [vmem:[%s20365_s25 + $0x110] sm:$0xff]  ;;  %v233_v32 = vld [vmem:[%s20365_s25 + $0x140] sm:$0xff]  ;;  %v236_v33 = vld [vmem:[%s20365_s25 + $0x158] sm:$0xff] }
  0xcd   :  { %464 = vperm.xlu1 %13700, %v202_v5   ;;  %459 = vperm.xlu0 %13699, %v201_v6   ;;  %v235_v34 = vld [vmem:[%s20365_s25 + $0x150] sm:$0xff]  ;;  %v222_v35 = vld [vmem:[%s20365_s25 + $0xe8] sm:$0xff]  ;;  %v221_v36 = vld [vmem:[%s20365_s25 + $0xe0] sm:$0xff] }
  0xce   :  { %13009 = vmatpush3.bf16.msra.mxu0 %v13704_v22  ;;  %v230_v37 = vld [vmem:[%s20365_s25 + $0x128] sm:$0xff]  ;;  %v229_v38 = vld [vmem:[%s20365_s25 + $0x120] sm:$0xff]  ;;  %v224_v39 = vld [vmem:[%s20365_s25 + $0xf8] sm:$0xff] }
  0xcf   :  { %13680 = vmatprep.subr.msk.bf16.mxu0 %vm2855_vm0, %v13705_v25  ;;  %v223_v40 = vld [vmem:[%s20365_s25 + $0xf0] sm:$0xff]  ;;  %v232_v41 = vld [vmem:[%s20365_s25 + $0x138] sm:$0xff]  ;;  %v238_v43 = vld [vmem:[%s20365_s25 + $0x168] sm:$0xff] }
  0xd0   :  { %v231_v42 = vld [vmem:[%s20365_s25 + $0x130] sm:$0xff]  ;;  %v237_v44 = vld [vmem:[%s20365_s25 + $0x160] sm:$0xff]  ;;  %v240_v45 = vld [vmem:[%s20365_s25 + $0x178] sm:$0xff] }
  0xd1   :  { %474 = vperm.xlu1 %13700, %v204_v7   ;;  %469 = vperm.xlu0 %13699, %v203_v8   ;;  %v239_v46 = vld [vmem:[%s20365_s25 + $0x170] sm:$0xff]  ;;  %v250_v47 = vld [vmem:[%s20365_s25 + $0x1c8] sm:$0xff]  ;;  %v249_v48 = vld [vmem:[%s20365_s25 + $0x1c0] sm:$0xff] }
  0xd2   :  { %13011 = vmatpush3.bf16.msra.mxu0 %v2857_v28  ;;  %v258_v49 = vld [vmem:[%s20365_s25 + $0x208] sm:$0xff]  ;;  %v257_v50 = vld [vmem:[%s20365_s25 + $0x200] sm:$0xff]  ;;  %v252_v51 = vld [vmem:[%s20365_s25 + $0x1d8] sm:$0xff] }
  0xd3   :  { %v251_v52 = vld [vmem:[%s20365_s25 + $0x1d0] sm:$0xff]  ;;  %v260_v53 = vld [vmem:[%s20365_s25 + $0x218] sm:$0xff]  ;;  %v266_v55 = vld [vmem:[%s20365_s25 + $0x248] sm:$0xff] }
  0xd4   :  { %v259_v54 = vld [vmem:[%s20365_s25 + $0x210] sm:$0xff]  ;;  %v265_v56 = vld [vmem:[%s20365_s25 + $0x240] sm:$0xff]  ;;  %v268_v57 = vld [vmem:[%s20365_s25 + $0x258] sm:$0xff] }
  0xd5   :  { %1212 = vperm.xlu1 %13700, %v198_v9   ;;  %1207 = vperm.xlu0 %13699, %v197_v10   ;;  %v267_v58 = vld [vmem:[%s20365_s25 + $0x250] sm:$0xff]  ;;  %v254_v59 = vld [vmem:[%s20365_s25 + $0x1e8] sm:$0xff]  ;;  %v253_v60 = vld [vmem:[%s20365_s25 + $0x1e0] sm:$0xff]  ;;  %v15413_v9 = vshrl.u32 %v1057_v4, 7 }
  0xd6   :  { %v262_v61 = vld [vmem:[%s20365_s25 + $0x228] sm:$0xff]  ;;  %v261_v62 = vld [vmem:[%s20365_s25 + $0x220] sm:$0xff]  ;;  %v256_v63 = vld [vmem:[%s20365_s25 + $0x1f8] sm:$0xff] }
  0xd7   :  { %v255_v1 = vld [vmem:[%s20365_s25 + $0x1f0] sm:$0xff]  ;;  %v264_v2 = vld [vmem:[%s20365_s25 + $0x238] sm:$0xff]  ;;  %v270_v5 = vld [vmem:[%s20365_s25 + $0x268] sm:$0xff]  ;;  %20366 = vst [vmem:[#allocation24_spill] sm:$0xff] %v15413_v9 }
  0xd8   :  { %v263_v3 = vld [vmem:[%s20365_s25 + $0x230] sm:$0xff]  ;;  %v269_v6 = vld [vmem:[%s20365_s25 + $0x260] sm:$0xff]  ;;  %v272_v7 = vld [vmem:[%s20365_s25 + $0x278] sm:$0xff] }
  0xd9   :  { %1222 = vperm.xlu1 %13700, %v200_v11   ;;  %1217 = vperm.xlu0 %13699, %v199_v12   ;;  %v271_v8 = vld [vmem:[%s20365_s25 + $0x270] sm:$0xff]  ;;  %v450_v10 = vld [vmem:[%s20367_s8] sm:$0x1]  ;;  %v11554_v11 = vld [vmem:[%s20367_s8 + $0x1] sm:$0x1] }
  0xda   :  { %v451_v12 = vunpack.c.l.bf16 %v450_v10  ;;  %v282_v15 = vld [vmem:[%s20365_s25 + $0x2c8] sm:$0xff]  ;;  %v11555_v17 = vld [vmem:[%s20367_s8 + $0x2] sm:$0x1] }
  0xdb   :  { %v290_v22 = vld [vmem:[%s20365_s25 + $0x308] sm:$0xff] }
  0xdd   :  { %484 = vperm.xlu1 %13700, %v206_v13   ;;  %479 = vperm.xlu0 %13699, %v205_v14   ;;  %v15422_v13 = vsub.s32 0, %v15413_v9  ;;  %v1184_v14 = vunpack.c.l.bf16 %v11554_v11 }
  0xdf   :  { %20368 = vst [vmem:[#allocation25_spill] sm:$0xff] %v15422_v13  ;;  %v15437_v19 = vrot.slane %v1184_v14, %v15422_v13  ;;  %v285_v14 = vld [vmem:[%s20365_s25 + $0x2e0] sm:$0xff] }
  0xe1   :  { %494 = vperm.xlu1 %13700, %v208_v16   ;;  %489 = vperm.xlu0 %13699, %v207_v18   ;;  %v281_v16 = vld [vmem:[%s20365_s25 + $0x2c0] sm:$0xff]  ;;  %v15434_v18 = vrot.slane %v451_v12, %v15422_v13  ;;  %v286_v12 = vld [vmem:[%s20365_s25 + $0x2e8] sm:$0xff] }
  0xe3   :  { %v15446_v25 = vmul.f32 0.0, %v15434_v18 }
  0xe5   :  { %504 = vperm.xlu1 %13700, %v218_v20   ;;  %499 = vperm.xlu0 %13699, %v217_v21  }
  0xe9   :  { %1272 = vperm.xlu1 %13700, %v226_v23   ;;  %1267 = vperm.xlu0 %13699, %v225_v24   ;;  %v289_v23 = vld [vmem:[%s20365_s25 + $0x300] sm:$0xff]  ;;  %v2087_v24 = vunpack.c.l.bf16 %v11555_v17 }
  0xed   :  { %514 = vperm.xlu1 %13700, %v220_v26   ;;  %509 = vperm.xlu0 %13699, %v219_v27  }
  0xf1   :  { %1282 = vperm.xlu1 %13700, %v228_v29   ;;  %1277 = vperm.xlu0 %13699, %v227_v30   ;;  %v15451_v30 = vrot.slane %v2087_v24, %v15422_v13  ;;  %v294_v24 = vld [vmem:[%s20365_s25 + $0x328] sm:$0xff]  ;;  %v360_v13 = vld [vmem:[%s20365_s25 + $0x538] sm:$0xff] }
  0xf5   :  { %544 = vperm.xlu1 %13700, %v234_v31   ;;  %539 = vperm.xlu0 %13699, %v233_v32   ;;  %v284_v31 = vld [vmem:[%s20365_s25 + $0x2d8] sm:$0xff]  ;;  %v283_v32 = vld [vmem:[%s20365_s25 + $0x2d0] sm:$0xff] }
  0xf9   :  { %554 = vperm.xlu1 %13700, %v236_v33   ;;  %549 = vperm.xlu0 %13699, %v235_v34  }
  0xfd   :  { %524 = vperm.xlu1 %13700, %v222_v35   ;;  %519 = vperm.xlu0 %13699, %v221_v36  }
 0x101   :  { %1292 = vperm.xlu1 %13700, %v230_v37   ;;  %1287 = vperm.xlu0 %13699, %v229_v38  }
 0x105   :  { %534 = vperm.xlu1 %13700, %v224_v39   ;;  %529 = vperm.xlu0 %13699, %v223_v40  }
 0x109   :  { %1302 = vperm.xlu1 %13700, %v232_v41   ;;  %1297 = vperm.xlu0 %13699, %v231_v42   ;;  %v15474_v41 = vld [vmem:[%s20369_s29] ss:$0 sm:$0xff]  ;;  %v292_v42 = vld [vmem:[%s20365_s25 + $0x318] sm:$0xff] }
 0x10d   :  { %564 = vperm.xlu1 %13700, %v238_v43   ;;  %559 = vperm.xlu0 %13699, %v237_v44   ;;  %v291_v43 = vld [vmem:[%s20365_s25 + $0x310] sm:$0xff] }
 0x111   :  { %574 = vperm.xlu1 %13700, %v240_v45   ;;  %569 = vperm.xlu0 %13699, %v239_v46  }
 0x115   :  { %584 = vperm.xlu1 %13700, %v250_v47   ;;  %579 = vperm.xlu0 %13699, %v249_v48  }
 0x119   :  { %1352 = vperm.xlu1 %13700, %v258_v49   ;;  %1347 = vperm.xlu0 %13699, %v257_v50  }
 0x11d   :  { %594 = vperm.xlu1 %13700, %v252_v51   ;;  %589 = vperm.xlu0 %13699, %v251_v52   ;;  %v298_v52 = vld [vmem:[%s20365_s25 + $0x348] sm:$0xff] }
 0x121   :  { %1362 = vperm.xlu1 %13700, %v260_v53   ;;  %1357 = vperm.xlu0 %13699, %v259_v54   ;;  %v297_v53 = vld [vmem:[%s20365_s25 + $0x340] sm:$0xff] }
 0x125   :  { %624 = vperm.xlu1 %13700, %v266_v55   ;;  %619 = vperm.xlu0 %13699, %v265_v56  }
 0x129   :  { %634 = vperm.xlu1 %13700, %v268_v57   ;;  %629 = vperm.xlu0 %13699, %v267_v58  }
 0x12d   :  { %604 = vperm.xlu1 %13700, %v254_v59   ;;  %599 = vperm.xlu0 %13699, %v253_v60  }
 0x131   :  { %1372 = vperm.xlu1 %13700, %v262_v61   ;;  %1367 = vperm.xlu0 %13699, %v261_v62  }
 0x135   :  { %614 = vperm.xlu1 %13700, %v256_v63   ;;  %609 = vperm.xlu0 %13699, %v255_v1   ;;  %v300_v1 = vld [vmem:[%s20365_s25 + $0x358] sm:$0xff] }
 0x139   :  { %1382 = vperm.xlu1 %13700, %v264_v2   ;;  %1377 = vperm.xlu0 %13699, %v263_v3   ;;  %v299_v2 = vld [vmem:[%s20365_s25 + $0x350] sm:$0xff] }
 0x13d   :  { %644 = vperm.xlu1 %13700, %v270_v5   ;;  %639 = vperm.xlu0 %13699, %v269_v6  }
 0x141   :  { %654 = vperm.xlu1 %13700, %v272_v7   ;;  %649 = vperm.xlu0 %13699, %v271_v8  }
 0x144   :  { %v1198_v20 = vpop.permute.xlu1 %1197  ;;  %v1188_v21 = vpop.permute.xlu0 %1187 }
 0x145   :  { %664 = vperm.xlu1 %13700, %v282_v15   ;;  %659 = vperm.xlu0 %13699, %v281_v16   ;;  %v1829_v26 = vmul.f32 %v15437_v19, %v1188_v21  ;;  %v1831_v33 = vmul.f32 %v15437_v19, %v1198_v20 }
 0x147   :  { %v1957_v34 = vadd.f32 %v1829_v26, %v15446_v25  ;;  %v1959_v48 = vadd.f32 %v1831_v33, %v15446_v25  ;;  %v293_v26 = vld [vmem:[%s20365_s25 + $0x320] sm:$0xff] }
 0x148   :  { %v1203_v27 = vpop.permute.xlu1 %1202  ;;  %v1193_v28 = vpop.permute.xlu0 %1192 }
 0x149   :  { %v1830_v29 = vmul.f32 %v15437_v19, %v1193_v28  ;;  %1432 = vperm.xlu1 %13700, %v290_v22   ;;  %1427 = vperm.xlu0 %13699, %v289_v23   ;;  %v1832_v37 = vmul.f32 %v15437_v19, %v1203_v27 }
 0x14b   :  { %v1958_v38 = vadd.f32 %v1830_v29, %v15446_v25  ;;  %v1960_v49 = vadd.f32 %v1832_v37, %v15446_v25 }
 0x14c   :  { %v15461_v35 = vpop.permute.xlu1 %464  ;;  %v15463_v36 = vpop.permute.xlu0 %459 }
 0x14d   :  { %v2133_v39 = vmul.f32 %v15451_v30, %v15461_v35  ;;  %v2132_v40 = vmul.f32 %v15451_v30, %v15463_v36  ;;  %674 = vperm.xlu1 %13700, %v284_v31   ;;  %669 = vperm.xlu0 %13699, %v283_v32  }
 0x14f   :  { %v2261_v44 = vadd.f32 %v2133_v39, %v1958_v38  ;;  %v2260_v45 = vadd.f32 %v2132_v40, %v1957_v34  ;;  %v288_v39 = vld [vmem:[%s20365_s25 + $0x2f8] sm:$0xff]  ;;  %v287_v40 = vld [vmem:[%s20365_s25 + $0x2f0] sm:$0xff] }
 0x150   :  { %v15482_v46 = vpop.permute.xlu1 %474  ;;  %v15484_v47 = vpop.permute.xlu0 %469 }
 0x151   :  { %v2135_v50 = vmul.f32 %v15451_v30, %v15482_v46  ;;  %v2134_v51 = vmul.f32 %v15451_v30, %v15484_v47  ;;  %1442 = vperm.xlu1 %13700, %v292_v42   ;;  %1437 = vperm.xlu0 %13699, %v291_v43   ;;  %v2394_v54 = vadd.f32 %v15474_v41, %v2260_v45 }
 0x152   :  { %v2395_v55 = vadd.f32 %v15474_v41, %v2261_v44 }
 0x153   :  { %v2263_v56 = vadd.f32 %v2135_v50, %v1960_v49  ;;  %v2262_v57 = vadd.f32 %v2134_v51, %v1959_v48  ;;  %v2522_v60 = vmax.f32 %v2394_v54, 0.0 }
 0x154   :  { %v1213_v58 = vpop.permute.xlu1 %1212  ;;  %v1208_v59 = vpop.permute.xlu0 %1207  ;;  %v2523_v61 = vmax.f32 %v2395_v55, 0.0 }
 0x155   :  { %v2397_v62 = vadd.f32 %v15474_v41, %v2263_v56  ;;  %v2396_v63 = vadd.f32 %v15474_v41, %v2262_v57  ;;  %704 = vperm.xlu1 %13700, %v298_v52   ;;  %699 = vperm.xlu0 %13699, %v297_v53   ;;  %v1834_v6 = vmul.f32 %v15437_v19, %v1213_v58  ;;  %v296_v53 = vld [vmem:[%s20365_s25 + $0x338] sm:$0xff] }
 0x156   :  { %v2699_v3 = vpack.c.bf16 %v2523_v61, %v2522_v60  ;;  %v1833_v10 = vmul.f32 %v15437_v19, %v1208_v59  ;;  %v302_v60 = vld [vmem:[%s20365_s25 + $0x368] sm:$0xff]  ;;  %v301_v61 = vld [vmem:[%s20365_s25 + $0x360] sm:$0xff] }
 0x157   :  { %v2525_v4 = vmax.f32 %v2397_v62, 0.0  ;;  %v2524_v5 = vmax.f32 %v2396_v63, 0.0  ;;  %v1962_v15 = vadd.f32 %v1834_v6, %v15446_v25 }
 0x158   :  { %13012 = vmatprep.mubr.msk.bf16.mxu0 %vm2758_vm1, %v2699_v3  ;;  %v1223_v7 = vpop.permute.xlu1 %1222  ;;  %v1218_v8 = vpop.permute.xlu0 %1217  ;;  %v1961_v20 = vadd.f32 %v1833_v10, %v15446_v25  ;;  %v303_v3 = vld [vmem:[%s20365_s25 + $0x370] sm:$0xff]  ;;  %v313_v10 = vld [vmem:[%s20365_s25 + $0x3c0] sm:$0xff] }
 0x159   :  { %714 = vperm.xlu1 %13700, %v300_v1   ;;  %v2700_v11 = vpack.c.bf16 %v2525_v4, %v2524_v5  ;;  %709 = vperm.xlu0 %13699, %v299_v2   ;;  %v1836_v21 = vmul.f32 %v15437_v19, %v1223_v7  ;;  %v1835_v27 = vmul.f32 %v15437_v19, %v1218_v8  ;;  %v304_v2 = vld [vmem:[%s20365_s25 + $0x378] sm:$0xff]  ;;  %v314_v8 = vld [vmem:[%s20365_s25 + $0x3c8] sm:$0xff] }
 0x15b   :  { %13013 = vmatmul.mubr.msk.bf16.vlgmr.msra.gmra.mrb[0].mxu0 %vm2758_vm1, %v2700_v11  ;;  %v1964_v33 = vadd.f32 %v1836_v21, %v15446_v25  ;;  %v1963_v42 = vadd.f32 %v1835_v27, %v15446_v25  ;;  %v295_v25 = vld [vmem:[%s20365_s25 + $0x330] sm:$0xff]  ;;  %v321_v27 = vld [vmem:[%s20365_s25 + $0x400] sm:$0xff] }
 0x15c   :  { %v15519_v16 = vpop.permute.xlu1 %484  ;;  %v15521_v17 = vpop.permute.xlu0 %479 }
 0x15d   :  { %v2137_v22 = vmul.f32 %v15451_v30, %v15519_v16  ;;  %v2136_v23 = vmul.f32 %v15451_v30, %v15521_v17  ;;  %684 = vperm.xlu1 %13700, %v286_v12   ;;  %679 = vperm.xlu0 %13699, %v285_v14  }
 0x15f   :  { %v2265_v28 = vadd.f32 %v2137_v22, %v1962_v15  ;;  %v2264_v29 = vadd.f32 %v2136_v23, %v1961_v20 }
 0x160   :  { %v15536_v31 = vpop.permute.xlu1 %494  ;;  %v15538_v32 = vpop.permute.xlu0 %489 }
 0x161   :  { %v2399_v34 = vadd.f32 %v15474_v41, %v2265_v28  ;;  %v2398_v37 = vadd.f32 %v15474_v41, %v2264_v29  ;;  %v2139_v38 = vmul.f32 %v15451_v30, %v15536_v31  ;;  %1452 = vperm.xlu1 %13700, %v294_v24   ;;  %v2138_v43 = vmul.f32 %v15451_v30, %v15538_v32 }
 0x162   :  { %1447 = vperm.xlu0 %13699, %v293_v26   ;;  %v322_v26 = vld [vmem:[%s20365_s25 + $0x408] sm:$0xff] }
 0x163   :  { %v2527_v44 = vmax.f32 %v2399_v34, 0.0  ;;  %v2526_v45 = vmax.f32 %v2398_v37, 0.0  ;;  %v2267_v48 = vadd.f32 %v2139_v38, %v1964_v33  ;;  %v2266_v49 = vadd.f32 %v2138_v43, %v1963_v42 }
 0x164   :  { %v15554_v50 = vpop.permute.xlu1 %504  ;;  %v15556_v51 = vpop.permute.xlu0 %499 }
 0x165   :  { %v2401_v52 = vadd.f32 %v15474_v41, %v2267_v48  ;;  %694 = vperm.xlu1 %13700, %v288_v39   ;;  %v2400_v54 = vadd.f32 %v15474_v41, %v2266_v49  ;;  %v2701_v55 = vpack.c.bf16 %v2527_v44, %v2526_v45  ;;  %v1071_v11 = vmul.f32 %v15434_v18, %v15554_v50  ;;  %v316_v45 = vld [vmem:[%s20365_s25 + $0x3d8] sm:$0xff]  ;;  %v315_v48 = vld [vmem:[%s20365_s25 + $0x3d0] sm:$0xff] }
 0x166   :  { %689 = vperm.xlu0 %13699, %v287_v40   ;;  %v1070_v12 = vmul.f32 %v15434_v18, %v15556_v51 }
 0x167   :  { %v2529_v56 = vmax.f32 %v2401_v52, 0.0  ;;  %v2528_v57 = vmax.f32 %v2400_v54, 0.0  ;;  %13016 = vmatprep.mubr.msk.bf16.mxu0 %vm2758_vm1, %v2701_v55 }
 0x168   :  { %v1273_v58 = vpop.permute.xlu1 %1272  ;;  %v1268_v59 = vpop.permute.xlu0 %1267 }
 0x169   :  { %1462 = vperm.xlu1 %13700, %v296_v53   ;;  %v2702_v62 = vpack.c.bf16 %v2529_v56, %v2528_v57  ;;  %v1846_v4 = vmul.f32 %v15437_v19, %v1273_v58  ;;  %v1845_v7 = vmul.f32 %v15437_v19, %v1268_v59  ;;  %v324_v59 = vld [vmem:[%s20365_s25 + $0x418] sm:$0xff] }
 0x16a   :  { %1457 = vperm.xlu0 %13699, %v295_v25  }
 0x16b   :  { %13017 = vmatmul.mubr.msk.bf16.gmra.mrb[4].mxu0 %vm2758_vm1, %v2702_v62  ;;  %v1974_v14 = vadd.f32 %v1846_v4, %v1071_v11  ;;  %v1973_v21 = vadd.f32 %v1845_v7, %v1070_v12  ;;  %v329_v7 = vld [vmem:[%s20365_s25 + $0x440] sm:$0xff]  ;;  %v332_v12 = vld [vmem:[%s20365_s25 + $0x458] sm:$0xff] }
 0x16c   :  { %v15574_v63 = vpop.permute.xlu1 %514  ;;  %v15576_v1 = vpop.permute.xlu0 %509 }
 0x16d   :  { %724 = vperm.xlu1 %13700, %v302_v60   ;;  %v1073_v29 = vmul.f32 %v15434_v18, %v15574_v63  ;;  %v1072_v37 = vmul.f32 %v15434_v18, %v15576_v1  ;;  %v323_v60 = vld [vmem:[%s20365_s25 + $0x410] sm:$0xff] }
 0x16e   :  { %719 = vperm.xlu0 %13699, %v301_v61  }
 0x170   :  { %v1283_v5 = vpop.permute.xlu1 %1282  ;;  %v1278_v6 = vpop.permute.xlu0 %1277 }
 0x171   :  { %734 = vperm.xlu1 %13700, %v304_v2   ;;  %v1848_v22 = vmul.f32 %v15437_v19, %v1283_v5  ;;  %v1847_v28 = vmul.f32 %v15437_v19, %v1278_v6  ;;  %v330_v6 = vld [vmem:[%s20365_s25 + $0x448] sm:$0xff] }
 0x172   :  { %729 = vperm.xlu0 %13699, %v303_v3  }
 0x173   :  { %v1976_v40 = vadd.f32 %v1848_v22, %v1073_v29  ;;  %v1975_v49 = vadd.f32 %v1847_v28, %v1072_v37 }
 0x174   :  { %v15596_v15 = vpop.permute.xlu1 %544  ;;  %v15598_v20 = vpop.permute.xlu0 %539 }
 0x175   :  { %v2149_v23 = vmul.f32 %v15451_v30, %v15596_v15  ;;  %v2148_v24 = vmul.f32 %v15451_v30, %v15598_v20  ;;  %744 = vperm.xlu1 %13700, %v314_v8  }
 0x176   :  { %739 = vperm.xlu0 %13699, %v313_v10  }
 0x177   :  { %v2277_v33 = vadd.f32 %v2149_v23, %v1974_v14  ;;  %v2276_v34 = vadd.f32 %v2148_v24, %v1973_v21  ;;  %v331_v14 = vld [vmem:[%s20365_s25 + $0x450] sm:$0xff] }
 0x178   :  { %v15616_v38 = vpop.permute.xlu1 %554  ;;  %v15618_v39 = vpop.permute.xlu0 %549 }
 0x179   :  { %v2411_v42 = vadd.f32 %v15474_v41, %v2277_v33  ;;  %v2410_v43 = vadd.f32 %v15474_v41, %v2276_v34  ;;  %v2151_v44 = vmul.f32 %v15451_v30, %v15616_v38  ;;  %1512 = vperm.xlu1 %13700, %v322_v26   ;;  %v2150_v52 = vmul.f32 %v15451_v30, %v15618_v39  ;;  %v318_v26 = vld [vmem:[%s20365_s25 + $0x3e8] sm:$0xff] }
 0x17a   :  { %1507 = vperm.xlu0 %13699, %v321_v27   ;;  %v317_v27 = vld [vmem:[%s20365_s25 + $0x3e0] sm:$0xff] }
 0x17b   :  { %v2539_v53 = vmax.f32 %v2411_v42, 0.0  ;;  %v2538_v25 = vmax.f32 %v2410_v43, 0.0  ;;  %v2279_v54 = vadd.f32 %v2151_v44, %v1976_v40  ;;  %v2278_v55 = vadd.f32 %v2150_v52, %v1975_v49 }
 0x17c   :  { %v15632_v56 = vpop.permute.xlu1 %524  ;;  %v15634_v57 = vpop.permute.xlu0 %519 }
 0x17d   :  { %v2413_v58 = vadd.f32 %v15474_v41, %v2279_v54  ;;  %754 = vperm.xlu1 %13700, %v316_v45   ;;  %v2412_v61 = vadd.f32 %v15474_v41, %v2278_v55  ;;  %v2703_v62 = vpack.c.bf16 %v2539_v53, %v2538_v25  ;;  %v1075_v28 = vmul.f32 %v15434_v18, %v15632_v56  ;;  %v326_v45 = vld [vmem:[%s20365_s25 + $0x428] sm:$0xff] }
 0x17e   :  { %749 = vperm.xlu0 %13699, %v315_v48   ;;  %v1074_v29 = vmul.f32 %v15434_v18, %v15634_v57  ;;  %v325_v48 = vld [vmem:[%s20365_s25 + $0x420] sm:$0xff] }
 0x17f   :  { %v2541_v2 = vmax.f32 %v2413_v58, 0.0  ;;  %v2540_v3 = vmax.f32 %v2412_v61, 0.0  ;;  %13020 = vmatprep.mubr.msk.bf16.mxu0 %vm2758_vm1, %v2703_v62 }
 0x180   :  { %v1293_v4 = vpop.permute.xlu1 %1292  ;;  %v1288_v5 = vpop.permute.xlu0 %1287 }
 0x181   :  { %1522 = vperm.xlu1 %13700, %v324_v59   ;;  %v2704_v8 = vpack.c.bf16 %v2541_v2, %v2540_v3  ;;  %v1850_v21 = vmul.f32 %v15437_v19, %v1293_v4  ;;  %v1849_v24 = vmul.f32 %v15437_v19, %v1288_v5  ;;  %v320_v2 = vld [vmem:[%s20365_s25 + $0x3f8] sm:$0xff]  ;;  %v319_v3 = vld [vmem:[%s20365_s25 + $0x3f0] sm:$0xff] }
 0x182   :  { %1517 = vperm.xlu0 %13699, %v323_v60  }
 0x183   :  { %13021 = vmatmul.mubr.msk.bf16.gmra.mrb[8].mxu0 %vm2758_vm1, %v2704_v8  ;;  %v1978_v33 = vadd.f32 %v1850_v21, %v1075_v28  ;;  %v1977_v40 = vadd.f32 %v1849_v24, %v1074_v29  ;;  %v327_v24 = vld [vmem:[%s20365_s25 + $0x430] sm:$0xff] }
 0x184   :  { %v15652_v10 = vpop.permute.xlu1 %534  ;;  %v15654_v11 = vpop.permute.xlu0 %529 }
 0x185   :  { %784 = vperm.xlu1 %13700, %v330_v6   ;;  %v1077_v52 = vmul.f32 %v15434_v18, %v15652_v10  ;;  %v1076_v54 = vmul.f32 %v15434_v18, %v15654_v11 }
 0x186   :  { %779 = vperm.xlu0 %13699, %v329_v7  }
 0x188   :  { %v1303_v22 = vpop.permute.xlu1 %1302  ;;  %v1298_v23 = vpop.permute.xlu0 %1297 }
 0x189   :  { %794 = vperm.xlu1 %13700, %v332_v12   ;;  %v1852_v42 = vmul.f32 %v15437_v19, %v1303_v22  ;;  %v1851_v49 = vmul.f32 %v15437_v19, %v1298_v23  ;;  %v328_v23 = vld [vmem:[%s20365_s25 + $0x438] sm:$0xff] }
 0x18a   :  { %789 = vperm.xlu0 %13699, %v331_v14  }
 0x18b   :  { %v1980_v59 = vadd.f32 %v1852_v42, %v1077_v52  ;;  %v1979_v4 = vadd.f32 %v1851_v49, %v1076_v54  ;;  %v334_v42 = vld [vmem:[%s20365_s25 + $0x468] sm:$0xff]  ;;  %v336_v49 = vld [vmem:[%s20365_s25 + $0x478] sm:$0xff]  ;;  %v335_v52 = vld [vmem:[%s20365_s25 + $0x470] sm:$0xff] }
 0x18c   :  { %v15674_v34 = vpop.permute.xlu1 %564  ;;  %v15676_v37 = vpop.permute.xlu0 %559 }
 0x18d   :  { %v2153_v43 = vmul.f32 %v15451_v30, %v15674_v34  ;;  %v2152_v44 = vmul.f32 %v15451_v30, %v15676_v37  ;;  %764 = vperm.xlu1 %13700, %v318_v26  }
 0x18e   :  { %759 = vperm.xlu0 %13699, %v317_v27  }
 0x18f   :  { %v2281_v53 = vadd.f32 %v2153_v43, %v1978_v33  ;;  %v2280_v25 = vadd.f32 %v2152_v44, %v1977_v40  ;;  %v333_v43 = vld [vmem:[%s20365_s25 + $0x460] sm:$0xff] }
 0x190   :  { %v15694_v55 = vpop.permute.xlu1 %574  ;;  %v15696_v58 = vpop.permute.xlu0 %569 }
 0x191   :  { %v2415_v60 = vadd.f32 %v15474_v41, %v2281_v53  ;;  %v2414_v61 = vadd.f32 %v15474_v41, %v2280_v25  ;;  %v2155_v62 = vmul.f32 %v15451_v30, %v15694_v55  ;;  %1532 = vperm.xlu1 %13700, %v326_v45   ;;  %v2154_v5 = vmul.f32 %v15451_v30, %v15696_v58 }
 0x192   :  { %1527 = vperm.xlu0 %13699, %v325_v48  }
 0x193   :  { %v2543_v6 = vmax.f32 %v2415_v60, 0.0  ;;  %v2542_v7 = vmax.f32 %v2414_v61, 0.0  ;;  %v2283_v8 = vadd.f32 %v2155_v62, %v1980_v59  ;;  %v2282_v12 = vadd.f32 %v2154_v5, %v1979_v4  ;;  %v346_v60 = vld [vmem:[%s20365_s25 + $0x4c8] sm:$0xff]  ;;  %v345_v61 = vld [vmem:[%s20365_s25 + $0x4c0] sm:$0xff] }
 0x194   :  { %v15710_v14 = vpop.permute.xlu1 %584  ;;  %v15712_v21 = vpop.permute.xlu0 %579 }
 0x195   :  { %v2417_v22 = vadd.f32 %v15474_v41, %v2283_v8  ;;  %774 = vperm.xlu1 %13700, %v320_v2   ;;  %v2416_v26 = vadd.f32 %v15474_v41, %v2282_v12  ;;  %v2705_v27 = vpack.c.bf16 %v2543_v6, %v2542_v7  ;;  %v1087_v62 = vmul.f32 %v15434_v18, %v15710_v14 }
 0x196   :  { %769 = vperm.xlu0 %13699, %v319_v3   ;;  %v1086_v2 = vmul.f32 %v15434_v18, %v15712_v21 }
 0x197   :  { %v2545_v28 = vmax.f32 %v2417_v22, 0.0  ;;  %v2544_v29 = vmax.f32 %v2416_v26, 0.0  ;;  %13024 = vmatprep.mubr.msk.bf16.mxu0 %vm2758_vm1, %v2705_v27  ;;  %v354_v22 = vld [vmem:[%s20365_s25 + $0x508] sm:$0xff] }
 0x198   :  { %v1353_v33 = vpop.permute.xlu1 %1352  ;;  %v1348_v40 = vpop.permute.xlu0 %1347 }
 0x199   :  { %1542 = vperm.xlu1 %13700, %v328_v23   ;;  %v2706_v44 = vpack.c.bf16 %v2545_v28, %v2544_v29  ;;  %v1862_v53 = vmul.f32 %v15437_v19, %v1353_v33  ;;  %v1861_v59 = vmul.f32 %v15437_v19, %v1348_v40  ;;  %v353_v23 = vld [vmem:[%s20365_s25 + $0x500] sm:$0xff] }
 0x19a   :  { %1537 = vperm.xlu0 %13699, %v327_v24  }
 0x19b   :  { %13025 = vmatmul.mubr.msk.bf16.gmra.mrb[12].mxu0 %vm2758_vm1, %v2706_v44  ;;  %v1990_v3 = vadd.f32 %v1862_v53, %v1087_v62  ;;  %v1989_v6 = vadd.f32 %v1861_v59, %v1086_v2  ;;  %v347_v53 = vld [vmem:[%s20365_s25 + $0x4d0] sm:$0xff] }
 0x19c   :  { %v15730_v45 = vpop.permute.xlu1 %594  ;;  %v15732_v48 = vpop.permute.xlu0 %589 }
 0x19d   :  { %804 = vperm.xlu1 %13700, %v334_v42   ;;  %v1089_v26 = vmul.f32 %v15434_v18, %v15730_v45  ;;  %v1088_v29 = vmul.f32 %v15434_v18, %v15732_v48 }
 0x19e   :  { %799 = vperm.xlu0 %13699, %v333_v43  }
 0x1a0   :  { %v1363_v25 = vpop.permute.xlu1 %1362  ;;  %v1358_v54 = vpop.permute.xlu0 %1357 }
 0x1a1   :  { %814 = vperm.xlu1 %13700, %v336_v49   ;;  %v1864_v7 = vmul.f32 %v15437_v19, %v1363_v25  ;;  %v1863_v24 = vmul.f32 %v15437_v19, %v1358_v54 }
 0x1a2   :  { %809 = vperm.xlu0 %13699, %v335_v52   ;;  %v348_v52 = vld [vmem:[%s20365_s25 + $0x4d8] sm:$0xff] }
 0x1a3   :  { %v1992_v42 = vadd.f32 %v1864_v7, %v1089_v26  ;;  %v1991_v25 = vadd.f32 %v1863_v24, %v1088_v29  ;;  %v356_v7 = vld [vmem:[%s20365_s25 + $0x518] sm:$0xff]  ;;  %v361_v29 = vld [vmem:[%s20365_s25 + $0x540] sm:$0xff] }
 0x1a4   :  { %v15752_v4 = vpop.permute.xlu1 %624  ;;  %v15754_v5 = vpop.permute.xlu0 %619 }
 0x1a5   :  { %v2165_v8 = vmul.f32 %v15451_v30, %v15752_v4  ;;  %v2164_v12 = vmul.f32 %v15451_v30, %v15754_v5  ;;  %824 = vperm.xlu1 %13700, %v346_v60  }
 0x1a6   :  { %819 = vperm.xlu0 %13699, %v345_v61  }
 0x1a7   :  { %v2293_v27 = vadd.f32 %v2165_v8, %v1990_v3  ;;  %v2292_v28 = vadd.f32 %v2164_v12, %v1989_v6  ;;  %v15795_v3 = vld [vmem:[%s20369_s29] ss:$0 sm:$0xff]  ;;  %v355_v8 = vld [vmem:[%s20365_s25 + $0x510] sm:$0xff] }
 0x1a8   :  { %v15772_v33 = vpop.permute.xlu1 %634  ;;  %v15774_v40 = vpop.permute.xlu0 %629 }
 0x1a9   :  { %v2427_v43 = vadd.f32 %v15474_v41, %v2293_v27  ;;  %v2426_v44 = vadd.f32 %v15474_v41, %v2292_v28  ;;  %v2167_v49 = vmul.f32 %v15451_v30, %v15772_v33  ;;  %1592 = vperm.xlu1 %13700, %v354_v22   ;;  %v2166_v54 = vmul.f32 %v15451_v30, %v15774_v40  ;;  %v362_v28 = vld [vmem:[%s20365_s25 + $0x548] sm:$0xff] }
 0x1aa   :  { %1587 = vperm.xlu0 %13699, %v353_v23  }
 0x1ab   :  { %v2555_v59 = vmax.f32 %v2427_v43, 0.0  ;;  %v2554_v60 = vmax.f32 %v2426_v44, 0.0  ;;  %v2295_v41 = vadd.f32 %v2167_v49, %v1992_v42  ;;  %v2294_v61 = vadd.f32 %v2166_v54, %v1991_v25  ;;  %v364_v49 = vld [vmem:[%s20365_s25 + $0x558] sm:$0xff] }
 0x1ac   :  { %v15788_v62 = vpop.permute.xlu1 %604  ;;  %v15790_v2 = vpop.permute.xlu0 %599 }
 0x1ad   :  { %v2429_v6 = vadd.f32 %v15795_v3, %v2295_v41  ;;  %834 = vperm.xlu1 %13700, %v348_v52   ;;  %v2428_v12 = vadd.f32 %v15795_v3, %v2294_v61  ;;  %v2707_v22 = vpack.c.bf16 %v2555_v59, %v2554_v60  ;;  %v363_v52 = vld [vmem:[%s20365_s25 + $0x550] sm:$0xff]  ;;  %v350_v60 = vld [vmem:[%s20365_s25 + $0x4e8] sm:$0xff]  ;;  %v349_v41 = vld [vmem:[%s20365_s25 + $0x4e0] sm:$0xff]  ;;  %v1091_v61 = vmul.f32 %v15434_v18, %v15788_v62 }
 0x1ae   :  { %829 = vperm.xlu0 %13699, %v347_v53  }
 0x1af   :  { %v2557_v23 = vmax.f32 %v2429_v6, 0.0  ;;  %v2556_v24 = vmax.f32 %v2428_v12, 0.0  ;;  %13028 = vmatprep.mubr.msk.bf16.mxu0 %vm2758_vm1, %v2707_v22  ;;  %v1090_v6 = vmul.f32 %v15434_v18, %v15790_v2 }
 0x1b0   :  { %v1373_v26 = vpop.permute.xlu1 %1372  ;;  %v1368_v27 = vpop.permute.xlu0 %1367 }
 0x1b1   :  { %1602 = vperm.xlu1 %13700, %v356_v7   ;;  %v2708_v42 = vpack.c.bf16 %v2557_v23, %v2556_v24  ;;  %v1866_v53 = vmul.f32 %v15437_v19, %v1373_v26  ;;  %v1865_v59 = vmul.f32 %v15437_v19, %v1368_v27  ;;  %v358_v27 = vld [vmem:[%s20365_s25 + $0x528] sm:$0xff] }
 0x1b2   :  { %1597 = vperm.xlu0 %13699, %v355_v8  }
 0x1b3   :  { %13029 = vmatmul.mubr.msk.bf16.gmra.mrb[16].mxu0 %vm2758_vm1, %v2708_v42  ;;  %v1994_v7 = vadd.f32 %v1866_v53, %v1091_v61  ;;  %v1993_v22 = vadd.f32 %v1865_v59, %v1090_v6 }
 0x1b4   :  { %v15813_v43 = vpop.permute.xlu1 %614  ;;  %v15815_v44 = vpop.permute.xlu0 %609 }
 0x1b5   :  { %864 = vperm.xlu1 %13700, %v362_v28   ;;  %v357_v28 = vld [vmem:[%s20365_s25 + $0x520] sm:$0xff]  ;;  %v1093_v42 = vmul.f32 %v15434_v18, %v15813_v43  ;;  %v1092_v53 = vmul.f32 %v15434_v18, %v15815_v44 }
 0x1b6   :  { %859 = vperm.xlu0 %13699, %v361_v29  }
 0x1b8   :  { %v1383_v25 = vpop.permute.xlu1 %1382  ;;  %v1378_v54 = vpop.permute.xlu0 %1377 }
 0x1b9   :  { %874 = vperm.xlu1 %13700, %v364_v49   ;;  %v1868_v23 = vmul.f32 %v15437_v19, %v1383_v25  ;;  %v1867_v29 = vmul.f32 %v15437_v19, %v1378_v54 }
 0x1ba   :  { %869 = vperm.xlu0 %13699, %v363_v52  }
 0x1bc   :  { %v15835_v8 = vpop.permute.xlu1 %644  ;;  %v15837_v12 = vpop.permute.xlu0 %639 }
 0x1bd   :  { %v2169_v24 = vmul.f32 %v15451_v30, %v15835_v8  ;;  %v2168_v26 = vmul.f32 %v15451_v30, %v15837_v12  ;;  %844 = vperm.xlu1 %13700, %v350_v60   ;;  %v1996_v60 = vadd.f32 %v1868_v23, %v1093_v42 }
 0x1be   :  { %839 = vperm.xlu0 %13699, %v349_v41   ;;  %v352_v41 = vld [vmem:[%s20365_s25 + $0x4f8] sm:$0xff] }
 0x1bf   :  { %v2297_v49 = vadd.f32 %v2169_v24, %v1994_v7  ;;  %v2296_v52 = vadd.f32 %v2168_v26, %v1993_v22  ;;  %v351_v7 = vld [vmem:[%s20365_s25 + $0x4f0] sm:$0xff]  ;;  %v1995_v22 = vadd.f32 %v1867_v29, %v1092_v53 }
 0x1c0   :  { %v15855_v25 = vpop.permute.xlu1 %654  ;;  %v15857_v59 = vpop.permute.xlu0 %649  ;;  %v359_v29 = vld [vmem:[%s20365_s25 + $0x530] sm:$0xff] }
 0x1c1   :  { %20370 = vst [vmem:[#allocation26_spill] sm:$0xff] %v15855_v25  ;;  %20371 = vst [vmem:[#allocation27_spill] sm:$0xff] %v15857_v59  ;;  %v2431_v61 = vadd.f32 %v15795_v3, %v2297_v49  ;;  %v2430_v6 = vadd.f32 %v15795_v3, %v2296_v52  ;;  %v2171_v54 = vmul.f32 %v15451_v30, %v15855_v25  ;;  %1612 = vperm.xlu1 %13700, %v358_v27  }
 0x1c2   :  { %v2170_v23 = vmul.f32 %v15451_v30, %v15857_v59  ;;  %1607 = vperm.xlu0 %13699, %v357_v28  }
 0x1c3   :  { %v2559_v24 = vmax.f32 %v2431_v61, 0.0  ;;  %v2558_v26 = vmax.f32 %v2430_v6, 0.0  ;;  %v2299_v42 = vadd.f32 %v2171_v54, %v1996_v60  ;;  %v13706_v60 = vld [vmem:[#allocation5] sm:$0xff]  }
 0x1c4   :  { %v2298_v49 = vadd.f32 %v2170_v23, %v1995_v22  ;;  %v15871_v52 = vpop.permute.xlu1 %664  ;;  %v15873_v27 = vpop.permute.xlu0 %659  ;;  %13076 = vmatprep.subr.bf16.mxu0 %v13706_v60  ;;  %v365_v23 = vld [vmem:[%s20365_s25 + $0x560] sm:$0xff] }
 0x1c5   :  { %20372 = vst [vmem:[#allocation28_spill] sm:$0xff] %v15871_v52  ;;  %20373 = vst [vmem:[#allocation29_spill] sm:$0xff] %v15873_v27  ;;  %v2433_v0 = vadd.f32 %v15795_v3, %v2299_v42  ;;  %854 = vperm.xlu1 %13700, %v352_v41   ;;  %v2709_v53 = vpack.c.bf16 %v2559_v24, %v2558_v26  ;;  %v366_v41 = vld [vmem:[%s20365_s25 + $0x568] sm:$0xff]  ;;  %13077 = vmatpush3.bf16.msra.mxu0 %v13706_v60  ;;  %v367_v26 = vld [vmem:[%s20365_s25 + $0x570] sm:$0xff] }
 0x1c6   :  { %v2432_v28 = vadd.f32 %v15795_v3, %v2298_v49  ;;  %849 = vperm.xlu0 %13699, %v351_v7  }
 0x1c7   :  { %v2561_v61 = vmax.f32 %v2433_v0, 0.0  ;;  %13032 = vmatprep.mubr.msk.bf16.mxu0 %vm2758_vm1, %v2709_v53  ;;  %v377_v53 = vld [vmem:[%s20365_s25 + $0x5c0] sm:$0xff] }
 0x1c8   :  { %v2560_v6 = vmax.f32 %v2432_v28, 0.0  ;;  %v1433_v54 = vpop.permute.xlu1 %1432  ;;  %v1428_v22 = vpop.permute.xlu0 %1427  ;;  %v378_v28 = vld [vmem:[%s20365_s25 + $0x5c8] sm:$0xff] }
 0x1c9   :  { %1622 = vperm.xlu1 %13700, %v360_v13   ;;  %v368_v13 = vld [vmem:[%s20365_s25 + $0x578] sm:$0xff]  ;;  %v1878_v49 = vmul.f32 %v15437_v19, %v1433_v54  ;;  %v1877_v60 = vmul.f32 %v15437_v19, %v1428_v22  ;;  %v386_v22 = vld [vmem:[%s20365_s25 + $0x608] sm:$0xff] }
 0x1ca   :  { %1617 = vperm.xlu0 %13699, %v359_v29   ;;  %v2710_v7 = vpack.c.bf16 %v2561_v61, %v2560_v6  ;;  %v1103_v61 = vmul.f32 %v15434_v18, %v15871_v52  ;;  %v1102_v6 = vmul.f32 %v15434_v18, %v15873_v27 }
 0x1cc   :  { %13033 = vmatmul.mubr.msk.bf16.gmra.mrb[20].mxu0 %vm2758_vm1, %v2710_v7  ;;  %v15891_v0 = vpop.permute.xlu1 %674  ;;  %v15893_v24 = vpop.permute.xlu0 %669  ;;  %v2005_v9 = vadd.f32 %v1877_v60, %v1102_v6  ;;  %v379_v6 = vld [vmem:[%s20365_s25 + $0x5d0] sm:$0xff] }
 0x1cd   :  { %20374 = vst [vmem:[#allocation30_spill] sm:$0xff] %v15891_v0  ;;  %20375 = vst [vmem:[#allocation31_spill] sm:$0xff] %v15893_v24  ;;  %884 = vperm.xlu1 %13700, %v366_v41   ;;  %v2006_v41 = vadd.f32 %v1878_v49, %v1103_v61  ;;  %v1105_v49 = vmul.f32 %v15434_v18, %v15891_v0 }
 0x1ce   :  { %879 = vperm.xlu0 %13699, %v365_v23  }
 0x1d0   :  { %v1443_v42 = vpop.permute.xlu1 %1442  ;;  %v1438_v29 = vpop.permute.xlu0 %1437 }
 0x1d1   :  { %894 = vperm.xlu1 %13700, %v368_v13   ;;  %v1880_v23 = vmul.f32 %v15437_v19, %v1443_v42  ;;  %v1879_v59 = vmul.f32 %v15437_v19, %v1438_v29 }
 0x1d2   :  { %889 = vperm.xlu0 %13699, %v367_v26   ;;  %v385_v26 = vld [vmem:[%s20365_s25 + $0x600] sm:$0xff] }
 0x1d3   :  { %v2008_v27 = vadd.f32 %v1880_v23, %v1105_v49 }
 0x1d4   :  { %v15913_v54 = vpop.permute.xlu1 %704  ;;  %v15918_v13 = vpop.permute.xlu0 %699 }
 0x1d5   :  { %20376 = vst [vmem:[#allocation32_spill] sm:$0xff] %v15913_v54  ;;  %v2181_v7 = vmul.f32 %v15451_v30, %v15913_v54  ;;  %20377 = vst [vmem:[#allocation33_spill] sm:$0xff] %v15918_v13  ;;  %904 = vperm.xlu1 %13700, %v378_v28   ;;  %v2180_v42 = vmul.f32 %v15451_v30, %v15918_v13  ;;  %v1104_v28 = vmul.f32 %v15434_v18, %v15893_v24 }
 0x1d6   :  { %899 = vperm.xlu0 %13699, %v377_v53   ;;  %v380_v53 = vld [vmem:[%s20365_s25 + $0x5d8] sm:$0xff] }
 0x1d7   :  { %v2309_v61 = vadd.f32 %v2181_v7, %v2006_v41  ;;  %v2308_v54 = vadd.f32 %v2180_v42, %v2005_v9  ;;  %v2007_v9 = vadd.f32 %v1879_v59, %v1104_v28  ;;  %v388_v59 = vld [vmem:[%s20365_s25 + $0x618] sm:$0xff] }
 0x1d8   :  { %v15933_v25 = vpop.permute.xlu1 %714  ;;  %v15938_v60 = vpop.permute.xlu0 %709 }
 0x1d9   :  { %20378 = vst [vmem:[#allocation34_spill] sm:$0xff] %v15933_v25  ;;  %v2443_v52 = vadd.f32 %v15795_v3, %v2309_v61  ;;  %v2183_v29 = vmul.f32 %v15451_v30, %v15933_v25  ;;  %20379 = vst [vmem:[#allocation35_spill] sm:$0xff] %v15938_v60  ;;  %1672 = vperm.xlu1 %13700, %v386_v22   ;;  %v2442_v41 = vadd.f32 %v15795_v3, %v2308_v54  ;;  %v387_v54 = vld [vmem:[%s20365_s25 + $0x610] sm:$0xff] }
 0x1da   :  { %v2182_v23 = vmul.f32 %v15451_v30, %v15938_v60  ;;  %1667 = vperm.xlu0 %13699, %v385_v26  }
 0x1db   :  { %v2571_v7 = vmax.f32 %v2443_v52, 0.0  ;;  %v2311_v42 = vadd.f32 %v2183_v29, %v2008_v27  ;;  %v2570_v49 = vmax.f32 %v2442_v41, 0.0  ;;  %v393_v41 = vld [vmem:[%s20365_s25 + $0x640] sm:$0xff] }
 0x1dc   :  { %v2310_v61 = vadd.f32 %v2182_v23, %v2007_v9  ;;  %v15949_v22 = vpop.permute.xlu1 %684  ;;  %v15952_v13 = vpop.permute.xlu0 %679 }
 0x1dd   :  { %20380 = vst [vmem:[#allocation36_spill] sm:$0xff] %v15949_v22  ;;  %v2445_v25 = vadd.f32 %v15795_v3, %v2311_v42  ;;  %20381 = vst [vmem:[#allocation37_spill] sm:$0xff] %v15952_v13  ;;  %914 = vperm.xlu1 %13700, %v380_v53   ;;  %v2711_v27 = vpack.c.bf16 %v2571_v7, %v2570_v49  ;;  %v394_v53 = vld [vmem:[%s20365_s25 + $0x648] sm:$0xff]  ;;  %v396_v42 = vld [vmem:[%s20365_s25 + $0x658] sm:$0xff] }
 0x1de   :  { %v2444_v52 = vadd.f32 %v15795_v3, %v2310_v61  ;;  %909 = vperm.xlu0 %13699, %v379_v6   ;;  %v395_v49 = vld [vmem:[%s20365_s25 + $0x650] sm:$0xff] }
 0x1df   :  { %v2573_v26 = vmax.f32 %v2445_v25, 0.0  ;;  %13036 = vmatprep.mubr.msk.bf16.mxu0 %vm2758_vm1, %v2711_v27  ;;  %v13707_v25 = vld [vmem:[#allocation5 + $0x8] sm:$0xff]   ;;  %v381_v27 = vld [vmem:[%s20365_s25 + $0x5e0] sm:$0xff] }
 0x1e0   :  { %v2572_v28 = vmax.f32 %v2444_v52, 0.0  ;;  %v1453_v29 = vpop.permute.xlu1 %1452  ;;  %13078 = vmatprep.subr.bf16.mxu0 %v13707_v25  ;;  %v382_v52 = vld [vmem:[%s20365_s25 + $0x5e8] sm:$0xff] }
 0x1e1   :  { %v1448_v9 = vpop.permute.xlu0 %1447  ;;  %1682 = vperm.xlu1 %13700, %v388_v59   ;;  %13079 = vmatpush3.bf16.msra.mxu0 %v13707_v25  ;;  %v1882_v59 = vmul.f32 %v15437_v19, %v1453_v29 }
 0x1e2   :  { %1677 = vperm.xlu0 %13699, %v387_v54   ;;  %v2712_v23 = vpack.c.bf16 %v2573_v26, %v2572_v28  ;;  %v1881_v26 = vmul.f32 %v15437_v19, %v1448_v9  ;;  %v1107_v28 = vmul.f32 %v15434_v18, %v15949_v22  ;;  %v390_v9 = vld [vmem:[%s20365_s25 + $0x628] sm:$0xff] }
 0x1e4   :  { %13037 = vmatmul.mubr.msk.bf16.gmra.mrb[24].mxu0 %vm2758_vm1, %v2712_v23  ;;  %v15969_v6 = vpop.permute.xlu1 %694 }
 0x1e5   :  { %v15971_v7 = vpop.permute.xlu0 %689  ;;  %944 = vperm.xlu1 %13700, %v394_v53   ;;  %v1106_v53 = vmul.f32 %v15434_v18, %v15952_v13 }
 0x1e6   :  { %939 = vperm.xlu0 %13699, %v393_v41   ;;  %v2010_v41 = vadd.f32 %v1882_v59, %v1107_v28  ;;  %v1109_v59 = vmul.f32 %v15434_v18, %v15969_v6 }
 0x1e7   :  { %v2009_v13 = vadd.f32 %v1881_v26, %v1106_v53  ;;  %v383_v53 = vld [vmem:[%s20365_s25 + $0x5f0] sm:$0xff] }
 0x1e8   :  { %v1463_v61 = vpop.permute.xlu1 %1462 }
 0x1e9   :  { %v1458_v54 = vpop.permute.xlu0 %1457  ;;  %954 = vperm.xlu1 %13700, %v396_v42   ;;  %v1884_v23 = vmul.f32 %v15437_v19, %v1463_v61 }
 0x1ea   :  { %949 = vperm.xlu0 %13699, %v395_v49   ;;  %v389_v49 = vld [vmem:[%s20365_s25 + $0x620] sm:$0xff]  ;;  %v1883_v22 = vmul.f32 %v15437_v19, %v1458_v54 }
 0x1eb   :  { %v2012_v24 = vadd.f32 %v1884_v23, %v1109_v59 }
 0x1ec   :  { %v15991_v29 = vpop.permute.xlu1 %724 }
 0x1ed   :  { %20382 = vst [vmem:[#allocation38_spill] sm:$0xff] %v15991_v29  ;;  %v2185_v25 = vmul.f32 %v15451_v30, %v15991_v29  ;;  %v15996_v42 = vpop.permute.xlu0 %719  ;;  %924 = vperm.xlu1 %13700, %v382_v52   ;;  %v1108_v52 = vmul.f32 %v15434_v18, %v15971_v7 }
 0x1ee   :  { %20383 = vst [vmem:[#allocation39_spill] sm:$0xff] %v15996_v42  ;;  %v2184_v61 = vmul.f32 %v15451_v30, %v15996_v42  ;;  %919 = vperm.xlu0 %13699, %v381_v27   ;;  %v384_v27 = vld [vmem:[%s20365_s25 + $0x5f8] sm:$0xff] }
 0x1ef   :  { %v2313_v28 = vadd.f32 %v2185_v25, %v2010_v41 }
 0x1f0   :  { %v2312_v29 = vadd.f32 %v2184_v61, %v2009_v13  ;;  %v16011_v60 = vpop.permute.xlu1 %734  ;;  %v2011_v13 = vadd.f32 %v1883_v22, %v1108_v52  ;;  %v392_v22 = vld [vmem:[%s20365_s25 + $0x638] sm:$0xff] }
 0x1f1   :  { %20384 = vst [vmem:[#allocation40_spill] sm:$0xff] %v16011_v60  ;;  %v2447_v0 = vadd.f32 %v15795_v3, %v2313_v28  ;;  %v2187_v54 = vmul.f32 %v15451_v30, %v16011_v60  ;;  %v16016_v26 = vpop.permute.xlu0 %729  ;;  %1692 = vperm.xlu1 %13700, %v390_v9  }
 0x1f2   :  { %20385 = vst [vmem:[#allocation41_spill] sm:$0xff] %v16016_v26  ;;  %v2446_v41 = vadd.f32 %v15795_v3, %v2312_v29  ;;  %v2186_v23 = vmul.f32 %v15451_v30, %v16016_v26  ;;  %1687 = vperm.xlu0 %13699, %v389_v49   ;;  %v391_v29 = vld [vmem:[%s20365_s25 + $0x630] sm:$0xff] }
 0x1f3   :  { %v2575_v25 = vmax.f32 %v2447_v0, 0.0  ;;  %v2315_v61 = vadd.f32 %v2187_v54, %v2012_v24 }
 0x1f4   :  { %v2574_v59 = vmax.f32 %v2446_v41, 0.0  ;;  %v2314_v28 = vadd.f32 %v2186_v23, %v2011_v13  ;;  %v16027_v9 = vpop.permute.xlu1 %744  ;;  %v397_v41 = vld [vmem:[%s20365_s25 + $0x660] sm:$0xff] }
 0x1f5   :  { %20386 = vst [vmem:[#allocation42_spill] sm:$0xff] %v16027_v9  ;;  %v2449_v60 = vadd.f32 %v15795_v3, %v2315_v61  ;;  %v16030_v42 = vpop.permute.xlu0 %739  ;;  %934 = vperm.xlu1 %13700, %v384_v27   ;;  %v398_v27 = vld [vmem:[%s20365_s25 + $0x668] sm:$0xff]  ;;  %v400_v61 = vld [vmem:[%s20365_s25 + $0x678] sm:$0xff] }
 0x1f6   :  { %20387 = vst [vmem:[#allocation43_spill] sm:$0xff] %v16030_v42  ;;  %v2448_v0 = vadd.f32 %v15795_v3, %v2314_v28  ;;  %929 = vperm.xlu0 %13699, %v383_v53   ;;  %v2713_v24 = vpack.c.bf16 %v2575_v25, %v2574_v59  ;;  %v399_v59 = vld [vmem:[%s20365_s25 + $0x670] sm:$0xff] }
 0x1f7   :  { %v2577_v49 = vmax.f32 %v2449_v60, 0.0  ;;  %v13708_v60 = vld [vmem:[#allocation5 + $0x10] sm:$0xff]  }
 0x1f8   :  { %v2576_v52 = vmax.f32 %v2448_v0, 0.0  ;;  %13040 = vmatprep.mubr.msk.bf16.mxu0 %vm2758_vm1, %v2713_v24  ;;  %v1513_v54 = vpop.permute.xlu1 %1512  ;;  %13080 = vmatprep.subr.bf16.mxu0 %v13708_v60  ;;  %v410_v24 = vld [vmem:[%s20365_s25 + $0x6c8] sm:$0xff] }
 0x1f9   :  { %v1508_v13 = vpop.permute.xlu0 %1507  ;;  %1702 = vperm.xlu1 %13700, %v392_v22   ;;  %13081 = vmatpush3.bf16.msra.mxu0 %v13708_v60  ;;  %v1894_v22 = vmul.f32 %v15437_v19, %v1513_v54 }
 0x1fa   :  { %1697 = vperm.xlu0 %13699, %v391_v29   ;;  %v2714_v23 = vpack.c.bf16 %v2577_v49, %v2576_v52  ;;  %v1893_v0 = vmul.f32 %v15437_v19, %v1508_v13  ;;  %v1119_v49 = vmul.f32 %v15434_v18, %v16027_v9  ;;  %v409_v52 = vld [vmem:[%s20365_s25 + $0x6c0] sm:$0xff] }
 0x1fc   :  { %13041 = vmatmul.mubr.msk.bf16.gmra.mrb[28].mxu0 %vm2758_vm1, %v2714_v23  ;;  %v16047_v53 = vpop.permute.xlu1 %754 }
 0x1fd   :  { %20388 = vst [vmem:[#allocation44_spill] sm:$0xff] %v16047_v53  ;;  %v16049_v25 = vpop.permute.xlu0 %749  ;;  %964 = vperm.xlu1 %13700, %v398_v27   ;;  %v1118_v27 = vmul.f32 %v15434_v18, %v16030_v42  ;;  %v418_v42 = vld [vmem:[%s20365_s25 + $0x708] sm:$0xff] }
 0x1fe   :  { %20389 = vst [vmem:[#allocation45_spill] sm:$0xff] %v16049_v25  ;;  %959 = vperm.xlu0 %13699, %v397_v41   ;;  %v2022_v41 = vadd.f32 %v1894_v22, %v1119_v49  ;;  %v417_v49 = vld [vmem:[%s20365_s25 + $0x700] sm:$0xff] }
 0x200   :  { %v1523_v28 = vpop.permute.xlu1 %1522 }
 0x201   :  { %v1518_v29 = vpop.permute.xlu0 %1517  ;;  %974 = vperm.xlu1 %13700, %v400_v61   ;;  %v1896_v13 = vmul.f32 %v15437_v19, %v1523_v28  ;;  %v2021_v61 = vadd.f32 %v1893_v0, %v1118_v27  ;;  %v1121_v28 = vmul.f32 %v15434_v18, %v16047_v53  ;;  %v1120_v0 = vmul.f32 %v15434_v18, %v16049_v25 }
 0x202   :  { %969 = vperm.xlu0 %13699, %v399_v59   ;;  %v1895_v59 = vmul.f32 %v15437_v19, %v1518_v29 }
 0x203   :  { %v2024_v27 = vadd.f32 %v1896_v13, %v1121_v28  ;;  %v411_v28 = vld [vmem:[%s20365_s25 + $0x6d0] sm:$0xff] }
 0x204   :  { %v16069_v54 = vpop.permute.xlu1 %784 }
 0x205   :  { %20390 = vst [vmem:[#allocation46_spill] sm:$0xff] %v16069_v54  ;;  %v2197_v23 = vmul.f32 %v15451_v30, %v16069_v54  ;;  %v16074_v60 = vpop.permute.xlu0 %779  ;;  %984 = vperm.xlu1 %13700, %v410_v24  }
 0x206   :  { %20391 = vst [vmem:[#allocation47_spill] sm:$0xff] %v16074_v60  ;;  %v2196_v9 = vmul.f32 %v15451_v30, %v16074_v60  ;;  %979 = vperm.xlu0 %13699, %v409_v52  }
 0x207   :  { %v2325_v22 = vadd.f32 %v2197_v23, %v2022_v41  ;;  %v2023_v41 = vadd.f32 %v1895_v59, %v1120_v0 }
 0x208   :  { %v2324_v29 = vadd.f32 %v2196_v9, %v2021_v61  ;;  %v16089_v24 = vpop.permute.xlu1 %794  ;;  %v412_v9 = vld [vmem:[%s20365_s25 + $0x6d8] sm:$0xff] }
 0x209   :  { %20392 = vst [vmem:[#allocation48_spill] sm:$0xff] %v16089_v24  ;;  %v2459_v52 = vadd.f32 %v15795_v3, %v2325_v22  ;;  %v2199_v60 = vmul.f32 %v15451_v30, %v16089_v24  ;;  %v16094_v54 = vpop.permute.xlu0 %789  ;;  %1752 = vperm.xlu1 %13700, %v418_v42  }
 0x20a   :  { %20393 = vst [vmem:[#allocation49_spill] sm:$0xff] %v16094_v54  ;;  %v2458_v23 = vadd.f32 %v15795_v3, %v2324_v29  ;;  %v2198_v53 = vmul.f32 %v15451_v30, %v16094_v54  ;;  %1747 = vperm.xlu0 %13699, %v417_v49  }
 0x20b   :  { %v2587_v13 = vmax.f32 %v2459_v52, 0.0  ;;  %v2327_v61 = vadd.f32 %v2199_v60, %v2024_v27  ;;  %v420_v60 = vld [vmem:[%s20365_s25 + $0x718] sm:$0xff] }
 0x20c   :  { %v2586_v22 = vmax.f32 %v2458_v23, 0.0  ;;  %v2326_v24 = vadd.f32 %v2198_v53, %v2023_v41  ;;  %v16105_v42 = vpop.permute.xlu1 %764  ;;  %v419_v53 = vld [vmem:[%s20365_s25 + $0x710] sm:$0xff] }
 0x20d   :  { %20394 = vst [vmem:[#allocation50_spill] sm:$0xff] %v16105_v42  ;;  %v2461_v59 = vadd.f32 %v15795_v3, %v2327_v61  ;;  %v16108_v0 = vpop.permute.xlu0 %759  ;;  %994 = vperm.xlu1 %13700, %v412_v9  }
 0x20e   :  { %20395 = vst [vmem:[#allocation51_spill] sm:$0xff] %v16108_v0  ;;  %v2460_v49 = vadd.f32 %v15795_v3, %v2326_v24  ;;  %989 = vperm.xlu0 %13699, %v411_v28   ;;  %v2715_v29 = vpack.c.bf16 %v2587_v13, %v2586_v22  ;;  %v426_v3 = vld [vmem:[%s20365_s25 + $0x748] sm:$0xff]  ;;  %v425_v24 = vld [vmem:[%s20365_s25 + $0x740] sm:$0xff]  ;;  %v428_v28 = vld [vmem:[%s20365_s25 + $0x758] sm:$0xff] }
 0x20f   :  { %v2589_v27 = vmax.f32 %v2461_v59, 0.0  ;;  %v427_v22 = vld [vmem:[%s20365_s25 + $0x750] sm:$0xff] }
 0x210   :  { %v2588_v52 = vmax.f32 %v2460_v49, 0.0  ;;  %13044 = vmatprep.mubr.msk.bf16.mxu0 %vm2758_vm1, %v2715_v29  ;;  %v1533_v41 = vpop.permute.xlu1 %1532 }
 0x211   :  { %v1528_v23 = vpop.permute.xlu0 %1527  ;;  %1762 = vperm.xlu1 %13700, %v420_v60   ;;  %v1898_v49 = vmul.f32 %v15437_v19, %v1533_v41  ;;  %v1122_v41 = vmul.f32 %v15434_v18, %v16108_v0 }
 0x212   :  { %1757 = vperm.xlu0 %13699, %v419_v53   ;;  %v2716_v9 = vpack.c.bf16 %v2589_v27, %v2588_v52  ;;  %v1897_v60 = vmul.f32 %v15437_v19, %v1528_v23  ;;  %v414_v27 = vld [vmem:[%s20365_s25 + $0x6e8] sm:$0xff]  ;;  %v1123_v53 = vmul.f32 %v15434_v18, %v16105_v42  ;;  %v413_v52 = vld [vmem:[%s20365_s25 + $0x6e0] sm:$0xff] }
 0x214   :  { %13045 = vmatmul.mubr.msk.bf16.gmra.mrb[32].mxu0 %vm2758_vm1, %v2716_v9  ;;  %v16125_v13 = vpop.permute.xlu1 %774  ;;  %v13709_v9 = vld [vmem:[#allocation5 + $0x18] sm:$0xff]   ;;  %v2025_v42 = vadd.f32 %v1897_v60, %v1122_v41 }
 0x215   :  { %20396 = vst [vmem:[#allocation52_spill] sm:$0xff] %v16125_v13  ;;  %v16127_v61 = vpop.permute.xlu0 %769  ;;  %1024 = vperm.xlu1 %13700, %v426_v3   ;;  %13082 = vmatprep.subr.bf16.mxu0 %v13709_v9 }
 0x216   :  { %20397 = vst [vmem:[#allocation53_spill] sm:$0xff] %v16127_v61  ;;  %1019 = vperm.xlu0 %13699, %v425_v24   ;;  %v2026_v24 = vadd.f32 %v1898_v49, %v1123_v53  ;;  %v422_v49 = vld [vmem:[%s20365_s25 + $0x728] sm:$0xff]  ;;  %13083 = vmatpush3.bf16.msra.mxu0 %v13709_v9 }
 0x218   :  { %v1543_v59 = vpop.permute.xlu1 %1542 }
 0x219   :  { %v1538_v29 = vpop.permute.xlu0 %1537  ;;  %1034 = vperm.xlu1 %13700, %v428_v28   ;;  %v1900_v23 = vmul.f32 %v15437_v19, %v1543_v59  ;;  %v1125_v59 = vmul.f32 %v15434_v18, %v16125_v13 }
 0x21a   :  { %1029 = vperm.xlu0 %13699, %v427_v22   ;;  %v1899_v54 = vmul.f32 %v15437_v19, %v1538_v29  ;;  %v1124_v29 = vmul.f32 %v15434_v18, %v16127_v61 }
 0x21c   :  { %v16147_v3 = vpop.permute.xlu1 %804 }
 0x21d   :  { %20398 = vst [vmem:[#allocation54_spill] sm:$0xff] %v16147_v3  ;;  %v2201_v28 = vmul.f32 %v15451_v30, %v16147_v3  ;;  %v16152_v22 = vpop.permute.xlu0 %799  ;;  %1004 = vperm.xlu1 %13700, %v414_v27   ;;  %v421_v27 = vld [vmem:[%s20365_s25 + $0x720] sm:$0xff]  ;;  %v2027_v3 = vadd.f32 %v1899_v54, %v1124_v29 }
 0x21e   :  { %20399 = vst [vmem:[#allocation55_spill] sm:$0xff] %v16152_v22  ;;  %v2200_v25 = vmul.f32 %v15451_v30, %v16152_v22  ;;  %999 = vperm.xlu0 %13699, %v413_v52   ;;  %v2028_v52 = vadd.f32 %v1900_v23, %v1125_v59  ;;  %v16172_v22 = vld [vmem:[%s20369_s29] ss:$0 sm:$0xff] }
 0x21f   :  { %v2329_v53 = vadd.f32 %v2201_v28, %v2026_v24 }
 0x220   :  { %v2328_v60 = vadd.f32 %v2200_v25, %v2025_v42  ;;  %v16167_v41 = vpop.permute.xlu1 %814  ;;  %v416_v42 = vld [vmem:[%s20365_s25 + $0x6f8] sm:$0xff] }
 0x221   :  { %20400 = vst [vmem:[#allocation56_spill] sm:$0xff] %v16167_v41  ;;  %v2463_v9 = vadd.f32 %v16172_v22, %v2329_v53  ;;  %v2203_v24 = vmul.f32 %v15451_v30, %v16167_v41  ;;  %v16177_v28 = vpop.permute.xlu0 %809  ;;  %1772 = vperm.xlu1 %13700, %v422_v49   ;;  %v415_v53 = vld [vmem:[%s20365_s25 + $0x6f0] sm:$0xff] }
 0x222   :  { %20401 = vst [vmem:[#allocation57_spill] sm:$0xff] %v16177_v28  ;;  %v2462_v61 = vadd.f32 %v16172_v22, %v2328_v60  ;;  %v2202_v25 = vmul.f32 %v15451_v30, %v16177_v28  ;;  %1767 = vperm.xlu0 %13699, %v421_v27  }
 0x223   :  { %v2591_v23 = vmax.f32 %v2463_v9, 0.0  ;;  %v2331_v59 = vadd.f32 %v2203_v24, %v2028_v52  ;;  %v424_v52 = vld [vmem:[%s20365_s25 + $0x738] sm:$0xff] }
 0x224   :  { %v2590_v41 = vmax.f32 %v2462_v61, 0.0  ;;  %v2330_v13 = vadd.f32 %v2202_v25, %v2027_v3  ;;  %v16188_v49 = vpop.permute.xlu1 %824  ;;  %v423_v61 = vld [vmem:[%s20365_s25 + $0x730] sm:$0xff] }
 0x225   :  { %20402 = vst [vmem:[#allocation58_spill] sm:$0xff] %v16188_v49  ;;  %v2465_v54 = vadd.f32 %v16172_v22, %v2331_v59  ;;  %v16191_v29 = vpop.permute.xlu0 %819  ;;  %1014 = vperm.xlu1 %13700, %v416_v42  }
 0x226   :  { %20403 = vst [vmem:[#allocation59_spill] sm:$0xff] %v16191_v29  ;;  %v2464_v27 = vadd.f32 %v16172_v22, %v2330_v13  ;;  %1009 = vperm.xlu0 %13699, %v415_v53   ;;  %v2717_v60 = vpack.c.bf16 %v2591_v23, %v2590_v41  ;;  %v430_v13 = vld [vmem:[%s20365_s25 + $0x768] sm:$0xff]  ;;  %v429_v41 = vld [vmem:[%s20365_s25 + $0x760] sm:$0xff]  ;;  %v432_v53 = vld [vmem:[%s20365_s25 + $0x778] sm:$0xff] }
 0x227   :  { %v2593_v9 = vmax.f32 %v2465_v54, 0.0  ;;  %v431_v54 = vld [vmem:[%s20365_s25 + $0x770] sm:$0xff] }
 0x228   :  { %v2592_v3 = vmax.f32 %v2464_v27, 0.0  ;;  %13048 = vmatprep.mubr.msk.bf16.mxu0 %vm2758_vm1, %v2717_v60  ;;  %v1593_v24 = vpop.permute.xlu1 %1592 }
 0x229   :  { %v1588_v25 = vpop.permute.xlu0 %1587  ;;  %1782 = vperm.xlu1 %13700, %v424_v52   ;;  %v1910_v60 = vmul.f32 %v15437_v19, %v1593_v24 }
 0x22a   :  { %1777 = vperm.xlu0 %13699, %v423_v61   ;;  %v2718_v42 = vpack.c.bf16 %v2593_v9, %v2592_v3  ;;  %v1909_v9 = vmul.f32 %v15437_v19, %v1588_v25  ;;  %v210_v61 = vld [vmem:[%s20365_s25 + $0x88] sm:$0xff]  ;;  %v1135_v3 = vmul.f32 %v15434_v18, %v16188_v49 }
 0x22c   :  { %13049 = vmatmul.mubr.msk.bf16.gmra.mrb[36].mxu0 %vm2758_vm1, %v2718_v42  ;;  %v16208_v23 = vpop.permute.xlu1 %834  ;;  %v209_v42 = vld [vmem:[%s20365_s25 + $0x80] sm:$0xff] }
 0x22d   :  { %20404 = vst [vmem:[#allocation60_spill] sm:$0xff] %v16208_v23  ;;  %v16210_v59 = vpop.permute.xlu0 %829  ;;  %1044 = vperm.xlu1 %13700, %v430_v13   ;;  %v1134_v13 = vmul.f32 %v15434_v18, %v16191_v29  ;;  %v212_v29 = vld [vmem:[%s20365_s25 + $0x98] sm:$0xff] }
 0x22e   :  { %20405 = vst [vmem:[#allocation61_spill] sm:$0xff] %v16210_v59  ;;  %1039 = vperm.xlu0 %13699, %v429_v41   ;;  %v13710_v41 = vld [vmem:[#allocation5 + $0x20] ss:$0 sps:$4 sm:$0xff]  }
 0x22f   :  { %v2037_v49 = vadd.f32 %v1909_v9, %v1134_v13  ;;  %13681 = vmatprep.subr.msk.bf16.mxu0 %vm2855_vm0, %v13710_v41  ;;  %v1136_v9 = vmul.f32 %v15434_v18, %v16210_v59 }
 0x230   :  { %v1603_v27 = vpop.permute.xlu1 %1602 }
 0x231   :  { %v1598_v52 = vpop.permute.xlu0 %1597  ;;  %1054 = vperm.xlu1 %13700, %v432_v53   ;;  %v2038_v53 = vadd.f32 %v1910_v60, %v1135_v3  ;;  %v1912_v25 = vmul.f32 %v15437_v19, %v1603_v27  ;;  %v3263_v27 = vsel %vm2855_vm0, %v13710_v41, 0  ;;  %v1137_v60 = vmul.f32 %v15434_v18, %v16208_v23 }
 0x232   :  { %1049 = vperm.xlu0 %13699, %v431_v54   ;;  %v1911_v0 = vmul.f32 %v15437_v19, %v1598_v52  ;;  %v211_v52 = vld [vmem:[%s20365_s25 + $0x90] sm:$0xff]  ;;  %13085 = vmatpush3.bf16.msra.mxu0 %v3263_v27 }
 0x233   :  { %v2040_v13 = vadd.f32 %v1912_v25, %v1137_v60  ;;  %v213_v60 = vld [vmem:[%s20365_s25 + $0xa0] sm:$0xff] }
 0x234   :  { %v16230_v24 = vpop.permute.xlu1 %864 }
 0x235   :  { %20406 = vst [vmem:[#allocation62_spill] sm:$0xff] %v16230_v24  ;;  %v2213_v54 = vmul.f32 %v15451_v30, %v16230_v24  ;;  %v16235_v28 = vpop.permute.xlu0 %859  ;;  %1232 = vperm.xlu1 %13700, %v210_v61  }
 0x236   :  { %20407 = vst [vmem:[#allocation63_spill] sm:$0xff] %v16235_v28  ;;  %v2212_v26 = vmul.f32 %v15451_v30, %v16235_v28  ;;  %1227 = vperm.xlu0 %13699, %v209_v42  }
 0x237   :  { %v2341_v3 = vadd.f32 %v2213_v54, %v2038_v53  ;;  %v2039_v53 = vadd.f32 %v1911_v0, %v1136_v9 }
 0x238   :  { %v2340_v61 = vadd.f32 %v2212_v26, %v2037_v49  ;;  %v16252_v42 = vpop.permute.xlu1 %874  ;;  %v214_v26 = vld [vmem:[%s20365_s25 + $0xa8] sm:$0xff] }
 0x239   :  { %20408 = vst [vmem:[#allocation64_spill] sm:$0xff] %v16252_v42  ;;  %v2475_v28 = vadd.f32 %v16172_v22, %v2341_v3  ;;  %v2215_v41 = vmul.f32 %v15451_v30, %v16252_v42  ;;  %v16257_v24 = vpop.permute.xlu0 %869  ;;  %1242 = vperm.xlu1 %13700, %v212_v29  }
 0x23a   :  { %20409 = vst [vmem:[#allocation65_spill] sm:$0xff] %v16257_v24  ;;  %v2474_v54 = vadd.f32 %v16172_v22, %v2340_v61  ;;  %v2214_v27 = vmul.f32 %v15451_v30, %v16257_v24  ;;  %1237 = vperm.xlu0 %13699, %v211_v52  }
 0x23b   :  { %v2603_v49 = vmax.f32 %v2475_v28, 0.0  ;;  %v2343_v25 = vadd.f32 %v2215_v41, %v2040_v13  ;;  %v216_v28 = vld [vmem:[%s20365_s25 + $0xb8] sm:$0xff]  ;;  %v215_v41 = vld [vmem:[%s20365_s25 + $0xb0] sm:$0xff] }
 0x23c   :  { %v2602_v3 = vmax.f32 %v2474_v54, 0.0  ;;  %v2342_v42 = vadd.f32 %v2214_v27, %v2039_v53  ;;  %v16268_v29 = vpop.permute.xlu1 %844 }
 0x23d   :  { %20410 = vst [vmem:[#allocation66_spill] sm:$0xff] %v16268_v29  ;;  %v2477_v0 = vadd.f32 %v16172_v22, %v2343_v25  ;;  %v16271_v9 = vpop.permute.xlu0 %839  ;;  %1252 = vperm.xlu1 %13700, %v214_v26  }
 0x23e   :  { %20411 = vst [vmem:[#allocation67_spill] sm:$0xff] %v16271_v9  ;;  %v2476_v52 = vadd.f32 %v16172_v22, %v2342_v42  ;;  %1247 = vperm.xlu0 %13699, %v213_v60   ;;  %v2719_v61 = vpack.c.bf16 %v2603_v49, %v2602_v3  ;;  %v242_v42 = vld [vmem:[%s20365_s25 + $0x188] sm:$0xff]  ;;  %v241_v49 = vld [vmem:[%s20365_s25 + $0x180] sm:$0xff]  ;;  %v244_v3 = vld [vmem:[%s20365_s25 + $0x198] sm:$0xff] }
 0x23f   :  { %v2605_v13 = vmax.f32 %v2477_v0, 0.0  ;;  %v243_v0 = vld [vmem:[%s20365_s25 + $0x190] sm:$0xff] }
 0x240   :  { %v2604_v53 = vmax.f32 %v2476_v52, 0.0  ;;  %13052 = vmatprep.mubr.msk.bf16.mxu0 %vm2758_vm1, %v2719_v61  ;;  %v1613_v54 = vpop.permute.xlu1 %1612 }
 0x241   :  { %v1608_v27 = vpop.permute.xlu0 %1607  ;;  %1262 = vperm.xlu1 %13700, %v216_v28   ;;  %v1914_v61 = vmul.f32 %v15437_v19, %v1613_v54 }
 0x242   :  { %1257 = vperm.xlu0 %13699, %v215_v41   ;;  %v2720_v26 = vpack.c.bf16 %v2605_v13, %v2604_v53  ;;  %v1913_v13 = vmul.f32 %v15437_v19, %v1608_v27  ;;  %v246_v41 = vld [vmem:[%s20365_s25 + $0x1a8] sm:$0xff]  ;;  %v1139_v53 = vmul.f32 %v15434_v18, %v16268_v29 }
 0x244   :  { %13053 = vmatmul.mubr.msk.bf16.gmra.mrb[40].mxu0 %vm2758_vm1, %v2720_v26  ;;  %v16288_v25 = vpop.permute.xlu1 %854  ;;  %v245_v26 = vld [vmem:[%s20365_s25 + $0x1a0] sm:$0xff] }
 0x245   :  { %20412 = vst [vmem:[#allocation68_spill] sm:$0xff] %v16288_v25  ;;  %v16290_v60 = vpop.permute.xlu0 %849  ;;  %1312 = vperm.xlu1 %13700, %v242_v42   ;;  %v1138_v42 = vmul.f32 %v15434_v18, %v16271_v9  ;;  %v248_v9 = vld [vmem:[%s20365_s25 + $0x1b8] sm:$0xff] }
 0x246   :  { %20413 = vst [vmem:[#allocation69_spill] sm:$0xff] %v16290_v60  ;;  %1307 = vperm.xlu0 %13699, %v241_v49   ;;  %v2042_v49 = vadd.f32 %v1914_v61, %v1139_v53  ;;  %v16323_v61 = vld [vmem:[#allocation5 + $0x48] sm:$0xff]  }
 0x247   :  { %v2041_v24 = vadd.f32 %v1913_v13, %v1138_v42  ;;  %v247_v13 = vld [vmem:[%s20365_s25 + $0x1b0] sm:$0xff]  ;;  %13150 = vmatprep.subr.bf16.mxu0 %v16323_v61 }
 0x248   :  { %v1623_v52 = vpop.permute.xlu1 %1622 }
 0x249   :  { %v1618_v28 = vpop.permute.xlu0 %1617  ;;  %1322 = vperm.xlu1 %13700, %v244_v3   ;;  %v1916_v27 = vmul.f32 %v15437_v19, %v1623_v52  ;;  %v1141_v52 = vmul.f32 %v15434_v18, %v16288_v25 }
 0x24a   :  { %1317 = vperm.xlu0 %13699, %v243_v0   ;;  %v1915_v29 = vmul.f32 %v15437_v19, %v1618_v28  ;;  %v1140_v28 = vmul.f32 %v15434_v18, %v16290_v60 }
 0x24c   :  { %v16310_v54 = vpop.permute.xlu1 %884 }
 0x24d   :  { %20414 = vst [vmem:[#allocation70_spill] sm:$0xff] %v16310_v54  ;;  %v2217_v3 = vmul.f32 %v15451_v30, %v16310_v54  ;;  %v16315_v0 = vpop.permute.xlu0 %879  ;;  %1332 = vperm.xlu1 %13700, %v246_v41  }
 0x24e   :  { %20415 = vst [vmem:[#allocation71_spill] sm:$0xff] %v16315_v0  ;;  %v2216_v59 = vmul.f32 %v15451_v30, %v16315_v0  ;;  %1327 = vperm.xlu0 %13699, %v245_v26   ;;  %v2044_v26 = vadd.f32 %v1916_v27, %v1141_v52  ;;  %v273_v52 = vld [vmem:[%s20365_s25 + $0x280] sm:$0xff] }
 0x24f   :  { %v2345_v53 = vadd.f32 %v2217_v3, %v2042_v49  ;;  %v2043_v49 = vadd.f32 %v1915_v29, %v1140_v28 }
 0x250   :  { %v2344_v41 = vadd.f32 %v2216_v59, %v2041_v24  ;;  %v16332_v42 = vpop.permute.xlu1 %894  ;;  %v274_v59 = vld [vmem:[%s20365_s25 + $0x288] sm:$0xff] }
 0x251   :  { %20416 = vst [vmem:[#allocation72_spill] sm:$0xff] %v16332_v42  ;;  %v2479_v0 = vadd.f32 %v16172_v22, %v2345_v53  ;;  %v2219_v54 = vmul.f32 %v15451_v30, %v16332_v42  ;;  %v16338_v25 = vpop.permute.xlu0 %889  ;;  %1342 = vperm.xlu1 %13700, %v248_v9  }
 0x252   :  { %20417 = vst [vmem:[#allocation73_spill] sm:$0xff] %v16338_v25  ;;  %v2478_v3 = vadd.f32 %v16172_v22, %v2344_v41  ;;  %v2218_v60 = vmul.f32 %v15451_v30, %v16338_v25  ;;  %1337 = vperm.xlu0 %13699, %v247_v13  }
 0x253   :  { %v2607_v24 = vmax.f32 %v2479_v0, 0.0  ;;  %v2347_v27 = vadd.f32 %v2219_v54, %v2044_v26  ;;  %v276_v54 = vld [vmem:[%s20365_s25 + $0x298] sm:$0xff] }
 0x254   :  { %v2606_v53 = vmax.f32 %v2478_v3, 0.0  ;;  %v2346_v42 = vadd.f32 %v2218_v60, %v2043_v49  ;;  %v16349_v9 = vpop.permute.xlu1 %904  ;;  %v275_v60 = vld [vmem:[%s20365_s25 + $0x290] sm:$0xff] }
 0x255   :  { %20418 = vst [vmem:[#allocation74_spill] sm:$0xff] %v16349_v9  ;;  %v2481_v29 = vadd.f32 %v16172_v22, %v2347_v27  ;;  %v16352_v28 = vpop.permute.xlu0 %899  ;;  %1392 = vperm.xlu1 %13700, %v274_v59  }
 0x256   :  { %20419 = vst [vmem:[#allocation75_spill] sm:$0xff] %v16352_v28  ;;  %v2480_v13 = vadd.f32 %v16172_v22, %v2346_v42  ;;  %1387 = vperm.xlu0 %13699, %v273_v52   ;;  %v2721_v41 = vpack.c.bf16 %v2607_v24, %v2606_v53  ;;  %v278_v42 = vld [vmem:[%s20365_s25 + $0x2a8] sm:$0xff]  ;;  %v277_v24 = vld [vmem:[%s20365_s25 + $0x2a0] sm:$0xff]  ;;  %v280_v53 = vld [vmem:[%s20365_s25 + $0x2b8] sm:$0xff] }
 0x257   :  { %v2609_v0 = vmax.f32 %v2481_v29, 0.0  ;;  %v279_v29 = vld [vmem:[%s20365_s25 + $0x2b0] sm:$0xff] }
 0x258   :  { %v2608_v26 = vmax.f32 %v2480_v13, 0.0  ;;  %13056 = vmatprep.mubr.msk.bf16.mxu0 %vm2758_vm1, %v2721_v41  ;;  %v1673_v49 = vpop.permute.xlu1 %1672 }
 0x259   :  { %v1668_v3 = vpop.permute.xlu0 %1667  ;;  %1402 = vperm.xlu1 %13700, %v276_v54   ;;  %v1926_v41 = vmul.f32 %v15437_v19, %v1673_v49 }
 0x25a   :  { %1397 = vperm.xlu0 %13699, %v275_v60   ;;  %v2722_v59 = vpack.c.bf16 %v2609_v0, %v2608_v26  ;;  %v1925_v0 = vmul.f32 %v15437_v19, %v1668_v3  ;;  %v306_v60 = vld [vmem:[%s20365_s25 + $0x388] sm:$0xff]  ;;  %v1151_v26 = vmul.f32 %v15434_v18, %v16349_v9 }
 0x25c   :  { %13057 = vmatmul.mubr.msk.bf16.gmra.mrb[44].mxu0 %vm2758_vm1, %v2722_v59  ;;  %v16369_v27 = vpop.permute.xlu1 %914  ;;  %v305_v59 = vld [vmem:[%s20365_s25 + $0x380] sm:$0xff] }
 0x25d   :  { %20420 = vst [vmem:[#allocation76_spill] sm:$0xff] %v16369_v27  ;;  %v16371_v52 = vpop.permute.xlu0 %909  ;;  %1412 = vperm.xlu1 %13700, %v278_v42   ;;  %v1150_v42 = vmul.f32 %v15434_v18, %v16352_v28  ;;  %v308_v28 = vld [vmem:[%s20365_s25 + $0x398] sm:$0xff] }
 0x25e   :  { %20421 = vst [vmem:[#allocation77_spill] sm:$0xff] %v16371_v52  ;;  %1407 = vperm.xlu0 %13699, %v277_v24   ;;  %v2054_v24 = vadd.f32 %v1926_v41, %v1151_v26  ;;  %v307_v26 = vld [vmem:[%s20365_s25 + $0x390] sm:$0xff] }
 0x25f   :  { %v2053_v25 = vadd.f32 %v1925_v0, %v1150_v42  ;;  %v1152_v0 = vmul.f32 %v15434_v18, %v16371_v52 }
 0x260   :  { %v1683_v13 = vpop.permute.xlu1 %1682 }
 0x261   :  { %v1678_v54 = vpop.permute.xlu0 %1677  ;;  %1422 = vperm.xlu1 %13700, %v280_v53   ;;  %v1928_v3 = vmul.f32 %v15437_v19, %v1683_v13  ;;  %v1153_v13 = vmul.f32 %v15434_v18, %v16369_v27 }
 0x262   :  { %1417 = vperm.xlu0 %13699, %v279_v29   ;;  %v1927_v9 = vmul.f32 %v15437_v19, %v1678_v54 }
 0x263   :  { %v2056_v42 = vadd.f32 %v1928_v3, %v1153_v13  ;;  %v309_v13 = vld [vmem:[%s20365_s25 + $0x3a0] sm:$0xff] }
 0x264   :  { %v16391_v49 = vpop.permute.xlu1 %944 }
 0x265   :  { %20422 = vst [vmem:[#allocation78_spill] sm:$0xff] %v16391_v49  ;;  %v2229_v53 = vmul.f32 %v15451_v30, %v16391_v49  ;;  %v16396_v29 = vpop.permute.xlu0 %939  ;;  %1472 = vperm.xlu1 %13700, %v306_v60  }
 0x266   :  { %20423 = vst [vmem:[#allocation79_spill] sm:$0xff] %v16396_v29  ;;  %v2228_v23 = vmul.f32 %v15451_v30, %v16396_v29  ;;  %1467 = vperm.xlu0 %13699, %v305_v59  }
 0x267   :  { %v2357_v41 = vadd.f32 %v2229_v53, %v2054_v24  ;;  %v2055_v24 = vadd.f32 %v1927_v9, %v1152_v0 }
 0x268   :  { %v2356_v54 = vadd.f32 %v2228_v23, %v2053_v25  ;;  %v16411_v60 = vpop.permute.xlu1 %954  ;;  %v310_v23 = vld [vmem:[%s20365_s25 + $0x3a8] sm:$0xff] }
 0x269   :  { %20424 = vst [vmem:[#allocation80_spill] sm:$0xff] %v16411_v60  ;;  %v2491_v59 = vadd.f32 %v16172_v22, %v2357_v41  ;;  %v2231_v29 = vmul.f32 %v15451_v30, %v16411_v60  ;;  %v16416_v49 = vpop.permute.xlu0 %949  ;;  %1482 = vperm.xlu1 %13700, %v308_v28  }
 0x26a   :  { %20425 = vst [vmem:[#allocation81_spill] sm:$0xff] %v16416_v49  ;;  %v2490_v53 = vadd.f32 %v16172_v22, %v2356_v54  ;;  %v2230_v27 = vmul.f32 %v15451_v30, %v16416_v49  ;;  %1477 = vperm.xlu0 %13699, %v307_v26  }
 0x26b   :  { %v2619_v25 = vmax.f32 %v2491_v59, 0.0  ;;  %v2359_v3 = vadd.f32 %v2231_v29, %v2056_v42  ;;  %v312_v29 = vld [vmem:[%s20365_s25 + $0x3b8] sm:$0xff] }
 0x26c   :  { %v2618_v41 = vmax.f32 %v2490_v53, 0.0  ;;  %v2358_v60 = vadd.f32 %v2230_v27, %v2055_v24  ;;  %v16427_v28 = vpop.permute.xlu1 %924  ;;  %v311_v27 = vld [vmem:[%s20365_s25 + $0x3b0] sm:$0xff] }
 0x26d   :  { %20426 = vst [vmem:[#allocation82_spill] sm:$0xff] %v16427_v28  ;;  %v2493_v9 = vadd.f32 %v16172_v22, %v2359_v3  ;;  %v16430_v0 = vpop.permute.xlu0 %919  ;;  %1492 = vperm.xlu1 %13700, %v310_v23  }
 0x26e   :  { %20427 = vst [vmem:[#allocation83_spill] sm:$0xff] %v16430_v0  ;;  %v2492_v26 = vadd.f32 %v16172_v22, %v2358_v60  ;;  %1487 = vperm.xlu0 %13699, %v309_v13   ;;  %v2723_v54 = vpack.c.bf16 %v2619_v25, %v2618_v41  ;;  %v338_v60 = vld [vmem:[%s20365_s25 + $0x488] sm:$0xff]  ;;  %v337_v25 = vld [vmem:[%s20365_s25 + $0x480] sm:$0xff]  ;;  %v340_v41 = vld [vmem:[%s20365_s25 + $0x498] sm:$0xff] }
 0x26f   :  { %v2621_v42 = vmax.f32 %v2493_v9, 0.0  ;;  %v339_v9 = vld [vmem:[%s20365_s25 + $0x490] sm:$0xff] }
 0x270   :  { %v2620_v59 = vmax.f32 %v2492_v26, 0.0  ;;  %13060 = vmatprep.mubr.msk.bf16.mxu0 %vm2758_vm1, %v2723_v54  ;;  %v1693_v24 = vpop.permute.xlu1 %1692 }
 0x271   :  { %v1688_v53 = vpop.permute.xlu0 %1687  ;;  %1502 = vperm.xlu1 %13700, %v312_v29   ;;  %v1930_v54 = vmul.f32 %v15437_v19, %v1693_v24 }
 0x272   :  { %1497 = vperm.xlu0 %13699, %v311_v27   ;;  %v2724_v23 = vpack.c.bf16 %v2621_v42, %v2620_v59  ;;  %v1929_v42 = vmul.f32 %v15437_v19, %v1688_v53  ;;  %v342_v27 = vld [vmem:[%s20365_s25 + $0x4a8] sm:$0xff]  ;;  %v1155_v59 = vmul.f32 %v15434_v18, %v16427_v28 }
 0x274   :  { %13061 = vmatmul.mubr.msk.bf16.gmra.mrb[48].mxu0 %vm2758_vm1, %v2724_v23  ;;  %v16447_v3 = vpop.permute.xlu1 %934  ;;  %v341_v23 = vld [vmem:[%s20365_s25 + $0x4a0] sm:$0xff] }
 0x275   :  { %20428 = vst [vmem:[#allocation84_spill] sm:$0xff] %v16447_v3  ;;  %v16449_v13 = vpop.permute.xlu0 %929  ;;  %1552 = vperm.xlu1 %13700, %v338_v60   ;;  %v1154_v60 = vmul.f32 %v15434_v18, %v16430_v0  ;;  %v344_v0 = vld [vmem:[%s20365_s25 + $0x4b8] sm:$0xff] }
 0x276   :  { %20429 = vst [vmem:[#allocation85_spill] sm:$0xff] %v16449_v13  ;;  %1547 = vperm.xlu0 %13699, %v337_v25   ;;  %v2058_v25 = vadd.f32 %v1930_v54, %v1155_v59  ;;  %v343_v59 = vld [vmem:[%s20365_s25 + $0x4b0] sm:$0xff] }
 0x277   :  { %v2057_v49 = vadd.f32 %v1929_v42, %v1154_v60  ;;  %v1156_v42 = vmul.f32 %v15434_v18, %v16449_v13 }
 0x278   :  { %v1703_v26 = vpop.permute.xlu1 %1702 }
 0x279   :  { %v1698_v29 = vpop.permute.xlu0 %1697  ;;  %1562 = vperm.xlu1 %13700, %v340_v41   ;;  %v1932_v53 = vmul.f32 %v15437_v19, %v1703_v26  ;;  %v1157_v26 = vmul.f32 %v15434_v18, %v16447_v3 }
 0x27a   :  { %1557 = vperm.xlu0 %13699, %v339_v9   ;;  %v1931_v28 = vmul.f32 %v15437_v19, %v1698_v29 }
 0x27b   :  { %v2060_v60 = vadd.f32 %v1932_v53, %v1157_v26  ;;  %v369_v26 = vld [vmem:[%s20365_s25 + $0x580] sm:$0xff] }
 0x27c   :  { %v16469_v24 = vpop.permute.xlu1 %964 }
 0x27d   :  { %20430 = vst [vmem:[#allocation86_spill] sm:$0xff] %v16469_v24  ;;  %v2233_v41 = vmul.f32 %v15451_v30, %v16469_v24  ;;  %v16474_v9 = vpop.permute.xlu0 %959  ;;  %1572 = vperm.xlu1 %13700, %v342_v27  }
 0x27e   :  { %20431 = vst [vmem:[#allocation87_spill] sm:$0xff] %v16474_v9  ;;  %v2232_v52 = vmul.f32 %v15451_v30, %v16474_v9  ;;  %1567 = vperm.xlu0 %13699, %v341_v23  }
 0x27f   :  { %v2361_v54 = vadd.f32 %v2233_v41, %v2058_v25  ;;  %v2059_v25 = vadd.f32 %v1931_v28, %v1156_v42 }
 0x280   :  { %v2360_v29 = vadd.f32 %v2232_v52, %v2057_v49  ;;  %v16489_v27 = vpop.permute.xlu1 %974  ;;  %v370_v52 = vld [vmem:[%s20365_s25 + $0x588] sm:$0xff] }
 0x281   :  { %20432 = vst [vmem:[#allocation88_spill] sm:$0xff] %v16489_v27  ;;  %v2495_v23 = vadd.f32 %v16172_v22, %v2361_v54  ;;  %v2235_v9 = vmul.f32 %v15451_v30, %v16489_v27  ;;  %v16494_v24 = vpop.permute.xlu0 %969  ;;  %1582 = vperm.xlu1 %13700, %v344_v0  }
 0x282   :  { %20433 = vst [vmem:[#allocation89_spill] sm:$0xff] %v16494_v24  ;;  %v2494_v41 = vadd.f32 %v16172_v22, %v2360_v29  ;;  %v2234_v3 = vmul.f32 %v15451_v30, %v16494_v24  ;;  %1577 = vperm.xlu0 %13699, %v343_v59  }
 0x283   :  { %v2623_v49 = vmax.f32 %v2495_v23, 0.0  ;;  %v2363_v53 = vadd.f32 %v2235_v9, %v2060_v60  ;;  %v372_v9 = vld [vmem:[%s20365_s25 + $0x598] sm:$0xff] }
 0x284   :  { %v2622_v54 = vmax.f32 %v2494_v41, 0.0  ;;  %v2362_v27 = vadd.f32 %v2234_v3, %v2059_v25  ;;  %v16505_v0 = vpop.permute.xlu1 %984  ;;  %v371_v3 = vld [vmem:[%s20365_s25 + $0x590] sm:$0xff] }
 0x285   :  { %20434 = vst [vmem:[#allocation90_spill] sm:$0xff] %v16505_v0  ;;  %v2497_v28 = vadd.f32 %v16172_v22, %v2363_v53  ;;  %v16508_v42 = vpop.permute.xlu0 %979  ;;  %1632 = vperm.xlu1 %13700, %v370_v52  }
 0x286   :  { %20435 = vst [vmem:[#allocation91_spill] sm:$0xff] %v16508_v42  ;;  %v2496_v59 = vadd.f32 %v16172_v22, %v2362_v27  ;;  %1627 = vperm.xlu0 %13699, %v369_v26   ;;  %v2725_v29 = vpack.c.bf16 %v2623_v49, %v2622_v54  ;;  %v374_v27 = vld [vmem:[%s20365_s25 + $0x5a8] sm:$0xff]  ;;  %v373_v49 = vld [vmem:[%s20365_s25 + $0x5a0] sm:$0xff]  ;;  %v376_v54 = vld [vmem:[%s20365_s25 + $0x5b8] sm:$0xff] }
 0x287   :  { %v2625_v60 = vmax.f32 %v2497_v28, 0.0  ;;  %v375_v28 = vld [vmem:[%s20365_s25 + $0x5b0] sm:$0xff] }
 0x288   :  { %v2624_v23 = vmax.f32 %v2496_v59, 0.0  ;;  %13064 = vmatprep.mubr.msk.bf16.mxu0 %vm2758_vm1, %v2725_v29  ;;  %v1753_v25 = vpop.permute.xlu1 %1752 }
 0x289   :  { %v1748_v41 = vpop.permute.xlu0 %1747  ;;  %1642 = vperm.xlu1 %13700, %v372_v9   ;;  %v1942_v29 = vmul.f32 %v15437_v19, %v1753_v25 }
 0x28a   :  { %1637 = vperm.xlu0 %13699, %v371_v3   ;;  %v2726_v52 = vpack.c.bf16 %v2625_v60, %v2624_v23  ;;  %v1941_v60 = vmul.f32 %v15437_v19, %v1748_v41  ;;  %v402_v3 = vld [vmem:[%s20365_s25 + $0x688] sm:$0xff]  ;;  %v1167_v23 = vmul.f32 %v15434_v18, %v16505_v0 }
 0x28c   :  { %13065 = vmatmul.mubr.msk.bf16.gmra.mrb[52].mxu0 %vm2758_vm1, %v2726_v52  ;;  %v16525_v53 = vpop.permute.xlu1 %994  ;;  %v401_v52 = vld [vmem:[%s20365_s25 + $0x680] sm:$0xff] }
 0x28d   :  { %20436 = vst [vmem:[#allocation92_spill] sm:$0xff] %v16525_v53  ;;  %v16527_v26 = vpop.permute.xlu0 %989  ;;  %1652 = vperm.xlu1 %13700, %v374_v27   ;;  %v1166_v27 = vmul.f32 %v15434_v18, %v16508_v42  ;;  %v404_v42 = vld [vmem:[%s20365_s25 + $0x698] sm:$0xff] }
 0x28e   :  { %20437 = vst [vmem:[#allocation93_spill] sm:$0xff] %v16527_v26  ;;  %1647 = vperm.xlu0 %13699, %v373_v49   ;;  %v2070_v49 = vadd.f32 %v1942_v29, %v1167_v23  ;;  %v403_v23 = vld [vmem:[%s20365_s25 + $0x690] sm:$0xff] }
 0x28f   :  { %v2069_v24 = vadd.f32 %v1941_v60, %v1166_v27  ;;  %v1168_v60 = vmul.f32 %v15434_v18, %v16527_v26 }
 0x290   :  { %v1763_v59 = vpop.permute.xlu1 %1762 }
 0x291   :  { %v1758_v9 = vpop.permute.xlu0 %1757  ;;  %1662 = vperm.xlu1 %13700, %v376_v54   ;;  %v1944_v41 = vmul.f32 %v15437_v19, %v1763_v59  ;;  %v1169_v59 = vmul.f32 %v15434_v18, %v16525_v53 }
 0x292   :  { %1657 = vperm.xlu0 %13699, %v375_v28   ;;  %v1943_v0 = vmul.f32 %v15437_v19, %v1758_v9 }
 0x293   :  { %v2072_v27 = vadd.f32 %v1944_v41, %v1169_v59  ;;  %v405_v59 = vld [vmem:[%s20365_s25 + $0x6a0] sm:$0xff] }
 0x294   :  { %v16547_v25 = vpop.permute.xlu1 %1024 }
 0x295   :  { %20438 = vst [vmem:[#allocation94_spill] sm:$0xff] %v16547_v25  ;;  %v2245_v54 = vmul.f32 %v15451_v30, %v16547_v25  ;;  %v16552_v28 = vpop.permute.xlu0 %1019  ;;  %1712 = vperm.xlu1 %13700, %v402_v3  }
 0x296   :  { %20439 = vst [vmem:[#allocation95_spill] sm:$0xff] %v16552_v28  ;;  %v2244_v13 = vmul.f32 %v15451_v30, %v16552_v28  ;;  %1707 = vperm.xlu0 %13699, %v401_v52  }
 0x297   :  { %v2373_v29 = vadd.f32 %v2245_v54, %v2070_v49  ;;  %v2071_v49 = vadd.f32 %v1943_v0, %v1168_v60 }
 0x298   :  { %v2372_v9 = vadd.f32 %v2244_v13, %v2069_v24  ;;  %v16567_v3 = vpop.permute.xlu1 %1034  ;;  %v406_v13 = vld [vmem:[%s20365_s25 + $0x6a8] sm:$0xff] }
 0x299   :  { %20440 = vst [vmem:[#allocation96_spill] sm:$0xff] %v16567_v3  ;;  %v2507_v52 = vadd.f32 %v16172_v22, %v2373_v29  ;;  %v2247_v28 = vmul.f32 %v15451_v30, %v16567_v3  ;;  %v16572_v25 = vpop.permute.xlu0 %1029  ;;  %1722 = vperm.xlu1 %13700, %v404_v42  }
 0x29a   :  { %20441 = vst [vmem:[#allocation97_spill] sm:$0xff] %v16572_v25  ;;  %v2506_v54 = vadd.f32 %v16172_v22, %v2372_v9  ;;  %v2246_v53 = vmul.f32 %v15451_v30, %v16572_v25  ;;  %1717 = vperm.xlu0 %13699, %v403_v23  }
 0x29b   :  { %v2635_v24 = vmax.f32 %v2507_v52, 0.0  ;;  %v2375_v41 = vadd.f32 %v2247_v28, %v2072_v27  ;;  %v408_v28 = vld [vmem:[%s20365_s25 + $0x6b8] sm:$0xff] }
 0x29c   :  { %v2634_v29 = vmax.f32 %v2506_v54, 0.0  ;;  %v2374_v3 = vadd.f32 %v2246_v53, %v2071_v49  ;;  %v16583_v42 = vpop.permute.xlu1 %1004  ;;  %v407_v53 = vld [vmem:[%s20365_s25 + $0x6b0] sm:$0xff] }
 0x29d   :  { %20442 = vst [vmem:[#allocation98_spill] sm:$0xff] %v16583_v42  ;;  %v2509_v0 = vadd.f32 %v16172_v22, %v2375_v41  ;;  %v16586_v60 = vpop.permute.xlu0 %999  ;;  %1732 = vperm.xlu1 %13700, %v406_v13  }
 0x29e   :  { %20443 = vst [vmem:[#allocation99_spill] sm:$0xff] %v16586_v60  ;;  %v2508_v23 = vadd.f32 %v16172_v22, %v2374_v3  ;;  %1727 = vperm.xlu0 %13699, %v405_v59   ;;  %v2727_v9 = vpack.c.bf16 %v2635_v24, %v2634_v29  ;;  %v434_v3 = vld [vmem:[%s20365_s25 + $0x788] sm:$0xff]  ;;  %v433_v24 = vld [vmem:[%s20365_s25 + $0x780] sm:$0xff]  ;;  %v436_v29 = vld [vmem:[%s20365_s25 + $0x798] sm:$0xff] }
 0x29f   :  { %v2637_v27 = vmax.f32 %v2509_v0, 0.0  ;;  %v435_v0 = vld [vmem:[%s20365_s25 + $0x790] sm:$0xff] }
 0x2a0   :  { %v2636_v52 = vmax.f32 %v2508_v23, 0.0  ;;  %13068 = vmatprep.mubr.msk.bf16.mxu0 %vm2758_vm1, %v2727_v9  ;;  %v1773_v49 = vpop.permute.xlu1 %1772 }
 0x2a1   :  { %v1768_v54 = vpop.permute.xlu0 %1767  ;;  %1742 = vperm.xlu1 %13700, %v408_v28   ;;  %v1946_v9 = vmul.f32 %v15437_v19, %v1773_v49 }
 0x2a2   :  { %1737 = vperm.xlu0 %13699, %v407_v53   ;;  %v2728_v13 = vpack.c.bf16 %v2637_v27, %v2636_v52  ;;  %v1945_v27 = vmul.f32 %v15437_v19, %v1768_v54  ;;  %v442_v53 = vld [vmem:[%s20365_s25 + $0x7c8] sm:$0xff]  ;;  %v1171_v52 = vmul.f32 %v15434_v18, %v16583_v42 }
 0x2a4   :  { %13069 = vmatmul.mubr.msk.bf16.gmra.mrb[56].mxu0 %vm2758_vm1, %v2728_v13  ;;  %v16603_v41 = vpop.permute.xlu1 %1014  ;;  %v441_v13 = vld [vmem:[%s20365_s25 + $0x7c0] sm:$0xff] }
 0x2a5   :  { %20444 = vst [vmem:[#allocation100_spill] sm:$0xff] %v16603_v41  ;;  %v16605_v59 = vpop.permute.xlu0 %1009  ;;  %1792 = vperm.xlu1 %13700, %v434_v3   ;;  %v1170_v3 = vmul.f32 %v15434_v18, %v16586_v60  ;;  %v444_v60 = vld [vmem:[%s20365_s25 + $0x7d8] sm:$0xff] }
 0x2a6   :  { %1787 = vperm.xlu0 %13699, %v433_v24   ;;  %v2074_v24 = vadd.f32 %v1946_v9, %v1171_v52  ;;  %v443_v52 = vld [vmem:[%s20365_s25 + $0x7d0] sm:$0xff] }
 0x2a7   :  { %v2073_v25 = vadd.f32 %v1945_v27, %v1170_v3  ;;  %v1172_v27 = vmul.f32 %v15434_v18, %v16605_v59 }
 0x2a8   :  { %v1783_v23 = vpop.permute.xlu1 %1782 }
 0x2a9   :  { %v1778_v28 = vpop.permute.xlu0 %1777  ;;  %1802 = vperm.xlu1 %13700, %v436_v29   ;;  %v1948_v54 = vmul.f32 %v15437_v19, %v1783_v23  ;;  %v1173_v23 = vmul.f32 %v15434_v18, %v16603_v41 }
 0x2aa   :  { %1797 = vperm.xlu0 %13699, %v435_v0   ;;  %v1947_v42 = vmul.f32 %v15437_v19, %v1778_v28 }
 0x2ab   :  { %v2076_v3 = vadd.f32 %v1948_v54, %v1173_v23  ;;  %v437_v23 = vld [vmem:[%s20365_s25 + $0x7a0] sm:$0xff] }
 0x2ac   :  { %v16625_v49 = vpop.permute.xlu1 %1044 }
 0x2ad   :  { %20445 = vst [vmem:[#allocation101_spill] sm:$0xff] %v16625_v49  ;;  %v2249_v29 = vmul.f32 %v15451_v30, %v16625_v49  ;;  %v16630_v0 = vpop.permute.xlu0 %1039  ;;  %2095 = vperm.xlu1 %13700, %v442_v53  }
 0x2ae   :  { %20446 = vst [vmem:[#allocation102_spill] sm:$0xff] %v16630_v0  ;;  %v2248_v26 = vmul.f32 %v15451_v30, %v16630_v0  ;;  %2090 = vperm.xlu0 %13699, %v441_v13  }
 0x2af   :  { %v2377_v9 = vadd.f32 %v2249_v29, %v2074_v24  ;;  %v2075_v24 = vadd.f32 %v1947_v42, %v1172_v27 }
 0x2b0   :  { %v2376_v28 = vadd.f32 %v2248_v26, %v2073_v25  ;;  %v16645_v53 = vpop.permute.xlu1 %1054  ;;  %v438_v26 = vld [vmem:[%s20365_s25 + $0x7a8] sm:$0xff] }
 0x2b1   :  { %20447 = vst [vmem:[#allocation103_spill] sm:$0xff] %v16645_v53  ;;  %v2511_v13 = vadd.f32 %v16172_v22, %v2377_v9  ;;  %v2251_v0 = vmul.f32 %v15451_v30, %v16645_v53  ;;  %v16650_v49 = vpop.permute.xlu0 %1049  ;;  %2105 = vperm.xlu1 %13700, %v444_v60  }
 0x2b2   :  { %20448 = vst [vmem:[#allocation104_spill] sm:$0xff] %v16650_v49  ;;  %v2510_v29 = vadd.f32 %v16172_v22, %v2376_v28  ;;  %v2250_v41 = vmul.f32 %v15451_v30, %v16650_v49  ;;  %2100 = vperm.xlu0 %13699, %v443_v52  }
 0x2b3   :  { %v2639_v25 = vmax.f32 %v2511_v13, 0.0  ;;  %v2379_v54 = vadd.f32 %v2251_v0, %v2076_v3  ;;  %v440_v13 = vld [vmem:[%s20365_s25 + $0x7b8] sm:$0xff] }
 0x2b4   :  { %v2638_v9 = vmax.f32 %v2510_v29, 0.0  ;;  %v2378_v53 = vadd.f32 %v2250_v41, %v2075_v24  ;;  %v1233_v60 = vpop.permute.xlu1 %1232  ;;  %v439_v41 = vld [vmem:[%s20365_s25 + $0x7b0] sm:$0xff] }
 0x2b5   :  { %v2513_v42 = vadd.f32 %v16172_v22, %v2379_v54  ;;  %v1228_v27 = vpop.permute.xlu0 %1227  ;;  %1812 = vperm.xlu1 %13700, %v438_v26   ;;  %v1838_v3 = vmul.f32 %v15437_v19, %v1233_v60  ;;  %v1062_v26 = vmul.f32 %v15434_v18, %v15463_v36  ;;  %v2141_v36 = vmul.f32 %v15451_v30, %v15554_v50  ;;  %v448_v50 = vld [vmem:[%s20365_s25 + $0x7f8] sm:$0xff] }
 0x2b6   :  { %v2512_v28 = vadd.f32 %v16172_v22, %v2378_v53  ;;  %1807 = vperm.xlu0 %13699, %v437_v23   ;;  %v2729_v52 = vpack.c.bf16 %v2639_v25, %v2638_v9  ;;  %v1837_v49 = vmul.f32 %v15437_v19, %v1228_v27  ;;  %v1063_v53 = vmul.f32 %v15434_v18, %v15461_v35  ;;  %v446_v23 = vld [vmem:[%s20365_s25 + $0x7e8] sm:$0xff] }
 0x2b7   :  { %v2641_v0 = vmax.f32 %v2513_v42, 0.0  ;;  %v445_v42 = vld [vmem:[%s20365_s25 + $0x7e0] sm:$0xff] }
 0x2b8   :  { %v2640_v24 = vmax.f32 %v2512_v28, 0.0  ;;  %13072 = vmatprep.mubr.msk.bf16.mxu0 %vm2758_vm1, %v2729_v52  ;;  %v1243_v29 = vpop.permute.xlu1 %1242  ;;  %v1966_v9 = vadd.f32 %v1838_v3, %v1063_v53  ;;  %v1965_v60 = vadd.f32 %v1837_v49, %v1062_v26  ;;  %v2140_v28 = vmul.f32 %v15451_v30, %v15556_v51  ;;  %v447_v53 = vld [vmem:[%s20365_s25 + $0x7f0] sm:$0xff] }
 0x2b9   :  { %v1238_v25 = vpop.permute.xlu0 %1237  ;;  %1822 = vperm.xlu1 %13700, %v440_v13   ;;  %v1840_v27 = vmul.f32 %v15437_v19, %v1243_v29  ;;  %v20342_v49 = vmov 0.0|0.0   ;;  %v1064_v51 = vmul.f32 %v15434_v18, %v15484_v47  ;;  %v1066_v26 = vmul.f32 %v15434_v18, %v15521_v17 }
 0x2ba   :  { %1817 = vperm.xlu0 %13699, %v439_v41   ;;  %v2730_v54 = vpack.c.bf16 %v2641_v0, %v2640_v24  ;;  %v1839_v52 = vmul.f32 %v15437_v19, %v1238_v25  ;;  %v1065_v0 = vmul.f32 %v15434_v18, %v15482_v46  ;;  %v2269_v24 = vadd.f32 %v2141_v36, %v1966_v9 }
 0x2bb   :  { %v2268_v29 = vadd.f32 %v2140_v28, %v1965_v60  ;;  %v1067_v46 = vmul.f32 %v15434_v18, %v15519_v16  ;;  %v2143_v47 = vmul.f32 %v15451_v30, %v15574_v63  ;;  %v2142_v36 = vmul.f32 %v15451_v30, %v15576_v1 }
 0x2bc   :  { %13073 = vmatmul.mubr.msk.bf16.gmra.mrb[60].mxu0 %vm2758_vm1, %v2730_v54  ;;  %v1253_v35 = vpop.permute.xlu1 %1252  ;;  %v1968_v25 = vadd.f32 %v1840_v27, %v1065_v0  ;;  %v2403_v16 = vadd.f32 %v16172_v22, %v2269_v24  ;;  %v2145_v17 = vmul.f32 %v15451_v30, %v15632_v56  ;;  %v2144_v27 = vmul.f32 %v15451_v30, %v15634_v57 }
 0x2bd   :  { %v1248_v13 = vpop.permute.xlu0 %1247  ;;  %2115 = vperm.xlu1 %13700, %v446_v23   ;;  %13086 = vmatprep.mubr.bf16.mxu0 %v20342_v49  ;;  %v1842_v3 = vmul.f32 %v15437_v19, %v1253_v35  ;;  %v1967_v23 = vadd.f32 %v1839_v52, %v1064_v51  ;;  %v13712_v35 = vld [vmem:[#allocation5 + $0x50] sm:$0xff]   ;;  %v2402_v28 = vadd.f32 %v16172_v22, %v2268_v29  ;;  %v13713_v51 = vld [vmem:[#allocation5 + $0x58] sm:$0xff]  }
 0x2be   :  { %v1841_v41 = vmul.f32 %v15437_v19, %v1248_v13  ;;  %2110 = vperm.xlu0 %13699, %v445_v42   ;;  %v2271_v52 = vadd.f32 %v2143_v47, %v1968_v25  ;;  %v1069_v56 = vmul.f32 %v15434_v18, %v15536_v31  ;;  %v1068_v57 = vmul.f32 %v15434_v18, %v15538_v32  ;;  %v16735_v32 = vld [vmem:[%s20369_s29] ss:$0 sm:$0xff] }
 0x2bf   :  { %v1970_v9 = vadd.f32 %v1842_v3, %v1067_v46  ;;  %v2270_v13 = vadd.f32 %v2142_v36, %v1967_v23  ;;  %v2531_v24 = vmax.f32 %v2403_v16, 0.0  ;;  %v2530_v29 = vmax.f32 %v2402_v28, 0.0 }
 0x2c0   :  { %v1263_v54 = vpop.permute.xlu1 %1262  ;;  %v1969_v60 = vadd.f32 %v1841_v41, %v1066_v26  ;;  %v1078_v26 = vmul.f32 %v15434_v18, %v15598_v20  ;;  %v2405_v25 = vadd.f32 %v16172_v22, %v2271_v52  ;;  %v13714_v22 = vld [vmem:[#allocation5 + $0x60] sm:$0xff]  }
 0x2c1   :  { %v1258_v42 = vpop.permute.xlu0 %1257  ;;  %2125 = vperm.xlu1 %13700, %v448_v50   ;;  %v1844_v0 = vmul.f32 %v15437_v19, %v1263_v54  ;;  %v2273_v41 = vadd.f32 %v2145_v17, %v1970_v9  ;;  %v2404_v54 = vadd.f32 %v16735_v32, %v2270_v13  ;;  %v16744_v28 = vpack.c.bf16 %v2531_v24, %v2530_v29 }
 0x2c2   :  { %2120 = vperm.xlu0 %13699, %v447_v53   ;;  %v1843_v3 = vmul.f32 %v15437_v19, %v1258_v42  ;;  %v2272_v50 = vadd.f32 %v2144_v27, %v1969_v60  ;;  %v2146_v60 = vmul.f32 %v15451_v30, %v15654_v11  ;;  %v1081_v17 = vmul.f32 %v15434_v18, %v15616_v38 }
 0x2c3   :  { %v1972_v23 = vadd.f32 %v1844_v0, %v1069_v56  ;;  %v2407_v9 = vadd.f32 %v16735_v32, %v2273_v41  ;;  %v2533_v52 = vmax.f32 %v2405_v25, 0.0  ;;  %v1080_v24 = vmul.f32 %v15434_v18, %v15618_v39 }
 0x2c4   :  { %13087 = vmatmul.mubr.bf16.vlgmr.msra.gmra.mrb[0].mxu0 %v20342_v49  ;;  %v1313_v63 = vpop.permute.xlu1 %1312  ;;  %v1971_v42 = vadd.f32 %v1843_v3, %v1068_v57  ;;  %v2406_v20 = vadd.f32 %v16735_v32, %v2272_v50  ;;  %v13715_v3 = vld [vmem:[#allocation5 + $0x68] ss:$0 sps:$4 sm:$0xff]   ;;  %v1082_v29 = vmul.f32 %v15434_v18, %v15676_v37 }
 0x2c5   :  { %v1308_v1 = vpop.permute.xlu0 %1307  ;;  %13151 = vmatpush3.bf16.msra.mxu0 %v16323_v61  ;;  %13090 = vmatprep.mubr.bf16.mxu0 %v20342_v49  ;;  %v1854_v53 = vmul.f32 %v15437_v19, %v1313_v63  ;;  %v1079_v61 = vmul.f32 %v15434_v18, %v15596_v15  ;;  %v2147_v15 = vmul.f32 %v15451_v30, %v15652_v10  ;;  %v2532_v63 = vmax.f32 %v2404_v54, 0.0 }
 0x2c6   :  { %13152 = vmatprep.subr.bf16.mxu0 %v13712_v35  ;;  %v1853_v46 = vmul.f32 %v15437_v19, %v1308_v1  ;;  %v2156_v10 = vmul.f32 %v15451_v30, %v15712_v21  ;;  %v2274_v11 = vadd.f32 %v2146_v60, %v1971_v42  ;;  %v2535_v38 = vmax.f32 %v2407_v9, 0.0 }
 0x2c7   :  { %v1982_v36 = vadd.f32 %v1854_v53, %v1079_v61  ;;  %v2275_v13 = vadd.f32 %v2147_v15, %v1972_v23  ;;  %v2534_v1 = vmax.f32 %v2406_v20, 0.0  ;;  %v1085_v53 = vmul.f32 %v15434_v18, %v15694_v55 }
 0x2c8   :  { %v1323_v31 = vpop.permute.xlu1 %1322  ;;  %v1981_v16 = vadd.f32 %v1853_v46, %v1078_v26  ;;  %v1084_v61 = vmul.f32 %v15434_v18, %v15696_v58  ;;  %v3608_v39 = vsel %vm2855_vm0, %v13715_v3, 0  ;;  %v16772_v23 = vpack.c.bf16 %v2533_v52, %v2532_v63 }
 0x2c9   :  { %v1318_v47 = vpop.permute.xlu0 %1317  ;;  %13153 = vmatpush3.bf16.msra.mxu0 %v13712_v35  ;;  %v2157_v35 = vmul.f32 %v15451_v30, %v15710_v14  ;;  %v1856_v14 = vmul.f32 %v15437_v19, %v1323_v31  ;;  %v2409_v26 = vadd.f32 %v16735_v32, %v2275_v13  ;;  %v2408_v31 = vadd.f32 %v16735_v32, %v2274_v11 }
 0x2ca   :  { %13154 = vmatprep.subr.bf16.mxu0 %v13713_v51  ;;  %v1855_v56 = vmul.f32 %v15437_v19, %v1318_v47  ;;  %v2284_v57 = vadd.f32 %v2156_v10, %v1981_v16  ;;  %v16774_v37 = vpack.c.bf16 %v2535_v38, %v2534_v1  ;;  %v2159_v15 = vmul.f32 %v15451_v30, %v15730_v45 }
 0x2cb   :  { %v2285_v21 = vadd.f32 %v2157_v35, %v1982_v36  ;;  %v1984_v54 = vadd.f32 %v1856_v14, %v1081_v17  ;;  %v2158_v9 = vmul.f32 %v15451_v30, %v15732_v48  ;;  %v2161_v20 = vmul.f32 %v15451_v30, %v15788_v62 }
 0x2cc   :  { %13091 = vmatmul.mubr.bf16.gmra.mrb[4].mxu0 %v20342_v49  ;;  %v1333_v27 = vpop.permute.xlu1 %1332  ;;  %v2418_v58 = vadd.f32 %v16735_v32, %v2284_v57  ;;  %v2537_v36 = vmax.f32 %v2409_v26, 0.0  ;;  %v2536_v16 = vmax.f32 %v2408_v31, 0.0  ;;  %v1095_v11 = vmul.f32 %v15434_v18, %v15752_v4  ;;  %v20450_v26 = vld [vmem:[#allocation29_spill] sm:$0xff] }
 0x2cd   :  { %13094 = vmatprep.mubr.msk.bf16.mxu0 %vm2758_vm1, %v16744_v28  ;;  %v1328_v0 = vpop.permute.xlu0 %1327  ;;  %13155 = vmatpush3.bf16.msra.mxu0 %v13713_v51  ;;  %v1858_v41 = vmul.f32 %v15437_v19, %v1333_v27  ;;  %v1083_v51 = vmul.f32 %v15434_v18, %v15674_v34  ;;  %v1983_v34 = vadd.f32 %v1855_v56, %v1080_v24 }
 0x2ce   :  { %13156 = vmatprep.subr.bf16.mxu0 %v13714_v22  ;;  %v1857_v50 = vmul.f32 %v15437_v19, %v1328_v0  ;;  %v2419_v55 = vadd.f32 %v16735_v32, %v2285_v21  ;;  %v2287_v48 = vadd.f32 %v2159_v15, %v1984_v54  ;;  %v2546_v52 = vmax.f32 %v2418_v58, 0.0 }
 0x2cf   :  { %v1986_v42 = vadd.f32 %v1858_v41, %v1083_v51  ;;  %v2286_v62 = vadd.f32 %v2158_v9, %v1983_v34  ;;  %v1094_v0 = vmul.f32 %v15434_v18, %v15754_v5  ;;  %v1096_v38 = vmul.f32 %v15434_v18, %v15774_v40 }
 0x2d0   :  { %v1343_v46 = vpop.permute.xlu1 %1342  ;;  %v1985_v47 = vadd.f32 %v1857_v50, %v1082_v29  ;;  %v2547_v27 = vmax.f32 %v2419_v55, 0.0  ;;  %v2163_v14 = vmul.f32 %v15451_v30, %v15813_v43  ;;  %v16805_v41 = vpack.c.bf16 %v2537_v36, %v2536_v16  ;;  %v20452_v36 = vld [vmem:[#allocation27_spill] sm:$0xff] }
 0x2d1   :  { %v1338_v25 = vpop.permute.xlu0 %1337  ;;  %13157 = vmatpush3.bf16.msra.mxu0 %v13714_v22  ;;  %v2160_v22 = vmul.f32 %v15451_v30, %v15790_v2  ;;  %v1860_v17 = vmul.f32 %v15437_v19, %v1343_v46  ;;  %v2289_v63 = vadd.f32 %v2161_v20, %v1986_v42  ;;  %v2421_v4 = vadd.f32 %v16735_v32, %v2287_v48  ;;  %v20449_v46 = vld [vmem:[#allocation28_spill] sm:$0xff] }
 0x2d2   :  { %13682 = vmatprep.subr.msk.bf16.mxu0 %vm2855_vm0, %v13715_v3  ;;  %v1859_v35 = vmul.f32 %v15437_v19, %v1338_v25  ;;  %v1097_v3 = vmul.f32 %v15434_v18, %v15772_v33  ;;  %v2420_v50 = vadd.f32 %v16735_v32, %v2286_v62  ;;  %v2162_v33 = vmul.f32 %v15451_v30, %v15815_v44 }
 0x2d3   :  { %v2288_v13 = vadd.f32 %v2160_v22, %v1985_v47  ;;  %v1988_v56 = vadd.f32 %v1860_v17, %v1085_v53  ;;  %v2423_v40 = vadd.f32 %v16735_v32, %v2289_v63  ;;  %v16813_v29 = vpack.c.bf16 %v2547_v27, %v2546_v52  ;;  %v20451_v22 = vld [vmem:[#allocation26_spill] sm:$0xff] }
 0x2d4   :  { %13095 = vmatmul.mubr.msk.bf16.gmra.mrb[8].mxu0 %vm2758_vm1, %v16772_v23  ;;  %v1393_v60 = vpop.permute.xlu1 %1392  ;;  %v1987_v21 = vadd.f32 %v1859_v35, %v1084_v61  ;;  %v1099_v43 = vmul.f32 %v15434_v18, %v15835_v8  ;;  %v1098_v53 = vmul.f32 %v15434_v18, %v15837_v12  ;;  %v2173_v61 = vmul.f32 %v15451_v30, %v20449_v46  ;;  %v20453_v17 = vld [vmem:[#allocation30_spill] sm:$0xff] }
 0x2d5   :  { %13098 = vmatprep.mubr.msk.bf16.mxu0 %vm2758_vm1, %v16774_v37  ;;  %v1388_v45 = vpop.permute.xlu0 %1387  ;;  %13159 = vmatpush3.bf16.msra.mxu0 %v3608_v39  ;;  %v1870_v10 = vmul.f32 %v15437_v19, %v1393_v60  ;;  %v2422_v51 = vadd.f32 %v16735_v32, %v2288_v13  ;;  %v2172_v31 = vmul.f32 %v15451_v30, %v20450_v26  ;;  %v2549_v12 = vmax.f32 %v2421_v4, 0.0  ;;  %v20455_v13 = vld [vmem:[#allocation32_spill] sm:$0xff] }
 0x2d6   :  { %v1869_v2 = vmul.f32 %v15437_v19, %v1388_v45  ;;  %v2291_v25 = vadd.f32 %v2163_v14, %v1988_v56  ;;  %v2290_v39 = vadd.f32 %v2162_v33, %v1987_v21  ;;  %v2548_v55 = vmax.f32 %v2420_v50, 0.0  ;;  %v20454_v45 = vld [vmem:[#allocation31_spill] sm:$0xff]  ;;  %v20456_v56 = vld [vmem:[#allocation33_spill] sm:$0xff]  ;;  %v20459_v33 = vld [vmem:[#allocation36_spill] sm:$0xff] }
 0x2d7   :  { %v1998_v5 = vadd.f32 %v1870_v10, %v1095_v11  ;;  %v2551_v47 = vmax.f32 %v2423_v40, 0.0  ;;  %v2550_v15 = vmax.f32 %v2422_v51, 0.0  ;;  %v1101_v60 = vmul.f32 %v15434_v18, %v20451_v22  ;;  %v20460_v51 = vld [vmem:[#allocation37_spill] sm:$0xff] }
 0x2d8   :  { %v1403_v1 = vpop.permute.xlu1 %1402  ;;  %v1997_v24 = vadd.f32 %v1869_v2, %v1094_v0  ;;  %v1100_v16 = vmul.f32 %v15434_v18, %v20452_v36  ;;  %v2175_v35 = vmul.f32 %v15451_v30, %v20453_v17  ;;  %v2174_v48 = vmul.f32 %v15451_v30, %v20454_v45  ;;  %v20463_v17 = vld [vmem:[#allocation40_spill] sm:$0xff]  ;;  %v20464_v45 = vld [vmem:[#allocation41_spill] sm:$0xff] }
 0x2d9   :  { %v1398_v57 = vpop.permute.xlu0 %1397  ;;  %v1872_v54 = vmul.f32 %v15437_v19, %v1403_v1  ;;  %v2301_v58 = vadd.f32 %v2173_v61, %v1998_v5  ;;  %v2425_v10 = vadd.f32 %v16735_v32, %v2291_v25  ;;  %v2424_v2 = vadd.f32 %v16735_v32, %v2290_v39  ;;  %v20457_v5 = vld [vmem:[#allocation34_spill] sm:$0xff] }
 0x2da   :  { %v1871_v34 = vmul.f32 %v15437_v19, %v1398_v57  ;;  %v2300_v42 = vadd.f32 %v2172_v31, %v1997_v24  ;;  %v1111_v11 = vmul.f32 %v15434_v18, %v20455_v13  ;;  %v16845_v14 = vpack.c.bf16 %v2549_v12, %v2548_v55 }
 0x2db   :  { %v2000_v27 = vadd.f32 %v1872_v54, %v1097_v3  ;;  %v2435_v0 = vadd.f32 %v16735_v32, %v2301_v58  ;;  %v1110_v21 = vmul.f32 %v15434_v18, %v20456_v56  ;;  %v16849_v50 = vpack.c.bf16 %v2551_v47, %v2550_v15  ;;  %v20461_v15 = vld [vmem:[#allocation38_spill] sm:$0xff] }
 0x2dc   :  { %13099 = vmatmul.mubr.msk.bf16.gmra.mrb[12].mxu0 %vm2758_vm1, %v16805_v41  ;;  %v1413_v44 = vpop.permute.xlu1 %1412  ;;  %v1999_v52 = vadd.f32 %v1871_v34, %v1096_v38  ;;  %v2434_v1 = vadd.f32 %v16735_v32, %v2300_v42  ;;  %v16853_v3 = vmul.f32 %v15434_v18, %v20457_v5  ;;  %v20458_v38 = vld [vmem:[#allocation35_spill] sm:$0xff]  ;;  %v2177_v40 = vmul.f32 %v15451_v30, %v20459_v33  ;;  %v20465_v56 = vld [vmem:[#allocation42_spill] sm:$0xff] }
 0x2dd   :  { %13102 = vmatprep.mubr.msk.bf16.mxu0 %vm2758_vm1, %v16813_v29  ;;  %v1408_v8 = vpop.permute.xlu0 %1407  ;;  %v1874_v9 = vmul.f32 %v15437_v19, %v1413_v44  ;;  %v16857_v24 = vmul.f32 %v15434_v18, %v20458_v38  ;;  %v2176_v46 = vmul.f32 %v15451_v30, %v20460_v51  ;;  %v2552_v61 = vmax.f32 %v2424_v2, 0.0  ;;  %v20467_v38 = vld [vmem:[#allocation44_spill] sm:$0xff] }
 0x2de   :  { %v1873_v20 = vmul.f32 %v15437_v19, %v1408_v8  ;;  %v2303_v26 = vadd.f32 %v2175_v35, %v2000_v27  ;;  %v2302_v31 = vadd.f32 %v2174_v48, %v1999_v52  ;;  %v2563_v25 = vmax.f32 %v2435_v0, 0.0 }
 0x2df   :  { %v2002_v57 = vadd.f32 %v1874_v9, %v1099_v43  ;;  %v2562_v39 = vmax.f32 %v2434_v1, 0.0  ;;  %v2179_v42 = vmul.f32 %v15451_v30, %v15969_v6  ;;  %v2178_v47 = vmul.f32 %v15451_v30, %v15971_v7 }
 0x2e0   :  { %v1423_v62 = vpop.permute.xlu1 %1422  ;;  %v2001_v4 = vadd.f32 %v1873_v20, %v1098_v53  ;;  %v2553_v53 = vmax.f32 %v2425_v10, 0.0  ;;  %v1115_v9 = vmul.f32 %v15434_v18, %v20461_v15  ;;  %v20462_v20 = vld [vmem:[#allocation39_spill] sm:$0xff]  ;;  %v16881_v35 = vmul.f32 %v15434_v18, %v20463_v17 }
 0x2e1   :  { %v1418_v63 = vpop.permute.xlu0 %1417  ;;  %v1876_v54 = vmul.f32 %v15437_v19, %v1423_v62  ;;  %v2305_v8 = vadd.f32 %v2177_v40, %v2002_v57  ;;  %v1114_v22 = vmul.f32 %v15434_v18, %v20462_v20  ;;  %v16885_v48 = vmul.f32 %v15434_v18, %v20464_v45 }
 0x2e2   :  { %v1875_v34 = vmul.f32 %v15437_v19, %v1418_v63  ;;  %v2304_v12 = vadd.f32 %v2176_v46, %v2001_v4  ;;  %v2437_v6 = vadd.f32 %v16735_v32, %v2303_v26  ;;  %v2436_v62 = vadd.f32 %v16735_v32, %v2302_v31  ;;  %v20466_v4 = vld [vmem:[#allocation43_spill] sm:$0xff] }
 0x2e3   :  { %v2004_v10 = vadd.f32 %v1876_v54, %v1101_v60  ;;  %v16889_v27 = vpack.c.bf16 %v2553_v53, %v2552_v61  ;;  %v16891_v52 = vpack.c.bf16 %v2563_v25, %v2562_v39  ;;  %v2439_v63 = vadd.f32 %v16735_v32, %v2305_v8 }
 0x2e4   :  { %13103 = vmatmul.mubr.msk.bf16.gmra.mrb[16].mxu0 %vm2758_vm1, %v16845_v14  ;;  %v1473_v43 = vpop.permute.xlu1 %1472  ;;  %v2003_v2 = vadd.f32 %v1875_v34, %v1100_v16  ;;  %v2438_v13 = vadd.f32 %v16735_v32, %v2304_v12  ;;  %v2189_v57 = vmul.f32 %v15451_v30, %v20465_v56  ;;  %v2188_v5 = vmul.f32 %v15451_v30, %v20466_v4  ;;  %v20468_v16 = vld [vmem:[#allocation45_spill] sm:$0xff]  ;;  %v20469_v34 = vld [vmem:[#allocation46_spill] sm:$0xff]  ;;  %v20470_v12 = vld [vmem:[#allocation47_spill] sm:$0xff] }
 0x2e5   :  { %13106 = vmatprep.mubr.msk.bf16.mxu0 %vm2758_vm1, %v16849_v50  ;;  %v1468_v44 = vpop.permute.xlu0 %1467  ;;  %v1886_v55 = vmul.f32 %v15437_v19, %v1473_v43  ;;  %v2191_v60 = vmul.f32 %v15451_v30, %v20467_v38  ;;  %v2190_v33 = vmul.f32 %v15451_v30, %v20468_v16  ;;  %v2565_v51 = vmax.f32 %v2437_v6, 0.0  ;;  %v20477_v16 = vld [vmem:[#allocation54_spill] sm:$0xff] }
 0x2e6   :  { %v1885_v58 = vmul.f32 %v15437_v19, %v1468_v44  ;;  %v2564_v46 = vmax.f32 %v2436_v62, 0.0  ;;  %v2307_v53 = vadd.f32 %v2179_v42, %v2004_v10  ;;  %v2306_v61 = vadd.f32 %v2178_v47, %v2003_v2  ;;  %v20472_v42 = vld [vmem:[#allocation49_spill] sm:$0xff] }
 0x2e7   :  { %v2014_v0 = vadd.f32 %v1886_v55, %v1111_v11  ;;  %v2567_v44 = vmax.f32 %v2439_v63, 0.0  ;;  %v2566_v25 = vmax.f32 %v2438_v13, 0.0  ;;  %v1127_v8 = vmul.f32 %v15434_v18, %v20469_v34 }
 0x2e8   :  { %v1483_v36 = vpop.permute.xlu1 %1482  ;;  %v2013_v1 = vadd.f32 %v1885_v58, %v1110_v21  ;;  %v1126_v55 = vmul.f32 %v15434_v18, %v20470_v12  ;;  %v20471_v58 = vld [vmem:[#allocation48_spill] sm:$0xff]  ;;  %v16921_v47 = vmul.f32 %v15434_v18, %v20472_v42  ;;  %v2441_v10 = vadd.f32 %v16735_v32, %v2307_v53  ;;  %v20480_v12 = vld [vmem:[#allocation57_spill] sm:$0xff]  ;;  %v20481_v42 = vld [vmem:[#allocation58_spill] sm:$0xff] }
 0x2e9   :  { %v1478_v7 = vpop.permute.xlu0 %1477  ;;  %v1888_v11 = vmul.f32 %v15437_v19, %v1483_v36  ;;  %v2317_v39 = vadd.f32 %v2189_v57, %v2014_v0  ;;  %v16917_v15 = vmul.f32 %v15434_v18, %v20471_v58  ;;  %v20473_v36 = vld [vmem:[#allocation50_spill] sm:$0xff]  ;;  %v2440_v2 = vadd.f32 %v16735_v32, %v2306_v61  ;;  %v20474_v0 = vld [vmem:[#allocation51_spill] sm:$0xff] }
 0x2ea   :  { %v1887_v21 = vmul.f32 %v15437_v19, %v1478_v7  ;;  %v2316_v54 = vadd.f32 %v2188_v5, %v2013_v1  ;;  %v2193_v17 = vmul.f32 %v15451_v30, %v20473_v36  ;;  %v16927_v7 = vpack.c.bf16 %v2565_v51, %v2564_v46  ;;  %v20476_v5 = vld [vmem:[#allocation53_spill] sm:$0xff]  ;;  %v20482_v36 = vld [vmem:[#allocation59_spill] sm:$0xff] }
 0x2eb   :  { %v2016_v45 = vadd.f32 %v1888_v11, %v16853_v3  ;;  %v2192_v1 = vmul.f32 %v15451_v30, %v20474_v0  ;;  %v2451_v56 = vadd.f32 %v16735_v32, %v2317_v39  ;;  %v16935_v4 = vpack.c.bf16 %v2567_v44, %v2566_v25  ;;  %v20475_v3 = vld [vmem:[#allocation52_spill] sm:$0xff] }
 0x2ec   :  { %13107 = vmatmul.mubr.msk.bf16.gmra.mrb[20].mxu0 %vm2758_vm1, %v16889_v27  ;;  %v1493_v40 = vpop.permute.xlu1 %1492  ;;  %v2015_v6 = vadd.f32 %v1887_v21, %v16857_v24  ;;  %v2450_v57 = vadd.f32 %v16735_v32, %v2316_v54  ;;  %v2195_v24 = vmul.f32 %v15451_v30, %v20475_v3  ;;  %v2194_v38 = vmul.f32 %v15451_v30, %v20476_v5  ;;  %v20484_v3 = vld [vmem:[#allocation61_spill] sm:$0xff] }
 0x2ed   :  { %13110 = vmatprep.mubr.msk.bf16.mxu0 %vm2758_vm1, %v16891_v52  ;;  %v1488_v43 = vpop.permute.xlu0 %1487  ;;  %v1890_v26 = vmul.f32 %v15437_v19, %v1493_v40  ;;  %v16943_v40 = vmul.f32 %v15434_v18, %v20477_v16  ;;  %v2319_v46 = vadd.f32 %v2191_v60, %v2016_v45  ;;  %v2569_v61 = vmax.f32 %v2441_v10, 0.0  ;;  %v20479_v60 = vld [vmem:[#allocation56_spill] sm:$0xff] }
 0x2ee   :  { %v1889_v31 = vmul.f32 %v15437_v19, %v1488_v43  ;;  %v2318_v11 = vadd.f32 %v2190_v33, %v2015_v6  ;;  %v2579_v25 = vmax.f32 %v2451_v56, 0.0  ;;  %v2578_v39 = vmax.f32 %v2450_v57, 0.0 }
 0x2ef   :  { %v2018_v63 = vadd.f32 %v1890_v26, %v1115_v9  ;;  %v20478_v9 = vld [vmem:[#allocation55_spill] sm:$0xff]  ;;  %v2568_v26 = vmax.f32 %v2440_v2, 0.0  ;;  %v16959_v33 = vmul.f32 %v15434_v18, %v20479_v60  ;;  %v16963_v58 = vmul.f32 %v15434_v18, %v20480_v12 }
 0x2f0   :  { %v1503_v20 = vpop.permute.xlu1 %1502  ;;  %v2017_v13 = vadd.f32 %v1889_v31, %v1114_v22  ;;  %v16947_v22 = vmul.f32 %v15434_v18, %v20478_v9  ;;  %v2453_v6 = vadd.f32 %v16735_v32, %v2319_v46  ;;  %v2206_v5 = vmul.f32 %v15451_v30, %v20484_v3  ;;  %v20486_v46 = vld [vmem:[#allocation63_spill] sm:$0xff] }
 0x2f1   :  { %v1498_v62 = vpop.permute.xlu0 %1497  ;;  %v1892_v21 = vmul.f32 %v15437_v19, %v1503_v20  ;;  %v2321_v31 = vadd.f32 %v2193_v17, %v2018_v63  ;;  %v2205_v20 = vmul.f32 %v15451_v30, %v20481_v42  ;;  %v2204_v17 = vmul.f32 %v15451_v30, %v20482_v36 }
 0x2f2   :  { %v1891_v43 = vmul.f32 %v15437_v19, %v1498_v62  ;;  %v2320_v44 = vadd.f32 %v2192_v1, %v2017_v13  ;;  %v2452_v62 = vadd.f32 %v16735_v32, %v2318_v11  ;;  %v20483_v13 = vld [vmem:[#allocation60_spill] sm:$0xff]  ;;  %v16977_v57 = vpack.c.bf16 %v2569_v61, %v2568_v26 }
 0x2f3   :  { %v2020_v10 = vadd.f32 %v1892_v21, %v16881_v35  ;;  %v2207_v0 = vmul.f32 %v15451_v30, %v20483_v13  ;;  %v2455_v1 = vadd.f32 %v16735_v32, %v2321_v31  ;;  %v20485_v35 = vld [vmem:[#allocation62_spill] sm:$0xff]  ;;  %v16989_v11 = vmul.f32 %v15434_v18, %v20486_v46  ;;  %v20487_v21 = vld [vmem:[#allocation64_spill] sm:$0xff] }
 0x2f4   :  { %13111 = vmatmul.mubr.msk.bf16.gmra.mrb[24].mxu0 %vm2758_vm1, %v16927_v7  ;;  %v1553_v51 = vpop.permute.xlu1 %1552  ;;  %v2019_v2 = vadd.f32 %v1891_v43, %v16885_v48  ;;  %v2454_v56 = vadd.f32 %v16735_v32, %v2320_v44  ;;  %v16985_v48 = vmul.f32 %v15434_v18, %v20485_v35  ;;  %v16993_v43 = vmul.f32 %v15434_v18, %v20487_v21 }
 0x2f5   :  { %13114 = vmatprep.mubr.msk.bf16.mxu0 %vm2758_vm1, %v16935_v4  ;;  %v1548_v53 = vpop.permute.xlu0 %1547  ;;  %v1902_v54 = vmul.f32 %v15437_v19, %v1553_v51  ;;  %v16981_v51 = vpack.c.bf16 %v2579_v25, %v2578_v39  ;;  %v2580_v26 = vmax.f32 %v2452_v62, 0.0  ;;  %v2323_v31 = vadd.f32 %v2195_v24, %v2020_v10  ;;  %v20491_v10 = vld [vmem:[#allocation68_spill] sm:$0xff] }
 0x2f6   :  { %v1901_v34 = vmul.f32 %v15437_v19, %v1548_v53  ;;  %v20488_v53 = vld [vmem:[#allocation65_spill] sm:$0xff]  ;;  %v2322_v44 = vadd.f32 %v2194_v38, %v2019_v2  ;;  %v2583_v39 = vmax.f32 %v2455_v1, 0.0  ;;  %v20490_v38 = vld [vmem:[#allocation67_spill] sm:$0xff]  ;;  %v2211_v2 = vmul.f32 %v15451_v30, %v20491_v10 }
 0x2f7   :  { %v2030_v16 = vadd.f32 %v1902_v54, %v1127_v8  ;;  %v16997_v61 = vmul.f32 %v15434_v18, %v20488_v53  ;;  %v2582_v54 = vmax.f32 %v2454_v56, 0.0  ;;  %v2208_v62 = vmul.f32 %v15451_v30, %v20490_v38  ;;  %v20492_v1 = vld [vmem:[#allocation69_spill] sm:$0xff] }
 0x2f8   :  { %v1563_v45 = vpop.permute.xlu1 %1562  ;;  %v2029_v9 = vadd.f32 %v1901_v34, %v1126_v55  ;;  %v2581_v55 = vmax.f32 %v2453_v6, 0.0  ;;  %v20489_v6 = vld [vmem:[#allocation66_spill] sm:$0xff] }
 0x2f9   :  { %v1558_v63 = vpop.permute.xlu0 %1557  ;;  %v1904_v34 = vmul.f32 %v15437_v19, %v1563_v45  ;;  %v2333_v12 = vadd.f32 %v2205_v20, %v2030_v16  ;;  %v2209_v24 = vmul.f32 %v15451_v30, %v20489_v6  ;;  %v2210_v45 = vmul.f32 %v15451_v30, %v20492_v1  ;;  %v20498_v1 = vld [vmem:[#allocation73_spill] sm:$0xff] }
 0x2fa   :  { %v1903_v60 = vmul.f32 %v15437_v19, %v1558_v63  ;;  %v2332_v42 = vadd.f32 %v2204_v17, %v2029_v9  ;;  %v20493_v63 = vld [vmem:[#allocation70_spill] sm:$0xff]  ;;  %v20494_v17 = vld [vmem:[#allocation71_spill] sm:$0xff]  ;;  %v2457_v16 = vadd.f32 %v16735_v32, %v2323_v31  ;;  %v2456_v9 = vadd.f32 %v16735_v32, %v2322_v44  ;;  %v20497_v31 = vld [vmem:[#allocation72_spill] sm:$0xff] }
 0x2fb   :  { %v17017_v20 = vmul.f32 %v15434_v18, %v20493_v63  ;;  %v17021_v3 = vmul.f32 %v15434_v18, %v20494_v17  ;;  %v2032_v46 = vadd.f32 %v1904_v34, %v16917_v15  ;;  %v17027_v53 = vpack.c.bf16 %v2581_v55, %v2580_v26  ;;  %v20500_v26 = vld [vmem:[#allocation75_spill] sm:$0xff] }
 0x2fc   :  { %13115 = vmatmul.mubr.msk.bf16.gmra.mrb[28].mxu0 %vm2758_vm1, %v16977_v57  ;;  %v1573_v8 = vpop.permute.xlu1 %1572  ;;  %v2031_v21 = vadd.f32 %v1903_v60, %v16921_v47  ;;  %v2466_v6 = vadd.f32 %v16735_v32, %v2332_v42  ;;  %v17037_v44 = vmul.f32 %v15434_v18, %v20497_v31  ;;  %v17041_v15 = vmul.f32 %v15434_v18, %v20498_v1  ;;  %v20499_v47 = vld [vmem:[#allocation74_spill] sm:$0xff] }
 0x2fd   :  { %13118 = vmatprep.mubr.msk.bf16.mxu0 %vm2758_vm1, %v16981_v51  ;;  %v1568_v25 = vpop.permute.xlu0 %1567  ;;  %v1906_v36 = vmul.f32 %v15437_v19, %v1573_v8  ;;  %20495 = vst [vmem:[#allocation28_spill] sm:$0xff] %v17027_v53  ;;  %v17029_v8 = vpack.c.bf16 %v2583_v39, %v2582_v54  ;;  %v2221_v55 = vmul.f32 %v15451_v30, %v20499_v47  ;;  %v2585_v54 = vmax.f32 %v2457_v16, 0.0  ;;  %v20501_v16 = vld [vmem:[#allocation76_spill] sm:$0xff] }
 0x2fe   :  { %v1905_v13 = vmul.f32 %v15437_v19, %v1568_v25  ;;  %v2467_v25 = vadd.f32 %v16735_v32, %v2333_v12  ;;  %v2220_v39 = vmul.f32 %v15451_v30, %v20500_v26  ;;  %v2335_v42 = vadd.f32 %v2207_v0, %v2032_v46  ;;  %v20503_v26 = vld [vmem:[#allocation78_spill] sm:$0xff]  ;;  %v20504_v0 = vld [vmem:[#allocation79_spill] sm:$0xff] }
 0x2ff   :  { %20496 = vst [vmem:[#allocation29_spill] sm:$0xff] %v17029_v8  ;;  %v2034_v38 = vadd.f32 %v1906_v36, %v16943_v40  ;;  %v2334_v36 = vadd.f32 %v2206_v5, %v2031_v21  ;;  %v2594_v31 = vmax.f32 %v2466_v6, 0.0  ;;  %v17061_v49 = vmul.f32 %v15434_v18, %v20503_v26  ;;  %v20505_v21 = vld [vmem:[#allocation80_spill] sm:$0xff] }
 0x300   :  { %v1583_v56 = vpop.permute.xlu1 %1582  ;;  %v2033_v10 = vadd.f32 %v1905_v13, %v16947_v22  ;;  %v2584_v22 = vmax.f32 %v2456_v9, 0.0  ;;  %v2595_v17 = vmax.f32 %v2467_v25, 0.0  ;;  %v2223_v9 = vmul.f32 %v15451_v30, %v20501_v16 }
 0x301   :  { %v1578_v35 = vpop.permute.xlu0 %1577  ;;  %v1908_v34 = vmul.f32 %v15437_v19, %v1583_v56  ;;  %v2337_v1 = vadd.f32 %v2209_v24, %v2034_v38  ;;  %v20502_v56 = vld [vmem:[#allocation77_spill] sm:$0xff]  ;;  %v17065_v5 = vmul.f32 %v15434_v18, %v20504_v0  ;;  %v17069_v25 = vmul.f32 %v15434_v18, %v20505_v21 }
 0x302   :  { %v1907_v60 = vmul.f32 %v15437_v19, %v1578_v35  ;;  %v2336_v47 = vadd.f32 %v2208_v62, %v2033_v10  ;;  %v2222_v35 = vmul.f32 %v15451_v30, %v20502_v56  ;;  %v17073_v38 = vpack.c.bf16 %v2585_v54, %v2584_v22  ;;  %v20507_v56 = vld [vmem:[#allocation81_spill] sm:$0xff]  ;;  %v20509_v54 = vld [vmem:[#allocation82_spill] sm:$0xff] }
 0x303   :  { %v2036_v24 = vadd.f32 %v1908_v34, %v16959_v33  ;;  %v2469_v10 = vadd.f32 %v16735_v32, %v2335_v42  ;;  %v17081_v26 = vmul.f32 %v15434_v18, %v20507_v56  ;;  %v2471_v0 = vadd.f32 %v16735_v32, %v2337_v1  ;;  %v20510_v34 = vld [vmem:[#allocation83_spill] sm:$0xff] }
 0x304   :  { %13119 = vmatmul.mubr.msk.bf16.gmra.mrb[32].mxu0 %vm2758_vm1, %v17027_v53  ;;  %v1633_v40 = vpop.permute.xlu1 %1632  ;;  %v2035_v62 = vadd.f32 %v1907_v60, %v16963_v58  ;;  %20506 = vst [vmem:[#allocation26_spill] sm:$0xff] %v17073_v38  ;;  %v2470_v33 = vadd.f32 %v16735_v32, %v2336_v47  ;;  %v17085_v58 = vpack.c.bf16 %v2595_v17, %v2594_v31 }
 0x305   :  { %13122 = vmatprep.mubr.msk.bf16.mxu0 %vm2758_vm1, %v17029_v8  ;;  %v1628_v12 = vpop.permute.xlu0 %1627  ;;  %v1918_v13 = vmul.f32 %v15437_v19, %v1633_v40  ;;  %v2468_v40 = vadd.f32 %v16735_v32, %v2334_v36  ;;  %v2225_v22 = vmul.f32 %v15451_v30, %v20509_v54  ;;  %v2224_v60 = vmul.f32 %v15451_v30, %v20510_v34  ;;  %v20511_v36 = vld [vmem:[#allocation84_spill] sm:$0xff]  ;;  %v20513_v8 = vld [vmem:[#allocation86_spill] sm:$0xff] }
 0x306   :  { %v1917_v63 = vmul.f32 %v15437_v19, %v1628_v12  ;;  %20508 = vst [vmem:[#allocation27_spill] sm:$0xff] %v17085_v58  ;;  %v2339_v31 = vadd.f32 %v2211_v2, %v2036_v24  ;;  %v2338_v1 = vadd.f32 %v2210_v45, %v2035_v62  ;;  %v2599_v54 = vmax.f32 %v2471_v0, 0.0  ;;  %v20514_v2 = vld [vmem:[#allocation87_spill] sm:$0xff] }
 0x307   :  { %v2046_v12 = vadd.f32 %v1918_v13, %v16985_v48  ;;  %v17097_v13 = vmul.f32 %v15451_v30, %v20511_v36  ;;  %v2596_v21 = vmax.f32 %v2468_v40, 0.0  ;;  %v2598_v34 = vmax.f32 %v2470_v33, 0.0  ;;  %v20516_v40 = vld [vmem:[#allocation89_spill] sm:$0xff]  ;;  %v20517_v33 = vld [vmem:[#allocation90_spill] sm:$0xff] }
 0x308   :  { %v1643_v46 = vpop.permute.xlu1 %1642  ;;  %v2045_v16 = vadd.f32 %v1917_v63, %v16989_v11  ;;  %v20512_v63 = vld [vmem:[#allocation85_spill] sm:$0xff]  ;;  %v17113_v45 = vmul.f32 %v15434_v18, %v20514_v2 }
 0x309   :  { %v1638_v6 = vpop.permute.xlu0 %1637  ;;  %v1920_v48 = vmul.f32 %v15437_v19, %v1643_v46  ;;  %v17101_v17 = vmul.f32 %v15451_v30, %v20512_v63  ;;  %v2597_v46 = vmax.f32 %v2469_v10, 0.0  ;;  %v17109_v63 = vmul.f32 %v15434_v18, %v20513_v8 }
 0x30a   :  { %v1919_v11 = vmul.f32 %v15437_v19, %v1638_v6  ;;  %v2349_v6 = vadd.f32 %v2221_v55, %v2046_v12  ;;  %v2348_v56 = vadd.f32 %v2220_v39, %v2045_v16  ;;  %v20515_v39 = vld [vmem:[#allocation88_spill] sm:$0xff]  ;;  %v17123_v12 = vmul.f32 %v15434_v18, %v20516_v40 }
 0x30b   :  { %v2048_v24 = vadd.f32 %v1920_v48, %v16993_v43  ;;  %v17119_v10 = vmul.f32 %v15434_v18, %v20515_v39  ;;  %v2473_v8 = vadd.f32 %v16735_v32, %v2339_v31  ;;  %v2472_v16 = vadd.f32 %v16735_v32, %v2338_v1  ;;  %v20519_v1 = vld [vmem:[#allocation92_spill] sm:$0xff] }
 0x30c   :  { %13123 = vmatmul.mubr.msk.bf16.gmra.mrb[36].mxu0 %vm2758_vm1, %v17073_v38  ;;  %v1653_v42 = vpop.permute.xlu1 %1652  ;;  %v2047_v62 = vadd.f32 %v1919_v11, %v16997_v61  ;;  %v2483_v43 = vadd.f32 %v16735_v32, %v2349_v6  ;;  %v2482_v61 = vadd.f32 %v16735_v32, %v2348_v56  ;;  %v17131_v48 = vpack.c.bf16 %v2597_v46, %v2596_v21  ;;  %v20518_v11 = vld [vmem:[#allocation91_spill] sm:$0xff] }
 0x30d   :  { %13126 = vmatprep.mubr.msk.bf16.mxu0 %vm2758_vm1, %v17085_v58  ;;  %v1648_v47 = vpop.permute.xlu0 %1647  ;;  %v1922_v38 = vmul.f32 %v15437_v19, %v1653_v42  ;;  %v2237_v42 = vmul.f32 %v15451_v30, %v20517_v33  ;;  %v17137_v31 = vpack.c.bf16 %v2599_v54, %v2598_v34  ;;  %v2239_v40 = vmul.f32 %v15451_v30, %v20519_v1  ;;  %v20520_v58 = vld [vmem:[#allocation93_spill] sm:$0xff] }
 0x30e   :  { %v1921_v36 = vmul.f32 %v15437_v19, %v1648_v47  ;;  %v2236_v47 = vmul.f32 %v15451_v30, %v20518_v11  ;;  %v2238_v33 = vmul.f32 %v15451_v30, %v20520_v58  ;;  %v2351_v6 = vadd.f32 %v2223_v9, %v2048_v24 }
 0x30f   :  { %v2050_v2 = vadd.f32 %v1922_v38, %v17017_v20  ;;  %v2350_v53 = vadd.f32 %v2222_v35, %v2047_v62  ;;  %v2601_v21 = vmax.f32 %v2473_v8, 0.0  ;;  %v2600_v56 = vmax.f32 %v2472_v16, 0.0  ;;  %v20521_v35 = vld [vmem:[#allocation98_spill] sm:$0xff] }
 0x310   :  { %v1663_v55 = vpop.permute.xlu1 %1662  ;;  %v2049_v39 = vadd.f32 %v1921_v36, %v17021_v3  ;;  %v2611_v54 = vmax.f32 %v2483_v43, 0.0  ;;  %v2610_v34 = vmax.f32 %v2482_v61, 0.0  ;;  %v2241_v36 = vmul.f32 %v15451_v30, %v20521_v35 }
 0x311   :  { %v1658_v0 = vpop.permute.xlu0 %1657  ;;  %v1924_v20 = vmul.f32 %v15437_v19, %v1663_v55  ;;  %v2353_v24 = vadd.f32 %v2225_v22, %v2050_v2  ;;  %v20522_v55 = vld [vmem:[#allocation99_spill] sm:$0xff]  ;;  %v2485_v11 = vadd.f32 %v16735_v32, %v2351_v6  ;;  %v2484_v1 = vadd.f32 %v16735_v32, %v2350_v53 }
 0x312   :  { %v1923_v58 = vmul.f32 %v15437_v19, %v1658_v0  ;;  %v2352_v62 = vadd.f32 %v2224_v60, %v2049_v39  ;;  %v2240_v16 = vmul.f32 %v15451_v30, %v20522_v55  ;;  %v17161_v22 = vpack.c.bf16 %v2601_v21, %v2600_v56 }
 0x313   :  { %v2052_v0 = vadd.f32 %v1924_v20, %v17037_v44  ;;  %v17165_v39 = vpack.c.bf16 %v2611_v54, %v2610_v34  ;;  %v2487_v53 = vadd.f32 %v16735_v32, %v2353_v24  ;;  %v2612_v20 = vmax.f32 %v2484_v1, 0.0 }
 0x314   :  { %13127 = vmatmul.mubr.msk.bf16.gmra.mrb[40].mxu0 %vm2758_vm1, %v17131_v48  ;;  %v1713_v46 = vpop.permute.xlu1 %1712 }
 0x315   :  { %v1934_v3 = vmul.f32 %v15437_v19, %v1713_v46  ;;  %13130 = vmatprep.mubr.msk.bf16.mxu0 %vm2758_vm1, %v17137_v31  ;;  %v1708_v38 = vpop.permute.xlu0 %1707 }
 0x316   :  { %v1933_v9 = vmul.f32 %v15437_v19, %v1708_v38 }
 0x317   :  { %v2062_v8 = vadd.f32 %v1934_v3, %v17061_v49  ;;  %v2051_v49 = vadd.f32 %v1923_v58, %v17041_v15 }
 0x318   :  { %v2061_v43 = vadd.f32 %v1933_v9, %v17065_v5  ;;  %v1723_v61 = vpop.permute.xlu1 %1722  ;;  %v2486_v5 = vadd.f32 %v16735_v32, %v2352_v62  ;;  %v2615_v62 = vmax.f32 %v2487_v53, 0.0 }
 0x319   :  { %v2365_v46 = vadd.f32 %v2237_v42, %v2062_v8  ;;  %v1936_v38 = vmul.f32 %v15437_v19, %v1723_v61  ;;  %v1718_v35 = vpop.permute.xlu0 %1717  ;;  %v2613_v42 = vmax.f32 %v2485_v11, 0.0  ;;  %v2354_v58 = vadd.f32 %v17101_v17, %v2051_v49 }
 0x31a   :  { %v2364_v60 = vadd.f32 %v2236_v47, %v2061_v43  ;;  %v1935_v2 = vmul.f32 %v15437_v19, %v1718_v35  ;;  %v2355_v47 = vadd.f32 %v17097_v13, %v2052_v0  ;;  %v2614_v8 = vmax.f32 %v2486_v5, 0.0 }
 0x31b   :  { %v2499_v6 = vadd.f32 %v16735_v32, %v2365_v46  ;;  %v2064_v44 = vadd.f32 %v1936_v38, %v17069_v25  ;;  %v17185_v43 = vpack.c.bf16 %v2613_v42, %v2612_v20  ;;  %v2488_v35 = vadd.f32 %v16735_v32, %v2354_v58 }
 0x31c   :  { %v2498_v21 = vadd.f32 %v16735_v32, %v2364_v60  ;;  %v2063_v56 = vadd.f32 %v1935_v2, %v17081_v26  ;;  %13131 = vmatmul.mubr.msk.bf16.gmra.mrb[44].mxu0 %vm2758_vm1, %v17161_v22  ;;  %v1733_v15 = vpop.permute.xlu1 %1732  ;;  %v2489_v17 = vadd.f32 %v16735_v32, %v2355_v47  ;;  %v20523_v2 = vld [vmem:[#allocation100_spill] sm:$0xff] }
 0x31d   :  { %v2627_v3 = vmax.f32 %v2499_v6, 0.0  ;;  %v2367_v54 = vadd.f32 %v2239_v40, %v2064_v44  ;;  %v1938_v34 = vmul.f32 %v15437_v19, %v1733_v15  ;;  %13134 = vmatprep.mubr.msk.bf16.mxu0 %vm2758_vm1, %v17165_v39  ;;  %v1728_v25 = vpop.permute.xlu0 %1727  ;;  %v17197_v6 = vpack.c.bf16 %v2615_v62, %v2614_v8 }
 0x31e   :  { %v2626_v9 = vmax.f32 %v2498_v21, 0.0  ;;  %v2366_v24 = vadd.f32 %v2238_v33, %v2063_v56  ;;  %v1937_v26 = vmul.f32 %v15437_v19, %v1728_v25  ;;  %v2617_v15 = vmax.f32 %v2489_v17, 0.0 }
 0x31f   :  { %v2501_v55 = vadd.f32 %v16735_v32, %v2367_v54  ;;  %v2066_v13 = vadd.f32 %v1938_v34, %v17109_v63  ;;  %v2616_v47 = vmax.f32 %v2488_v35, 0.0 }
 0x320   :  { %v2500_v40 = vadd.f32 %v16735_v32, %v2366_v24  ;;  %v2065_v11 = vadd.f32 %v1937_v26, %v17113_v45  ;;  %v1743_v1 = vpop.permute.xlu1 %1742  ;;  %v17187_v61 = vpack.c.bf16 %v2627_v3, %v2626_v9  ;;  %v2243_v45 = vmul.f32 %v15451_v30, %v20523_v2 }
 0x321   :  { %v2629_v33 = vmax.f32 %v2501_v55, 0.0  ;;  %v2369_v0 = vadd.f32 %v2241_v36, %v2066_v13  ;;  %v1940_v46 = vmul.f32 %v15437_v19, %v1743_v1  ;;  %v1738_v38 = vpop.permute.xlu0 %1737  ;;  %v2242_v36 = vmul.f32 %v15451_v30, %v16605_v59  ;;  %v20524_v55 = vld [vmem:[#allocation94_spill] sm:$0xff] }
 0x322   :  { %v2628_v49 = vmax.f32 %v2500_v40, 0.0  ;;  %v2368_v63 = vadd.f32 %v2240_v16, %v2065_v11  ;;  %v1939_v60 = vmul.f32 %v15437_v19, %v1738_v38  ;;  %v17215_v8 = vpack.c.bf16 %v2617_v15, %v2616_v47  ;;  %v20525_v40 = vld [vmem:[#allocation95_spill] sm:$0xff] }
 0x323   :  { %v2503_v53 = vadd.f32 %v16735_v32, %v2369_v0  ;;  %v2068_v5 = vadd.f32 %v1940_v46, %v17119_v10  ;;  %v1175_v13 = vmul.f32 %v15434_v18, %v20524_v55  ;;  %v1174_v11 = vmul.f32 %v15434_v18, %v20525_v40 }
 0x324   :  { %v2502_v44 = vadd.f32 %v16735_v32, %v2368_v63  ;;  %v2067_v42 = vadd.f32 %v1939_v60, %v17123_v12  ;;  %13135 = vmatmul.mubr.msk.bf16.gmra.mrb[48].mxu0 %vm2758_vm1, %v17185_v43  ;;  %v1793_v16 = vpop.permute.xlu1 %1792  ;;  %v17205_v20 = vpack.c.bf16 %v2629_v33, %v2628_v49  ;;  %v20526_v60 = vld [vmem:[#allocation96_spill] sm:$0xff] }
 0x325   :  { %v2631_v21 = vmax.f32 %v2503_v53, 0.0  ;;  %v2371_v56 = vadd.f32 %v2243_v45, %v2068_v5  ;;  %13138 = vmatprep.mubr.msk.bf16.mxu0 %vm2758_vm1, %v17197_v6  ;;  %v1788_v10 = vpop.permute.xlu0 %1787  ;;  %v1950_v9 = vmul.f32 %v15437_v19, %v1793_v16  ;;  %v1177_v2 = vmul.f32 %v15434_v18, %v20526_v60  ;;  %v20527_v53 = vld [vmem:[#allocation97_spill] sm:$0xff] }
 0x326   :  { %v2630_v3 = vmax.f32 %v2502_v44, 0.0  ;;  %v2370_v59 = vadd.f32 %v2242_v36, %v2067_v42  ;;  %v1949_v62 = vmul.f32 %v15437_v19, %v1788_v10  ;;  %v1176_v5 = vmul.f32 %v15434_v18, %v20527_v53  ;;  %v13719_v60 = vld [vmem:[%s20530_s3 + $0x84] ss:$8 sps:$4 sm:$0xff]  }
 0x327   :  { %v2505_v54 = vadd.f32 %v16735_v32, %v2371_v56  ;;  %v2078_v33 = vadd.f32 %v1950_v9, %v1175_v13 }
 0x328   :  { %v2504_v12 = vadd.f32 %v16735_v32, %v2370_v59  ;;  %v1803_v34 = vpop.permute.xlu1 %1802  ;;  %v17211_v25 = vpack.c.bf16 %v2631_v21, %v2630_v3  ;;  %v2077_v35 = vadd.f32 %v1949_v62, %v1174_v11 }
 0x329   :  { %v2633_v58 = vmax.f32 %v2505_v54, 0.0  ;;  %v1798_v24 = vpop.permute.xlu0 %1797  ;;  %v1952_v0 = vmul.f32 %v15437_v19, %v1803_v34 }
 0x32a   :  { %v2632_v26 = vmax.f32 %v2504_v12, 0.0  ;;  %v1951_v49 = vmul.f32 %v15437_v19, %v1798_v24 }
 0x32b   :  { %v2080_v42 = vadd.f32 %v1952_v0, %v1177_v2  ;;  %v20528_v0 = vld [vmem:[#allocation101_spill] sm:$0xff] }
 0x32c   :  { %13139 = vmatmul.mubr.msk.bf16.gmra.mrb[52].mxu0 %vm2758_vm1, %v17215_v8  ;;  %v2096_v1 = vpop.permute.xlu1 %2095  ;;  %v17223_v17 = vpack.c.bf16 %v2633_v58, %v2632_v26  ;;  %v2079_v10 = vadd.f32 %v1951_v49, %v1176_v5  ;;  %v13716_v49 = vld [vmem:[%s20530_s3 + $0x74] ss:$8 sps:$4 sm:$0xff]  }
 0x32d   :  { %v2253_v46 = vmul.f32 %v15451_v30, %v2096_v1  ;;  %13142 = vmatprep.mubr.msk.bf16.mxu0 %vm2758_vm1, %v17187_v61  ;;  %v2091_v38 = vpop.permute.xlu0 %2090  ;;  %4279 = vmatprep.subr.bf16.mxu1 %v13716_v49 }
 0x32e   :  { %v2252_v63 = vmul.f32 %v15451_v30, %v2091_v38  ;;  %v20529_v38 = vld [vmem:[#allocation102_spill] sm:$0xff] }
 0x32f   :  { %v2381_v45 = vadd.f32 %v2253_v46, %v2078_v33  ;;  %v1179_v46 = vmul.f32 %v15434_v18, %v20528_v0 }
 0x330   :  { %v2380_v36 = vadd.f32 %v2252_v63, %v2077_v35  ;;  %v2106_v44 = vpop.permute.xlu1 %2105  ;;  %v1178_v35 = vmul.f32 %v15434_v18, %v20529_v38  ;;  %v13718_v63 = vld [vmem:[%s20530_s3 + $0x70] ss:$8 sps:$4 sm:$0xff]  }
 0x331   :  { %v2515_v16 = vadd.f32 %v16735_v32, %v2381_v45  ;;  %v2255_v21 = vmul.f32 %v15451_v30, %v2106_v44  ;;  %v2101_v56 = vpop.permute.xlu0 %2100  ;;  %4280 = vmatpush1.bf16.msra.mxu1 %v13718_v63 }
 0x332   :  { %v2514_v15 = vadd.f32 %v16735_v32, %v2380_v36  ;;  %v2254_v47 = vmul.f32 %v15451_v30, %v2101_v56  ;;  %4281 = vmatprep.subr.bf16.mxu1 %v13719_v60  ;;  %v13737_v60 = vld [vmem:[%s20530_s3] ss:$8 sps:$4 sm:$0xff]  }
 0x333   :  { %v2643_v3 = vmax.f32 %v2515_v16, 0.0  ;;  %v2383_v59 = vadd.f32 %v2255_v21, %v2080_v42  ;;  %v20531_v16 = vld [vmem:[#allocation103_spill] sm:$0xff] }
 0x334   :  { %v2642_v54 = vmax.f32 %v2514_v15, 0.0  ;;  %v2382_v12 = vadd.f32 %v2254_v47, %v2079_v10  ;;  %13143 = vmatmul.mubr.msk.bf16.gmra.mrb[56].mxu0 %vm2758_vm1, %v17205_v20  ;;  %v1813_v34 = vpop.permute.xlu1 %1812  ;;  %v1181_v21 = vmul.f32 %v15434_v18, %v20531_v16  ;;  %v13721_v10 = vld [vmem:[%s20530_s3 + $0x80] ss:$8 sps:$4 sm:$0xff]  }
 0x335   :  { %v2517_v58 = vadd.f32 %v16735_v32, %v2383_v59  ;;  %13146 = vmatprep.mubr.msk.bf16.mxu0 %vm2758_vm1, %v17211_v25  ;;  %v1808_v9 = vpop.permute.xlu0 %1807  ;;  %v1954_v40 = vmul.f32 %v15437_v19, %v1813_v34  ;;  %v20532_v15 = vld [vmem:[#allocation104_spill] sm:$0xff]  ;;  %4282 = vmatpush1.bf16.msra.mxu1 %v13721_v10  ;;  %v13740_v10 = vld [vmem:[%s20530_s3 + $0x10] ss:$8 sps:$4 sm:$0xff]  }
 0x336   :  { %v17244_v24 = vpack.c.bf16 %v2643_v3, %v2642_v54  ;;  %v2516_v26 = vadd.f32 %v16735_v32, %v2382_v12  ;;  %v1953_v33 = vmul.f32 %v15437_v19, %v1808_v9  ;;  %v1180_v47 = vmul.f32 %v15434_v18, %v20532_v15  ;;  %v14718_v54 = vld [vmem:[%s20369_s29] ss:$0 sm:$0xff] }
 0x337   :  { %v2645_v62 = vmax.f32 %v2517_v58, 0.0  ;;  %v2082_v2 = vadd.f32 %v1954_v40, %v1179_v46 }
 0x338   :  { %v2644_v55 = vmax.f32 %v2516_v26, 0.0  ;;  %v1823_v13 = vpop.permute.xlu1 %1822  ;;  %v2081_v36 = vadd.f32 %v1953_v33, %v1178_v35  ;;  %v13725_v33 = vld [vmem:[%s20530_s3 + $0xa4] ss:$8 sps:$4 sm:$0xff]   ;;  %v13727_v35 = vld [vmem:[%s20530_s3 + $0xa0] ss:$8 sps:$4 sm:$0xff]  }
 0x339   :  { %v1818_v11 = vpop.permute.xlu0 %1817  ;;  %v1956_v45 = vmul.f32 %v15437_v19, %v1823_v13  ;;  %v13724_v13 = vld [vmem:[%s20530_s3 + $0x90] ss:$8 sps:$4 sm:$0xff]  }
 0x33a   :  { %v17248_v1 = vpack.c.bf16 %v2645_v62, %v2644_v55  ;;  %v1955_v44 = vmul.f32 %v15437_v19, %v1818_v11  ;;  %v13722_v19 = vld [vmem:[%s20530_s3 + $0x94] ss:$8 sps:$4 sm:$0xff]  }
 0x33b   :  { %v2084_v59 = vadd.f32 %v1956_v45, %v1181_v21  ;;  %4283 = vmatprep.subr.bf16.mxu1 %v13722_v19 }
 0x33c   :  { %13147 = vmatmul.mubr.msk.bf16.gmra.mrb[60].mxu0 %vm2758_vm1, %v17223_v17  ;;  %v2116_v32 = vpop.permute.xlu1 %2115  ;;  %v2083_v9 = vadd.f32 %v1955_v44, %v1180_v47  ;;  %4284 = vmatpush1.bf16.msra.mxu1 %v13724_v13  ;;  %v13745_v47 = vld [vmem:[%s20530_s3 + $0x24] ss:$8 sps:$4 sm:$0xff]  }
 0x33d   :  { %v2257_v53 = vmul.f32 %v15451_v30, %v2116_v32  ;;  %13160 = vmatprep.mubr.msk.bf16.mxu0 %vm2758_vm1, %v16744_v28  ;;  %v2111_v5 = vpop.permute.xlu0 %2110  ;;  %4285 = vmatprep.subr.bf16.mxu1 %v13725_v33 }
 0x33e   :  { %v2256_v42 = vmul.f32 %v15451_v30, %v2111_v5 }
 0x33f   :  { %v2385_v56 = vadd.f32 %v2257_v53, %v2082_v2  ;;  %v13742_v53 = vld [vmem:[%s20530_s3 + $0x14] ss:$8 sps:$4 sm:$0xff]  }
 0x340   :  { %v2384_v28 = vadd.f32 %v2256_v42, %v2081_v36  ;;  %v2126_v3 = vpop.permute.xlu1 %2125  ;;  %4286 = vmatpush1.bf16.msra.mxu1 %v13727_v35 }
 0x341   :  { %v2519_v12 = vadd.f32 %v14718_v54, %v2385_v56  ;;  %v2259_v34 = vmul.f32 %v15451_v30, %v2126_v3  ;;  %v2121_v58 = vpop.permute.xlu0 %2120  ;;  %v20537_v56 = vmov 0  }
 0x342   :  { %v2518_v26 = vadd.f32 %v14718_v54, %v2384_v28  ;;  %v2258_v18 = vmul.f32 %v15451_v30, %v2121_v58 }
 0x343   :  { %v2647_v62 = vmax.f32 %v2519_v12, 0.0  ;;  %v2387_v55 = vadd.f32 %v2259_v34, %v2084_v59  ;;  %v13743_v12 = vld [vmem:[%s20530_s3 + $0x20] ss:$8 sps:$4 sm:$0xff]  }
 0x344   :  { %v2646_v40 = vmax.f32 %v2518_v26, 0.0  ;;  %v2386_v11 = vadd.f32 %v2258_v18, %v2083_v9  ;;  %13161 = vmatmul.mubr.msk.bf16.vlgmr.msra.gmra.mrb[0].mxu0 %vm2758_vm1, %v16772_v23  ;;  %v13728_v23 = vld [vmem:[%s20530_s3 + $0xb4] ss:$8 sps:$4 sm:$0xff]  }
 0x345   :  { %v2521_v0 = vadd.f32 %v14718_v54, %v2387_v55  ;;  %13164 = vmatprep.mubr.msk.bf16.mxu0 %vm2758_vm1, %v16774_v37  ;;  %v13730_v37 = vld [vmem:[%s20530_s3 + $0xb0] ss:$8 sps:$4 sm:$0xff]   ;;  %4287 = vmatprep.subr.bf16.mxu1 %v13728_v23  ;;  %v13748_v9 = vld [vmem:[%s20530_s3 + $0x34] ss:$8 sps:$4 sm:$0xff]   ;;  %v13749_v23 = vld [vmem:[%s20530_s3 + $0x40] ss:$8 sps:$4 sm:$0xff]  }
 0x346   :  { %v3566_v30 = vpack.c.bf16 %v2647_v62, %v2646_v40  ;;  %v2520_v46 = vadd.f32 %v14718_v54, %v2386_v11  ;;  %4288 = vmatpush1.bf16.msra.mxu1 %v13730_v37  ;;  %v13746_v11 = vld [vmem:[%s20530_s3 + $0x30] ss:$8 sps:$4 sm:$0xff]  }
 0x347   :  { %v2649_v38 = vmax.f32 %v2521_v0, 0.0  ;;  %v13751_v0 = vld [vmem:[%s20530_s3 + $0x44] ss:$8 sps:$4 sm:$0xff]  }
 0x348   :  { %v2648_v32 = vmax.f32 %v2520_v46, 0.0 }
 0x34a   :  { %v3567_v49 = vpack.c.bf16 %v2649_v38, %v2648_v32 }
 0x34c   :  { %13165 = vmatmul.mubr.msk.bf16.gmra.mrb[4].mxu0 %vm2758_vm1, %v16805_v41  ;;  %v20533_v41 = vld [vmem:[#allocation28_spill] sm:$0xff] }
 0x34d   :  { %13168 = vmatprep.mubr.msk.bf16.mxu0 %vm2758_vm1, %v16813_v29  ;;  %v20534_v29 = vld [vmem:[#allocation29_spill] sm:$0xff] }
 0x354   :  { %13169 = vmatmul.mubr.msk.bf16.gmra.mrb[8].mxu0 %vm2758_vm1, %v16845_v14  ;;  %v20535_v14 = vld [vmem:[#allocation26_spill] sm:$0xff] }
 0x355   :  { %13172 = vmatprep.mubr.msk.bf16.mxu0 %vm2758_vm1, %v16849_v50  ;;  %v20536_v50 = vld [vmem:[#allocation27_spill] sm:$0xff] }
 0x35c   :  { %13173 = vmatmul.mubr.msk.bf16.gmra.mrb[12].mxu0 %vm2758_vm1, %v16889_v27  ;;  %v13731_v27 = vld [vmem:[%s20530_s3 + $0xc4] ss:$8 sps:$4 sm:$0xff]  }
 0x35d   :  { %13176 = vmatprep.mubr.msk.bf16.mxu0 %vm2758_vm1, %v16891_v52  ;;  %v13733_v52 = vld [vmem:[%s20530_s3 + $0xc0] ss:$8 sps:$4 sm:$0xff]   ;;  %4289 = vmatprep.subr.bf16.mxu1 %v13731_v27 }
 0x35e   :  { %4290 = vmatpush1.bf16.msra.mxu1 %v13733_v52 }
 0x364   :  { %13177 = vmatmul.mubr.msk.bf16.gmra.mrb[16].mxu0 %vm2758_vm1, %v16927_v7  ;;  %v13734_v7 = vld [vmem:[%s20530_s3 + $0xd4] ss:$8 sps:$4 sm:$0x3f]  }
 0x365   :  { %13180 = vmatprep.mubr.msk.bf16.mxu0 %vm2758_vm1, %v16935_v4  ;;  %v13736_v4 = vld [vmem:[%s20530_s3 + $0xd0] ss:$8 sps:$4 sm:$0x3f]   ;;  %11693 = vmatprep.subr.msk.bf16.mxu1 %vm4272_vm2, %v13734_v7 }
 0x36c   :  { %13181 = vmatmul.mubr.msk.bf16.gmra.mrb[20].mxu0 %vm2758_vm1, %v16977_v57  ;;  %v4274_v57 = vsel %vm4272_vm2, %v13736_v4, 0  ;;  %v13752_v4 = vld [vmem:[%s20530_s3 + $0x50] ss:$8 sps:$4 sm:$0xff]  }
 0x36d   :  { %13184 = vmatprep.mubr.msk.bf16.mxu0 %vm2758_vm1, %v16981_v51  ;;  %4292 = vmatpush1.bf16.msra.mxu1 %v4274_v57  ;;  %v13739_v51 = vld [vmem:[%s20530_s3 + $0x4] ss:$8 sps:$4 sm:$0xff]  }
 0x36e   :  { %4584 = vmatprep.subr.bf16.mxu1 %v13739_v51  ;;  %v13755_v51 = vld [vmem:[%s20530_s3 + $0x64] ss:$8 sps:$4 sm:$0x3f]  }
 0x374   :  { %13185 = vmatmul.mubr.msk.bf16.gmra.mrb[24].mxu0 %vm2758_vm1, %v20533_v41  ;;  %v13754_v41 = vld [vmem:[%s20530_s3 + $0x54] ss:$8 sps:$4 sm:$0xff]  }
 0x375   :  { %13188 = vmatprep.mubr.msk.bf16.mxu0 %vm2758_vm1, %v20534_v29 }
 0x37c   :  { %13189 = vmatmul.mubr.msk.bf16.gmra.mrb[28].mxu0 %vm2758_vm1, %v20535_v14 }
 0x37d   :  { %13192 = vmatprep.mubr.msk.bf16.mxu0 %vm2758_vm1, %v20536_v50 }
 0x384   :  { %13193 = vmatmul.mubr.msk.bf16.gmra.mrb[32].mxu0 %vm2758_vm1, %v17131_v48  ;;  %v17379_v48 = vld [vmem:[#allocation7] ss:$0 sm:$0xff] }
 0x385   :  { %13196 = vmatprep.mubr.msk.bf16.mxu0 %vm2758_vm1, %v17137_v31 }
 0x38c   :  { %13197 = vmatmul.mubr.msk.bf16.gmra.mrb[36].mxu0 %vm2758_vm1, %v17161_v22 }
 0x38d   :  { %13200 = vmatprep.mubr.msk.bf16.mxu0 %vm2758_vm1, %v17165_v39 }
 0x394   :  { %13201 = vmatmul.mubr.msk.bf16.gmra.mrb[40].mxu0 %vm2758_vm1, %v17185_v43 }
 0x395   :  { %13204 = vmatprep.mubr.msk.bf16.mxu0 %vm2758_vm1, %v17197_v6 }
 0x39c   :  { %13205 = vmatmul.mubr.msk.bf16.gmra.mrb[44].mxu0 %vm2758_vm1, %v17215_v8 }
 0x39d   :  { %13208 = vmatprep.mubr.msk.bf16.mxu0 %vm2758_vm1, %v17187_v61 }
 0x3a4   :  { %13209 = vmatmul.mubr.msk.bf16.gmra.mrb[48].mxu0 %vm2758_vm1, %v17205_v20 }
 0x3a5   :  { %13212 = vmatprep.mubr.msk.bf16.mxu0 %vm2758_vm1, %v17211_v25 }
 0x3ac   :  { %13213 = vmatmul.mubr.msk.bf16.gmra.mrb[52].mxu0 %vm2758_vm1, %v17223_v17 }
 0x3ad   :  { %13216 = vmatprep.mubr.msk.bf16.mxu0 %vm2758_vm1, %v17244_v24 }
 0x3b4   :  { %13217 = vmatmul.mubr.msk.bf16.gmra.mrb[56].mxu0 %vm2758_vm1, %v17248_v1 }
 0x3b5   :  { %13220 = vmatprep.mubr.msk.bf16.mxu0 %vm2758_vm1, %v3566_v30 }
 0x3bc   :  { %13221 = vmatmul.mubr.msk.bf16.gmra.mrb[60].mxu0 %vm2758_vm1, %v3567_v49 }
 0x417   :  { %v13162_v31 = vpop.f32.mrb[0].mxu0 }
 0x418   :  { %v3971_v22 = vadd.f32 %v13162_v31, %v17379_v48  ;;  %v3644_v39 = vpop.f32.mrb[1].mxu0  ;;  %v13757_v31 = vld [vmem:[%s20530_s3 + $0x60] ss:$8 sps:$4 sm:$0x3f]  }
 0x419   :  { %v3969_v43 = vadd.f32 %v17379_v48, %v3644_v39  ;;  %v13163_v61 = vpop.f32.mrb[2].mxu0 }
 0x41a   :  { %v3972_v6 = vadd.f32 %v13163_v61, %v17379_v48  ;;  %v3647_v20 = vpop.f32.mrb[3].mxu0  ;;  %v4035_v8 = vmax.f32 %v3971_v22, 0.0 }
 0x41b   :  { %v3970_v25 = vadd.f32 %v17379_v48, %v3647_v20  ;;  %v4033_v24 = vmax.f32 %v3969_v43, 0.0 }
 0x41c   :  { %v4036_v17 = vmax.f32 %v3972_v6, 0.0 }
 0x41d   :  { %v4034_v1 = vmax.f32 %v3970_v25, 0.0 }
 0x41e   :  { %v4140_v63 = vpack.c.bf16 %v4036_v17, %v4035_v8  ;;  %v4579_v8 = vsel %vm4272_vm2, %v13757_v31, 0  ;;  %v13760_v17 = vld [vmem:[%s20530_s3 + $0xe4] ss:$8 sps:$4 sm:$0xff]  }
 0x41f   :  { %v4139_v2 = vpack.c.bf16 %v4034_v1, %v4033_v24  ;;  %v13166_v45 = vpop.f32.mrb[4].mxu0 }
 0x420   :  { %v3975_v5 = vadd.f32 %v13166_v45, %v17379_v48  ;;  %v3660_v36 = vpop.f32.mrb[5].mxu0 }
 0x421   :  { %v3973_v44 = vadd.f32 %v17379_v48, %v3660_v36  ;;  %v13167_v42 = vpop.f32.mrb[6].mxu0  ;;  %11694 = vmatmul.mubr.msk.bf16.vlgmr.msra.gmra.mrb[0].mxu1 %vm4223_vm3, %v4139_v2 }
 0x422   :  { %v3976_v16 = vadd.f32 %v13167_v42, %v17379_v48  ;;  %v3663_v21 = vpop.f32.mrb[7].mxu0  ;;  %4585 = vmatpush1.bf16.msra.mxu1 %v13737_v60  ;;  %4321 = vmatprep.mubr.bf16.mxu1 %v20537_v56  ;;  %v4039_v28 = vmax.f32 %v3975_v5, 0.0 }
 0x423   :  { %v3974_v15 = vadd.f32 %v17379_v48, %v3663_v21  ;;  %4586 = vmatprep.subr.bf16.mxu1 %v13742_v53  ;;  %v4037_v19 = vmax.f32 %v3973_v44, 0.0 }
 0x424   :  { %v4040_v3 = vmax.f32 %v3976_v16, 0.0 }
 0x425   :  { %v4038_v59 = vmax.f32 %v3974_v15, 0.0 }
 0x426   :  { %v4142_v54 = vpack.c.bf16 %v4040_v3, %v4039_v28  ;;  %4587 = vmatpush1.bf16.msra.mxu1 %v13740_v10 }
 0x427   :  { %v4141_v34 = vpack.c.bf16 %v4038_v59, %v4037_v19  ;;  %v13170_v58 = vpop.f32.mrb[8].mxu0  ;;  %4588 = vmatprep.subr.bf16.mxu1 %v13745_v47 }
 0x428   :  { %v3979_v26 = vadd.f32 %v13170_v58, %v17379_v48  ;;  %v3676_v18 = vpop.f32.mrb[9].mxu0 }
 0x429   :  { %v3977_v62 = vadd.f32 %v17379_v48, %v3676_v18  ;;  %v13171_v55 = vpop.f32.mrb[10].mxu0  ;;  %11695 = vmatmul.mubr.msk.bf16.gmra.mrb[4].mxu1 %vm4223_vm3, %v4140_v63 }
 0x42a   :  { %v3980_v13 = vadd.f32 %v13171_v55, %v17379_v48  ;;  %v3679_v40 = vpop.f32.mrb[11].mxu0  ;;  %4331 = vmatprep.mubr.bf16.mxu1 %v20537_v56  ;;  %4589 = vmatpush1.bf16.msra.mxu1 %v13743_v12  ;;  %v4043_v30 = vmax.f32 %v3979_v26, 0.0 }
 0x42b   :  { %v3978_v33 = vadd.f32 %v17379_v48, %v3679_v40  ;;  %4590 = vmatprep.subr.bf16.mxu1 %v13748_v9  ;;  %v4041_v38 = vmax.f32 %v3977_v62, 0.0 }
 0x42c   :  { %v4044_v46 = vmax.f32 %v3980_v13, 0.0 }
 0x42d   :  { %v4042_v35 = vmax.f32 %v3978_v33, 0.0 }
 0x42e   :  { %v17421_v32 = vpack.c.bf16 %v4044_v46, %v4043_v30  ;;  %4591 = vmatpush1.bf16.msra.mxu1 %v13746_v11 }
 0x42f   :  { %v17426_v49 = vpack.c.bf16 %v4042_v35, %v4041_v38  ;;  %v13174_v37 = vpop.f32.mrb[12].mxu0  ;;  %4592 = vmatprep.subr.bf16.mxu1 %v13751_v0 }
 0x430   :  { %v3983_v29 = vadd.f32 %v13174_v37, %v17379_v48  ;;  %v3692_v14 = vpop.f32.mrb[13].mxu0 }
 0x431   :  { %v3981_v50 = vadd.f32 %v17379_v48, %v3692_v14  ;;  %v13175_v27 = vpop.f32.mrb[14].mxu0  ;;  %11696 = vmatmul.mubr.msk.bf16.gmra.mrb[8].mxu1 %vm4223_vm3, %v4141_v34 }
 0x432   :  { %v3984_v52 = vadd.f32 %v13175_v27, %v17379_v48  ;;  %v3695_v7 = vpop.f32.mrb[15].mxu0  ;;  %4341 = vmatprep.mubr.bf16.mxu1 %v20537_v56  ;;  %4593 = vmatpush1.bf16.msra.mxu1 %v13749_v23  ;;  %v4047_v22 = vmax.f32 %v3983_v29, 0.0 }
 0x433   :  { %v3982_v57 = vadd.f32 %v17379_v48, %v3695_v7  ;;  %4594 = vmatprep.subr.bf16.mxu1 %v13754_v41  ;;  %v4045_v43 = vmax.f32 %v3981_v50, 0.0 }
 0x434   :  { %v4048_v39 = vmax.f32 %v3984_v52, 0.0 }
 0x435   :  { %v4046_v61 = vmax.f32 %v3982_v57, 0.0 }
 0x436   :  { %v17446_v6 = vpack.c.bf16 %v4048_v39, %v4047_v22  ;;  %4595 = vmatpush1.bf16.msra.mxu1 %v13752_v4 }
 0x437   :  { %v17448_v20 = vpack.c.bf16 %v4046_v61, %v4045_v43  ;;  %v13178_v25 = vpop.f32.mrb[16].mxu0  ;;  %11724 = vmatprep.subr.msk.bf16.mxu1 %vm4272_vm2, %v13755_v51 }
 0x438   :  { %v3987_v24 = vadd.f32 %v13178_v25, %v17379_v48  ;;  %v3708_v1 = vpop.f32.mrb[17].mxu0 }
 0x439   :  { %v3985_v63 = vadd.f32 %v17379_v48, %v3708_v1  ;;  %v13179_v60 = vpop.f32.mrb[18].mxu0  ;;  %11697 = vmatmul.mubr.msk.bf16.gmra.mrb[12].mxu1 %vm4223_vm3, %v4142_v54 }
 0x43a   :  { %v3988_v2 = vadd.f32 %v13179_v60, %v17379_v48  ;;  %v3711_v45 = vpop.f32.mrb[19].mxu0  ;;  %4351 = vmatprep.mubr.bf16.mxu1 %v20537_v56  ;;  %4597 = vmatpush1.bf16.msra.mxu1 %v4579_v8  ;;  %v4051_v5 = vmax.f32 %v3987_v24, 0.0 }
 0x43b   :  { %v3986_v53 = vadd.f32 %v17379_v48, %v3711_v45  ;;  %4882 = vmatprep.subr.bf16.mxu1 %v13760_v17  ;;  %v4049_v44 = vmax.f32 %v3985_v63, 0.0 }
 0x43c   :  { %v4052_v36 = vmax.f32 %v3988_v2, 0.0 }
 0x43d   :  { %v4050_v42 = vmax.f32 %v3986_v53, 0.0 }
 0x43e   :  { %v4144_v16 = vpack.c.bf16 %v4052_v36, %v4051_v5 }
 0x43f   :  { %v4143_v21 = vpack.c.bf16 %v4050_v42, %v4049_v44  ;;  %v13182_v10 = vpop.f32.mrb[20].mxu0 }
 0x440   :  { %v3991_v15 = vadd.f32 %v13182_v10, %v17379_v48  ;;  %v3724_v47 = vpop.f32.mrb[21].mxu0 }
 0x441   :  { %v3989_v28 = vadd.f32 %v17379_v48, %v3724_v47  ;;  %v13183_v3 = vpop.f32.mrb[22].mxu0  ;;  %11698 = vmatmul.mubr.msk.bf16.gmra.mrb[16].mxu1 %vm4223_vm3, %v4143_v21 }
 0x442   :  { %v3992_v19 = vadd.f32 %v13183_v3, %v17379_v48  ;;  %v3727_v59 = vpop.f32.mrb[23].mxu0  ;;  %4361 = vmatprep.mubr.bf16.mxu1 %v20537_v56  ;;  %v4055_v12 = vmax.f32 %v3991_v15, 0.0 }
 0x443   :  { %v3990_v54 = vadd.f32 %v17379_v48, %v3727_v59  ;;  %v4053_v58 = vmax.f32 %v3989_v28, 0.0 }
 0x444   :  { %v4056_v34 = vmax.f32 %v3992_v19, 0.0 }
 0x445   :  { %v4054_v9 = vmax.f32 %v3990_v54, 0.0 }
 0x446   :  { %v4146_v26 = vpack.c.bf16 %v4056_v34, %v4055_v12 }
 0x447   :  { %v4145_v18 = vpack.c.bf16 %v4054_v9, %v4053_v58  ;;  %v13186_v62 = vpop.f32.mrb[24].mxu0 }
 0x448   :  { %v3995_v55 = vadd.f32 %v13186_v62, %v17379_v48  ;;  %v3740_v13 = vpop.f32.mrb[25].mxu0 }
 0x449   :  { %v3993_v40 = vadd.f32 %v17379_v48, %v3740_v13  ;;  %v13187_v11 = vpop.f32.mrb[26].mxu0  ;;  %11699 = vmatmul.mubr.msk.bf16.gmra.mrb[20].mxu1 %vm4223_vm3, %v4144_v16 }
 0x44a   :  { %v3996_v33 = vadd.f32 %v13187_v11, %v17379_v48  ;;  %v3743_v0 = vpop.f32.mrb[27].mxu0  ;;  %4371 = vmatprep.mubr.bf16.mxu1 %v20537_v56  ;;  %v4059_v46 = vmax.f32 %v3995_v55, 0.0 }
 0x44b   :  { %v3994_v30 = vadd.f32 %v17379_v48, %v3743_v0  ;;  %v4057_v35 = vmax.f32 %v3993_v40, 0.0 }
 0x44c   :  { %v4060_v38 = vmax.f32 %v3996_v33, 0.0 }
 0x44d   :  { %v4058_v23 = vmax.f32 %v3994_v30, 0.0 }
 0x44e   :  { %v17473_v37 = vpack.c.bf16 %v4060_v38, %v4059_v46 }
 0x44f   :  { %v17475_v41 = vpack.c.bf16 %v4058_v23, %v4057_v35  ;;  %v13190_v29 = vpop.f32.mrb[28].mxu0 }
 0x450   :  { %v3999_v14 = vadd.f32 %v13190_v29, %v17379_v48  ;;  %v3756_v50 = vpop.f32.mrb[29].mxu0 }
 0x451   :  { %v3997_v27 = vadd.f32 %v17379_v48, %v3756_v50  ;;  %v13191_v52 = vpop.f32.mrb[30].mxu0  ;;  %11700 = vmatmul.mubr.msk.bf16.gmra.mrb[24].mxu1 %vm4223_vm3, %v4145_v18 }
 0x452   :  { %v4000_v7 = vadd.f32 %v13191_v52, %v17379_v48  ;;  %v3759_v4 = vpop.f32.mrb[31].mxu0  ;;  %4381 = vmatprep.mubr.bf16.mxu1 %v20537_v56  ;;  %v4063_v51 = vmax.f32 %v3999_v14, 0.0 }
 0x453   :  { %v3998_v57 = vadd.f32 %v17379_v48, %v3759_v4  ;;  %v4061_v22 = vmax.f32 %v3997_v27, 0.0 }
 0x454   :  { %v4064_v31 = vmax.f32 %v4000_v7, 0.0 }
 0x455   :  { %v4062_v39 = vmax.f32 %v3998_v57, 0.0 }
 0x456   :  { %v17483_v43 = vpack.c.bf16 %v4064_v31, %v4063_v51 }
 0x457   :  { %v17485_v61 = vpack.c.bf16 %v4062_v39, %v4061_v22  ;;  %v13194_v25 = vpop.f32.mrb[32].mxu0 }
 0x458   :  { %v4003_v8 = vadd.f32 %v13194_v25, %v17379_v48  ;;  %v3772_v17 = vpop.f32.mrb[33].mxu0 }
 0x459   :  { %v4001_v24 = vadd.f32 %v17379_v48, %v3772_v17  ;;  %v13195_v1 = vpop.f32.mrb[34].mxu0  ;;  %11701 = vmatmul.mubr.msk.bf16.gmra.mrb[28].mxu1 %vm4223_vm3, %v4146_v26 }
 0x45a   :  { %v4004_v63 = vadd.f32 %v13195_v1, %v17379_v48  ;;  %v3775_v60 = vpop.f32.mrb[35].mxu0  ;;  %4391 = vmatprep.mubr.bf16.mxu1 %v20537_v56  ;;  %v4067_v45 = vmax.f32 %v4003_v8, 0.0 }
 0x45b   :  { %v4002_v2 = vadd.f32 %v17379_v48, %v3775_v60  ;;  %v4065_v5 = vmax.f32 %v4001_v24, 0.0 }
 0x45c   :  { %v4068_v53 = vmax.f32 %v4004_v63, 0.0 }
 0x45d   :  { %v4066_v36 = vmax.f32 %v4002_v2, 0.0 }
 0x45e   :  { %v4148_v44 = vpack.c.bf16 %v4068_v53, %v4067_v45 }
 0x45f   :  { %v4147_v42 = vpack.c.bf16 %v4066_v36, %v4065_v5  ;;  %v13198_v16 = vpop.f32.mrb[36].mxu0 }
 0x460   :  { %v4007_v21 = vadd.f32 %v13198_v16, %v17379_v48  ;;  %v3788_v10 = vpop.f32.mrb[37].mxu0 }
 0x461   :  { %v4005_v15 = vadd.f32 %v17379_v48, %v3788_v10  ;;  %v13199_v47 = vpop.f32.mrb[38].mxu0  ;;  %11702 = vmatmul.mubr.msk.bf16.gmra.mrb[32].mxu1 %vm4223_vm3, %v4147_v42 }
 0x462   :  { %v4008_v28 = vadd.f32 %v13199_v47, %v17379_v48  ;;  %v3791_v3 = vpop.f32.mrb[39].mxu0  ;;  %4401 = vmatprep.mubr.bf16.mxu1 %v20537_v56  ;;  %v4071_v59 = vmax.f32 %v4007_v21, 0.0 }
 0x463   :  { %v4006_v19 = vadd.f32 %v17379_v48, %v3791_v3  ;;  %v4069_v12 = vmax.f32 %v4005_v15, 0.0 }
 0x464   :  { %v4072_v54 = vmax.f32 %v4008_v28, 0.0 }
 0x465   :  { %v4070_v34 = vmax.f32 %v4006_v19, 0.0 }
 0x466   :  { %v4150_v58 = vpack.c.bf16 %v4072_v54, %v4071_v59 }
 0x467   :  { %v4149_v9 = vpack.c.bf16 %v4070_v34, %v4069_v12  ;;  %v13202_v26 = vpop.f32.mrb[40].mxu0 }
 0x468   :  { %v4011_v18 = vadd.f32 %v13202_v26, %v17379_v48  ;;  %v3804_v62 = vpop.f32.mrb[41].mxu0 }
 0x469   :  { %v4009_v55 = vadd.f32 %v17379_v48, %v3804_v62  ;;  %v13203_v13 = vpop.f32.mrb[42].mxu0  ;;  %11703 = vmatmul.mubr.msk.bf16.gmra.mrb[36].mxu1 %vm4223_vm3, %v4148_v44 }
 0x46a   :  { %v4012_v40 = vadd.f32 %v13203_v13, %v17379_v48  ;;  %v3807_v11 = vpop.f32.mrb[43].mxu0  ;;  %4411 = vmatprep.mubr.bf16.mxu1 %v20537_v56  ;;  %v4075_v0 = vmax.f32 %v4011_v18, 0.0 }
 0x46b   :  { %v4010_v33 = vadd.f32 %v17379_v48, %v3807_v11  ;;  %v4073_v46 = vmax.f32 %v4009_v55, 0.0 }
 0x46c   :  { %v4076_v30 = vmax.f32 %v4012_v40, 0.0 }
 0x46d   :  { %v4074_v38 = vmax.f32 %v4010_v33, 0.0 }
 0x46e   :  { %v17505_v35 = vpack.c.bf16 %v4076_v30, %v4075_v0 }
 0x46f   :  { %v17507_v23 = vpack.c.bf16 %v4074_v38, %v4073_v46  ;;  %v13206_v29 = vpop.f32.mrb[44].mxu0 }
 0x470   :  { %v4015_v14 = vadd.f32 %v13206_v29, %v17379_v48  ;;  %v3820_v50 = vpop.f32.mrb[45].mxu0 }
 0x471   :  { %v4013_v27 = vadd.f32 %v17379_v48, %v3820_v50  ;;  %v13207_v52 = vpop.f32.mrb[46].mxu0  ;;  %11704 = vmatmul.mubr.msk.bf16.gmra.mrb[40].mxu1 %vm4223_vm3, %v4149_v9 }
 0x472   :  { %v4016_v7 = vadd.f32 %v13207_v52, %v17379_v48  ;;  %v3823_v4 = vpop.f32.mrb[47].mxu0  ;;  %4421 = vmatprep.mubr.bf16.mxu1 %v20537_v56  ;;  %v4079_v51 = vmax.f32 %v4015_v14, 0.0 }
 0x473   :  { %v4014_v57 = vadd.f32 %v17379_v48, %v3823_v4  ;;  %v4077_v22 = vmax.f32 %v4013_v27, 0.0 }
 0x474   :  { %v4080_v31 = vmax.f32 %v4016_v7, 0.0 }
 0x475   :  { %v4078_v39 = vmax.f32 %v4014_v57, 0.0 }
 0x476   :  { %v17515_v25 = vpack.c.bf16 %v4080_v31, %v4079_v51 }
 0x477   :  { %v17517_v8 = vpack.c.bf16 %v4078_v39, %v4077_v22  ;;  %v13210_v17 = vpop.f32.mrb[48].mxu0 }
 0x478   :  { %v4019_v24 = vadd.f32 %v13210_v17, %v17379_v48  ;;  %v3836_v1 = vpop.f32.mrb[49].mxu0 }
 0x479   :  { %v4017_v63 = vadd.f32 %v17379_v48, %v3836_v1  ;;  %v13211_v60 = vpop.f32.mrb[50].mxu0  ;;  %11705 = vmatmul.mubr.msk.bf16.gmra.mrb[44].mxu1 %vm4223_vm3, %v4150_v58 }
 0x47a   :  { %v4020_v2 = vadd.f32 %v13211_v60, %v17379_v48  ;;  %v3839_v45 = vpop.f32.mrb[51].mxu0  ;;  %4431 = vmatprep.mubr.bf16.mxu1 %v20537_v56  ;;  %v4083_v5 = vmax.f32 %v4019_v24, 0.0 }
 0x47b   :  { %v4018_v53 = vadd.f32 %v17379_v48, %v3839_v45  ;;  %v4081_v44 = vmax.f32 %v4017_v63, 0.0  ;;  %v13758_v45 = vld [vmem:[%s20530_s3 + $0xe0] ss:$8 sps:$4 sm:$0xff]  }
 0x47c   :  { %v4084_v36 = vmax.f32 %v4020_v2, 0.0 }
 0x47d   :  { %v4082_v42 = vmax.f32 %v4018_v53, 0.0  ;;  %v20538_v53 = vmov 0.0|0.0  }
 0x47e   :  { %v4152_v16 = vpack.c.bf16 %v4084_v36, %v4083_v5  ;;  %v13761_v5 = vld [vmem:[%s20530_s3 + $0xf0] ss:$8 sps:$4 sm:$0xff]   ;;  %v13766_v36 = vld [vmem:[%s20530_s3 + $0x104] ss:$8 sps:$4 sm:$0xff]  }
 0x47f   :  { %v4151_v21 = vpack.c.bf16 %v4082_v42, %v4081_v44  ;;  %v13214_v10 = vpop.f32.mrb[52].mxu0  ;;  %v13764_v44 = vld [vmem:[%s20530_s3 + $0x100] ss:$8 sps:$4 sm:$0xff]   ;;  %v13769_v42 = vld [vmem:[%s20530_s3 + $0x114] ss:$8 sps:$4 sm:$0xff]  }
 0x480   :  { %v4023_v15 = vadd.f32 %v13214_v10, %v17379_v48  ;;  %v3852_v47 = vpop.f32.mrb[53].mxu0  ;;  %v13770_v10 = vld [vmem:[%s20530_s3 + $0x120] ss:$8 sps:$4 sm:$0xff]  }
 0x481   :  { %v4021_v28 = vadd.f32 %v17379_v48, %v3852_v47  ;;  %v13215_v3 = vpop.f32.mrb[54].mxu0  ;;  %11706 = vmatmul.mubr.msk.bf16.gmra.mrb[48].mxu1 %vm4223_vm3, %v4151_v21  ;;  %v13772_v21 = vld [vmem:[%s20530_s3 + $0x124] ss:$8 sps:$4 sm:$0xff]   ;;  %v13773_v47 = vld [vmem:[%s20530_s3 + $0x130] ss:$8 sps:$4 sm:$0xff]  }
 0x482   :  { %v4024_v19 = vadd.f32 %v13215_v3, %v17379_v48  ;;  %v3855_v59 = vpop.f32.mrb[55].mxu0  ;;  %4441 = vmatprep.mubr.bf16.mxu1 %v20537_v56  ;;  %v4087_v12 = vmax.f32 %v4023_v15, 0.0  ;;  %v13775_v15 = vld [vmem:[%s20530_s3 + $0x134] ss:$8 sps:$4 sm:$0xff]  }
 0x483   :  { %v4022_v54 = vadd.f32 %v17379_v48, %v3855_v59  ;;  %v4085_v58 = vmax.f32 %v4021_v28, 0.0  ;;  %v13776_v28 = vld [vmem:[%s20530_s3 + $0x144] ss:$8 sps:$4 sm:$0x3f]   ;;  %v13779_v59 = vld [vmem:[%s20539_s9 + $0xa8] ss:$8 sps:$4 sm:$0xff]  }
 0x484   :  { %v4088_v34 = vmax.f32 %v4024_v19, 0.0  ;;  %v13778_v3 = vld [vmem:[%s20530_s3 + $0x140] ss:$8 sps:$4 sm:$0x3f]  }
 0x485   :  { %v4086_v9 = vmax.f32 %v4022_v54, 0.0  ;;  %v4877_v19 = vsel %vm4272_vm2, %v13778_v3, 0  ;;  %v13781_v54 = vld [vmem:[%s20539_s9 + $0xac] ss:$8 sps:$4 sm:$0xff]  }
 0x486   :  { %v4154_v26 = vpack.c.bf16 %v4088_v34, %v4087_v12  ;;  %v13784_v12 = vld [vmem:[%s20539_s9 + $0xbc] ss:$8 sps:$4 sm:$0xff]   ;;  %5483 = vmatprep.subr.bf16.mxu0 %v13781_v54  ;;  %v13782_v34 = vld [vmem:[%s20539_s9 + $0xb8] ss:$8 sps:$4 sm:$0xff]  }
 0x487   :  { %v4153_v18 = vpack.c.bf16 %v4086_v9, %v4085_v58  ;;  %v13218_v62 = vpop.f32.mrb[56].mxu0  ;;  %5484 = vmatpush1.bf16.msra.mxu0 %v13779_v59  ;;  %v13787_v58 = vld [vmem:[%s20539_s9 + $0xcc] ss:$8 sps:$4 sm:$0xff]   ;;  %v13785_v9 = vld [vmem:[%s20539_s9 + $0xc8] ss:$8 sps:$4 sm:$0xff]  }
 0x488   :  { %v4027_v55 = vadd.f32 %v13218_v62, %v17379_v48  ;;  %v3868_v13 = vpop.f32.mrb[57].mxu0  ;;  %5485 = vmatprep.subr.bf16.mxu0 %v13784_v12  ;;  %v13793_v62 = vld [vmem:[%s20539_s9 + $0xec] ss:$8 sps:$4 sm:$0xff]   ;;  %v13817_v12 = vld [vmem:[%s20539_s9 + $0x20] ss:$8 sps:$4 sm:$0xff]  }
 0x489   :  { %v4025_v40 = vadd.f32 %v17379_v48, %v3868_v13  ;;  %v13219_v11 = vpop.f32.mrb[58].mxu0  ;;  %11707 = vmatmul.mubr.msk.bf16.gmra.mrb[52].mxu1 %vm4223_vm3, %v4152_v16  ;;  %v13767_v16 = vld [vmem:[%s20530_s3 + $0x110] ss:$8 sps:$4 sm:$0xff]  }
 0x48a   :  { %v4028_v33 = vadd.f32 %v13219_v11, %v17379_v48  ;;  %v3871_v0 = vpop.f32.mrb[59].mxu0  ;;  %4451 = vmatprep.mubr.bf16.mxu1 %v20537_v56  ;;  %v4091_v46 = vmax.f32 %v4027_v55, 0.0  ;;  %v13796_v55 = vld [vmem:[%s20539_s9 + $0xfc] ss:$8 sps:$4 sm:$0xff]   ;;  %v13794_v13 = vld [vmem:[%s20539_s9 + $0xf8] ss:$8 sps:$4 sm:$0xff]  }
 0x48b   :  { %v4026_v30 = vadd.f32 %v17379_v48, %v3871_v0  ;;  %v4089_v29 = vmax.f32 %v4025_v40, 0.0  ;;  %5486 = vmatpush1.bf16.msra.mxu0 %v13782_v34  ;;  %v13799_v40 = vld [vmem:[%s20539_s9 + $0x10c] ss:$8 sps:$4 sm:$0xff]   ;;  %v13802_v11 = vld [vmem:[%s20539_s9 + $0x11c] ss:$8 sps:$4 sm:$0xff]  }
 0x48c   :  { %v4092_v38 = vmax.f32 %v4028_v33, 0.0  ;;  %5487 = vmatprep.subr.bf16.mxu0 %v13787_v58  ;;  %v13800_v33 = vld [vmem:[%s20539_s9 + $0x118] ss:$8 sps:$4 sm:$0xff]   ;;  %v13805_v0 = vld [vmem:[%s20539_s9 + $0x12c] ss:$8 sps:$4 sm:$0xff]  }
 0x48d   :  { %v4090_v14 = vmax.f32 %v4026_v30, 0.0 }
 0x48e   :  { %v17537_v50 = vpack.c.bf16 %v4092_v38, %v4091_v46  ;;  %v20542_v46 = vld [vmem:[#allocation25_spill] sm:$0xff] }
 0x48f   :  { %v17539_v27 = vpack.c.bf16 %v4090_v14, %v4089_v29  ;;  %v13222_v52 = vpop.f32.mrb[60].mxu0  ;;  %5488 = vmatpush1.bf16.msra.mxu0 %v13785_v9  ;;  %v13822_v9 = vld [vmem:[%s20539_s9 + $0x34] ss:$8 sps:$4 sm:$0xff]  }
 0x490   :  { %v4031_v7 = vadd.f32 %v13222_v52, %v17379_v48  ;;  %v3884_v4 = vpop.f32.mrb[61].mxu0 }
 0x491   :  { %v4029_v57 = vadd.f32 %v17379_v48, %v3884_v4  ;;  %v13223_v51 = vpop.f32.mrb[62].mxu0  ;;  %11708 = vmatmul.mubr.msk.bf16.gmra.mrb[56].mxu1 %vm4223_vm3, %v4153_v18  ;;  %v13788_v18 = vld [vmem:[%s20539_s9 + $0xd8] ss:$8 sps:$4 sm:$0xff]  }
 0x492   :  { %v4032_v31 = vadd.f32 %v13223_v51, %v17379_v48  ;;  %v3887_v22 = vpop.f32.mrb[63].mxu0  ;;  %4461 = vmatprep.mubr.bf16.mxu1 %v20537_v56  ;;  %v4095_v17 = vmax.f32 %v4031_v7, 0.0 }
 0x493   :  { %v4030_v39 = vadd.f32 %v17379_v48, %v3887_v22  ;;  %v4093_v1 = vmax.f32 %v4029_v57, 0.0  ;;  %v13763_v48 = vld [vmem:[%s20530_s3 + $0xf4] ss:$8 sps:$4 sm:$0xff]  }
 0x494   :  { %v4096_v24 = vmax.f32 %v4032_v31, 0.0 }
 0x495   :  { %v4094_v63 = vmax.f32 %v4030_v39, 0.0 }
 0x496   :  { %v17547_v60 = vpack.c.bf16 %v4096_v24, %v4095_v17 }
 0x497   :  { %v17549_v2 = vpack.c.bf16 %v4094_v63, %v4093_v1 }
 0x499   :  { %11709 = vmatmul.mubr.msk.bf16.gmra.mrb[60].mxu1 %vm4223_vm3, %v4154_v26  ;;  %v13790_v26 = vld [vmem:[%s20539_s9 + $0xdc] ss:$8 sps:$4 sm:$0xff]  }
 0x49a   :  { %4616 = vmatprep.mubr.bf16.mxu1 %v20537_v56  ;;  %5489 = vmatprep.subr.bf16.mxu0 %v13790_v26 }
 0x49b   :  { %5490 = vmatpush1.bf16.msra.mxu0 %v13788_v18 }
 0x49c   :  { %5491 = vmatprep.subr.bf16.mxu0 %v13793_v62 }
 0x4a1   :  { %4617 = vmatmul.mubr.bf16.vlgmr.msra.gmra.mrb[0].mxu1 %v20538_v53 }
 0x4a2   :  { %4883 = vmatpush1.bf16.msra.mxu1 %v13758_v45  ;;  %4626 = vmatprep.mubr.bf16.mxu1 %v20537_v56 }
 0x4a3   :  { %4884 = vmatprep.subr.bf16.mxu1 %v13763_v48  ;;  %v13816_v48 = vld [vmem:[%s20539_s9 + $0x14] ss:$8 sps:$4 sm:$0xff]  }
 0x4a6   :  { %4885 = vmatpush1.bf16.msra.mxu1 %v13761_v5 }
 0x4a7   :  { %4886 = vmatprep.subr.bf16.mxu1 %v13766_v36 }
 0x4a9   :  { %4627 = vmatmul.mubr.bf16.gmra.mrb[4].mxu1 %v20538_v53 }
 0x4aa   :  { %4636 = vmatprep.mubr.bf16.mxu1 %v20537_v56  ;;  %4887 = vmatpush1.bf16.msra.mxu1 %v13764_v44 }
 0x4ab   :  { %4888 = vmatprep.subr.bf16.mxu1 %v13769_v42 }
 0x4ae   :  { %4889 = vmatpush1.bf16.msra.mxu1 %v13767_v16 }
 0x4af   :  { %4890 = vmatprep.subr.bf16.mxu1 %v13772_v21  ;;  %v13814_v21 = vld [vmem:[%s20539_s9 + $0x10] ss:$8 sps:$4 sm:$0xff]  }
 0x4b1   :  { %4637 = vmatmul.mubr.bf16.gmra.mrb[8].mxu1 %v20538_v53 }
 0x4b2   :  { %4646 = vmatprep.mubr.bf16.mxu1 %v20537_v56  ;;  %4891 = vmatpush1.bf16.msra.mxu1 %v13770_v10 }
 0x4b3   :  { %4892 = vmatprep.subr.bf16.mxu1 %v13775_v15 }
 0x4b6   :  { %4893 = vmatpush1.bf16.msra.mxu1 %v13773_v47  ;;  %v13819_v47 = vld [vmem:[%s20539_s9 + $0x24] ss:$8 sps:$4 sm:$0xff]  }
 0x4b7   :  { %11765 = vmatprep.subr.msk.bf16.mxu1 %vm4272_vm2, %v13776_v28 }
 0x4b9   :  { %4647 = vmatmul.mubr.bf16.gmra.mrb[12].mxu1 %v20538_v53 }
 0x4ba   :  { %4656 = vmatprep.mubr.bf16.mxu1 %v20537_v56  ;;  %4895 = vmatpush1.bf16.msra.mxu1 %v4877_v19 }
 0x4c1   :  { %11725 = vmatmul.mubr.msk.bf16.gmra.mrb[16].mxu1 %vm4223_vm3, %v17426_v49 }
 0x4c2   :  { %4666 = vmatprep.mubr.bf16.mxu1 %v20537_v56 }
 0x4c9   :  { %11726 = vmatmul.mubr.msk.bf16.gmra.mrb[20].mxu1 %vm4223_vm3, %v17421_v32 }
 0x4ca   :  { %4676 = vmatprep.mubr.bf16.mxu1 %v20537_v56 }
 0x4d1   :  { %11727 = vmatmul.mubr.msk.bf16.gmra.mrb[24].mxu1 %vm4223_vm3, %v17448_v20 }
 0x4d2   :  { %4686 = vmatprep.mubr.bf16.mxu1 %v20537_v56 }
 0x4d9   :  { %11728 = vmatmul.mubr.msk.bf16.gmra.mrb[28].mxu1 %vm4223_vm3, %v17446_v6 }
 0x4da   :  { %4696 = vmatprep.mubr.bf16.mxu1 %v20537_v56 }
 0x4e1   :  { %11729 = vmatmul.mubr.msk.bf16.gmra.mrb[32].mxu1 %vm4223_vm3, %v17475_v41 }
 0x4e2   :  { %4706 = vmatprep.mubr.bf16.mxu1 %v20537_v56 }
 0x4e9   :  { %11730 = vmatmul.mubr.msk.bf16.gmra.mrb[36].mxu1 %vm4223_vm3, %v17473_v37 }
 0x4ea   :  { %4716 = vmatprep.mubr.bf16.mxu1 %v20537_v56 }
 0x4f1   :  { %11731 = vmatmul.mubr.msk.bf16.gmra.mrb[40].mxu1 %vm4223_vm3, %v17485_v61 }
 0x4f2   :  { %4726 = vmatprep.mubr.bf16.mxu1 %v20537_v56 }
 0x4f9   :  { %11732 = vmatmul.mubr.msk.bf16.gmra.mrb[44].mxu1 %vm4223_vm3, %v17483_v43 }
 0x4fa   :  { %4736 = vmatprep.mubr.bf16.mxu1 %v20537_v56 }
 0x501   :  { %11733 = vmatmul.mubr.msk.bf16.gmra.mrb[48].mxu1 %vm4223_vm3, %v17507_v23 }
 0x502   :  { %4746 = vmatprep.mubr.bf16.mxu1 %v20537_v56 }
 0x509   :  { %11734 = vmatmul.mubr.msk.bf16.gmra.mrb[52].mxu1 %vm4223_vm3, %v17505_v35 }
 0x50a   :  { %4756 = vmatprep.mubr.bf16.mxu1 %v20537_v56 }
 0x511   :  { %11735 = vmatmul.mubr.msk.bf16.gmra.mrb[56].mxu1 %vm4223_vm3, %v17517_v8 }
 0x512   :  { %4766 = vmatprep.mubr.bf16.mxu1 %v20537_v56 }
 0x519   :  { %11736 = vmatmul.mubr.msk.bf16.gmra.mrb[60].mxu1 %vm4223_vm3, %v17515_v25 }
 0x51a   :  { %4914 = vmatprep.mubr.bf16.mxu1 %v20537_v56 }
 0x521   :  { %11766 = vmatmul.mubr.msk.bf16.vlgmr.msra.gmra.mrb[0].mxu1 %vm4223_vm3, %v17426_v49  ;;  %v13791_v49 = vld [vmem:[%s20539_s9 + $0xe8] ss:$8 sps:$4 sm:$0xff]  }
 0x522   :  { %4924 = vmatprep.mubr.bf16.mxu1 %v20537_v56  ;;  %5492 = vmatpush1.bf16.msra.mxu0 %v13791_v49 }
 0x523   :  { %5493 = vmatprep.subr.bf16.mxu0 %v13796_v55 }
 0x526   :  { %5494 = vmatpush1.bf16.msra.mxu0 %v13794_v13  ;;  %v13820_v13 = vld [vmem:[%s20539_s9 + $0x30] ss:$8 sps:$4 sm:$0xff]  }
 0x527   :  { %5495 = vmatprep.subr.bf16.mxu0 %v13799_v40 }
 0x529   :  { %11767 = vmatmul.mubr.msk.bf16.gmra.mrb[4].mxu1 %vm4223_vm3, %v17421_v32  ;;  %v13797_v32 = vld [vmem:[%s20539_s9 + $0x108] ss:$8 sps:$4 sm:$0xff]  }
 0x52a   :  { %4934 = vmatprep.mubr.bf16.mxu1 %v20537_v56  ;;  %5496 = vmatpush1.bf16.msra.mxu0 %v13797_v32 }
 0x52b   :  { %5497 = vmatprep.subr.bf16.mxu0 %v13802_v11  ;;  %v13825_v11 = vld [vmem:[%s20539_s9 + $0x44] ss:$8 sps:$4 sm:$0xff]  }
 0x52e   :  { %5498 = vmatpush1.bf16.msra.mxu0 %v13800_v33 }
 0x52f   :  { %5499 = vmatprep.subr.bf16.mxu0 %v13805_v0 }
 0x531   :  { %11768 = vmatmul.mubr.msk.bf16.gmra.mrb[8].mxu1 %vm4223_vm3, %v17448_v20  ;;  %v13803_v20 = vld [vmem:[%s20539_s9 + $0x128] ss:$8 sps:$4 sm:$0xff]  }
 0x532   :  { %4944 = vmatprep.mubr.bf16.mxu1 %v20537_v56  ;;  %5500 = vmatpush1.bf16.msra.mxu0 %v13803_v20 }
 0x539   :  { %11769 = vmatmul.mubr.msk.bf16.gmra.mrb[12].mxu1 %vm4223_vm3, %v17446_v6  ;;  %v13808_v6 = vld [vmem:[%s20539_s9 + $0x13c] ss:$8 sps:$4 sm:$0xff]  }
 0x53a   :  { %4954 = vmatprep.mubr.bf16.mxu1 %v20537_v56  ;;  %5501 = vmatprep.subr.bf16.mxu0 %v13808_v6 }
 0x541   :  { %11770 = vmatmul.mubr.msk.bf16.gmra.mrb[16].mxu1 %vm4223_vm3, %v17475_v41  ;;  %v11802_v41 = vld [vmem:[%s20539_s9 + $0x148] sm:$0x11] }
 0x542   :  { %4964 = vmatprep.mubr.bf16.mxu1 %v20537_v56 }
 0x549   :  { %11771 = vmatmul.mubr.msk.bf16.gmra.mrb[20].mxu1 %vm4223_vm3, %v17473_v37  ;;  %v13806_v37 = vld [vmem:[%s20539_s9 + $0x138] ss:$8 sps:$4 sm:$0xff]  }
 0x54a   :  { %4974 = vmatprep.mubr.bf16.mxu1 %v20537_v56  ;;  %5502 = vmatpush1.bf16.msra.mxu0 %v13806_v37 }
 0x551   :  { %11772 = vmatmul.mubr.msk.bf16.gmra.mrb[24].mxu1 %vm4223_vm3, %v17485_v61  ;;  %v11823_v61 = vcombine.low %v11802_v41, %v11802_v41 }
 0x552   :  { %4984 = vmatprep.mubr.bf16.mxu1 %v20537_v56 }
 0x559   :  { %11773 = vmatmul.mubr.msk.bf16.gmra.mrb[28].mxu1 %vm4223_vm3, %v17483_v43  ;;  %v11824_v43 = vcombine.high %v11802_v41, %v11802_v41  ;;  %v13823_v41 = vld [vmem:[%s20539_s9 + $0x40] ss:$8 sps:$4 sm:$0xff]  }
 0x55a   :  { %4994 = vmatprep.mubr.bf16.mxu1 %v20537_v56 }
 0x55b   :  { %11825 = vmatprep.subr.msk.bf16.mxu0 %vm5476_vm4, %v11824_v43 }
 0x561   :  { %11774 = vmatmul.mubr.msk.bf16.gmra.mrb[32].mxu1 %vm4223_vm3, %v17507_v23  ;;  %v13813_v23 = vld [vmem:[%s20539_s9 + $0x4] ss:$8 sps:$4 sm:$0xff]  }
 0x562   :  { %5004 = vmatprep.mubr.bf16.mxu1 %v20537_v56 }
 0x569   :  { %11775 = vmatmul.mubr.msk.bf16.gmra.mrb[36].mxu1 %vm4223_vm3, %v17505_v35  ;;  %v5478_v35 = vsel %vm5476_vm4, %v11823_v61, 0 }
 0x56a   :  { %5014 = vmatprep.mubr.bf16.mxu1 %v20537_v56  ;;  %5504 = vmatpush1.bf16.msra.mxu0 %v5478_v35  ;;  %v13828_v35 = vld [vmem:[%s20539_s9 + $0x54] ss:$8 sps:$4 sm:$0xff]  }
 0x56b   :  { %5721 = vmatprep.subr.bf16.mxu0 %v13813_v23 }
 0x571   :  { %11776 = vmatmul.mubr.msk.bf16.gmra.mrb[40].mxu1 %vm4223_vm3, %v17517_v8  ;;  %v20541_v8 = vld [vmem:[#allocation24_spill] sm:$0xff] }
 0x572   :  { %5024 = vmatprep.mubr.bf16.mxu1 %v20537_v56  ;;  %v17757_v30 = vsub.s32 1, %v20541_v8 }
 0x579   :  { %11777 = vmatmul.mubr.msk.bf16.gmra.mrb[44].mxu1 %vm4223_vm3, %v17515_v25  ;;  %v4097_v25 = vld [vmem:[%s20540_s10] sm:$0x3] }
 0x57a   :  { %5034 = vmatprep.mubr.bf16.mxu1 %v20537_v56  ;;  %v17760_v38 = vrot.slane %v4097_v25, %v20542_v46  ;;  %v17763_v29 = vrot.slane %v4097_v25, %v17757_v30 }
 0x581   :  { %11778 = vmatmul.mubr.msk.bf16.gmra.mrb[48].mxu1 %vm4223_vm3, %v17539_v27 }
 0x582   :  { %5044 = vmatprep.mubr.bf16.mxu1 %v20537_v56 }
 0x589   :  { %11779 = vmatmul.mubr.msk.bf16.gmra.mrb[52].mxu1 %vm4223_vm3, %v17537_v50 }
 0x58a   :  { %5054 = vmatprep.mubr.bf16.mxu1 %v20537_v56 }
 0x591   :  { %11780 = vmatmul.mubr.msk.bf16.gmra.mrb[56].mxu1 %vm4223_vm3, %v17549_v2 }
 0x592   :  { %5064 = vmatprep.mubr.bf16.mxu1 %v20537_v56 }
 0x599   :  { %11781 = vmatmul.mubr.msk.bf16.gmra.mrb[60].mxu1 %vm4223_vm3, %v17547_v60  ;;  %v13811_v60 = vld [vmem:[%s20539_s9] ss:$8 sps:$4 sm:$0xff]  }
 0x5f4   :  { %v4916_v14 = vpop.f32.mrb[0].mxu1 }
 0x5f5   :  { %v5150_v50 = vadd.f32 %v17760_v38, %v4916_v14  ;;  %v4918_v27 = vpop.f32.mrb[1].mxu1 }
 0x5f6   :  { %v5151_v52 = vadd.f32 %v17763_v29, %v4918_v27  ;;  %v4920_v7 = vpop.f32.mrb[2].mxu1  ;;  %v13826_v27 = vld [vmem:[%s20539_s9 + $0x50] ss:$8 sps:$4 sm:$0xff]  }
 0x5f7   :  { %v5152_v4 = vadd.f32 %v17760_v38, %v4920_v7  ;;  %v4922_v57 = vpop.f32.mrb[3].mxu1  ;;  %v5214_v31 = vmax.f32 %v5150_v50, 0.0 }
 0x5f8   :  { %v5153_v51 = vadd.f32 %v17763_v29, %v4922_v57  ;;  %v5215_v39 = vmax.f32 %v5151_v52, 0.0 }
 0x5f9   :  { %v5216_v22 = vmax.f32 %v5152_v4, 0.0  ;;  %v13831_v4 = vld [vmem:[%s20539_s9 + $0x64] ss:$8 sps:$4 sm:$0xff]  }
 0x5fa   :  { %v5217_v17 = vmax.f32 %v5153_v51, 0.0 }
 0x5fb   :  { %v5330_v24 = vpack.c.bf16 %v5216_v22, %v5214_v31 }
 0x5fc   :  { %v5331_v1 = vpack.c.bf16 %v5217_v17, %v5215_v39  ;;  %v4926_v63 = vpop.f32.mrb[4].mxu1  ;;  %v13829_v17 = vld [vmem:[%s20539_s9 + $0x60] ss:$8 sps:$4 sm:$0xff]  }
 0x5fd   :  { %v5154_v2 = vadd.f32 %v17760_v38, %v4926_v63  ;;  %v4928_v45 = vpop.f32.mrb[5].mxu1  ;;  %v13834_v63 = vld [vmem:[%s20539_s9 + $0x74] ss:$8 sps:$4 sm:$0xff]  }
 0x5fe   :  { %v5155_v5 = vadd.f32 %v17763_v29, %v4928_v45  ;;  %v4930_v36 = vpop.f32.mrb[6].mxu1  ;;  %11826 = vmatprep.mubr.msk.bf16.mxu0 %vm5451_vm5, %v5331_v1 }
 0x5ff   :  { %v5156_v44 = vadd.f32 %v17760_v38, %v4930_v36  ;;  %v4932_v42 = vpop.f32.mrb[7].mxu1  ;;  %5516 = vmatmul.mubr.bf16.vlgmr.msra.gmra.mrb[64].mxu0 %v5330_v24  ;;  %v5218_v10 = vmax.f32 %v5154_v2, 0.0  ;;  %v13832_v36 = vld [vmem:[%s20539_s9 + $0x70] ss:$8 sps:$4 sm:$0xff]  }
 0x600   :  { %v5157_v16 = vadd.f32 %v17763_v29, %v4932_v42  ;;  %5722 = vmatpush1.bf16.msra.mxu0 %v13811_v60  ;;  %v5219_v28 = vmax.f32 %v5155_v5, 0.0 }
 0x601   :  { %v5220_v15 = vmax.f32 %v5156_v44, 0.0  ;;  %5723 = vmatprep.subr.bf16.mxu0 %v13816_v48 }
 0x602   :  { %v5221_v3 = vmax.f32 %v5157_v16, 0.0  ;;  %v13837_v16 = vld [vmem:[%s20539_s9 + $0x84] ss:$8 sps:$4 sm:$0xff]  }
 0x603   :  { %v5332_v19 = vpack.c.bf16 %v5220_v15, %v5218_v10 }
 0x604   :  { %v5333_v59 = vpack.c.bf16 %v5221_v3, %v5219_v28  ;;  %v4936_v54 = vpop.f32.mrb[8].mxu1  ;;  %5724 = vmatpush1.bf16.msra.mxu0 %v13814_v21  ;;  %v13835_v3 = vld [vmem:[%s20539_s9 + $0x80] ss:$8 sps:$4 sm:$0xff]  }
 0x605   :  { %v5158_v34 = vadd.f32 %v17760_v38, %v4936_v54  ;;  %v4938_v58 = vpop.f32.mrb[9].mxu1  ;;  %5725 = vmatprep.subr.bf16.mxu0 %v13819_v47  ;;  %v13840_v54 = vld [vmem:[%s20539_s9 + $0x94] ss:$8 sps:$4 sm:$0xff]  }
 0x606   :  { %v5159_v26 = vadd.f32 %v17763_v29, %v4938_v58  ;;  %v4940_v18 = vpop.f32.mrb[10].mxu1  ;;  %11827 = vmatprep.mubr.msk.bf16.mxu0 %vm5451_vm5, %v5333_v59  ;;  %v5299_v58 = vld [vmem:[%s20539_s9 + $0xa0] sm:$0x11] }
 0x607   :  { %v5160_v62 = vadd.f32 %v17760_v38, %v4940_v18  ;;  %v4942_v49 = vpop.f32.mrb[11].mxu1  ;;  %5526 = vmatmul.mubr.bf16.gmra.mrb[68].mxu0 %v5332_v19  ;;  %v5222_v40 = vmax.f32 %v5158_v34, 0.0 }
 0x608   :  { %v5161_v55 = vadd.f32 %v17763_v29, %v4942_v49  ;;  %5726 = vmatpush1.bf16.msra.mxu0 %v13817_v12  ;;  %v5223_v33 = vmax.f32 %v5159_v26, 0.0 }
 0x609   :  { %v5224_v32 = vmax.f32 %v5160_v62, 0.0  ;;  %5727 = vmatprep.subr.bf16.mxu0 %v13822_v9  ;;  %v13838_v62 = vld [vmem:[%s20539_s9 + $0x90] ss:$8 sps:$4 sm:$0xff]  }
 0x60a   :  { %v5225_v0 = vmax.f32 %v5161_v55, 0.0 }
 0x60b   :  { %v5334_v20 = vpack.c.bf16 %v5224_v32, %v5222_v40  ;;  %v11854_v40 = vcombine.low %v5299_v58, %v5299_v58 }
 0x60c   :  { %v5335_v6 = vpack.c.bf16 %v5225_v0, %v5223_v33  ;;  %v4946_v37 = vpop.f32.mrb[12].mxu1  ;;  %5728 = vmatpush1.bf16.msra.mxu0 %v13820_v13  ;;  %v11855_v13 = vcombine.high %v5299_v58, %v5299_v58 }
 0x60d   :  { %v5162_v43 = vadd.f32 %v17760_v38, %v4946_v37  ;;  %v4948_v61 = vpop.f32.mrb[13].mxu1  ;;  %5729 = vmatprep.subr.bf16.mxu0 %v13825_v11 }
 0x60e   :  { %v5163_v23 = vadd.f32 %v17763_v29, %v4948_v61  ;;  %v4950_v25 = vpop.f32.mrb[14].mxu1  ;;  %11828 = vmatprep.mubr.msk.bf16.mxu0 %vm5451_vm5, %v5335_v6 }
 0x60f   :  { %v5164_v8 = vadd.f32 %v17760_v38, %v4950_v25  ;;  %v4952_v14 = vpop.f32.mrb[15].mxu1  ;;  %5536 = vmatmul.mubr.bf16.gmra.mrb[72].mxu0 %v5334_v20  ;;  %v5226_v52 = vmax.f32 %v5162_v43, 0.0  ;;  %v13845_v43 = vld [vmem:[%s20539_s9 + $0x154] ss:$8 sps:$4 sm:$0xff]  }
 0x610   :  { %v5165_v50 = vadd.f32 %v17763_v29, %v4952_v14  ;;  %5730 = vmatpush1.bf16.msra.mxu0 %v13823_v41  ;;  %v5227_v57 = vmax.f32 %v5163_v23, 0.0  ;;  %v5716_v41 = vsel %vm5476_vm4, %v11854_v40, 0 }
 0x611   :  { %v5228_v7 = vmax.f32 %v5164_v8, 0.0  ;;  %5731 = vmatprep.subr.bf16.mxu0 %v13828_v35 }
 0x612   :  { %v5229_v51 = vmax.f32 %v5165_v50, 0.0 }
 0x613   :  { %v5336_v31 = vpack.c.bf16 %v5228_v7, %v5226_v52 }
 0x614   :  { %v5337_v22 = vpack.c.bf16 %v5229_v51, %v5227_v57  ;;  %v4956_v39 = vpop.f32.mrb[16].mxu1  ;;  %5732 = vmatpush1.bf16.msra.mxu0 %v13826_v27 }
 0x615   :  { %v5166_v24 = vadd.f32 %v17760_v38, %v4956_v39  ;;  %v4958_v1 = vpop.f32.mrb[17].mxu1  ;;  %5733 = vmatprep.subr.bf16.mxu0 %v13831_v4 }
 0x616   :  { %v5167_v60 = vadd.f32 %v17763_v29, %v4958_v1  ;;  %v4960_v2 = vpop.f32.mrb[18].mxu1  ;;  %11829 = vmatprep.mubr.msk.bf16.mxu0 %vm5451_vm5, %v5337_v22 }
 0x617   :  { %v5168_v45 = vadd.f32 %v17760_v38, %v4960_v2  ;;  %v4962_v48 = vpop.f32.mrb[19].mxu1  ;;  %5546 = vmatmul.mubr.bf16.gmra.mrb[76].mxu0 %v5336_v31  ;;  %v5230_v44 = vmax.f32 %v5166_v24, 0.0 }
 0x618   :  { %v5169_v5 = vadd.f32 %v17763_v29, %v4962_v48  ;;  %5734 = vmatpush1.bf16.msra.mxu0 %v13829_v17  ;;  %v5231_v21 = vmax.f32 %v5167_v60, 0.0 }
 0x619   :  { %v5232_v42 = vmax.f32 %v5168_v45, 0.0  ;;  %5735 = vmatprep.subr.bf16.mxu0 %v13834_v63 }
 0x61a   :  { %v5233_v10 = vmax.f32 %v5169_v5, 0.0 }
 0x61b   :  { %v17837_v15 = vpack.c.bf16 %v5232_v42, %v5230_v44 }
 0x61c   :  { %v17839_v47 = vpack.c.bf16 %v5233_v10, %v5231_v21  ;;  %v4966_v28 = vpop.f32.mrb[20].mxu1  ;;  %5736 = vmatpush1.bf16.msra.mxu0 %v13832_v36 }
 0x61d   :  { %v5170_v19 = vadd.f32 %v17760_v38, %v4966_v28  ;;  %v4968_v59 = vpop.f32.mrb[21].mxu1  ;;  %5737 = vmatprep.subr.bf16.mxu0 %v13837_v16 }
 0x61e   :  { %v5171_v12 = vadd.f32 %v17763_v29, %v4968_v59  ;;  %v4970_v34 = vpop.f32.mrb[22].mxu1 }
 0x61f   :  { %v5172_v9 = vadd.f32 %v17760_v38, %v4970_v34  ;;  %v4972_v26 = vpop.f32.mrb[23].mxu1  ;;  %v5234_v49 = vmax.f32 %v5170_v19, 0.0 }
 0x620   :  { %v5173_v18 = vadd.f32 %v17763_v29, %v4972_v26  ;;  %5738 = vmatpush1.bf16.msra.mxu0 %v13835_v3  ;;  %v5235_v32 = vmax.f32 %v5171_v12, 0.0 }
 0x621   :  { %v5236_v55 = vmax.f32 %v5172_v9, 0.0  ;;  %5739 = vmatprep.subr.bf16.mxu0 %v13840_v54 }
 0x622   :  { %v5237_v11 = vmax.f32 %v5173_v18, 0.0 }
 0x623   :  { %v17857_v33 = vpack.c.bf16 %v5236_v55, %v5234_v49 }
 0x624   :  { %v17859_v0 = vpack.c.bf16 %v5237_v11, %v5235_v32  ;;  %v4976_v20 = vpop.f32.mrb[24].mxu1  ;;  %5740 = vmatpush1.bf16.msra.mxu0 %v13838_v62 }
 0x625   :  { %v5174_v6 = vadd.f32 %v17760_v38, %v4976_v20  ;;  %v4978_v37 = vpop.f32.mrb[25].mxu1  ;;  %11856 = vmatprep.subr.msk.bf16.mxu0 %vm5476_vm4, %v11855_v13 }
 0x626   :  { %v5175_v61 = vadd.f32 %v17763_v29, %v4978_v37  ;;  %v4980_v35 = vpop.f32.mrb[26].mxu1 }
 0x627   :  { %v5176_v23 = vadd.f32 %v17760_v38, %v4980_v35  ;;  %v4982_v25 = vpop.f32.mrb[27].mxu1  ;;  %v5238_v14 = vmax.f32 %v5174_v6, 0.0 }
 0x628   :  { %v5177_v8 = vadd.f32 %v17763_v29, %v4982_v25  ;;  %5742 = vmatpush1.bf16.msra.mxu0 %v5716_v41  ;;  %v5239_v27 = vmax.f32 %v5175_v61, 0.0 }
 0x629   :  { %v5240_v50 = vmax.f32 %v5176_v23, 0.0  ;;  %5987 = vmatprep.subr.bf16.mxu0 %v13845_v43 }
 0x62a   :  { %v5241_v52 = vmax.f32 %v5177_v8, 0.0 }
 0x62b   :  { %v17870_v7 = vpack.c.bf16 %v5240_v50, %v5238_v14 }
 0x62c   :  { %v17872_v4 = vpack.c.bf16 %v5241_v52, %v5239_v27  ;;  %v4986_v57 = vpop.f32.mrb[28].mxu1 }
 0x62d   :  { %v5178_v51 = vadd.f32 %v17760_v38, %v4986_v57  ;;  %v4988_v31 = vpop.f32.mrb[29].mxu1 }
 0x62e   :  { %v5179_v22 = vadd.f32 %v17763_v29, %v4988_v31  ;;  %v4990_v39 = vpop.f32.mrb[30].mxu1 }
 0x62f   :  { %v5180_v17 = vadd.f32 %v17760_v38, %v4990_v39  ;;  %v4992_v24 = vpop.f32.mrb[31].mxu1  ;;  %v5242_v63 = vmax.f32 %v5178_v51, 0.0 }
 0x630   :  { %v5181_v1 = vadd.f32 %v17763_v29, %v4992_v24  ;;  %v5243_v2 = vmax.f32 %v5179_v22, 0.0 }
 0x631   :  { %v5244_v60 = vmax.f32 %v5180_v17, 0.0 }
 0x632   :  { %v5245_v45 = vmax.f32 %v5181_v1, 0.0 }
 0x633   :  { %v17878_v48 = vpack.c.bf16 %v5244_v60, %v5242_v63 }
 0x634   :  { %v17880_v5 = vpack.c.bf16 %v5245_v45, %v5243_v2  ;;  %v4996_v36 = vpop.f32.mrb[32].mxu1 }
 0x635   :  { %v5182_v44 = vadd.f32 %v17760_v38, %v4996_v36  ;;  %v4998_v42 = vpop.f32.mrb[33].mxu1 }
 0x636   :  { %v5183_v16 = vadd.f32 %v17763_v29, %v4998_v42  ;;  %v5000_v21 = vpop.f32.mrb[34].mxu1 }
 0x637   :  { %v5184_v10 = vadd.f32 %v17760_v38, %v5000_v21  ;;  %v5002_v28 = vpop.f32.mrb[35].mxu1  ;;  %v5246_v19 = vmax.f32 %v5182_v44, 0.0 }
 0x638   :  { %v5185_v3 = vadd.f32 %v17763_v29, %v5002_v28  ;;  %v5247_v54 = vmax.f32 %v5183_v16, 0.0 }
 0x639   :  { %v5248_v59 = vmax.f32 %v5184_v10, 0.0 }
 0x63a   :  { %v5249_v12 = vmax.f32 %v5185_v3, 0.0 }
 0x63b   :  { %v5338_v34 = vpack.c.bf16 %v5248_v59, %v5246_v19 }
 0x63c   :  { %v5339_v58 = vpack.c.bf16 %v5249_v12, %v5247_v54  ;;  %v5006_v9 = vpop.f32.mrb[36].mxu1 }
 0x63d   :  { %v5186_v26 = vadd.f32 %v17760_v38, %v5006_v9  ;;  %v5008_v18 = vpop.f32.mrb[37].mxu1  ;;  %v13877_v9 = vld [vmem:[%s20543_s7 + $0x1f4] ss:$8 sps:$4 sm:$0xff]  }
 0x63e   :  { %v5187_v62 = vadd.f32 %v17763_v29, %v5008_v18  ;;  %v5010_v49 = vpop.f32.mrb[38].mxu1  ;;  %11830 = vmatprep.mubr.msk.bf16.mxu0 %vm5451_vm5, %v5339_v58  ;;  %v13875_v58 = vld [vmem:[%s20543_s7 + $0x1f0] ss:$8 sps:$4 sm:$0xff]   ;;  %v13880_v18 = vld [vmem:[%s20543_s7 + $0x204] ss:$8 sps:$4 sm:$0xff]   ;;  %6465 = vmatprep.subr.bf16.mxu1 %v13877_v9 }
 0x63f   :  { %v5188_v55 = vadd.f32 %v17760_v38, %v5010_v49  ;;  %v5012_v13 = vpop.f32.mrb[39].mxu1  ;;  %5556 = vmatmul.mubr.bf16.gmra.mrb[80].mxu0 %v5338_v34  ;;  %v5250_v32 = vmax.f32 %v5186_v26, 0.0  ;;  %6466 = vmatpush1.bf16.msra.mxu1 %v13875_v58 }
 0x640   :  { %v5189_v40 = vadd.f32 %v17763_v29, %v5012_v13  ;;  %v5251_v20 = vmax.f32 %v5187_v62, 0.0  ;;  %6467 = vmatprep.subr.bf16.mxu1 %v13880_v18 }
 0x641   :  { %v5252_v11 = vmax.f32 %v5188_v55, 0.0 }
 0x642   :  { %v5253_v6 = vmax.f32 %v5189_v40, 0.0  ;;  %v13878_v40 = vld [vmem:[%s20543_s7 + $0x200] ss:$8 sps:$4 sm:$0xff]  }
 0x643   :  { %v5340_v37 = vpack.c.bf16 %v5252_v11, %v5250_v32  ;;  %v13883_v11 = vld [vmem:[%s20543_s7 + $0x214] ss:$8 sps:$4 sm:$0xff]   ;;  %6468 = vmatpush1.bf16.msra.mxu1 %v13878_v40 }
 0x644   :  { %v5341_v41 = vpack.c.bf16 %v5253_v6, %v5251_v20  ;;  %v5016_v43 = vpop.f32.mrb[40].mxu1  ;;  %6469 = vmatprep.subr.bf16.mxu1 %v13883_v11 }
 0x645   :  { %v5190_v61 = vadd.f32 %v17760_v38, %v5016_v43  ;;  %v5018_v35 = vpop.f32.mrb[41].mxu1 }
 0x646   :  { %v5191_v23 = vadd.f32 %v17763_v29, %v5018_v35  ;;  %v5020_v25 = vpop.f32.mrb[42].mxu1  ;;  %11831 = vmatprep.mubr.msk.bf16.mxu0 %vm5451_vm5, %v5341_v41 }
 0x647   :  { %v5192_v8 = vadd.f32 %v17760_v38, %v5020_v25  ;;  %v5022_v14 = vpop.f32.mrb[43].mxu1  ;;  %5566 = vmatmul.mubr.bf16.gmra.mrb[84].mxu0 %v5340_v37  ;;  %v5254_v27 = vmax.f32 %v5190_v61, 0.0  ;;  %v13843_v37 = vld [vmem:[%s20539_s9 + $0x150] ss:$8 sps:$4 sm:$0xff]   ;;  %v13848_v61 = vld [vmem:[%s20539_s9 + $0x164] ss:$8 sps:$4 sm:$0xff]  }
 0x648   :  { %v5193_v50 = vadd.f32 %v17763_v29, %v5022_v14  ;;  %v5255_v57 = vmax.f32 %v5191_v23, 0.0  ;;  %v13881_v25 = vld [vmem:[%s20543_s7 + $0x210] ss:$8 sps:$4 sm:$0xff]  }
 0x649   :  { %v5256_v52 = vmax.f32 %v5192_v8, 0.0  ;;  %6470 = vmatpush1.bf16.msra.mxu1 %v13881_v25 }
 0x64a   :  { %v5257_v51 = vmax.f32 %v5193_v50, 0.0  ;;  %v13886_v50 = vld [vmem:[%s20543_s7 + $0x224] ss:$8 sps:$4 sm:$0xff]  }
 0x64b   :  { %v5342_v31 = vpack.c.bf16 %v5256_v52, %v5254_v27  ;;  %v13846_v52 = vld [vmem:[%s20539_s9 + $0x160] ss:$8 sps:$4 sm:$0xff]   ;;  %6471 = vmatprep.subr.bf16.mxu1 %v13886_v50 }
 0x64c   :  { %v5343_v22 = vpack.c.bf16 %v5257_v51, %v5255_v57  ;;  %v5026_v39 = vpop.f32.mrb[44].mxu1 }
 0x64d   :  { %v5194_v17 = vadd.f32 %v17760_v38, %v5026_v39  ;;  %v5028_v24 = vpop.f32.mrb[45].mxu1 }
 0x64e   :  { %v5195_v1 = vadd.f32 %v17763_v29, %v5028_v24  ;;  %v5030_v63 = vpop.f32.mrb[46].mxu1  ;;  %11832 = vmatprep.mubr.msk.bf16.mxu0 %vm5451_vm5, %v5343_v22 }
 0x64f   :  { %v5196_v60 = vadd.f32 %v17760_v38, %v5030_v63  ;;  %v5032_v2 = vpop.f32.mrb[47].mxu1  ;;  %5576 = vmatmul.mubr.bf16.gmra.mrb[88].mxu0 %v5342_v31  ;;  %v5258_v36 = vmax.f32 %v5194_v17, 0.0  ;;  %v13851_v31 = vld [vmem:[%s20539_s9 + $0x174] ss:$8 sps:$4 sm:$0xff]   ;;  %v13884_v17 = vld [vmem:[%s20543_s7 + $0x220] ss:$8 sps:$4 sm:$0xff]  }
 0x650   :  { %v5197_v45 = vadd.f32 %v17763_v29, %v5032_v2  ;;  %v5259_v42 = vmax.f32 %v5195_v1, 0.0  ;;  %v13889_v1 = vld [vmem:[%s20543_s7 + $0x234] ss:$8 sps:$4 sm:$0xff]   ;;  %v13849_v2 = vld [vmem:[%s20539_s9 + $0x170] ss:$8 sps:$4 sm:$0xff]   ;;  %6472 = vmatpush1.bf16.msra.mxu1 %v13884_v17 }
 0x651   :  { %v5260_v44 = vmax.f32 %v5196_v60, 0.0  ;;  %6473 = vmatprep.subr.bf16.mxu1 %v13889_v1  ;;  %v13899_v17 = vld [vmem:[%s20543_s7 + $0x270] ss:$8 sps:$4 sm:$0xff]   ;;  %v13904_v1 = vld [vmem:[%s20543_s7 + $0x284] ss:$8 sps:$4 sm:$0xff]  }
 0x652   :  { %v5261_v16 = vmax.f32 %v5197_v45, 0.0 }
 0x653   :  { %v5344_v21 = vpack.c.bf16 %v5260_v44, %v5258_v36  ;;  %v13854_v44 = vld [vmem:[%s20539_s9 + $0x184] ss:$8 sps:$4 sm:$0xff]  }
 0x654   :  { %v5345_v10 = vpack.c.bf16 %v5261_v16, %v5259_v42  ;;  %v5036_v28 = vpop.f32.mrb[48].mxu1 }
 0x655   :  { %v5198_v3 = vadd.f32 %v17760_v38, %v5036_v28  ;;  %v5038_v19 = vpop.f32.mrb[49].mxu1 }
 0x656   :  { %v5199_v59 = vadd.f32 %v17763_v29, %v5038_v19  ;;  %v5040_v54 = vpop.f32.mrb[50].mxu1  ;;  %11833 = vmatprep.mubr.msk.bf16.mxu0 %vm5451_vm5, %v5345_v10 }
 0x657   :  { %v5200_v12 = vadd.f32 %v17760_v38, %v5040_v54  ;;  %v5042_v34 = vpop.f32.mrb[51].mxu1  ;;  %5586 = vmatmul.mubr.bf16.gmra.mrb[92].mxu0 %v5344_v21  ;;  %v5262_v62 = vmax.f32 %v5198_v3, 0.0  ;;  %v13887_v21 = vld [vmem:[%s20543_s7 + $0x230] ss:$8 sps:$4 sm:$0xff]   ;;  %v13892_v3 = vld [vmem:[%s20543_s7 + $0x244] ss:$8 sps:$4 sm:$0xff]  }
 0x658   :  { %v5201_v26 = vadd.f32 %v17763_v29, %v5042_v34  ;;  %5753 = vmatprep.mubr.bf16.mxu0 %v20538_v53  ;;  %v5263_v55 = vmax.f32 %v5199_v59, 0.0  ;;  %v13852_v59 = vld [vmem:[%s20539_s9 + $0x180] ss:$8 sps:$4 sm:$0xff]   ;;  %v13857_v34 = vld [vmem:[%s20539_s9 + $0x194] ss:$8 sps:$4 sm:$0xff]   ;;  %6474 = vmatpush1.bf16.msra.mxu1 %v13887_v21 }
 0x659   :  { %v5264_v49 = vmax.f32 %v5200_v12, 0.0  ;;  %6475 = vmatprep.subr.bf16.mxu1 %v13892_v3  ;;  %v13870_v21 = vld [vmem:[%s20539_s9 + $0x1e0] ss:$8 sps:$4 sm:$0xff]  }
 0x65a   :  { %v5265_v13 = vmax.f32 %v5201_v26, 0.0  ;;  %v13890_v26 = vld [vmem:[%s20543_s7 + $0x240] ss:$8 sps:$4 sm:$0xff]  }
 0x65b   :  { %v17919_v32 = vpack.c.bf16 %v5264_v49, %v5262_v62  ;;  %v13895_v62 = vld [vmem:[%s20543_s7 + $0x254] ss:$8 sps:$4 sm:$0xff]  }
 0x65c   :  { %v17924_v20 = vpack.c.bf16 %v5265_v13, %v5263_v55  ;;  %v5046_v6 = vpop.f32.mrb[52].mxu1  ;;  %v13855_v13 = vld [vmem:[%s20539_s9 + $0x190] ss:$8 sps:$4 sm:$0xff]   ;;  %6476 = vmatpush1.bf16.msra.mxu1 %v13890_v26 }
 0x65d   :  { %v5202_v41 = vadd.f32 %v17760_v38, %v5046_v6  ;;  %v5048_v43 = vpop.f32.mrb[53].mxu1  ;;  %v13860_v6 = vld [vmem:[%s20539_s9 + $0x1a4] ss:$8 sps:$4 sm:$0xff]   ;;  %6477 = vmatprep.subr.bf16.mxu1 %v13895_v62 }
 0x65e   :  { %v5203_v35 = vadd.f32 %v17763_v29, %v5048_v43  ;;  %v5050_v23 = vpop.f32.mrb[54].mxu1  ;;  %v13893_v43 = vld [vmem:[%s20543_s7 + $0x250] ss:$8 sps:$4 sm:$0xff]  }
 0x65f   :  { %v5204_v8 = vadd.f32 %v17760_v38, %v5050_v23  ;;  %v5052_v14 = vpop.f32.mrb[55].mxu1  ;;  %5754 = vmatmul.mubr.bf16.vlgmr.msra.gmra.mrb[64].mxu0 %v20538_v53  ;;  %v5266_v57 = vmax.f32 %v5202_v41, 0.0  ;;  %v13898_v23 = vld [vmem:[%s20543_s7 + $0x264] ss:$8 sps:$4 sm:$0xff]  }
 0x660   :  { %v5205_v27 = vadd.f32 %v17763_v29, %v5052_v14  ;;  %5988 = vmatpush1.bf16.msra.mxu0 %v13843_v37  ;;  %5763 = vmatprep.mubr.bf16.mxu0 %v20538_v53  ;;  %v5267_v22 = vmax.f32 %v5203_v35, 0.0 }
 0x661   :  { %v5268_v51 = vmax.f32 %v5204_v8, 0.0  ;;  %5989 = vmatprep.subr.bf16.mxu0 %v13848_v61  ;;  %v13858_v8 = vld [vmem:[%s20539_s9 + $0x1a0] ss:$8 sps:$4 sm:$0xff]   ;;  %6478 = vmatpush1.bf16.msra.mxu1 %v13893_v43 }
 0x662   :  { %v5269_v39 = vmax.f32 %v5205_v27, 0.0  ;;  %6479 = vmatprep.subr.bf16.mxu1 %v13898_v23 }
 0x663   :  { %v17953_v24 = vpack.c.bf16 %v5268_v51, %v5266_v57  ;;  %v13901_v51 = vld [vmem:[%s20543_s7 + $0x274] ss:$8 sps:$4 sm:$0xff]  }
 0x664   :  { %v17958_v63 = vpack.c.bf16 %v5269_v39, %v5267_v22  ;;  %v5056_v60 = vpop.f32.mrb[56].mxu1  ;;  %5990 = vmatpush1.bf16.msra.mxu0 %v13846_v52  ;;  %v13861_v22 = vld [vmem:[%s20539_s9 + $0x1b0] ss:$8 sps:$4 sm:$0xff]   ;;  %v13866_v39 = vld [vmem:[%s20539_s9 + $0x1c4] ss:$8 sps:$4 sm:$0xff]  }
 0x665   :  { %v5206_v45 = vadd.f32 %v17760_v38, %v5056_v60  ;;  %v5058_v36 = vpop.f32.mrb[57].mxu1  ;;  %5991 = vmatprep.subr.bf16.mxu0 %v13851_v31  ;;  %v13864_v60 = vld [vmem:[%s20539_s9 + $0x1c0] ss:$8 sps:$4 sm:$0xff]  }
 0x666   :  { %v5207_v42 = vadd.f32 %v17763_v29, %v5058_v36  ;;  %v5060_v16 = vpop.f32.mrb[58].mxu1  ;;  %v13867_v36 = vld [vmem:[%s20539_s9 + $0x1d0] ss:$8 sps:$4 sm:$0xff]  }
 0x667   :  { %v5208_v10 = vadd.f32 %v17760_v38, %v5060_v16  ;;  %v5062_v28 = vpop.f32.mrb[59].mxu1  ;;  %5764 = vmatmul.mubr.bf16.gmra.mrb[68].mxu0 %v20538_v53  ;;  %v5270_v54 = vmax.f32 %v5206_v45, 0.0  ;;  %v13907_v45 = vld [vmem:[%s20543_s7 + $0x294] ss:$8 sps:$4 sm:$0xff]   ;;  %v13905_v16 = vld [vmem:[%s20543_s7 + $0x290] ss:$8 sps:$4 sm:$0xff]  }
 0x668   :  { %v5209_v19 = vadd.f32 %v17763_v29, %v5062_v28  ;;  %5773 = vmatprep.mubr.bf16.mxu0 %v20538_v53  ;;  %5992 = vmatpush1.bf16.msra.mxu0 %v13849_v2  ;;  %v5271_v58 = vmax.f32 %v5207_v42, 0.0  ;;  %v13869_v2 = vld [vmem:[%s20539_s9 + $0x1d4] ss:$8 sps:$4 sm:$0xff]  }
 0x669   :  { %v5272_v12 = vmax.f32 %v5208_v10, 0.0  ;;  %5993 = vmatprep.subr.bf16.mxu0 %v13854_v44  ;;  %v13872_v44 = vld [vmem:[%s20539_s9 + $0x1e4] ss:$8 sps:$4 sm:$0xff]   ;;  %v11881_v42 = vld [vmem:[%s20539_s9 + $0x1f0] sm:$0x11] }
 0x66a   :  { %v5273_v9 = vmax.f32 %v5209_v19, 0.0  ;;  %v11903_v10 = vcombine.high %v11881_v42, %v11881_v42  ;;  %v11902_v28 = vcombine.low %v11881_v42, %v11881_v42 }
 0x66b   :  { %v17987_v18 = vpack.c.bf16 %v5272_v12, %v5270_v54 }
 0x66c   :  { %v17992_v49 = vpack.c.bf16 %v5273_v9, %v5271_v58  ;;  %v5066_v55 = vpop.f32.mrb[60].mxu1  ;;  %5994 = vmatpush1.bf16.msra.mxu0 %v13852_v59  ;;  %v5982_v3 = vsel %vm5476_vm4, %v11902_v28, 0  ;;  %v5278_v58 = vld [vmem:[%s20544_s15] sm:$0x3] }
 0x66d   :  { %v5210_v40 = vadd.f32 %v17760_v38, %v5066_v55  ;;  %v5068_v11 = vpop.f32.mrb[61].mxu1  ;;  %5995 = vmatprep.subr.bf16.mxu0 %v13857_v34  ;;  %v13924_v34 = vld [vmem:[%s20543_s7 + $0xfc] ss:$8 sps:$4 sm:$0xff]   ;;  %v18139_v9 = vrot.slane %v5278_v58, %v20542_v46  ;;  %v18142_v26 = vrot.slane %v5278_v58, %v17757_v30 }
 0x66e   :  { %v5211_v37 = vadd.f32 %v17763_v29, %v5068_v11  ;;  %v5070_v41 = vpop.f32.mrb[62].mxu1 }
 0x66f   :  { %v5212_v61 = vadd.f32 %v17760_v38, %v5070_v41  ;;  %v5072_v35 = vpop.f32.mrb[63].mxu1  ;;  %5774 = vmatmul.mubr.bf16.gmra.mrb[72].mxu0 %v20538_v53  ;;  %v5274_v14 = vmax.f32 %v5210_v40, 0.0  ;;  %v13863_v38 = vld [vmem:[%s20539_s9 + $0x1b4] ss:$8 sps:$4 sm:$0xff]  }
 0x670   :  { %v5213_v25 = vadd.f32 %v17763_v29, %v5072_v35  ;;  %5783 = vmatprep.mubr.bf16.mxu0 %v20538_v53  ;;  %5996 = vmatpush1.bf16.msra.mxu0 %v13855_v13  ;;  %v5275_v27 = vmax.f32 %v5211_v37, 0.0  ;;  %v13896_v29 = vld [vmem:[%s20543_s7 + $0x260] ss:$8 sps:$4 sm:$0xff]  }
 0x671   :  { %v5276_v50 = vmax.f32 %v5212_v61, 0.0  ;;  %5997 = vmatprep.subr.bf16.mxu0 %v13860_v6  ;;  %6480 = vmatpush1.bf16.msra.mxu1 %v13896_v29 }
 0x672   :  { %v5277_v52 = vmax.f32 %v5213_v25, 0.0  ;;  %6481 = vmatprep.subr.bf16.mxu1 %v13901_v51 }
 0x673   :  { %v5862_v57 = vpack.c.bf16 %v5276_v50, %v5274_v14 }
 0x674   :  { %v5863_v31 = vpack.c.bf16 %v5277_v52, %v5275_v27  ;;  %5998 = vmatpush1.bf16.msra.mxu0 %v13858_v8 }
 0x675   :  { %5999 = vmatprep.subr.bf16.mxu0 %v13863_v38  ;;  %6482 = vmatpush1.bf16.msra.mxu1 %v13899_v17 }
 0x676   :  { %6483 = vmatprep.subr.bf16.mxu1 %v13904_v1 }
 0x677   :  { %5784 = vmatmul.mubr.bf16.gmra.mrb[76].mxu0 %v20538_v53  ;;  %v13902_v53 = vld [vmem:[%s20543_s7 + $0x280] ss:$8 sps:$4 sm:$0xff]  }
 0x678   :  { %11857 = vmatprep.mubr.msk.bf16.mxu0 %vm5451_vm5, %v17839_v47  ;;  %6000 = vmatpush1.bf16.msra.mxu0 %v13861_v22 }
 0x679   :  { %6001 = vmatprep.subr.bf16.mxu0 %v13866_v39  ;;  %6484 = vmatpush1.bf16.msra.mxu1 %v13902_v53 }
 0x67a   :  { %6485 = vmatprep.subr.bf16.mxu1 %v13907_v45 }
 0x67c   :  { %6002 = vmatpush1.bf16.msra.mxu0 %v13864_v60 }
 0x67d   :  { %6003 = vmatprep.subr.bf16.mxu0 %v13869_v2  ;;  %6486 = vmatpush1.bf16.msra.mxu1 %v13905_v16 }
 0x67f   :  { %5794 = vmatmul.mubr.bf16.gmra.mrb[80].mxu0 %v17837_v15 }
 0x680   :  { %11858 = vmatprep.mubr.msk.bf16.mxu0 %vm5451_vm5, %v17859_v0  ;;  %6004 = vmatpush1.bf16.msra.mxu0 %v13867_v36 }
 0x681   :  { %6005 = vmatprep.subr.bf16.mxu0 %v13872_v44 }
 0x684   :  { %6006 = vmatpush1.bf16.msra.mxu0 %v13870_v21 }
 0x685   :  { %11904 = vmatprep.subr.msk.bf16.mxu0 %vm5476_vm4, %v11903_v10 }
 0x687   :  { %5804 = vmatmul.mubr.bf16.gmra.mrb[84].mxu0 %v17857_v33 }
 0x688   :  { %11859 = vmatprep.mubr.msk.bf16.mxu0 %vm5451_vm5, %v17872_v4  ;;  %6008 = vmatpush1.bf16.msra.mxu0 %v5982_v3 }
 0x68f   :  { %5814 = vmatmul.mubr.bf16.gmra.mrb[88].mxu0 %v17870_v7 }
 0x690   :  { %11860 = vmatprep.mubr.msk.bf16.mxu0 %vm5451_vm5, %v17880_v5 }
 0x697   :  { %5824 = vmatmul.mubr.bf16.gmra.mrb[92].mxu0 %v17878_v48 }
 0x698   :  { %11905 = vmatprep.mubr.msk.bf16.mxu0 %vm5451_vm5, %v17839_v47  ;;  %v13910_v47 = vld [vmem:[%s20543_s7 + $0x2a4] ss:$8 sps:$4 sm:$0xff]  }
 0x699   :  { %6487 = vmatprep.subr.bf16.mxu1 %v13910_v47 }
 0x69f   :  { %6020 = vmatmul.mubr.bf16.vlgmr.msra.gmra.mrb[64].mxu0 %v17837_v15  ;;  %v13908_v15 = vld [vmem:[%s20543_s7 + $0x2a0] ss:$8 sps:$4 sm:$0xff]  }
 0x6a0   :  { %11906 = vmatprep.mubr.msk.bf16.mxu0 %vm5451_vm5, %v17859_v0  ;;  %6488 = vmatpush1.bf16.msra.mxu1 %v13908_v15  ;;  %v13913_v0 = vld [vmem:[%s20543_s7 + $0x2b4] ss:$8 sps:$4 sm:$0xff]  }
 0x6a1   :  { %6489 = vmatprep.subr.bf16.mxu1 %v13913_v0 }
 0x6a7   :  { %6030 = vmatmul.mubr.bf16.gmra.mrb[68].mxu0 %v17857_v33  ;;  %v13911_v33 = vld [vmem:[%s20543_s7 + $0x2b0] ss:$8 sps:$4 sm:$0xff]  }
 0x6a8   :  { %11907 = vmatprep.mubr.msk.bf16.mxu0 %vm5451_vm5, %v17872_v4  ;;  %6490 = vmatpush1.bf16.msra.mxu1 %v13911_v33  ;;  %v13916_v4 = vld [vmem:[%s20543_s7 + $0x2c4] ss:$8 sps:$4 sm:$0xff]  }
 0x6a9   :  { %6491 = vmatprep.subr.bf16.mxu1 %v13916_v4 }
 0x6af   :  { %6040 = vmatmul.mubr.bf16.gmra.mrb[72].mxu0 %v17870_v7  ;;  %v13914_v7 = vld [vmem:[%s20543_s7 + $0x2c0] ss:$8 sps:$4 sm:$0xff]  }
 0x6b0   :  { %11908 = vmatprep.mubr.msk.bf16.mxu0 %vm5451_vm5, %v17880_v5  ;;  %6492 = vmatpush1.bf16.msra.mxu1 %v13914_v7  ;;  %v13919_v5 = vld [vmem:[%s20543_s7 + $0x2d4] ss:$8 sps:$4 sm:$0xff]  }
 0x6b1   :  { %6493 = vmatprep.subr.bf16.mxu1 %v13919_v5 }
 0x6b7   :  { %6050 = vmatmul.mubr.bf16.gmra.mrb[76].mxu0 %v17878_v48  ;;  %v13917_v48 = vld [vmem:[%s20543_s7 + $0x2d0] ss:$8 sps:$4 sm:$0xff]  }
 0x6b8   :  { %11909 = vmatprep.mubr.msk.bf16.mxu0 %vm5451_vm5, %v17924_v20  ;;  %6494 = vmatpush1.bf16.msra.mxu1 %v13917_v48 }
 0x6bf   :  { %6060 = vmatmul.mubr.bf16.gmra.mrb[80].mxu0 %v17919_v32  ;;  %v11974_v32 = vld [vmem:[%s20543_s7 + $0x2e0] sm:$0x33] }
 0x6c0   :  { %11910 = vmatprep.mubr.msk.bf16.mxu0 %vm5451_vm5, %v17958_v63  ;;  %v12006_v20 = vcombine.high %v11974_v32, %v11974_v32  ;;  %v12005_v19 = vcombine.low %v11974_v32, %v11974_v32 }
 0x6c7   :  { %6070 = vmatmul.mubr.bf16.gmra.mrb[84].mxu0 %v17953_v24  ;;  %v14964_v24 = vmov 65535  }
 0x6c8   :  { %11911 = vmatprep.mubr.msk.bf16.mxu0 %vm5451_vm5, %v17992_v49  ;;  %v6457_v63 = vsel %vm5476_vm4, 4294967295, %v14964_v24 }
 0x6c9   :  { %v18128_v59 = vsel %vm6456_vm6, %v6457_v63, 0 }
 0x6ca   :  { %v6463_v54 = vand.u32 %v12006_v20, %v18128_v59  ;;  %v6460_v12 = vand.u32 %v12005_v19, %v18128_v59 }
 0x6cc   :  { %6495 = vmatprep.subr.bf16.mxu1 %v6463_v54 }
 0x6cd   :  { %6496 = vmatpush1.bf16.msra.mxu1 %v6460_v12 }
 0x6ce   :  { %6711 = vmatprep.subr.bf16.mxu1 %v13924_v34 }
 0x6cf   :  { %6080 = vmatmul.mubr.bf16.gmra.mrb[88].mxu0 %v17987_v18 }
 0x6d0   :  { %11912 = vmatprep.mubr.msk.bf16.mxu0 %vm5451_vm5, %v5863_v31 }
 0x6d7   :  { %6090 = vmatmul.mubr.bf16.gmra.mrb[92].mxu0 %v5862_v57 }
 0x772   :  { %v6021_v18 = vpop.f32.mrb[64].mxu0 }
 0x773   :  { %v6143_v62 = vadd.f32 %v18139_v9, %v6021_v18  ;;  %v6023_v49 = vpop.f32.mrb[65].mxu0 }
 0x774   :  { %v6144_v55 = vadd.f32 %v18142_v26, %v6023_v49  ;;  %v6025_v13 = vpop.f32.mrb[66].mxu0 }
 0x775   :  { %v6145_v40 = vadd.f32 %v18139_v9, %v6025_v13  ;;  %v6027_v11 = vpop.f32.mrb[67].mxu0  ;;  %v6175_v37 = vmax.f32 %v6143_v62, 0.0 }
 0x776   :  { %v6146_v6 = vadd.f32 %v18142_v26, %v6027_v11  ;;  %v6176_v43 = vmax.f32 %v6144_v55, 0.0 }
 0x777   :  { %v6177_v41 = vmax.f32 %v6145_v40, 0.0 }
 0x778   :  { %v6178_v61 = vmax.f32 %v6146_v6, 0.0 }
 0x779   :  { %v18148_v35 = vpack.c.bf16 %v6177_v41, %v6175_v37 }
 0x77a   :  { %v18150_v23 = vpack.c.bf16 %v6178_v61, %v6176_v43  ;;  %v6031_v25 = vpop.f32.mrb[68].mxu0 }
 0x77b   :  { %v6147_v8 = vadd.f32 %v18139_v9, %v6031_v25  ;;  %v6033_v14 = vpop.f32.mrb[69].mxu0 }
 0x77c   :  { %v6148_v50 = vadd.f32 %v18142_v26, %v6033_v14  ;;  %v6035_v38 = vpop.f32.mrb[70].mxu0 }
 0x77d   :  { %v6149_v27 = vadd.f32 %v18139_v9, %v6035_v38  ;;  %v6037_v52 = vpop.f32.mrb[71].mxu0  ;;  %v6179_v57 = vmax.f32 %v6147_v8, 0.0  ;;  %v13922_v8 = vld [vmem:[%s20543_s7 + $0xf8] ss:$8 sps:$4 sm:$0xff]   ;;  %v13927_v38 = vld [vmem:[%s20543_s7 + $0x10c] ss:$8 sps:$4 sm:$0xff]  }
 0x77e   :  { %v6150_v29 = vadd.f32 %v18142_v26, %v6037_v52  ;;  %v6180_v31 = vmax.f32 %v6148_v50, 0.0 }
 0x77f   :  { %v6181_v51 = vmax.f32 %v6149_v27, 0.0 }
 0x780   :  { %v6182_v22 = vmax.f32 %v6150_v29, 0.0 }
 0x781   :  { %v18156_v39 = vpack.c.bf16 %v6181_v51, %v6179_v57 }
 0x782   :  { %v18158_v17 = vpack.c.bf16 %v6182_v22, %v6180_v31  ;;  %v6041_v1 = vpop.f32.mrb[72].mxu0  ;;  %v13925_v31 = vld [vmem:[%s20543_s7 + $0x108] ss:$8 sps:$4 sm:$0xff]  }
 0x783   :  { %v6151_v60 = vadd.f32 %v18139_v9, %v6041_v1  ;;  %v6043_v2 = vpop.f32.mrb[73].mxu0 }
 0x784   :  { %v6152_v53 = vadd.f32 %v18142_v26, %v6043_v2  ;;  %v6045_v45 = vpop.f32.mrb[74].mxu0 }
 0x785   :  { %v6153_v36 = vadd.f32 %v18139_v9, %v6045_v45  ;;  %v6047_v44 = vpop.f32.mrb[75].mxu0  ;;  %v6183_v16 = vmax.f32 %v6151_v60, 0.0  ;;  %v13930_v60 = vld [vmem:[%s20543_s7 + $0x11c] ss:$8 sps:$4 sm:$0xff]  }
 0x786   :  { %v6154_v42 = vadd.f32 %v18142_v26, %v6047_v44  ;;  %v6184_v10 = vmax.f32 %v6152_v53, 0.0 }
 0x787   :  { %v6185_v21 = vmax.f32 %v6153_v36, 0.0 }
 0x788   :  { %v6186_v28 = vmax.f32 %v6154_v42, 0.0  ;;  %v13928_v42 = vld [vmem:[%s20543_s7 + $0x118] ss:$8 sps:$4 sm:$0xff]  }
 0x789   :  { %v18164_v3 = vpack.c.bf16 %v6185_v21, %v6183_v16 }
 0x78a   :  { %v18166_v15 = vpack.c.bf16 %v6186_v28, %v6184_v10  ;;  %v6051_v47 = vpop.f32.mrb[76].mxu0  ;;  %v13933_v10 = vld [vmem:[%s20543_s7 + $0x12c] ss:$8 sps:$4 sm:$0xff]  }
 0x78b   :  { %v6155_v33 = vadd.f32 %v18139_v9, %v6051_v47  ;;  %v6053_v0 = vpop.f32.mrb[77].mxu0 }
 0x78c   :  { %v6156_v7 = vadd.f32 %v18142_v26, %v6053_v0  ;;  %v6055_v4 = vpop.f32.mrb[78].mxu0 }
 0x78d   :  { %v6157_v48 = vadd.f32 %v18139_v9, %v6055_v4  ;;  %v6057_v5 = vpop.f32.mrb[79].mxu0  ;;  %v6187_v20 = vmax.f32 %v6155_v33, 0.0  ;;  %v13931_v4 = vld [vmem:[%s20543_s7 + $0x128] ss:$8 sps:$4 sm:$0xff]  }
 0x78e   :  { %v6158_v32 = vadd.f32 %v18142_v26, %v6057_v5  ;;  %v6188_v63 = vmax.f32 %v6156_v7, 0.0 }
 0x78f   :  { %v6189_v24 = vmax.f32 %v6157_v48, 0.0 }
 0x790   :  { %v6190_v19 = vmax.f32 %v6158_v32, 0.0  ;;  %v13936_v32 = vld [vmem:[%s20543_s7 + $0x13c] ss:$8 sps:$4 sm:$0xff]  }
 0x791   :  { %v18172_v54 = vpack.c.bf16 %v6189_v24, %v6187_v20 }
 0x792   :  { %v18174_v12 = vpack.c.bf16 %v6190_v19, %v6188_v63  ;;  %v6061_v34 = vpop.f32.mrb[80].mxu0 }
 0x793   :  { %v6159_v58 = vadd.f32 %v18139_v9, %v6061_v34  ;;  %v6063_v18 = vpop.f32.mrb[81].mxu0 }
 0x794   :  { %v6160_v62 = vadd.f32 %v18142_v26, %v6063_v18  ;;  %v6065_v49 = vpop.f32.mrb[82].mxu0 }
 0x795   :  { %v6161_v55 = vadd.f32 %v18139_v9, %v6065_v49  ;;  %v6067_v13 = vpop.f32.mrb[83].mxu0  ;;  %v6191_v11 = vmax.f32 %v6159_v58, 0.0  ;;  %v13934_v58 = vld [vmem:[%s20543_s7 + $0x138] ss:$8 sps:$4 sm:$0xff]   ;;  %v13939_v49 = vld [vmem:[%s20543_s7 + $0x14c] ss:$8 sps:$4 sm:$0xff]  }
 0x796   :  { %v6162_v40 = vadd.f32 %v18142_v26, %v6067_v13  ;;  %v6192_v37 = vmax.f32 %v6160_v62, 0.0 }
 0x797   :  { %v6193_v6 = vmax.f32 %v6161_v55, 0.0 }
 0x798   :  { %v6194_v41 = vmax.f32 %v6162_v40, 0.0 }
 0x799   :  { %v6280_v43 = vpack.c.bf16 %v6193_v6, %v6191_v11 }
 0x79a   :  { %v6281_v61 = vpack.c.bf16 %v6194_v41, %v6192_v37  ;;  %v6071_v25 = vpop.f32.mrb[84].mxu0  ;;  %v13937_v37 = vld [vmem:[%s20543_s7 + $0x148] ss:$8 sps:$4 sm:$0xff]  }
 0x79b   :  { %v6163_v14 = vadd.f32 %v18139_v9, %v6071_v25  ;;  %v6073_v50 = vpop.f32.mrb[85].mxu0 }
 0x79c   :  { %v6164_v27 = vadd.f32 %v18142_v26, %v6073_v50  ;;  %v6075_v52 = vpop.f32.mrb[86].mxu0  ;;  %12007 = vmatprep.mubr.msk.bf16.mxu1 %vm6443_vm7, %v6281_v61  ;;  %v13942_v61 = vld [vmem:[%s20543_s7 + $0x15c] ss:$8 sps:$4 sm:$0xff]   ;;  %v13945_v50 = vld [vmem:[%s20543_s7 + $0x16c] ss:$8 sps:$4 sm:$0xff]  }
 0x79d   :  { %v6165_v29 = vadd.f32 %v18139_v9, %v6075_v52  ;;  %v6077_v57 = vpop.f32.mrb[87].mxu0  ;;  %6498 = vmatmul.mubr.bf16.vlgmr.msra.gmra.mrb[64].mxu1 %v6280_v43  ;;  %v6195_v22 = vmax.f32 %v6163_v14, 0.0  ;;  %v13946_v52 = vld [vmem:[%s20543_s7 + $0x178] ss:$8 sps:$4 sm:$0xff]  }
 0x79e   :  { %v6166_v51 = vadd.f32 %v18142_v26, %v6077_v57  ;;  %6712 = vmatpush1.bf16.msra.mxu1 %v13922_v8  ;;  %v6196_v2 = vmax.f32 %v6164_v27, 0.0  ;;  %v13948_v27 = vld [vmem:[%s20543_s7 + $0x17c] ss:$8 sps:$4 sm:$0xff]  }
 0x79f   :  { %v6197_v1 = vmax.f32 %v6165_v29, 0.0  ;;  %6713 = vmatprep.subr.bf16.mxu1 %v13927_v38  ;;  %v13943_v38 = vld [vmem:[%s20543_s7 + $0x168] ss:$8 sps:$4 sm:$0xff]   ;;  %v13951_v29 = vld [vmem:[%s20543_s7 + $0x18c] ss:$8 sps:$4 sm:$0xff]  }
 0x7a0   :  { %v6198_v53 = vmax.f32 %v6166_v51, 0.0  ;;  %v13954_v57 = vld [vmem:[%s20543_s7 + $0x19c] ss:$8 sps:$4 sm:$0xff]   ;;  %v13952_v51 = vld [vmem:[%s20543_s7 + $0x198] ss:$8 sps:$4 sm:$0xff]  }
 0x7a1   :  { %v6282_v45 = vpack.c.bf16 %v6197_v1, %v6195_v22  ;;  %v13955_v22 = vld [vmem:[%s20543_s7 + $0x1a8] ss:$8 sps:$4 sm:$0xff]   ;;  %v13960_v1 = vld [vmem:[%s20543_s7 + $0x1bc] ss:$8 sps:$4 sm:$0xff]  }
 0x7a2   :  { %v6283_v36 = vpack.c.bf16 %v6198_v53, %v6196_v2  ;;  %6714 = vmatpush1.bf16.msra.mxu1 %v13925_v31  ;;  %v6081_v44 = vpop.f32.mrb[88].mxu0  ;;  %v13957_v31 = vld [vmem:[%s20543_s7 + $0x1ac] ss:$8 sps:$4 sm:$0xff]  }
 0x7a3   :  { %v6167_v16 = vadd.f32 %v18139_v9, %v6081_v44  ;;  %v6083_v21 = vpop.f32.mrb[89].mxu0  ;;  %6715 = vmatprep.subr.bf16.mxu1 %v13930_v60  ;;  %v13958_v60 = vld [vmem:[%s20543_s7 + $0x1b8] ss:$8 sps:$4 sm:$0xff]   ;;  %v13963_v2 = vld [vmem:[%s20543_s7 + $0x1cc] ss:$8 sps:$4 sm:$0xff]  }
 0x7a4   :  { %v6168_v28 = vadd.f32 %v18142_v26, %v6083_v21  ;;  %v6085_v47 = vpop.f32.mrb[90].mxu0  ;;  %12008 = vmatprep.mubr.msk.bf16.mxu1 %vm6443_vm7, %v6283_v36  ;;  %v11943_v53 = vld [vmem:[%s20543_s7 + $0x1e8] sm:$0x33]  ;;  %v13966_v36 = vld [vmem:[%s20543_s7 + $0x1dc] ss:$8 sps:$4 sm:$0xff]  }
 0x7a5   :  { %v6169_v33 = vadd.f32 %v18139_v9, %v6085_v47  ;;  %v6087_v0 = vpop.f32.mrb[91].mxu0  ;;  %6508 = vmatmul.mubr.bf16.gmra.mrb[68].mxu1 %v6282_v45  ;;  %v6199_v48 = vmax.f32 %v6167_v16, 0.0  ;;  %v13961_v45 = vld [vmem:[%s20543_s7 + $0x1c8] ss:$8 sps:$4 sm:$0xff]   ;;  %v12042_v44 = vcombine.high %v11943_v53, %v11943_v53  ;;  %v12041_v16 = vcombine.low %v11943_v53, %v11943_v53 }
 0x7a6   :  { %v6170_v7 = vadd.f32 %v18142_v26, %v6087_v0  ;;  %6716 = vmatpush1.bf16.msra.mxu1 %v13928_v42  ;;  %v6200_v20 = vmax.f32 %v6168_v28, 0.0  ;;  %v13964_v42 = vld [vmem:[%s20543_s7 + $0x1d8] ss:$8 sps:$4 sm:$0xff]  }
 0x7a7   :  { %v6201_v5 = vmax.f32 %v6169_v33, 0.0  ;;  %6717 = vmatprep.subr.bf16.mxu1 %v13933_v10  ;;  %v6709_v21 = vand.u32 %v12042_v44, %v18128_v59  ;;  %v6706_v10 = vand.u32 %v12041_v16, %v18128_v59  ;;  %v6207_v59 = vld [vmem:[%s20232_s11] sm:$0x3]  ;;  %v13987_v16 = vld [vmem:[%s20233_s12 + $0x104] ss:$8 sps:$4 sm:$0xff]  }
 0x7a8   :  { %v6202_v24 = vmax.f32 %v6170_v7, 0.0  ;;  %7447 = vmatprep.subr.bf16.mxu0 %v13987_v16 }
 0x7a9   :  { %v6284_v63 = vpack.c.bf16 %v6201_v5, %v6199_v48 }
 0x7aa   :  { %v6285_v19 = vpack.c.bf16 %v6202_v24, %v6200_v20  ;;  %6718 = vmatpush1.bf16.msra.mxu1 %v13931_v4  ;;  %v6091_v34 = vpop.f32.mrb[92].mxu0 }
 0x7ab   :  { %v6171_v18 = vadd.f32 %v18139_v9, %v6091_v34  ;;  %v6093_v62 = vpop.f32.mrb[93].mxu0  ;;  %6719 = vmatprep.subr.bf16.mxu1 %v13936_v32 }
 0x7ac   :  { %v6172_v55 = vadd.f32 %v18142_v26, %v6093_v62  ;;  %v6095_v13 = vpop.f32.mrb[94].mxu0  ;;  %12009 = vmatprep.mubr.msk.bf16.mxu1 %vm6443_vm7, %v6285_v19 }
 0x7ad   :  { %v6173_v40 = vadd.f32 %v18139_v9, %v6095_v13  ;;  %v6097_v11 = vpop.f32.mrb[95].mxu0  ;;  %6518 = vmatmul.mubr.bf16.gmra.mrb[72].mxu1 %v6284_v63  ;;  %v6203_v41 = vmax.f32 %v6171_v18, 0.0 }
 0x7ae   :  { %v6174_v6 = vadd.f32 %v18142_v26, %v6097_v11  ;;  %6720 = vmatpush1.bf16.msra.mxu1 %v13934_v58  ;;  %v6204_v25 = vmax.f32 %v6172_v55, 0.0  ;;  %v13940_v26 = vld [vmem:[%s20543_s7 + $0x158] ss:$8 sps:$4 sm:$0xff]  }
 0x7af   :  { %v6205_v43 = vmax.f32 %v6173_v40, 0.0  ;;  %6721 = vmatprep.subr.bf16.mxu1 %v13939_v49 }
 0x7b0   :  { %v6206_v8 = vmax.f32 %v6174_v6, 0.0 }
 0x7b1   :  { %v6286_v14 = vpack.c.bf16 %v6205_v43, %v6203_v41 }
 0x7b2   :  { %v6287_v9 = vpack.c.bf16 %v6206_v8, %v6204_v25  ;;  %6722 = vmatpush1.bf16.msra.mxu1 %v13937_v37 }
 0x7b3   :  { %6723 = vmatprep.subr.bf16.mxu1 %v13942_v61 }
 0x7b4   :  { %12010 = vmatprep.mubr.msk.bf16.mxu1 %vm6443_vm7, %v6287_v9 }
 0x7b5   :  { %6528 = vmatmul.mubr.bf16.gmra.mrb[76].mxu1 %v6286_v14 }
 0x7b6   :  { %6724 = vmatpush1.bf16.msra.mxu1 %v13940_v26  ;;  %12043 = vmatprep.mubr.msk.bf16.mxu1 %vm6443_vm7, %v18150_v23  ;;  %v13949_v23 = vld [vmem:[%s20543_s7 + $0x188] ss:$8 sps:$4 sm:$0xff]  }
 0x7b7   :  { %6725 = vmatprep.subr.bf16.mxu1 %v13945_v50 }
 0x7ba   :  { %6726 = vmatpush1.bf16.msra.mxu1 %v13943_v38 }
 0x7bb   :  { %6727 = vmatprep.subr.bf16.mxu1 %v13948_v27 }
 0x7be   :  { %6728 = vmatpush1.bf16.msra.mxu1 %v13946_v52 }
 0x7bf   :  { %6729 = vmatprep.subr.bf16.mxu1 %v13951_v29 }
 0x7c2   :  { %6730 = vmatpush1.bf16.msra.mxu1 %v13949_v23 }
 0x7c3   :  { %6731 = vmatprep.subr.bf16.mxu1 %v13954_v57 }
 0x7c6   :  { %6732 = vmatpush1.bf16.msra.mxu1 %v13952_v51 }
 0x7c7   :  { %6733 = vmatprep.subr.bf16.mxu1 %v13957_v31 }
 0x7ca   :  { %6734 = vmatpush1.bf16.msra.mxu1 %v13955_v22 }
 0x7cb   :  { %6735 = vmatprep.subr.bf16.mxu1 %v13960_v1 }
 0x7ce   :  { %6736 = vmatpush1.bf16.msra.mxu1 %v13958_v60 }
 0x7cf   :  { %6737 = vmatprep.subr.bf16.mxu1 %v13963_v2 }
 0x7d2   :  { %6738 = vmatpush1.bf16.msra.mxu1 %v13961_v45 }
 0x7d3   :  { %6739 = vmatprep.subr.bf16.mxu1 %v13966_v36 }
 0x7d6   :  { %6740 = vmatpush1.bf16.msra.mxu1 %v13964_v42  ;;  %v13985_v42 = vld [vmem:[%s20233_s12 + $0x100] ss:$8 sps:$4 sm:$0xff]  }
 0x7d7   :  { %6741 = vmatprep.subr.bf16.mxu1 %v6709_v21  ;;  %7448 = vmatpush1.bf16.msra.mxu0 %v13985_v42 }
 0x7da   :  { %6742 = vmatpush1.bf16.msra.mxu1 %v6706_v10  ;;  %v13990_v10 = vld [vmem:[%s20233_s12 + $0x114] ss:$8 sps:$4 sm:$0xff]  }
 0x7db   :  { %7449 = vmatprep.subr.bf16.mxu0 %v13990_v10 }
 0x7dd   :  { %6744 = vmatmul.mubr.bf16.vlgmr.msra.gmra.mrb[64].mxu1 %v18148_v35  ;;  %v6788_v35 = vrot.slane %v6207_v59, %v20542_v46 }
 0x7de   :  { %12044 = vmatprep.mubr.msk.bf16.mxu1 %vm6443_vm7, %v18158_v17 }
 0x7e5   :  { %6754 = vmatmul.mubr.bf16.gmra.mrb[68].mxu1 %v18156_v39  ;;  %v6792_v39 = vrot.slane %v6207_v59, %v17757_v30 }
 0x7e6   :  { %12045 = vmatprep.mubr.msk.bf16.mxu1 %vm6443_vm7, %v18166_v15 }
 0x7ed   :  { %6764 = vmatmul.mubr.bf16.gmra.mrb[72].mxu1 %v18164_v3 }
 0x7ee   :  { %12046 = vmatprep.mubr.msk.bf16.mxu1 %vm6443_vm7, %v18174_v12 }
 0x7f5   :  { %6774 = vmatmul.mubr.bf16.gmra.mrb[76].mxu1 %v18172_v54 }
 0x7f6   :  { %7028 = vmatprep.mubr.bf16.mxu1 %v20537_v56 }
 0x8b0   :  { %v6745_v17 = vpop.f32.mrb[64].mxu1 }
 0x8b1   :  { %v6795_v28 = vadd.f32 %v6788_v35, %v6745_v17  ;;  %v6747_v15 = vpop.f32.mrb[65].mxu1  ;;  %v13993_v17 = vld [vmem:[%s20233_s12 + $0x124] ss:$8 sps:$4 sm:$0xff]  }
 0x8b2   :  { %v6796_v47 = vadd.f32 %v6792_v39, %v6747_v15  ;;  %v6749_v3 = vpop.f32.mrb[66].mxu1  ;;  %v13996_v15 = vld [vmem:[%s20233_s12 + $0x134] ss:$8 sps:$4 sm:$0xff]  }
 0x8b3   :  { %v6797_v33 = vadd.f32 %v6788_v35, %v6749_v3  ;;  %v6751_v0 = vpop.f32.mrb[67].mxu1  ;;  %v6811_v7 = vmax.f32 %v6795_v28, 0.0  ;;  %v13991_v28 = vld [vmem:[%s20233_s12 + $0x120] ss:$8 sps:$4 sm:$0xff]  }
 0x8b4   :  { %v6798_v12 = vadd.f32 %v6792_v39, %v6751_v0  ;;  %v6812_v4 = vmax.f32 %v6796_v47, 0.0  ;;  %v13994_v47 = vld [vmem:[%s20233_s12 + $0x130] ss:$8 sps:$4 sm:$0xff]   ;;  %v13970_v3 = vld [vmem:[#allocation2 + $0x8] sm:$0xff]  }
 0x8b5   :  { %v6813_v54 = vmax.f32 %v6797_v33, 0.0  ;;  %v13999_v33 = vld [vmem:[%s20233_s12 + $0x144] ss:$8 sps:$4 sm:$0xff]   ;;  %v13997_v0 = vld [vmem:[%s20233_s12 + $0x140] ss:$8 sps:$4 sm:$0xff]  }
 0x8b6   :  { %v6814_v48 = vmax.f32 %v6798_v12, 0.0  ;;  %v14002_v12 = vld [vmem:[%s20233_s12 + $0x154] ss:$8 sps:$4 sm:$0xff]  }
 0x8b7   :  { %v6859_v5 = vpack.c.bf16 %v6813_v54, %v6811_v7  ;;  %v14000_v7 = vld [vmem:[%s20233_s12 + $0x150] ss:$8 sps:$4 sm:$0xff]  }
 0x8b8   :  { %v6860_v32 = vpack.c.bf16 %v6814_v48, %v6812_v4  ;;  %v6755_v20 = vpop.f32.mrb[68].mxu1  ;;  %v13971_v54 = vld [vmem:[#allocation2 + $0x10] sm:$0xff]   ;;  %v14005_v4 = vld [vmem:[%s20233_s12 + $0x164] ss:$8 sps:$4 sm:$0xff]   ;;  %v14003_v48 = vld [vmem:[%s20233_s12 + $0x160] ss:$8 sps:$4 sm:$0xff]  }
 0x8b9   :  { %v6799_v24 = vadd.f32 %v6788_v35, %v6755_v20  ;;  %v6757_v63 = vpop.f32.mrb[69].mxu1  ;;  %v13972_v20 = vld [vmem:[#allocation2 + $0x18] sm:$0xff]  }
 0x8ba   :  { %v6800_v19 = vadd.f32 %v6792_v39, %v6757_v63  ;;  %v6759_v34 = vpop.f32.mrb[70].mxu1  ;;  %6996 = vmatprep.subr.bf16.mxu1 %v6860_v32  ;;  %v14006_v32 = vld [vmem:[%s20233_s12 + $0x170] ss:$8 sps:$4 sm:$0xff]   ;;  %v14009_v63 = vld [vmem:[%s20233_s12 + $0x180] ss:$8 sps:$4 sm:$0xff]  }
 0x8bb   :  { %v6801_v58 = vadd.f32 %v6788_v35, %v6759_v34  ;;  %v6761_v18 = vpop.f32.mrb[71].mxu1  ;;  %6997 = vmatpush1.bf16.msra.mxu1 %v6859_v5  ;;  %v6815_v49 = vmax.f32 %v6799_v24, 0.0  ;;  %v14008_v5 = vld [vmem:[%s20233_s12 + $0x174] ss:$8 sps:$4 sm:$0xff]   ;;  %v14011_v24 = vld [vmem:[%s20233_s12 + $0x184] ss:$8 sps:$4 sm:$0xff]  }
 0x8bc   :  { %v6802_v62 = vadd.f32 %v6792_v39, %v6761_v18  ;;  %v6816_v13 = vmax.f32 %v6800_v19, 0.0  ;;  %v14014_v19 = vld [vmem:[%s20233_s12 + $0x194] ss:$8 sps:$4 sm:$0xff]   ;;  %v14012_v34 = vld [vmem:[%s20233_s12 + $0x190] ss:$8 sps:$4 sm:$0xff]  }
 0x8bd   :  { %v6817_v55 = vmax.f32 %v6801_v58, 0.0  ;;  %v13973_v58 = vld [vmem:[#allocation2 + $0x20] sm:$0xff]  }
 0x8be   :  { %v6818_v40 = vmax.f32 %v6802_v62, 0.0  ;;  %v14017_v18 = vld [vmem:[%s20233_s12 + $0x1a4] ss:$8 sps:$4 sm:$0xff]   ;;  %v14015_v62 = vld [vmem:[%s20233_s12 + $0x1a0] ss:$8 sps:$4 sm:$0xff]  }
 0x8bf   :  { %v6861_v11 = vpack.c.bf16 %v6817_v55, %v6815_v49  ;;  %v14020_v49 = vld [vmem:[%s20233_s12 + $0x1b4] ss:$8 sps:$4 sm:$0xff]   ;;  %v14018_v55 = vld [vmem:[%s20233_s12 + $0x1b0] ss:$8 sps:$4 sm:$0xff]  }
 0x8c0   :  { %v6862_v6 = vpack.c.bf16 %v6818_v40, %v6816_v13  ;;  %v6765_v37 = vpop.f32.mrb[72].mxu1  ;;  %v13974_v13 = vld [vmem:[#allocation2 + $0x28] sm:$0xff]  }
 0x8c1   :  { %v6803_v41 = vadd.f32 %v6788_v35, %v6765_v37  ;;  %v6767_v43 = vpop.f32.mrb[73].mxu1  ;;  %v14023_v40 = vld [vmem:[%s20233_s12 + $0x1c4] ss:$8 sps:$4 sm:$0xff]   ;;  %v14024_v37 = vld [vmem:[%s20233_s12 + $0x1d0] ss:$8 sps:$4 sm:$0xff]  }
 0x8c2   :  { %v6804_v61 = vadd.f32 %v6792_v39, %v6767_v43  ;;  %v6769_v25 = vpop.f32.mrb[74].mxu1  ;;  %6998 = vmatprep.subr.bf16.mxu1 %v6862_v6  ;;  %v14026_v6 = vld [vmem:[%s20233_s12 + $0x1d4] ss:$8 sps:$4 sm:$0xff]  }
 0x8c3   :  { %v6805_v8 = vadd.f32 %v6788_v35, %v6769_v25  ;;  %v6771_v14 = vpop.f32.mrb[75].mxu1  ;;  %6999 = vmatpush1.bf16.msra.mxu1 %v6861_v11  ;;  %v6819_v26 = vmax.f32 %v6803_v41, 0.0  ;;  %v14021_v11 = vld [vmem:[%s20233_s12 + $0x1c0] ss:$8 sps:$4 sm:$0xff]   ;;  %v13975_v41 = vld [vmem:[#allocation2 + $0x30] sm:$0xff]   ;;  %v13976_v43 = vld [vmem:[#allocation2 + $0x38] sm:$0xff]  }
 0x8c4   :  { %v6806_v9 = vadd.f32 %v6792_v39, %v6771_v14  ;;  %v6820_v38 = vmax.f32 %v6804_v61, 0.0  ;;  %v13977_v61 = vld [vmem:[#allocation2 + $0x40] sm:$0xff]   ;;  %v13978_v25 = vld [vmem:[#allocation2 + $0x48] sm:$0xff]   ;;  %v13980_v14 = vld [vmem:[#allocation2 + $0x58] sm:$0xff]  }
 0x8c5   :  { %v6821_v50 = vmax.f32 %v6805_v8, 0.0  ;;  %v13979_v8 = vld [vmem:[#allocation2 + $0x50] sm:$0xff]  }
 0x8c6   :  { %v6822_v27 = vmax.f32 %v6806_v9, 0.0  ;;  %v14029_v9 = vld [vmem:[%s20233_s12 + $0x1e4] ss:$8 sps:$4 sm:$0xff]  }
 0x8c7   :  { %v6863_v52 = vpack.c.bf16 %v6821_v50, %v6819_v26  ;;  %v14027_v26 = vld [vmem:[%s20233_s12 + $0x1e0] ss:$8 sps:$4 sm:$0xff]   ;;  %v14032_v50 = vld [vmem:[%s20233_s12 + $0x1f4] ss:$8 sps:$4 sm:$0xff]  }
 0x8c8   :  { %v6864_v29 = vpack.c.bf16 %v6822_v27, %v6820_v38  ;;  %v6775_v23 = vpop.f32.mrb[76].mxu1  ;;  %v14030_v38 = vld [vmem:[%s20233_s12 + $0x1f0] ss:$8 sps:$4 sm:$0xff]   ;;  %v13981_v27 = vld [vmem:[#allocation2 + $0x60] sm:$0xff]  }
 0x8c9   :  { %v6807_v57 = vadd.f32 %v6788_v35, %v6775_v23  ;;  %v6777_v51 = vpop.f32.mrb[77].mxu1  ;;  %v13984_v23 = vld [vmem:[#allocation2 + $0x78] sm:$0xff]  }
 0x8ca   :  { %v6808_v31 = vadd.f32 %v6792_v39, %v6777_v51  ;;  %v6779_v22 = vpop.f32.mrb[78].mxu1  ;;  %7000 = vmatprep.subr.bf16.mxu1 %v6864_v29  ;;  %v13983_v29 = vld [vmem:[#allocation2 + $0x70] sm:$0xff]  }
 0x8cb   :  { %v6809_v1 = vadd.f32 %v6788_v35, %v6779_v22  ;;  %v6781_v60 = vpop.f32.mrb[79].mxu1  ;;  %7001 = vmatpush1.bf16.msra.mxu1 %v6863_v52  ;;  %v6823_v53 = vmax.f32 %v6807_v57, 0.0  ;;  %v13988_v35 = vld [vmem:[%s20233_s12 + $0x110] ss:$8 sps:$4 sm:$0xff]   ;;  %v13982_v52 = vld [vmem:[#allocation2 + $0x68] sm:$0xff]  }
 0x8cc   :  { %v6810_v2 = vadd.f32 %v6792_v39, %v6781_v60  ;;  %v6824_v36 = vmax.f32 %v6808_v31, 0.0  ;;  %v13969_v39 = vld [vmem:[#allocation2] sm:$0xff]   ;;  %7450 = vmatpush1.bf16.msra.mxu0 %v13988_v35 }
 0x8cd   :  { %v6825_v45 = vmax.f32 %v6809_v1, 0.0  ;;  %7451 = vmatprep.subr.bf16.mxu0 %v13993_v17  ;;  %v14035_v57 = vld [vmem:[%s20233_s12 + $0x4] ss:$8 sps:$4 sm:$0xff]  }
 0x8ce   :  { %v6826_v44 = vmax.f32 %v6810_v2, 0.0  ;;  %v14041_v35 = vld [vmem:[%s20233_s12 + $0x24] ss:$8 sps:$4 sm:$0xff]  }
 0x8cf   :  { %v6865_v21 = vpack.c.bf16 %v6825_v45, %v6823_v53 }
 0x8d0   :  { %v6866_v59 = vpack.c.bf16 %v6826_v44, %v6824_v36  ;;  %7452 = vmatpush1.bf16.msra.mxu0 %v13991_v28  ;;  %v14033_v44 = vld [vmem:[%s20233_s12] ss:$8 sps:$4 sm:$0xff]  }
 0x8d1   :  { %7453 = vmatprep.subr.bf16.mxu0 %v13996_v15  ;;  %v14039_v15 = vld [vmem:[%s20233_s12 + $0x20] ss:$8 sps:$4 sm:$0xff]  }
 0x8d2   :  { %7002 = vmatprep.subr.bf16.mxu1 %v6866_v59  ;;  %v14036_v59 = vld [vmem:[%s20233_s12 + $0x10] ss:$8 sps:$4 sm:$0xff]  }
 0x8d3   :  { %7003 = vmatpush1.bf16.msra.mxu1 %v6865_v21  ;;  %v14038_v21 = vld [vmem:[%s20233_s12 + $0x14] ss:$8 sps:$4 sm:$0xff]  }
 0x8d4   :  { %7454 = vmatpush1.bf16.msra.mxu0 %v13994_v47 }
 0x8d5   :  { %7455 = vmatprep.subr.bf16.mxu0 %v13999_v33  ;;  %v14044_v33 = vld [vmem:[%s20233_s12 + $0x34] ss:$8 sps:$4 sm:$0xff]  }
 0x8d6   :  { %12063 = vmatmul.mubr.msk.bf16.vlgmr.msra.gmra.mrb[80].mxu1 %vm6947_vm8, %v13969_v39 }
 0x8d7   :  { %7038 = vmatprep.mubr.bf16.mxu1 %v20537_v56 }
 0x8d8   :  { %7456 = vmatpush1.bf16.msra.mxu0 %v13997_v0 }
 0x8d9   :  { %7457 = vmatprep.subr.bf16.mxu0 %v14002_v12  ;;  %v14042_v12 = vld [vmem:[%s20233_s12 + $0x30] ss:$8 sps:$4 sm:$0xff]  }
 0x8dc   :  { %7458 = vmatpush1.bf16.msra.mxu0 %v14000_v7  ;;  %v14047_v7 = vld [vmem:[%s20233_s12 + $0x44] ss:$8 sps:$4 sm:$0xff]  }
 0x8dd   :  { %7459 = vmatprep.subr.bf16.mxu0 %v14005_v4 }
 0x8de   :  { %12064 = vmatmul.mubr.msk.bf16.gmra.mrb[84].mxu1 %vm6947_vm8, %v13970_v3 }
 0x8df   :  { %7048 = vmatprep.mubr.bf16.mxu1 %v20537_v56 }
 0x8e0   :  { %7460 = vmatpush1.bf16.msra.mxu0 %v14003_v48 }
 0x8e1   :  { %7461 = vmatprep.subr.bf16.mxu0 %v14008_v5 }
 0x8e4   :  { %7462 = vmatpush1.bf16.msra.mxu0 %v14006_v32 }
 0x8e5   :  { %7463 = vmatprep.subr.bf16.mxu0 %v14011_v24 }
 0x8e6   :  { %12065 = vmatmul.mubr.msk.bf16.gmra.mrb[88].mxu1 %vm6947_vm8, %v13971_v54 }
 0x8e7   :  { %7058 = vmatprep.mubr.bf16.mxu1 %v20537_v56 }
 0x8e8   :  { %7464 = vmatpush1.bf16.msra.mxu0 %v14009_v63 }
 0x8e9   :  { %7465 = vmatprep.subr.bf16.mxu0 %v14014_v19  ;;  %v14050_v19 = vld [vmem:[%s20233_s12 + $0x54] ss:$8 sps:$4 sm:$0xff]  }
 0x8ec   :  { %7466 = vmatpush1.bf16.msra.mxu0 %v14012_v34 }
 0x8ed   :  { %7467 = vmatprep.subr.bf16.mxu0 %v14017_v18  ;;  %v14053_v18 = vld [vmem:[%s20233_s12 + $0x64] ss:$8 sps:$4 sm:$0xff]  }
 0x8ee   :  { %12066 = vmatmul.mubr.msk.bf16.gmra.mrb[92].mxu1 %vm6947_vm8, %v13972_v20  ;;  %v14045_v20 = vld [vmem:[%s20233_s12 + $0x40] ss:$8 sps:$4 sm:$0xff]  }
 0x8ef   :  { %7068 = vmatprep.mubr.bf16.mxu1 %v20537_v56 }
 0x8f0   :  { %7468 = vmatpush1.bf16.msra.mxu0 %v14015_v62 }
 0x8f1   :  { %7469 = vmatprep.subr.bf16.mxu0 %v14020_v49 }
 0x8f4   :  { %7470 = vmatpush1.bf16.msra.mxu0 %v14018_v55 }
 0x8f5   :  { %7471 = vmatprep.subr.bf16.mxu0 %v14023_v40 }
 0x8f6   :  { %12067 = vmatmul.mubr.msk.bf16.gmra.mrb[96].mxu1 %vm6947_vm8, %v13973_v58  ;;  %v14048_v58 = vld [vmem:[%s20233_s12 + $0x50] ss:$8 sps:$4 sm:$0xff]  }
 0x8f7   :  { %7078 = vmatprep.mubr.bf16.mxu1 %v20537_v56 }
 0x8f8   :  { %7472 = vmatpush1.bf16.msra.mxu0 %v14021_v11 }
 0x8f9   :  { %7473 = vmatprep.subr.bf16.mxu0 %v14026_v6  ;;  %v14056_v6 = vld [vmem:[%s20233_s12 + $0x74] ss:$8 sps:$4 sm:$0xff]  }
 0x8fc   :  { %7474 = vmatpush1.bf16.msra.mxu0 %v14024_v37 }
 0x8fd   :  { %7475 = vmatprep.subr.bf16.mxu0 %v14029_v9 }
 0x8fe   :  { %12068 = vmatmul.mubr.msk.bf16.gmra.mrb[100].mxu1 %vm6947_vm8, %v13974_v13  ;;  %v14051_v13 = vld [vmem:[%s20233_s12 + $0x60] ss:$8 sps:$4 sm:$0xff]  }
 0x8ff   :  { %7088 = vmatprep.mubr.bf16.mxu1 %v20537_v56 }
 0x900   :  { %7476 = vmatpush1.bf16.msra.mxu0 %v14027_v26  ;;  %v14057_v26 = vld [vmem:[%s20233_s12 + $0x80] ss:$8 sps:$4 sm:$0xff]  }
 0x901   :  { %7477 = vmatprep.subr.bf16.mxu0 %v14032_v50 }
 0x904   :  { %7478 = vmatpush1.bf16.msra.mxu0 %v14030_v38 }
 0x905   :  { %7720 = vmatprep.subr.bf16.mxu0 %v14035_v57 }
 0x906   :  { %12069 = vmatmul.mubr.msk.bf16.gmra.mrb[104].mxu1 %vm6947_vm8, %v13975_v41  ;;  %v14054_v41 = vld [vmem:[%s20233_s12 + $0x70] ss:$8 sps:$4 sm:$0xff]  }
 0x907   :  { %7098 = vmatprep.mubr.bf16.mxu1 %v20537_v56 }
 0x90e   :  { %12070 = vmatmul.mubr.msk.bf16.gmra.mrb[108].mxu1 %vm6947_vm8, %v13976_v43  ;;  %v14059_v43 = vld [vmem:[%s20233_s12 + $0x84] ss:$8 sps:$4 sm:$0xff]  }
 0x90f   :  { %7108 = vmatprep.mubr.bf16.mxu1 %v20537_v56 }
 0x916   :  { %12071 = vmatmul.mubr.msk.bf16.gmra.mrb[112].mxu1 %vm6947_vm8, %v13977_v61 }
 0x917   :  { %7118 = vmatprep.mubr.bf16.mxu1 %v20537_v56 }
 0x91e   :  { %12072 = vmatmul.mubr.msk.bf16.gmra.mrb[116].mxu1 %vm6947_vm8, %v13978_v25 }
 0x91f   :  { %7128 = vmatprep.mubr.bf16.mxu1 %v20537_v56 }
 0x926   :  { %12073 = vmatmul.mubr.msk.bf16.gmra.mrb[120].mxu1 %vm6947_vm8, %v13979_v8 }
 0x927   :  { %7138 = vmatprep.mubr.bf16.mxu1 %v20537_v56 }
 0x92e   :  { %12074 = vmatmul.mubr.msk.bf16.gmra.mrb[124].mxu1 %vm6947_vm8, %v13980_v14 }
 0x92f   :  { %7148 = vmatprep.mubr.bf16.mxu1 %v20537_v56 }
 0x936   :  { %12075 = vmatmul.mubr.msk.bf16.gmra.mrb[128].mxu1 %vm6947_vm8, %v13981_v27  ;;  %v14062_v27 = vld [vmem:[%s20233_s12 + $0x94] ss:$8 sps:$4 sm:$0xff]  }
 0x937   :  { %7158 = vmatprep.mubr.bf16.mxu1 %v20537_v56 }
 0x93e   :  { %12076 = vmatmul.mubr.msk.bf16.gmra.mrb[132].mxu1 %vm6947_vm8, %v13982_v52 }
 0x93f   :  { %7168 = vmatprep.mubr.bf16.mxu1 %v20537_v56 }
 0x946   :  { %12077 = vmatmul.mubr.msk.bf16.gmra.mrb[136].mxu1 %vm6947_vm8, %v13983_v29  ;;  %v14060_v29 = vld [vmem:[%s20233_s12 + $0x90] ss:$8 sps:$4 sm:$0xff]  }
 0x947   :  { %7178 = vmatprep.mubr.bf16.mxu1 %v20537_v56 }
 0x94e   :  { %12078 = vmatmul.mubr.msk.bf16.gmra.mrb[140].mxu1 %vm6947_vm8, %v13984_v23  ;;  %v14065_v23 = vld [vmem:[%s20233_s12 + $0xa4] ss:$8 sps:$4 sm:$0xff]  }
 0x9a9   :  { %v7030_v51 = vpop.f32.mrb[80].mxu1 }
 0x9aa   :  { %v7032_v31 = vpop.f32.mrb[81].mxu1 }
 0x9ab   :  { %v18436_v22 = vpop.f32.mrb[82].mxu1 }
 0x9ac   :  { %v18438_v1 = vpop.f32.mrb[83].mxu1 }
 0x9b1   :  { %v7040_v60 = vpop.f32.mrb[84].mxu1 }
 0x9b2   :  { %v7271_v2 = vpack.c.bf16 %v7040_v60, %v7030_v51  ;;  %v7042_v53 = vpop.f32.mrb[85].mxu1  ;;  %v14063_v60 = vld [vmem:[%s20233_s12 + $0xa0] ss:$8 sps:$4 sm:$0xff]  }
 0x9b3   :  { %v7272_v45 = vpack.c.bf16 %v7042_v53, %v7032_v31  ;;  %v18440_v36 = vpop.f32.mrb[86].mxu1 }
 0x9b4   :  { %v7866_v42 = vpack.c.bf16 %v18440_v36, %v18436_v22  ;;  %v18447_v16 = vpop.f32.mrb[87].mxu1 }
 0x9b5   :  { %v7867_v10 = vpack.c.bf16 %v18447_v16, %v18438_v1  ;;  %7479 = vmatprep.mubr.bf16.mxu0 %v7272_v45  ;;  %v14068_v45 = vld [vmem:[%s20233_s12 + $0xb4] ss:$8 sps:$4 sm:$0xff]  }
 0x9b6   :  { %7480 = vmatmul.mubr.bf16.vlgmr.msra.gmra.mrb[96].mxu0 %v7271_v2 }
 0x9b7   :  { %7721 = vmatpush1.bf16.msra.mxu0 %v14033_v44 }
 0x9b8   :  { %7722 = vmatprep.subr.bf16.mxu0 %v14038_v21  ;;  %v14066_v21 = vld [vmem:[%s20233_s12 + $0xb0] ss:$8 sps:$4 sm:$0xff]  }
 0x9b9   :  { %v7050_v39 = vpop.f32.mrb[88].mxu1 }
 0x9ba   :  { %v7052_v17 = vpop.f32.mrb[89].mxu1 }
 0x9bb   :  { %v18460_v28 = vpop.f32.mrb[90].mxu1  ;;  %7723 = vmatpush1.bf16.msra.mxu0 %v14036_v59  ;;  %v14071_v59 = vld [vmem:[%s20233_s12 + $0xc4] ss:$8 sps:$4 sm:$0xff]  }
 0x9bc   :  { %v7224_v47 = vpack.c.bf16 %v18460_v28, %v18440_v36  ;;  %v18467_v3 = vpop.f32.mrb[91].mxu1  ;;  %7724 = vmatprep.subr.bf16.mxu0 %v14041_v35 }
 0x9bd   :  { %v7225_v0 = vpack.c.bf16 %v18467_v3, %v18447_v16 }
 0x9bf   :  { %7725 = vmatpush1.bf16.msra.mxu0 %v14039_v15 }
 0x9c0   :  { %7726 = vmatprep.subr.bf16.mxu0 %v14044_v33 }
 0x9c1   :  { %v7060_v54 = vpop.f32.mrb[92].mxu1 }
 0x9c2   :  { %v7273_v4 = vpack.c.bf16 %v7060_v54, %v7050_v39  ;;  %v7062_v48 = vpop.f32.mrb[93].mxu1 }
 0x9c3   :  { %v7274_v5 = vpack.c.bf16 %v7062_v48, %v7052_v17  ;;  %v18480_v32 = vpop.f32.mrb[94].mxu1  ;;  %7727 = vmatpush1.bf16.msra.mxu0 %v14042_v12  ;;  %v14069_v12 = vld [vmem:[%s20233_s12 + $0xc0] ss:$8 sps:$4 sm:$0xff]  }
 0x9c4   :  { %v7868_v24 = vpack.c.bf16 %v18480_v32, %v18460_v28  ;;  %v18487_v63 = vpop.f32.mrb[95].mxu1  ;;  %7728 = vmatprep.subr.bf16.mxu0 %v14047_v7 }
 0x9c5   :  { %v7869_v34 = vpack.c.bf16 %v18487_v63, %v18467_v3  ;;  %7489 = vmatprep.mubr.bf16.mxu0 %v7274_v5  ;;  %v14072_v5 = vld [vmem:[%s20233_s12 + $0xd0] ss:$8 sps:$4 sm:$0xff]  }
 0x9c6   :  { %7490 = vmatmul.mubr.bf16.gmra.mrb[100].mxu0 %v7273_v4  ;;  %v14074_v4 = vld [vmem:[%s20233_s12 + $0xd4] ss:$8 sps:$4 sm:$0xff]  }
 0x9c7   :  { %7729 = vmatpush1.bf16.msra.mxu0 %v14045_v20  ;;  %v14077_v20 = vld [vmem:[%s20233_s12 + $0xe4] ss:$8 sps:$4 sm:$0xff]  }
 0x9c8   :  { %7730 = vmatprep.subr.bf16.mxu0 %v14050_v19 }
 0x9c9   :  { %v7070_v62 = vpop.f32.mrb[96].mxu1 }
 0x9ca   :  { %v7072_v49 = vpop.f32.mrb[97].mxu1 }
 0x9cb   :  { %v18500_v55 = vpop.f32.mrb[98].mxu1  ;;  %7731 = vmatpush1.bf16.msra.mxu0 %v14048_v58 }
 0x9cc   :  { %v7226_v40 = vpack.c.bf16 %v18500_v55, %v18480_v32  ;;  %v18507_v11 = vpop.f32.mrb[99].mxu1  ;;  %7732 = vmatprep.subr.bf16.mxu0 %v14053_v18 }
 0x9cd   :  { %v7227_v37 = vpack.c.bf16 %v18507_v11, %v18487_v63  ;;  %v14171_v63 = vld [vmem:[%s20235_s14 + $0x1e0] ss:$8 sps:$4 sm:$0xff]  }
 0x9cf   :  { %7733 = vmatpush1.bf16.msra.mxu0 %v14051_v13 }
 0x9d0   :  { %7734 = vmatprep.subr.bf16.mxu0 %v14056_v6  ;;  %v14080_v6 = vld [vmem:[%s20233_s12 + $0xf4] ss:$8 sps:$4 sm:$0xff]  }
 0x9d1   :  { %v7080_v61 = vpop.f32.mrb[100].mxu1 }
 0x9d2   :  { %v7275_v25 = vpack.c.bf16 %v7080_v61, %v7070_v62  ;;  %v7082_v8 = vpop.f32.mrb[101].mxu1  ;;  %v14075_v62 = vld [vmem:[%s20233_s12 + $0xe0] ss:$8 sps:$4 sm:$0xff]   ;;  %v14083_v61 = vld [vmem:[%s20233_s12 + $0x204] ss:$8 sps:$4 sm:$0xff]  }
 0x9d3   :  { %v7276_v14 = vpack.c.bf16 %v7082_v8, %v7072_v49  ;;  %v18520_v9 = vpop.f32.mrb[102].mxu1  ;;  %7735 = vmatpush1.bf16.msra.mxu0 %v14054_v41 }
 0x9d4   :  { %v18527_v38 = vpop.f32.mrb[103].mxu1  ;;  %7736 = vmatprep.subr.bf16.mxu0 %v14059_v43  ;;  %v14078_v43 = vld [vmem:[%s20233_s12 + $0xf0] ss:$8 sps:$4 sm:$0xff]  }
 0x9d5   :  { %v7871_v52 = vpack.c.bf16 %v18527_v38, %v18507_v11  ;;  %7499 = vmatprep.mubr.bf16.mxu0 %v7276_v14  ;;  %v14179_v11 = vld [vmem:[%s20235_s14 + $0x4] ss:$8 sps:$4 sm:$0xff]  }
 0x9d6   :  { %7500 = vmatmul.mubr.bf16.gmra.mrb[104].mxu0 %v7275_v25 }
 0x9d7   :  { %7737 = vmatpush1.bf16.msra.mxu0 %v14057_v26 }
 0x9d8   :  { %7738 = vmatprep.subr.bf16.mxu0 %v14062_v27 }
 0x9d9   :  { %v7090_v57 = vpop.f32.mrb[104].mxu1 }
 0x9da   :  { %v7092_v51 = vpop.f32.mrb[105].mxu1 }
 0x9db   :  { %v18540_v31 = vpop.f32.mrb[106].mxu1  ;;  %7739 = vmatpush1.bf16.msra.mxu0 %v14060_v29 }
 0x9dc   :  { %v7228_v2 = vpack.c.bf16 %v18540_v31, %v18520_v9  ;;  %v18547_v53 = vpop.f32.mrb[107].mxu1  ;;  %7740 = vmatprep.subr.bf16.mxu0 %v14065_v23 }
 0x9dd   :  { %v7229_v44 = vpack.c.bf16 %v18547_v53, %v18527_v38 }
 0x9df   :  { %7741 = vmatpush1.bf16.msra.mxu0 %v14063_v60 }
 0x9e0   :  { %7742 = vmatprep.subr.bf16.mxu0 %v14068_v45 }
 0x9e1   :  { %v7100_v35 = vpop.f32.mrb[108].mxu1 }
 0x9e2   :  { %v7277_v39 = vpack.c.bf16 %v7100_v35, %v7090_v57  ;;  %v7102_v17 = vpop.f32.mrb[109].mxu1 }
 0x9e3   :  { %v7278_v15 = vpack.c.bf16 %v7102_v17, %v7092_v51  ;;  %v18560_v33 = vpop.f32.mrb[110].mxu1  ;;  %7743 = vmatpush1.bf16.msra.mxu0 %v14066_v21 }
 0x9e4   :  { %v18567_v54 = vpop.f32.mrb[111].mxu1  ;;  %7744 = vmatprep.subr.bf16.mxu0 %v14071_v59  ;;  %v20547_v36 = vpack.c.bf16 %v18560_v33, %v18540_v31 }
 0x9e5   :  { %7509 = vmatprep.mubr.bf16.mxu0 %v7278_v15 }
 0x9e6   :  { %7510 = vmatmul.mubr.bf16.gmra.mrb[108].mxu0 %v7277_v39 }
 0x9e7   :  { %7745 = vmatpush1.bf16.msra.mxu0 %v14069_v12 }
 0x9e8   :  { %7746 = vmatprep.subr.bf16.mxu0 %v14074_v4 }
 0x9e9   :  { %v7110_v19 = vpop.f32.mrb[112].mxu1 }
 0x9ea   :  { %v7112_v58 = vpop.f32.mrb[113].mxu1 }
 0x9eb   :  { %v18580_v18 = vpop.f32.mrb[114].mxu1  ;;  %7747 = vmatpush1.bf16.msra.mxu0 %v14072_v5 }
 0x9ec   :  { %v7230_v49 = vpack.c.bf16 %v18580_v18, %v18560_v33  ;;  %v18587_v13 = vpop.f32.mrb[115].mxu1  ;;  %7748 = vmatprep.subr.bf16.mxu0 %v14077_v20 }
 0x9ed   :  { %v7231_v41 = vpack.c.bf16 %v18587_v13, %v18567_v54 }
 0x9ef   :  { %7749 = vmatpush1.bf16.msra.mxu0 %v14075_v62 }
 0x9f0   :  { %7750 = vmatprep.subr.bf16.mxu0 %v14080_v6 }
 0x9f1   :  { %v7120_v25 = vpop.f32.mrb[116].mxu1 }
 0x9f2   :  { %v7279_v8 = vpack.c.bf16 %v7120_v25, %v7110_v19  ;;  %v7122_v14 = vpop.f32.mrb[117].mxu1 }
 0x9f3   :  { %v7280_v26 = vpack.c.bf16 %v7122_v14, %v7112_v58  ;;  %v18600_v27 = vpop.f32.mrb[118].mxu1  ;;  %7751 = vmatpush1.bf16.msra.mxu0 %v14078_v43 }
 0x9f4   :  { %v18604_v23 = vpop.f32.mrb[119].mxu1  ;;  %8042 = vmatprep.subr.bf16.mxu0 %v14083_v61  ;;  %v20549_v16 = vpack.c.bf16 %v18600_v27, %v18580_v18 }
 0x9f5   :  { %7519 = vmatprep.mubr.bf16.mxu0 %v7280_v26 }
 0x9f6   :  { %7520 = vmatmul.mubr.bf16.gmra.mrb[112].mxu0 %v7279_v8 }
 0x9f9   :  { %v7130_v51 = vpop.f32.mrb[120].mxu1 }
 0x9fa   :  { %v7132_v60 = vpop.f32.mrb[121].mxu1 }
 0x9fb   :  { %v18608_v45 = vpop.f32.mrb[122].mxu1 }
 0x9fc   :  { %v7232_v21 = vpack.c.bf16 %v18608_v45, %v18600_v27  ;;  %v18612_v59 = vpop.f32.mrb[123].mxu1 }
 0x9fd   :  { %v7233_v35 = vpack.c.bf16 %v18612_v59, %v18604_v23 }
 0xa01   :  { %v7140_v39 = vpop.f32.mrb[124].mxu1 }
 0xa02   :  { %v7281_v17 = vpack.c.bf16 %v7140_v39, %v7130_v51  ;;  %v7142_v15 = vpop.f32.mrb[125].mxu1 }
 0xa03   :  { %v7282_v12 = vpack.c.bf16 %v7142_v15, %v7132_v60  ;;  %v18616_v4 = vpop.f32.mrb[126].mxu1  ;;  %v20348_v15 = vmov 0.0  }
 0xa04   :  { %v18620_v20 = vpop.f32.mrb[127].mxu1  ;;  %v7223_v48 = vpack.c.bf16 %v18438_v1, %v20348_v15  ;;  %v20545_v1 = vpack.c.bf16 %v18520_v9, %v18500_v55  ;;  %v20551_v28 = vpack.c.bf16 %v18616_v4, %v18608_v45  ;;  %v14174_v55 = vld [vmem:[%s20235_s14 + $0x1f0] ss:$8 sps:$4 sm:$0xff]   ;;  %v7189_v9 = vld [vmem:[%s20234_s13] sm:$0x3] }
 0xa05   :  { %7529 = vmatprep.mubr.bf16.mxu0 %v7282_v12  ;;  %v18946_v38 = vrot.slane %v7189_v9, %v20542_v46 }
 0xa06   :  { %7530 = vmatmul.mubr.bf16.gmra.mrb[116].mxu0 %v7281_v17 }
 0xa09   :  { %v7150_v58 = vpop.f32.mrb[128].mxu1 }
 0xa0a   :  { %v7152_v62 = vpop.f32.mrb[129].mxu1 }
 0xa0b   :  { %v18624_v6 = vpop.f32.mrb[130].mxu1 }
 0xa0c   :  { %v7234_v43 = vpack.c.bf16 %v18624_v6, %v18616_v4  ;;  %v18628_v61 = vpop.f32.mrb[131].mxu1 }
 0xa0d   :  { %v7235_v25 = vpack.c.bf16 %v18628_v61, %v18620_v20 }
 0xa11   :  { %v7160_v8 = vpop.f32.mrb[132].mxu1 }
 0xa12   :  { %v7283_v14 = vpack.c.bf16 %v7160_v8, %v7150_v58  ;;  %v7162_v26 = vpop.f32.mrb[133].mxu1 }
 0xa13   :  { %v7284_v51 = vpack.c.bf16 %v7162_v26, %v7152_v62  ;;  %v18632_v60 = vpop.f32.mrb[134].mxu1 }
 0xa14   :  { %v18636_v17 = vpop.f32.mrb[135].mxu1  ;;  %v20553_v32 = vpack.c.bf16 %v18632_v60, %v18624_v6 }
 0xa15   :  { %7539 = vmatprep.mubr.bf16.mxu0 %v7284_v51  ;;  %v20552_v3 = vpack.c.bf16 %v18636_v17, %v18628_v61 }
 0xa16   :  { %7540 = vmatmul.mubr.bf16.gmra.mrb[120].mxu0 %v7283_v14 }
 0xa19   :  { %v7170_v12 = vpop.f32.mrb[136].mxu1 }
 0xa1a   :  { %v7172_v5 = vpop.f32.mrb[137].mxu1 }
 0xa1b   :  { %v18640_v19 = vpop.f32.mrb[138].mxu1 }
 0xa1c   :  { %v7236_v58 = vpack.c.bf16 %v18640_v19, %v18632_v60  ;;  %v18644_v62 = vpop.f32.mrb[139].mxu1 }
 0xa1d   :  { %v7237_v8 = vpack.c.bf16 %v18644_v62, %v18636_v17 }
 0xa21   :  { %v7180_v26 = vpop.f32.mrb[140].mxu1 }
 0xa22   :  { %v7285_v39 = vpack.c.bf16 %v7180_v26, %v7170_v12  ;;  %v7182_v29 = vpop.f32.mrb[141].mxu1  ;;  %v14134_v12 = vld [vmem:[%s20235_s14 + $0x114] ss:$8 sps:$4 sm:$0xff]   ;;  %v14081_v26 = vld [vmem:[%s20233_s12 + $0x200] ss:$8 sps:$4 sm:$0xff]  }
 0xa23   :  { %v7286_v57 = vpack.c.bf16 %v7182_v29, %v7172_v5  ;;  %v18648_v7 = vpop.f32.mrb[142].mxu1  ;;  %v14129_v29 = vld [vmem:[%s20235_s14 + $0x100] ss:$8 sps:$4 sm:$0xff]   ;;  %v14131_v5 = vld [vmem:[%s20235_s14 + $0x104] ss:$8 sps:$4 sm:$0xff]  }
 0xa24   :  { %v7880_v14 = vpack.c.bf16 %v18648_v7, %v18640_v19  ;;  %v18652_v51 = vpop.f32.mrb[143].mxu1  ;;  %8504 = vmatprep.subr.bf16.mxu1 %v14131_v5  ;;  %v14135_v5 = vld [vmem:[%s20235_s14 + $0x120] ss:$8 sps:$4 sm:$0xff]   ;;  %v18952_v7 = vrot.slane %v7189_v9, %v17757_v30 }
 0xa25   :  { %v7881_v50 = vpack.c.bf16 %v18652_v51, %v18644_v62  ;;  %7549 = vmatprep.mubr.bf16.mxu0 %v7286_v57  ;;  %8505 = vmatpush1.bf16.msra.mxu1 %v14129_v29  ;;  %v14132_v57 = vld [vmem:[%s20235_s14 + $0x110] ss:$8 sps:$4 sm:$0xff]   ;;  %v14086_v29 = vld [vmem:[%s20233_s12 + $0x214] ss:$8 sps:$4 sm:$0xff]  }
 0xa26   :  { %7550 = vmatmul.mubr.bf16.gmra.mrb[124].mxu0 %v7285_v39  ;;  %8506 = vmatprep.subr.bf16.mxu1 %v14134_v12  ;;  %v14137_v39 = vld [vmem:[%s20235_s14 + $0x124] ss:$8 sps:$4 sm:$0xff]   ;;  %v14140_v12 = vld [vmem:[%s20235_s14 + $0x134] ss:$8 sps:$4 sm:$0xff]  }
 0xa27   :  { %7752 = vmatprep.mubr.bf16.mxu0 %v7223_v48  ;;  %v7222_v48 = vpack.c.bf16 %v18436_v22, %v20348_v15  ;;  %v14084_v15 = vld [vmem:[%s20233_s12 + $0x210] ss:$8 sps:$4 sm:$0xff]   ;;  %v20546_v22 = vpack.c.bf16 %v18567_v54, %v18547_v53 }
 0xa29   :  { %8507 = vmatpush1.bf16.msra.mxu1 %v14132_v57  ;;  %v14089_v57 = vld [vmem:[%s20233_s12 + $0x224] ss:$8 sps:$4 sm:$0xff]  }
 0xa2a   :  { %8508 = vmatprep.subr.bf16.mxu1 %v14137_v39  ;;  %v14138_v39 = vld [vmem:[%s20235_s14 + $0x130] ss:$8 sps:$4 sm:$0xff]  }
 0xa2d   :  { %8509 = vmatpush1.bf16.msra.mxu1 %v14135_v5  ;;  %v14090_v5 = vld [vmem:[%s20233_s12 + $0x230] ss:$8 sps:$4 sm:$0xff]  }
 0xa2e   :  { %7753 = vmatmul.mubr.bf16.vlgmr.msra.gmra.mrb[96].mxu0 %v7222_v48  ;;  %8510 = vmatprep.subr.bf16.mxu1 %v14140_v12  ;;  %v14092_v48 = vld [vmem:[%s20233_s12 + $0x234] ss:$8 sps:$4 sm:$0xff]   ;;  %v14095_v12 = vld [vmem:[%s20233_s12 + $0x244] ss:$8 sps:$4 sm:$0xff]  }
 0xa2f   :  { %7762 = vmatprep.mubr.bf16.mxu0 %v7225_v0  ;;  %8043 = vmatpush1.bf16.msra.mxu0 %v14081_v26  ;;  %v14143_v0 = vld [vmem:[%s20235_s14 + $0x144] ss:$8 sps:$4 sm:$0xff]   ;;  %v14087_v26 = vld [vmem:[%s20233_s12 + $0x220] ss:$8 sps:$4 sm:$0xff]  }
 0xa30   :  { %8044 = vmatprep.subr.bf16.mxu0 %v14086_v29  ;;  %v14141_v29 = vld [vmem:[%s20235_s14 + $0x140] ss:$8 sps:$4 sm:$0xff]  }
 0xa31   :  { %8511 = vmatpush1.bf16.msra.mxu1 %v14138_v39  ;;  %v14098_v39 = vld [vmem:[%s20233_s12 + $0x254] ss:$8 sps:$4 sm:$0xff]  }
 0xa32   :  { %8512 = vmatprep.subr.bf16.mxu1 %v14143_v0  ;;  %v14147_v0 = vld [vmem:[%s20235_s14 + $0x160] ss:$8 sps:$4 sm:$0xff]  }
 0xa33   :  { %8045 = vmatpush1.bf16.msra.mxu0 %v14084_v15  ;;  %v14146_v15 = vld [vmem:[%s20235_s14 + $0x154] ss:$8 sps:$4 sm:$0xff]  }
 0xa34   :  { %8046 = vmatprep.subr.bf16.mxu0 %v14089_v57  ;;  %v14093_v57 = vld [vmem:[%s20233_s12 + $0x240] ss:$8 sps:$4 sm:$0xff]  }
 0xa35   :  { %8513 = vmatpush1.bf16.msra.mxu1 %v14141_v29  ;;  %v14101_v29 = vld [vmem:[%s20233_s12 + $0x264] ss:$8 sps:$4 sm:$0xff]  }
 0xa36   :  { %7763 = vmatmul.mubr.bf16.gmra.mrb[100].mxu0 %v7224_v47  ;;  %v14144_v47 = vld [vmem:[%s20235_s14 + $0x150] ss:$8 sps:$4 sm:$0xff]   ;;  %8514 = vmatprep.subr.bf16.mxu1 %v14146_v15  ;;  %v14099_v15 = vld [vmem:[%s20233_s12 + $0x260] ss:$8 sps:$4 sm:$0xff]  }
 0xa37   :  { %7772 = vmatprep.mubr.bf16.mxu0 %v7227_v37  ;;  %8047 = vmatpush1.bf16.msra.mxu0 %v14087_v26  ;;  %v14149_v37 = vld [vmem:[%s20235_s14 + $0x164] ss:$8 sps:$4 sm:$0xff]   ;;  %v14152_v26 = vld [vmem:[%s20235_s14 + $0x174] ss:$8 sps:$4 sm:$0xff]  }
 0xa38   :  { %8048 = vmatprep.subr.bf16.mxu0 %v14092_v48  ;;  %v14096_v48 = vld [vmem:[%s20233_s12 + $0x250] ss:$8 sps:$4 sm:$0xff]  }
 0xa39   :  { %8515 = vmatpush1.bf16.msra.mxu1 %v14144_v47  ;;  %v14158_v47 = vld [vmem:[%s20235_s14 + $0x194] ss:$8 sps:$4 sm:$0xff]  }
 0xa3a   :  { %8516 = vmatprep.subr.bf16.mxu1 %v14149_v37  ;;  %v14102_v37 = vld [vmem:[%s20233_s12 + $0x270] ss:$8 sps:$4 sm:$0xff]  }
 0xa3b   :  { %8049 = vmatpush1.bf16.msra.mxu0 %v14090_v5  ;;  %v14104_v5 = vld [vmem:[%s20233_s12 + $0x274] ss:$8 sps:$4 sm:$0xff]  }
 0xa3c   :  { %8050 = vmatprep.subr.bf16.mxu0 %v14095_v12  ;;  %v14153_v12 = vld [vmem:[%s20235_s14 + $0x180] ss:$8 sps:$4 sm:$0xff]  }
 0xa3d   :  { %8517 = vmatpush1.bf16.msra.mxu1 %v14147_v0  ;;  %v14110_v0 = vld [vmem:[%s20233_s12 + $0x294] ss:$8 sps:$4 sm:$0xff]  }
 0xa3e   :  { %7773 = vmatmul.mubr.bf16.gmra.mrb[104].mxu0 %v7226_v40  ;;  %v14150_v40 = vld [vmem:[%s20235_s14 + $0x170] ss:$8 sps:$4 sm:$0xff]   ;;  %8518 = vmatprep.subr.bf16.mxu1 %v14152_v26  ;;  %v14159_v26 = vld [vmem:[%s20235_s14 + $0x1a0] ss:$8 sps:$4 sm:$0xff]  }
 0xa3f   :  { %7782 = vmatprep.mubr.bf16.mxu0 %v7229_v44  ;;  %8051 = vmatpush1.bf16.msra.mxu0 %v14093_v57  ;;  %v14155_v44 = vld [vmem:[%s20235_s14 + $0x184] ss:$8 sps:$4 sm:$0xff]  }
 0xa40   :  { %8052 = vmatprep.subr.bf16.mxu0 %v14098_v39  ;;  %v14107_v57 = vld [vmem:[%s20233_s12 + $0x284] ss:$8 sps:$4 sm:$0xff]   ;;  %v14105_v39 = vld [vmem:[%s20233_s12 + $0x280] ss:$8 sps:$4 sm:$0xff]  }
 0xa41   :  { %8519 = vmatpush1.bf16.msra.mxu1 %v14150_v40  ;;  %v14113_v40 = vld [vmem:[%s20233_s12 + $0x2a4] ss:$8 sps:$4 sm:$0xff]  }
 0xa42   :  { %8520 = vmatprep.subr.bf16.mxu1 %v14155_v44  ;;  %v14111_v44 = vld [vmem:[%s20233_s12 + $0x2a0] ss:$8 sps:$4 sm:$0xff]  }
 0xa43   :  { %8053 = vmatpush1.bf16.msra.mxu0 %v14096_v48  ;;  %v14164_v48 = vld [vmem:[%s20235_s14 + $0x1b4] ss:$8 sps:$4 sm:$0xff]  }
 0xa44   :  { %8054 = vmatprep.subr.bf16.mxu0 %v14101_v29  ;;  %v14108_v29 = vld [vmem:[%s20233_s12 + $0x290] ss:$8 sps:$4 sm:$0xff]  }
 0xa45   :  { %8521 = vmatpush1.bf16.msra.mxu1 %v14153_v12  ;;  %v14170_v12 = vld [vmem:[%s20235_s14 + $0x1d4] ss:$8 sps:$4 sm:$0xff]  }
 0xa46   :  { %7783 = vmatmul.mubr.bf16.gmra.mrb[108].mxu0 %v7228_v2  ;;  %v14156_v2 = vld [vmem:[%s20235_s14 + $0x190] ss:$8 sps:$4 sm:$0xff]   ;;  %8522 = vmatprep.subr.bf16.mxu1 %v14158_v47 }
 0xa47   :  { %7792 = vmatprep.mubr.bf16.mxu0 %v7231_v41  ;;  %8055 = vmatpush1.bf16.msra.mxu0 %v14099_v15  ;;  %v14161_v41 = vld [vmem:[%s20235_s14 + $0x1a4] ss:$8 sps:$4 sm:$0xff]   ;;  %v14116_v15 = vld [vmem:[%s20233_s12 + $0x2b4] ss:$8 sps:$4 sm:$0xff]   ;;  %v14114_v47 = vld [vmem:[%s20233_s12 + $0x2b0] ss:$8 sps:$4 sm:$0xff]  }
 0xa48   :  { %8056 = vmatprep.subr.bf16.mxu0 %v14104_v5  ;;  %v14165_v5 = vld [vmem:[%s20235_s14 + $0x1c0] ss:$8 sps:$4 sm:$0xff]  }
 0xa49   :  { %8523 = vmatpush1.bf16.msra.mxu1 %v14156_v2  ;;  %v14120_v2 = vld [vmem:[%s20233_s12 + $0x2d0] ss:$8 sps:$4 sm:$0xff]  }
 0xa4a   :  { %8524 = vmatprep.subr.bf16.mxu1 %v14161_v41  ;;  %v14125_v41 = vld [vmem:[%s20233_s12 + $0x2e4] ss:$8 sps:$4 sm:$0xff]  }
 0xa4b   :  { %8057 = vmatpush1.bf16.msra.mxu0 %v14102_v37  ;;  %v14119_v37 = vld [vmem:[%s20233_s12 + $0x2c4] ss:$8 sps:$4 sm:$0xff]  }
 0xa4c   :  { %8058 = vmatprep.subr.bf16.mxu0 %v14107_v57  ;;  %v14122_v57 = vld [vmem:[%s20233_s12 + $0x2d4] ss:$8 sps:$4 sm:$0xff]  }
 0xa4d   :  { %8525 = vmatpush1.bf16.msra.mxu1 %v14159_v26 }
 0xa4e   :  { %7793 = vmatmul.mubr.bf16.gmra.mrb[112].mxu0 %v7230_v49  ;;  %v14162_v49 = vld [vmem:[%s20235_s14 + $0x1b0] ss:$8 sps:$4 sm:$0xff]   ;;  %8526 = vmatprep.subr.bf16.mxu1 %v14164_v48 }
 0xa4f   :  { %7802 = vmatprep.mubr.bf16.mxu0 %v7233_v35  ;;  %8059 = vmatpush1.bf16.msra.mxu0 %v14105_v39  ;;  %v14167_v35 = vld [vmem:[%s20235_s14 + $0x1c4] ss:$8 sps:$4 sm:$0xff]   ;;  %v14123_v39 = vld [vmem:[%s20233_s12 + $0x2e0] ss:$8 sps:$4 sm:$0xff]  }
 0xa50   :  { %8060 = vmatprep.subr.bf16.mxu0 %v14110_v0 }
 0xa51   :  { %8527 = vmatpush1.bf16.msra.mxu1 %v14162_v49  ;;  %v14182_v49 = vld [vmem:[%s20235_s14 + $0x14] ss:$8 sps:$4 sm:$0xff]  }
 0xa52   :  { %8528 = vmatprep.subr.bf16.mxu1 %v14167_v35 }
 0xa53   :  { %8061 = vmatpush1.bf16.msra.mxu0 %v14108_v29  ;;  %v14177_v29 = vld [vmem:[%s20235_s14] ss:$8 sps:$4 sm:$0xff]  }
 0xa54   :  { %8062 = vmatprep.subr.bf16.mxu0 %v14113_v40 }
 0xa55   :  { %8529 = vmatpush1.bf16.msra.mxu1 %v14165_v5 }
 0xa56   :  { %7803 = vmatmul.mubr.bf16.gmra.mrb[116].mxu0 %v7232_v21  ;;  %v14168_v21 = vld [vmem:[%s20235_s14 + $0x1d0] ss:$8 sps:$4 sm:$0xff]   ;;  %8530 = vmatprep.subr.bf16.mxu1 %v14170_v12 }
 0xa57   :  { %7812 = vmatprep.mubr.bf16.mxu0 %v7235_v25  ;;  %8063 = vmatpush1.bf16.msra.mxu0 %v14111_v44  ;;  %v14117_v25 = vld [vmem:[%s20233_s12 + $0x2c0] ss:$8 sps:$4 sm:$0xff]   ;;  %v14180_v12 = vld [vmem:[%s20235_s14 + $0x10] ss:$8 sps:$4 sm:$0xff]  }
 0xa58   :  { %8064 = vmatprep.subr.bf16.mxu0 %v14116_v15 }
 0xa59   :  { %8531 = vmatpush1.bf16.msra.mxu1 %v14168_v21  ;;  %v14185_v21 = vld [vmem:[%s20235_s14 + $0x24] ss:$8 sps:$4 sm:$0xff]  }
 0xa5b   :  { %8065 = vmatpush1.bf16.msra.mxu0 %v14114_v47 }
 0xa5c   :  { %8066 = vmatprep.subr.bf16.mxu0 %v14119_v37 }
 0xa5e   :  { %7813 = vmatmul.mubr.bf16.gmra.mrb[120].mxu0 %v7234_v43  ;;  %v14128_v43 = vld [vmem:[%s20233_s12 + $0x2f4] ss:$8 sps:$4 sm:$0xff]  }
 0xa5f   :  { %7822 = vmatprep.mubr.bf16.mxu0 %v7237_v8  ;;  %8067 = vmatpush1.bf16.msra.mxu0 %v14117_v25  ;;  %v14126_v8 = vld [vmem:[%s20233_s12 + $0x2f0] ss:$8 sps:$4 sm:$0xff]  }
 0xa60   :  { %8068 = vmatprep.subr.bf16.mxu0 %v14122_v57 }
 0xa63   :  { %8069 = vmatpush1.bf16.msra.mxu0 %v14120_v2 }
 0xa64   :  { %8070 = vmatprep.subr.bf16.mxu0 %v14125_v41  ;;  %v14183_v41 = vld [vmem:[%s20235_s14 + $0x20] ss:$8 sps:$4 sm:$0xff]  }
 0xa66   :  { %7823 = vmatmul.mubr.bf16.gmra.mrb[124].mxu0 %v7236_v58 }
 0xa67   :  { %8071 = vmatpush1.bf16.msra.mxu0 %v14123_v39  ;;  %8074 = vmatprep.mubr.bf16.mxu0 %v7867_v10  ;;  %v20550_v10 = vpack.c.bf16 %v18620_v20, %v18612_v59 }
 0xa68   :  { %8072 = vmatprep.subr.bf16.mxu0 %v14128_v43 }
 0xa6b   :  { %8073 = vmatpush1.bf16.msra.mxu0 %v14126_v8  ;;  %v14188_v8 = vld [vmem:[%s20235_s14 + $0x34] ss:$8 sps:$4 sm:$0xff]  }
 0xa6e   :  { %8075 = vmatmul.mubr.bf16.vlgmr.msra.gmra.mrb[96].mxu0 %v7866_v42  ;;  %v20548_v42 = vpack.c.bf16 %v18604_v23, %v18587_v13 }
 0xa6f   :  { %8084 = vmatprep.mubr.bf16.mxu0 %v7869_v34  ;;  %v14176_v34 = vld [vmem:[%s20235_s14 + $0x1f4] ss:$8 sps:$4 sm:$0xff]  }
 0xa76   :  { %8085 = vmatmul.mubr.bf16.gmra.mrb[100].mxu0 %v7868_v24  ;;  %v14173_v24 = vld [vmem:[%s20235_s14 + $0x1e4] ss:$8 sps:$4 sm:$0xff]  }
 0xa77   :  { %8094 = vmatprep.mubr.bf16.mxu0 %v7871_v52  ;;  %8532 = vmatprep.subr.bf16.mxu1 %v14173_v24 }
 0xa78   :  { %8533 = vmatpush1.bf16.msra.mxu1 %v14171_v63 }
 0xa79   :  { %8534 = vmatprep.subr.bf16.mxu1 %v14176_v34 }
 0xa7c   :  { %8535 = vmatpush1.bf16.msra.mxu1 %v14174_v55  ;;  %v14191_v55 = vld [vmem:[%s20235_s14 + $0x44] ss:$8 sps:$4 sm:$0xff]  }
 0xa7d   :  { %8737 = vmatprep.subr.bf16.mxu1 %v14179_v11 }
 0xa7e   :  { %8095 = vmatmul.mubr.bf16.gmra.mrb[104].mxu0 %v20545_v1 }
 0xa7f   :  { %8104 = vmatprep.mubr.bf16.mxu0 %v20546_v22 }
 0xa86   :  { %8105 = vmatmul.mubr.bf16.gmra.mrb[108].mxu0 %v20547_v36 }
 0xa87   :  { %8114 = vmatprep.mubr.bf16.mxu0 %v20548_v42 }
 0xa8e   :  { %8115 = vmatmul.mubr.bf16.gmra.mrb[112].mxu0 %v20549_v16 }
 0xa8f   :  { %8124 = vmatprep.mubr.bf16.mxu0 %v20550_v10 }
 0xa96   :  { %8125 = vmatmul.mubr.bf16.gmra.mrb[116].mxu0 %v20551_v28 }
 0xa97   :  { %8134 = vmatprep.mubr.bf16.mxu0 %v20552_v3  ;;  %v14186_v3 = vld [vmem:[%s20235_s14 + $0x30] ss:$8 sps:$4 sm:$0xff]  }
 0xa9e   :  { %8135 = vmatmul.mubr.bf16.gmra.mrb[120].mxu0 %v20553_v32 }
 0xa9f   :  { %8144 = vmatprep.mubr.bf16.mxu0 %v7881_v50 }
 0xaa6   :  { %8145 = vmatmul.mubr.bf16.gmra.mrb[124].mxu0 %v7880_v14 }
 0xb41   :  { %v8076_v50 = vpop.f32.mrb[96].mxu0 }
 0xb42   :  { %v8078_v52 = vpop.f32.mrb[97].mxu0  ;;  %v8198_v54 = vadd.f32 %v18946_v38, %v8076_v50 }
 0xb43   :  { %v8080_v31 = vpop.f32.mrb[98].mxu0  ;;  %v8199_v18 = vadd.f32 %v18952_v7, %v8078_v52 }
 0xb44   :  { %v18949_v53 = vadd.f32 %v18946_v38, %v8080_v31  ;;  %v8082_v33 = vpop.f32.mrb[99].mxu0  ;;  %v8230_v20 = vmax.f32 %v8198_v54, 0.0 }
 0xb45   :  { %v18958_v45 = vadd.f32 %v18952_v7, %v8082_v33  ;;  %v8231_v60 = vmax.f32 %v8199_v18, 0.0  ;;  %v14189_v18 = vld [vmem:[%s20235_s14 + $0x40] ss:$8 sps:$4 sm:$0xff]  }
 0xb46   :  { %v8232_v62 = vmax.f32 %v18949_v53, 0.0  ;;  %v14228_v53 = vld [vmem:[%s20235_s14 + $0x210] ss:$8 sps:$4 sm:$0xff]  }
 0xb47   :  { %v8233_v0 = vmax.f32 %v18958_v45, 0.0  ;;  %v14216_v45 = vld [vmem:[%s20235_s14 + $0xd0] ss:$8 sps:$4 sm:$0xff]  }
 0xb49   :  { %v8086_v13 = vpop.f32.mrb[100].mxu0 }
 0xb4a   :  { %v8202_v27 = vadd.f32 %v18946_v38, %v8086_v13  ;;  %v8088_v23 = vpop.f32.mrb[101].mxu0 }
 0xb4b   :  { %v8203_v59 = vadd.f32 %v18952_v7, %v8088_v23  ;;  %v8090_v4 = vpop.f32.mrb[102].mxu0 }
 0xb4c   :  { %v8234_v19 = vmax.f32 %v8202_v27, 0.0  ;;  %v8204_v6 = vadd.f32 %v18946_v38, %v8090_v4  ;;  %v8092_v61 = vpop.f32.mrb[103].mxu0  ;;  %v14194_v27 = vld [vmem:[%s20235_s14 + $0x54] ss:$8 sps:$4 sm:$0xff]  }
 0xb4d   :  { %v8235_v17 = vmax.f32 %v8203_v59, 0.0  ;;  %v8205_v58 = vadd.f32 %v18952_v7, %v8092_v61 }
 0xb4e   :  { %v8336_v14 = vpack.c.bf16 %v8234_v19, %v8230_v20  ;;  %v8236_v51 = vmax.f32 %v8204_v6, 0.0  ;;  %v14192_v19 = vld [vmem:[%s20235_s14 + $0x50] ss:$8 sps:$4 sm:$0xff]  }
 0xb4f   :  { %v8337_v26 = vpack.c.bf16 %v8235_v17, %v8231_v60  ;;  %v8237_v48 = vmax.f32 %v8205_v58, 0.0  ;;  %v14197_v60 = vld [vmem:[%s20235_s14 + $0x64] ss:$8 sps:$4 sm:$0xff]  }
 0xb50   :  { %v18970_v40 = vpack.c.bf16 %v8236_v51, %v8232_v62 }
 0xb51   :  { %v18977_v35 = vpack.c.bf16 %v8237_v48, %v8233_v0  ;;  %v8096_v44 = vpop.f32.mrb[104].mxu0  ;;  %8536 = vmatprep.mubr.bf16.mxu1 %v8337_v26 }
 0xb52   :  { %v8098_v15 = vpop.f32.mrb[105].mxu0  ;;  %8537 = vmatmul.mubr.bf16.vlgmr.msra.gmra.mrb[144].mxu1 %v8336_v14  ;;  %v8206_v39 = vadd.f32 %v18946_v38, %v8096_v44 }
 0xb53   :  { %8738 = vmatpush1.bf16.msra.mxu1 %v14177_v29  ;;  %v8100_v5 = vpop.f32.mrb[106].mxu0  ;;  %v8207_v1 = vadd.f32 %v18952_v7, %v8098_v15  ;;  %v14200_v29 = vld [vmem:[%s20235_s14 + $0x74] ss:$8 sps:$4 sm:$0xff]  }
 0xb54   :  { %v8208_v47 = vadd.f32 %v18946_v38, %v8100_v5  ;;  %v8102_v37 = vpop.f32.mrb[107].mxu0  ;;  %8739 = vmatprep.subr.bf16.mxu1 %v14182_v49  ;;  %v8238_v32 = vmax.f32 %v8206_v39, 0.0 }
 0xb55   :  { %v8209_v25 = vadd.f32 %v18952_v7, %v8102_v37  ;;  %v8239_v11 = vmax.f32 %v8207_v1, 0.0  ;;  %v14275_v37 = vld [vmem:[%s20237_s16 + $0x104] ss:$8 sps:$4 sm:$0xff]  }
 0xb56   :  { %v8240_v57 = vmax.f32 %v8208_v47, 0.0  ;;  %v14273_v47 = vld [vmem:[%s20237_s16 + $0x100] ss:$8 sps:$4 sm:$0xff]   ;;  %9377 = vmatprep.subr.bf16.mxu0 %v14275_v37  ;;  %v14290_v37 = vld [vmem:[%s20237_s16 + $0x154] ss:$8 sps:$4 sm:$0xff]  }
 0xb57   :  { %v8241_v2 = vmax.f32 %v8209_v25, 0.0  ;;  %8740 = vmatpush1.bf16.msra.mxu1 %v14180_v12  ;;  %9378 = vmatpush1.bf16.msra.mxu0 %v14273_v47 }
 0xb58   :  { %v18991_v43 = vpack.c.bf16 %v8240_v57, %v8236_v51  ;;  %8741 = vmatprep.subr.bf16.mxu1 %v14185_v21  ;;  %v14195_v51 = vld [vmem:[%s20235_s14 + $0x60] ss:$8 sps:$4 sm:$0xff]  }
 0xb59   :  { %v18997_v22 = vpack.c.bf16 %v8241_v2, %v8237_v48  ;;  %v8106_v36 = vpop.f32.mrb[108].mxu0 }
 0xb5a   :  { %v8210_v42 = vadd.f32 %v18946_v38, %v8106_v36  ;;  %v8108_v16 = vpop.f32.mrb[109].mxu0  ;;  %v14203_v36 = vld [vmem:[%s20235_s14 + $0x84] ss:$8 sps:$4 sm:$0xff]  }
 0xb5b   :  { %v8211_v10 = vadd.f32 %v18952_v7, %v8108_v16  ;;  %8742 = vmatpush1.bf16.msra.mxu1 %v14183_v41  ;;  %v8110_v28 = vpop.f32.mrb[110].mxu0 }
 0xb5c   :  { %v8242_v24 = vmax.f32 %v8210_v42, 0.0  ;;  %v8212_v63 = vadd.f32 %v18946_v38, %v8110_v28  ;;  %v8112_v34 = vpop.f32.mrb[111].mxu0  ;;  %8743 = vmatprep.subr.bf16.mxu1 %v14188_v8  ;;  %v14276_v28 = vld [vmem:[%s20237_s16 + $0x110] ss:$8 sps:$4 sm:$0xff]  }
 0xb5d   :  { %v8243_v9 = vmax.f32 %v8211_v10, 0.0  ;;  %v8213_v50 = vadd.f32 %v18952_v7, %v8112_v34 }
 0xb5e   :  { %v8338_v52 = vpack.c.bf16 %v8242_v24, %v8238_v32  ;;  %v8244_v31 = vmax.f32 %v8212_v63, 0.0  ;;  %v14281_v24 = vld [vmem:[%s20237_s16 + $0x124] ss:$8 sps:$4 sm:$0xff]  }
 0xb5f   :  { %v8339_v33 = vpack.c.bf16 %v8243_v9, %v8239_v11  ;;  %v8245_v54 = vmax.f32 %v8213_v50, 0.0  ;;  %8744 = vmatpush1.bf16.msra.mxu1 %v14186_v3  ;;  %v14206_v9 = vld [vmem:[%s20235_s14 + $0x94] ss:$8 sps:$4 sm:$0xff]  }
 0xb60   :  { %v19012_v13 = vpack.c.bf16 %v8244_v31, %v8240_v57  ;;  %8745 = vmatprep.subr.bf16.mxu1 %v14191_v55  ;;  %v14198_v57 = vld [vmem:[%s20235_s14 + $0x70] ss:$8 sps:$4 sm:$0xff]   ;;  %v14201_v55 = vld [vmem:[%s20235_s14 + $0x80] ss:$8 sps:$4 sm:$0xff]  }
 0xb61   :  { %v19017_v23 = vpack.c.bf16 %v8245_v54, %v8241_v2  ;;  %v8116_v59 = vpop.f32.mrb[112].mxu0  ;;  %8546 = vmatprep.mubr.bf16.mxu1 %v8339_v33  ;;  %v14278_v2 = vld [vmem:[%s20237_s16 + $0x114] ss:$8 sps:$4 sm:$0xff]  }
 0xb62   :  { %v8118_v4 = vpop.f32.mrb[113].mxu0  ;;  %8547 = vmatmul.mubr.bf16.gmra.mrb[148].mxu1 %v8338_v52  ;;  %v8214_v26 = vadd.f32 %v18946_v38, %v8116_v59  ;;  %9379 = vmatprep.subr.bf16.mxu0 %v14278_v2 }
 0xb63   :  { %8746 = vmatpush1.bf16.msra.mxu1 %v14189_v18  ;;  %v8120_v20 = vpop.f32.mrb[114].mxu0  ;;  %v8215_v49 = vadd.f32 %v18952_v7, %v8118_v4  ;;  %9380 = vmatpush1.bf16.msra.mxu0 %v14276_v28 }
 0xb64   :  { %v8216_v6 = vadd.f32 %v18946_v38, %v8120_v20  ;;  %v8122_v61 = vpop.f32.mrb[115].mxu0  ;;  %8747 = vmatprep.subr.bf16.mxu1 %v14194_v27  ;;  %v8246_v41 = vmax.f32 %v8214_v26, 0.0  ;;  %9381 = vmatprep.subr.bf16.mxu0 %v14281_v24  ;;  %v14204_v27 = vld [vmem:[%s20235_s14 + $0x90] ss:$8 sps:$4 sm:$0xff]   ;;  %v14209_v20 = vld [vmem:[%s20235_s14 + $0xa4] ss:$8 sps:$4 sm:$0xff]  }
 0xb65   :  { %v8217_v17 = vadd.f32 %v18952_v7, %v8122_v61  ;;  %v8247_v42 = vmax.f32 %v8215_v49, 0.0  ;;  %v14212_v26 = vld [vmem:[%s20235_s14 + $0xb4] ss:$8 sps:$4 sm:$0xff]  }
 0xb66   :  { %v8248_v58 = vmax.f32 %v8216_v6, 0.0  ;;  %v14282_v6 = vld [vmem:[%s20237_s16 + $0x130] ss:$8 sps:$4 sm:$0xff]  }
 0xb67   :  { %v8249_v14 = vmax.f32 %v8217_v17, 0.0  ;;  %8748 = vmatpush1.bf16.msra.mxu1 %v14192_v19 }
 0xb68   :  { %v19031_v48 = vpack.c.bf16 %v8248_v58, %v8244_v31  ;;  %8749 = vmatprep.subr.bf16.mxu1 %v14197_v60  ;;  %v14279_v31 = vld [vmem:[%s20237_s16 + $0x120] ss:$8 sps:$4 sm:$0xff]   ;;  %v14287_v60 = vld [vmem:[%s20237_s16 + $0x144] ss:$8 sps:$4 sm:$0xff]  }
 0xb69   :  { %v19037_v44 = vpack.c.bf16 %v8249_v14, %v8245_v54  ;;  %v8126_v15 = vpop.f32.mrb[116].mxu0  ;;  %v14284_v54 = vld [vmem:[%s20237_s16 + $0x134] ss:$8 sps:$4 sm:$0xff]   ;;  %9382 = vmatpush1.bf16.msra.mxu0 %v14279_v31  ;;  %v14291_v31 = vld [vmem:[%s20237_s16 + $0x160] ss:$8 sps:$4 sm:$0xff]  }
 0xb6a   :  { %v8218_v5 = vadd.f32 %v18946_v38, %v8126_v15  ;;  %v8128_v12 = vpop.f32.mrb[117].mxu0  ;;  %9383 = vmatprep.subr.bf16.mxu0 %v14284_v54  ;;  %v14294_v54 = vld [vmem:[%s20237_s16 + $0x170] ss:$8 sps:$4 sm:$0xff]  }
 0xb6b   :  { %v8219_v21 = vadd.f32 %v18952_v7, %v8128_v12  ;;  %8750 = vmatpush1.bf16.msra.mxu1 %v14195_v51  ;;  %v8130_v25 = vpop.f32.mrb[118].mxu0 }
 0xb6c   :  { %v8250_v39 = vmax.f32 %v8218_v5, 0.0  ;;  %v8220_v8 = vadd.f32 %v18946_v38, %v8130_v25  ;;  %v8132_v1 = vpop.f32.mrb[119].mxu0  ;;  %8751 = vmatprep.subr.bf16.mxu1 %v14200_v29  ;;  %v14285_v5 = vld [vmem:[%s20237_s16 + $0x140] ss:$8 sps:$4 sm:$0xff]  }
 0xb6d   :  { %v8251_v16 = vmax.f32 %v8219_v21, 0.0  ;;  %v8221_v10 = vadd.f32 %v18952_v7, %v8132_v1  ;;  %9384 = vmatpush1.bf16.msra.mxu0 %v14282_v6  ;;  %v14215_v1 = vld [vmem:[%s20235_s14 + $0xc4] ss:$8 sps:$4 sm:$0xff]  }
 0xb6e   :  { %v8340_v3 = vpack.c.bf16 %v8250_v39, %v8246_v41  ;;  %v8252_v32 = vmax.f32 %v8220_v8, 0.0  ;;  %9385 = vmatprep.subr.bf16.mxu0 %v14287_v60  ;;  %v14227_v6 = vld [vmem:[%s20235_s14 + $0x204] ss:$8 sps:$4 sm:$0xff]  }
 0xb6f   :  { %v8341_v63 = vpack.c.bf16 %v8251_v16, %v8247_v42  ;;  %v8253_v34 = vmax.f32 %v8221_v10, 0.0  ;;  %8752 = vmatpush1.bf16.msra.mxu1 %v14198_v57  ;;  %v14210_v57 = vld [vmem:[%s20235_s14 + $0xb0] ss:$8 sps:$4 sm:$0xff]   ;;  %v14305_v60 = vld [vmem:[%s20237_s16 + $0x1a4] ss:$8 sps:$4 sm:$0xff]  }
 0xb70   :  { %v19067_v11 = vpack.c.bf16 %v8252_v32, %v8248_v58  ;;  %8753 = vmatprep.subr.bf16.mxu1 %v14203_v36  ;;  %v14207_v58 = vld [vmem:[%s20235_s14 + $0xa0] ss:$8 sps:$4 sm:$0xff]   ;;  %v14288_v10 = vld [vmem:[%s20237_s16 + $0x150] ss:$8 sps:$4 sm:$0xff]  }
 0xb71   :  { %v19072_v50 = vpack.c.bf16 %v8253_v34, %v8249_v14  ;;  %v8136_v52 = vpop.f32.mrb[120].mxu0  ;;  %8556 = vmatprep.mubr.bf16.mxu1 %v8341_v63  ;;  %9386 = vmatpush1.bf16.msra.mxu0 %v14285_v5  ;;  %v14213_v63 = vld [vmem:[%s20235_s14 + $0xc0] ss:$8 sps:$4 sm:$0xff]   ;;  %v14236_v5 = vld [vmem:[%s20235_s14 + $0x234] ss:$8 sps:$4 sm:$0xff]  }
 0xb72   :  { %v8138_v33 = vpop.f32.mrb[121].mxu0  ;;  %8557 = vmatmul.mubr.bf16.gmra.mrb[152].mxu1 %v8340_v3  ;;  %v8222_v14 = vadd.f32 %v18946_v38, %v8136_v52  ;;  %9387 = vmatprep.subr.bf16.mxu0 %v14290_v37  ;;  %v14237_v37 = vld [vmem:[%s20235_s14 + $0x240] ss:$8 sps:$4 sm:$0xff]  }
 0xb73   :  { %8754 = vmatpush1.bf16.msra.mxu1 %v14201_v55  ;;  %v8140_v18 = vpop.f32.mrb[122].mxu0  ;;  %v8223_v29 = vadd.f32 %v18952_v7, %v8138_v33  ;;  %v20554_v55 = vmov 0.0   ;;  %v14296_v33 = vld [vmem:[%s20237_s16 + $0x174] ss:$8 sps:$4 sm:$0xff]  }
 0xb74   :  { %v8224_v59 = vadd.f32 %v18946_v38, %v8140_v18  ;;  %v8142_v4 = vpop.f32.mrb[123].mxu0  ;;  %8755 = vmatprep.subr.bf16.mxu1 %v14206_v9  ;;  %v8254_v2 = vmax.f32 %v8222_v14, 0.0  ;;  %v8296_v9 = vpack.c.bf16 %v8233_v0, %v20554_v55  ;;  %v14221_v0 = vld [vmem:[%s20235_s14 + $0xe4] ss:$8 sps:$4 sm:$0xff]   ;;  %v14230_v14 = vld [vmem:[%s20235_s14 + $0x214] ss:$8 sps:$4 sm:$0xff]  }
 0xb75   :  { %v8225_v19 = vadd.f32 %v18952_v7, %v8142_v4  ;;  %v8255_v36 = vmax.f32 %v8223_v29, 0.0  ;;  %9388 = vmatpush1.bf16.msra.mxu0 %v14288_v10  ;;  %v14299_v18 = vld [vmem:[%s20237_s16 + $0x184] ss:$8 sps:$4 sm:$0xff]   ;;  %v14297_v4 = vld [vmem:[%s20237_s16 + $0x180] ss:$8 sps:$4 sm:$0xff]  }
 0xb76   :  { %v8256_v61 = vmax.f32 %v8224_v59, 0.0  ;;  %v14224_v59 = vld [vmem:[%s20235_s14 + $0xf4] ss:$8 sps:$4 sm:$0xff]   ;;  %v14264_v10 = vld [vmem:[%s20235_s14 + $0x2d0] ss:$8 sps:$4 sm:$0xff]  }
 0xb77   :  { %v8257_v17 = vmax.f32 %v8225_v19, 0.0  ;;  %8756 = vmatpush1.bf16.msra.mxu1 %v14204_v27  ;;  %v14219_v27 = vld [vmem:[%s20235_s14 + $0xe0] ss:$8 sps:$4 sm:$0xff]   ;;  %v14222_v19 = vld [vmem:[%s20235_s14 + $0xf0] ss:$8 sps:$4 sm:$0xff]  }
 0xb78   :  { %v19098_v51 = vpack.c.bf16 %v8256_v61, %v8252_v32  ;;  %8757 = vmatprep.subr.bf16.mxu1 %v14209_v20  ;;  %v14302_v20 = vld [vmem:[%s20237_s16 + $0x194] ss:$8 sps:$4 sm:$0xff]  }
 0xb79   :  { %v19104_v49 = vpack.c.bf16 %v8257_v17, %v8253_v34  ;;  %v8146_v15 = vpop.f32.mrb[124].mxu0  ;;  %v14218_v34 = vld [vmem:[%s20235_s14 + $0xd4] ss:$8 sps:$4 sm:$0xff]  }
 0xb7a   :  { %v8226_v12 = vadd.f32 %v18946_v38, %v8146_v15  ;;  %v8148_v47 = vpop.f32.mrb[125].mxu0  ;;  %v14308_v29 = vld [vmem:[%s20237_s16 + $0x1b4] ss:$8 sps:$4 sm:$0xff]   ;;  %v14306_v15 = vld [vmem:[%s20237_s16 + $0x1b0] ss:$8 sps:$4 sm:$0xff]  }
 0xb7b   :  { %v8227_v21 = vadd.f32 %v18952_v7, %v8148_v47  ;;  %8758 = vmatpush1.bf16.msra.mxu1 %v14207_v58  ;;  %v8150_v25 = vpop.f32.mrb[126].mxu0  ;;  %v8295_v58 = vpack.c.bf16 %v8232_v62, %v20554_v55  ;;  %v14233_v62 = vld [vmem:[%s20235_s14 + $0x224] ss:$8 sps:$4 sm:$0xff]  }
 0xb7c   :  { %v8258_v41 = vmax.f32 %v8226_v12, 0.0  ;;  %v8228_v39 = vadd.f32 %v18946_v38, %v8150_v25  ;;  %v8152_v8 = vpop.f32.mrb[127].mxu0  ;;  %8759 = vmatprep.subr.bf16.mxu1 %v14212_v26  ;;  %v14293_v38 = vld [vmem:[%s20237_s16 + $0x164] ss:$8 sps:$4 sm:$0xff]   ;;  %v14303_v26 = vld [vmem:[%s20237_s16 + $0x1a0] ss:$8 sps:$4 sm:$0xff]  }
 0xb7d   :  { %v8259_v42 = vmax.f32 %v8227_v21, 0.0  ;;  %v8229_v16 = vadd.f32 %v18952_v7, %v8152_v8  ;;  %9389 = vmatprep.subr.bf16.mxu0 %v14293_v38  ;;  %v14234_v12 = vld [vmem:[%s20235_s14 + $0x230] ss:$8 sps:$4 sm:$0xff]   ;;  %v14239_v47 = vld [vmem:[%s20235_s14 + $0x244] ss:$8 sps:$4 sm:$0xff]  }
 0xb7e   :  { %v8342_v28 = vpack.c.bf16 %v8258_v41, %v8254_v2  ;;  %v8260_v3 = vmax.f32 %v8228_v39, 0.0  ;;  %9390 = vmatpush1.bf16.msra.mxu0 %v14291_v31  ;;  %v14245_v21 = vld [vmem:[%s20235_s14 + $0x264] ss:$8 sps:$4 sm:$0xff]   ;;  %v14243_v25 = vld [vmem:[%s20235_s14 + $0x260] ss:$8 sps:$4 sm:$0xff]  }
 0xb7f   :  { %v8343_v32 = vpack.c.bf16 %v8259_v42, %v8255_v36  ;;  %v8261_v24 = vmax.f32 %v8229_v16, 0.0  ;;  %8760 = vmatpush1.bf16.msra.mxu1 %v14210_v57  ;;  %9391 = vmatprep.subr.bf16.mxu0 %v14296_v33  ;;  %v14251_v57 = vld [vmem:[%s20235_s14 + $0x284] ss:$8 sps:$4 sm:$0xff]   ;;  %v14249_v2 = vld [vmem:[%s20235_s14 + $0x280] ss:$8 sps:$4 sm:$0xff]  }
 0xb80   :  { %v19131_v7 = vpack.c.bf16 %v8260_v3, %v8256_v61  ;;  %8761 = vmatprep.subr.bf16.mxu1 %v14215_v1  ;;  %v14300_v61 = vld [vmem:[%s20237_s16 + $0x190] ss:$8 sps:$4 sm:$0xff]   ;;  %v14257_v41 = vld [vmem:[%s20235_s14 + $0x2a4] ss:$8 sps:$4 sm:$0xff]   ;;  %v14255_v39 = vld [vmem:[%s20235_s14 + $0x2a0] ss:$8 sps:$4 sm:$0xff]  }
 0xb81   :  { %v19139_v52 = vpack.c.bf16 %v8261_v24, %v8257_v17  ;;  %8566 = vmatprep.mubr.bf16.mxu1 %v8343_v32  ;;  %v14225_v17 = vld [vmem:[%s20235_s14 + $0x200] ss:$8 sps:$4 sm:$0xff]   ;;  %v14260_v8 = vld [vmem:[%s20235_s14 + $0x2b4] ss:$8 sps:$4 sm:$0xff]   ;;  %v14258_v1 = vld [vmem:[%s20235_s14 + $0x2b0] ss:$8 sps:$4 sm:$0xff]  }
 0xb82   :  { %8567 = vmatmul.mubr.bf16.gmra.mrb[156].mxu1 %v8342_v28  ;;  %9392 = vmatpush1.bf16.msra.mxu0 %v14294_v54  ;;  %v14263_v36 = vld [vmem:[%s20235_s14 + $0x2c4] ss:$8 sps:$4 sm:$0xff]   ;;  %v14261_v42 = vld [vmem:[%s20235_s14 + $0x2c0] ss:$8 sps:$4 sm:$0xff]   ;;  %v14266_v16 = vld [vmem:[%s20235_s14 + $0x2d4] ss:$8 sps:$4 sm:$0xff]  }
 0xb83   :  { %8762 = vmatpush1.bf16.msra.mxu1 %v14213_v63  ;;  %8769 = vmatprep.mubr.bf16.mxu1 %v8296_v9  ;;  %v14269_v28 = vld [vmem:[%s20235_s14 + $0x2e4] ss:$8 sps:$4 sm:$0xff]   ;;  %v14267_v3 = vld [vmem:[%s20235_s14 + $0x2e0] ss:$8 sps:$4 sm:$0xff]   ;;  %v14272_v38 = vld [vmem:[%s20235_s14 + $0x2f4] ss:$8 sps:$4 sm:$0xff]  }
 0xb84   :  { %8763 = vmatprep.subr.bf16.mxu1 %v14218_v34  ;;  %9393 = vmatprep.subr.bf16.mxu0 %v14299_v18  ;;  %v14270_v32 = vld [vmem:[%s20235_s14 + $0x2f0] ss:$8 sps:$4 sm:$0xff]   ;;  %v14311_v24 = vld [vmem:[%s20237_s16 + $0x1c4] ss:$8 sps:$4 sm:$0xff]   ;;  %v14320_v63 = vld [vmem:[%s20237_s16 + $0x1f4] ss:$8 sps:$4 sm:$0xff]  }
 0xb85   :  { %v14323_v34 = vld [vmem:[%s20237_s16 + $0x4] ss:$8 sps:$4 sm:$0xff]  }
 0xb86   :  { %9394 = vmatpush1.bf16.msra.mxu0 %v14297_v4  ;;  %v8262_v9 = vld [vmem:[#allocation8] sm:$0x3] }
 0xb87   :  { %8764 = vmatpush1.bf16.msra.mxu1 %v14216_v45  ;;  %9395 = vmatprep.subr.bf16.mxu0 %v14302_v20  ;;  %v19330_v31 = vrot.slane %v8262_v9, %v20542_v46  ;;  %v19336_v18 = vrot.slane %v8262_v9, %v17757_v30 }
 0xb88   :  { %8765 = vmatprep.subr.bf16.mxu1 %v14221_v0 }
 0xb8a   :  { %9396 = vmatpush1.bf16.msra.mxu0 %v14300_v61 }
 0xb8b   :  { %8766 = vmatpush1.bf16.msra.mxu1 %v14219_v27  ;;  %9397 = vmatprep.subr.bf16.mxu0 %v14305_v60 }
 0xb8c   :  { %8767 = vmatprep.subr.bf16.mxu1 %v14224_v59 }
 0xb8e   :  { %9398 = vmatpush1.bf16.msra.mxu0 %v14303_v26 }
 0xb8f   :  { %8768 = vmatpush1.bf16.msra.mxu1 %v14222_v19  ;;  %9399 = vmatprep.subr.bf16.mxu0 %v14308_v29 }
 0xb90   :  { %9011 = vmatprep.subr.bf16.mxu1 %v14227_v6 }
 0xb92   :  { %8770 = vmatmul.mubr.bf16.vlgmr.msra.gmra.mrb[144].mxu1 %v8295_v58  ;;  %9400 = vmatpush1.bf16.msra.mxu0 %v14306_v15 }
 0xb93   :  { %8779 = vmatprep.mubr.bf16.mxu1 %v18997_v22  ;;  %9012 = vmatpush1.bf16.msra.mxu1 %v14225_v17  ;;  %v14231_v22 = vld [vmem:[%s20235_s14 + $0x220] ss:$8 sps:$4 sm:$0xff]  }
 0xb94   :  { %9013 = vmatprep.subr.bf16.mxu1 %v14230_v14  ;;  %9401 = vmatprep.subr.bf16.mxu0 %v14311_v24 }
 0xb97   :  { %9014 = vmatpush1.bf16.msra.mxu1 %v14228_v53 }
 0xb98   :  { %9015 = vmatprep.subr.bf16.mxu1 %v14233_v62 }
 0xb9a   :  { %8780 = vmatmul.mubr.bf16.gmra.mrb[148].mxu1 %v18991_v43  ;;  %v14242_v43 = vld [vmem:[%s20235_s14 + $0x254] ss:$8 sps:$4 sm:$0xff]  }
 0xb9b   :  { %8789 = vmatprep.mubr.bf16.mxu1 %v19037_v44  ;;  %9016 = vmatpush1.bf16.msra.mxu1 %v14231_v22  ;;  %v14240_v44 = vld [vmem:[%s20235_s14 + $0x250] ss:$8 sps:$4 sm:$0xff]  }
 0xb9c   :  { %9017 = vmatprep.subr.bf16.mxu1 %v14236_v5 }
 0xb9f   :  { %9018 = vmatpush1.bf16.msra.mxu1 %v14234_v12 }
 0xba0   :  { %9019 = vmatprep.subr.bf16.mxu1 %v14239_v47 }
 0xba2   :  { %8790 = vmatmul.mubr.bf16.gmra.mrb[152].mxu1 %v19031_v48  ;;  %v14248_v48 = vld [vmem:[%s20235_s14 + $0x274] ss:$8 sps:$4 sm:$0xff]  }
 0xba3   :  { %8799 = vmatprep.mubr.bf16.mxu1 %v19104_v49  ;;  %9020 = vmatpush1.bf16.msra.mxu1 %v14237_v37  ;;  %v14246_v49 = vld [vmem:[%s20235_s14 + $0x270] ss:$8 sps:$4 sm:$0xff]  }
 0xba4   :  { %9021 = vmatprep.subr.bf16.mxu1 %v14242_v43  ;;  %v14321_v43 = vld [vmem:[%s20237_s16] ss:$8 sps:$4 sm:$0xff]  }
 0xba7   :  { %9022 = vmatpush1.bf16.msra.mxu1 %v14240_v44 }
 0xba8   :  { %9023 = vmatprep.subr.bf16.mxu1 %v14245_v21  ;;  %v14326_v21 = vld [vmem:[%s20237_s16 + $0x14] ss:$8 sps:$4 sm:$0xff]  }
 0xbaa   :  { %8800 = vmatmul.mubr.bf16.gmra.mrb[156].mxu1 %v19098_v51  ;;  %v14254_v51 = vld [vmem:[%s20235_s14 + $0x294] ss:$8 sps:$4 sm:$0xff]  }
 0xbab   :  { %9024 = vmatpush1.bf16.msra.mxu1 %v14243_v25  ;;  %9043 = vmatprep.mubr.bf16.mxu1 %v18977_v35  ;;  %v14252_v35 = vld [vmem:[%s20235_s14 + $0x290] ss:$8 sps:$4 sm:$0xff]  }
 0xbac   :  { %9025 = vmatprep.subr.bf16.mxu1 %v14248_v48 }
 0xbaf   :  { %9026 = vmatpush1.bf16.msra.mxu1 %v14246_v49 }
 0xbb0   :  { %9027 = vmatprep.subr.bf16.mxu1 %v14251_v57 }
 0xbb3   :  { %9028 = vmatpush1.bf16.msra.mxu1 %v14249_v2  ;;  %v14324_v2 = vld [vmem:[%s20237_s16 + $0x10] ss:$8 sps:$4 sm:$0xff]  }
 0xbb4   :  { %9029 = vmatprep.subr.bf16.mxu1 %v14254_v51 }
 0xbb7   :  { %9030 = vmatpush1.bf16.msra.mxu1 %v14252_v35 }
 0xbb8   :  { %9031 = vmatprep.subr.bf16.mxu1 %v14257_v41  ;;  %v14329_v41 = vld [vmem:[%s20237_s16 + $0x24] ss:$8 sps:$4 sm:$0xff]  }
 0xbbb   :  { %9032 = vmatpush1.bf16.msra.mxu1 %v14255_v39 }
 0xbbc   :  { %9033 = vmatprep.subr.bf16.mxu1 %v14260_v8 }
 0xbbf   :  { %9034 = vmatpush1.bf16.msra.mxu1 %v14258_v1 }
 0xbc0   :  { %9035 = vmatprep.subr.bf16.mxu1 %v14263_v36  ;;  %v14327_v36 = vld [vmem:[%s20237_s16 + $0x20] ss:$8 sps:$4 sm:$0xff]  }
 0xbc3   :  { %9036 = vmatpush1.bf16.msra.mxu1 %v14261_v42 }
 0xbc4   :  { %9037 = vmatprep.subr.bf16.mxu1 %v14266_v16 }
 0xbc7   :  { %9038 = vmatpush1.bf16.msra.mxu1 %v14264_v10  ;;  %v14332_v10 = vld [vmem:[%s20237_s16 + $0x34] ss:$8 sps:$4 sm:$0xff]  }
 0xbc8   :  { %9039 = vmatprep.subr.bf16.mxu1 %v14269_v28 }
 0xbcb   :  { %9040 = vmatpush1.bf16.msra.mxu1 %v14267_v3 }
 0xbcc   :  { %9041 = vmatprep.subr.bf16.mxu1 %v14272_v38 }
 0xbcf   :  { %9042 = vmatpush1.bf16.msra.mxu1 %v14270_v32 }
 0xbd2   :  { %9044 = vmatmul.mubr.bf16.vlgmr.msra.gmra.mrb[144].mxu1 %v18970_v40  ;;  %v14309_v40 = vld [vmem:[%s20237_s16 + $0x1c0] ss:$8 sps:$4 sm:$0xff]  }
 0xbd3   :  { %9053 = vmatprep.mubr.bf16.mxu1 %v19017_v23  ;;  %9402 = vmatpush1.bf16.msra.mxu0 %v14309_v40  ;;  %v14312_v23 = vld [vmem:[%s20237_s16 + $0x1d0] ss:$8 sps:$4 sm:$0xff]   ;;  %v14417_v40 = vld [vmem:[%s20239_s18 + $0x100] ss:$8 sps:$4 sm:$0xff]  }
 0xbda   :  { %9054 = vmatmul.mubr.bf16.gmra.mrb[148].mxu1 %v19012_v13  ;;  %v14314_v13 = vld [vmem:[%s20237_s16 + $0x1d4] ss:$8 sps:$4 sm:$0xff]  }
 0xbdb   :  { %9063 = vmatprep.mubr.bf16.mxu1 %v19072_v50  ;;  %9403 = vmatprep.subr.bf16.mxu0 %v14314_v13  ;;  %v14315_v50 = vld [vmem:[%s20237_s16 + $0x1e0] ss:$8 sps:$4 sm:$0xff]   ;;  %v14419_v13 = vld [vmem:[%s20239_s18 + $0x104] ss:$8 sps:$4 sm:$0xff]  }
 0xbdc   :  { %9404 = vmatpush1.bf16.msra.mxu0 %v14312_v23  ;;  %10158 = vmatprep.subr.bf16.mxu1 %v14419_v13  ;;  %v14357_v13 = vld [vmem:[%s20237_s16 + $0xc0] ss:$8 sps:$4 sm:$0xff]  }
 0xbdd   :  { %10159 = vmatpush1.bf16.msra.mxu1 %v14417_v40  ;;  %v14449_v40 = vld [vmem:[%s20239_s18 + $0x1a4] ss:$8 sps:$4 sm:$0xff]  }
 0xbe2   :  { %9064 = vmatmul.mubr.bf16.gmra.mrb[152].mxu1 %v19067_v11  ;;  %v14317_v11 = vld [vmem:[%s20237_s16 + $0x1e4] ss:$8 sps:$4 sm:$0xff]  }
 0xbe3   :  { %9073 = vmatprep.mubr.bf16.mxu1 %v19139_v52  ;;  %9405 = vmatprep.subr.bf16.mxu0 %v14317_v11 }
 0xbe4   :  { %9406 = vmatpush1.bf16.msra.mxu0 %v14315_v50  ;;  %v14330_v50 = vld [vmem:[%s20237_s16 + $0x30] ss:$8 sps:$4 sm:$0xff]  }
 0xbe5   :  { %9407 = vmatprep.subr.bf16.mxu0 %v14320_v63  ;;  %v14422_v63 = vld [vmem:[%s20239_s18 + $0x114] ss:$8 sps:$4 sm:$0xff]  }
 0xbe6   :  { %10160 = vmatprep.subr.bf16.mxu1 %v14422_v63  ;;  %v14360_v63 = vld [vmem:[%s20237_s16 + $0xd0] ss:$8 sps:$4 sm:$0xff]  }
 0xbea   :  { %9074 = vmatmul.mubr.bf16.gmra.mrb[156].mxu1 %v19131_v7  ;;  %v14318_v7 = vld [vmem:[%s20237_s16 + $0x1f0] ss:$8 sps:$4 sm:$0xff]  }
 0xbeb   :  { %9408 = vmatpush1.bf16.msra.mxu0 %v14318_v7 }
 0xbec   :  { %9590 = vmatprep.subr.bf16.mxu0 %v14323_v34 }
 0xca5   :  { %v9045_v52 = vpop.f32.mrb[144].mxu1 }
 0xca6   :  { %v9047_v33 = vpop.f32.mrb[145].mxu1  ;;  %v9111_v27 = vadd.f32 %v19330_v31, %v9045_v52 }
 0xca7   :  { %v9049_v45 = vpop.f32.mrb[146].mxu1  ;;  %v9112_v59 = vadd.f32 %v19336_v18, %v9047_v33  ;;  %v14335_v33 = vld [vmem:[%s20237_s16 + $0x44] ss:$8 sps:$4 sm:$0xff]  }
 0xca8   :  { %v19333_v0 = vadd.f32 %v19330_v31, %v9049_v45  ;;  %v9051_v54 = vpop.f32.mrb[147].mxu1  ;;  %v9127_v17 = vmax.f32 %v9111_v27, 0.0 }
 0xca9   :  { %v19342_v6 = vadd.f32 %v19336_v18, %v9051_v54  ;;  %v9128_v29 = vmax.f32 %v9112_v59, 0.0  ;;  %v14420_v59 = vld [vmem:[%s20239_s18 + $0x110] ss:$8 sps:$4 sm:$0xff]  }
 0xcaa   :  { %v9129_v15 = vmax.f32 %v19333_v0, 0.0  ;;  %10161 = vmatpush1.bf16.msra.mxu1 %v14420_v59  ;;  %v14374_v59 = vld [vmem:[%s20237_s16 + $0x214] ss:$8 sps:$4 sm:$0xff]   ;;  %v14375_v0 = vld [vmem:[%s20237_s16 + $0x220] ss:$8 sps:$4 sm:$0xff]  }
 0xcab   :  { %v9130_v12 = vmax.f32 %v19342_v6, 0.0 }
 0xcad   :  { %v9055_v4 = vpop.f32.mrb[148].mxu1 }
 0xcae   :  { %v9115_v20 = vadd.f32 %v19330_v31, %v9055_v4  ;;  %v9057_v19 = vpop.f32.mrb[149].mxu1 }
 0xcaf   :  { %v9116_v61 = vadd.f32 %v19336_v18, %v9057_v19  ;;  %v9059_v60 = vpop.f32.mrb[150].mxu1 }
 0xcb0   :  { %v9131_v58 = vmax.f32 %v9115_v20, 0.0  ;;  %v9117_v14 = vadd.f32 %v19330_v31, %v9059_v60  ;;  %v9061_v26 = vpop.f32.mrb[151].mxu1  ;;  %v14338_v60 = vld [vmem:[%s20237_s16 + $0x54] ss:$8 sps:$4 sm:$0xff]  }
 0xcb1   :  { %v9132_v53 = vmax.f32 %v9116_v61, 0.0  ;;  %v9118_v62 = vadd.f32 %v19336_v18, %v9061_v26  ;;  %v14333_v61 = vld [vmem:[%s20237_s16 + $0x40] ss:$8 sps:$4 sm:$0xff]   ;;  %v14428_v26 = vld [vmem:[%s20239_s18 + $0x134] ss:$8 sps:$4 sm:$0xff]  }
 0xcb2   :  { %v9213_v22 = vpack.c.bf16 %v9131_v58, %v9127_v17  ;;  %v9133_v5 = vmax.f32 %v9117_v14, 0.0  ;;  %v9177_v17 = vpack.c.bf16 %v9130_v12, %v20554_v55  ;;  %v14423_v14 = vld [vmem:[%s20239_s18 + $0x120] ss:$8 sps:$4 sm:$0xff]  }
 0xcb3   :  { %v9214_v47 = vpack.c.bf16 %v9132_v53, %v9128_v29  ;;  %v9134_v37 = vmax.f32 %v9118_v62, 0.0  ;;  %v14336_v29 = vld [vmem:[%s20237_s16 + $0x50] ss:$8 sps:$4 sm:$0xff]   ;;  %v14341_v53 = vld [vmem:[%s20237_s16 + $0x64] ss:$8 sps:$4 sm:$0xff]  }
 0xcb4   :  { %v19354_v44 = vpack.c.bf16 %v9133_v5, %v9129_v15  ;;  %v14426_v62 = vld [vmem:[%s20239_s18 + $0x130] ss:$8 sps:$4 sm:$0xff]  }
 0xcb5   :  { %v19359_v25 = vpack.c.bf16 %v9134_v37, %v9130_v12  ;;  %v9065_v48 = vpop.f32.mrb[152].mxu1  ;;  %9409 = vmatprep.mubr.bf16.mxu0 %v9214_v47  ;;  %v14344_v12 = vld [vmem:[%s20237_s16 + $0x74] ss:$8 sps:$4 sm:$0xff]   ;;  %v14429_v47 = vld [vmem:[%s20239_s18 + $0x140] ss:$8 sps:$4 sm:$0xff]  }
 0xcb6   :  { %v9067_v49 = vpop.f32.mrb[153].mxu1  ;;  %9410 = vmatmul.mubr.bf16.vlgmr.msra.gmra.mrb[128].mxu0 %v9213_v22  ;;  %v9119_v42 = vadd.f32 %v19330_v31, %v9065_v48  ;;  %v14431_v22 = vld [vmem:[%s20239_s18 + $0x144] ss:$8 sps:$4 sm:$0xff]   ;;  %v14432_v48 = vld [vmem:[%s20239_s18 + $0x150] ss:$8 sps:$4 sm:$0xff]  }
 0xcb7   :  { %9591 = vmatpush1.bf16.msra.mxu0 %v14321_v43  ;;  %v9069_v57 = vpop.f32.mrb[154].mxu1  ;;  %v9120_v28 = vadd.f32 %v19336_v18, %v9067_v49  ;;  %v14342_v43 = vld [vmem:[%s20237_s16 + $0x70] ss:$8 sps:$4 sm:$0xff]   ;;  %v14437_v49 = vld [vmem:[%s20239_s18 + $0x164] ss:$8 sps:$4 sm:$0xff]  }
 0xcb8   :  { %v9121_v51 = vadd.f32 %v19330_v31, %v9069_v57  ;;  %v9071_v35 = vpop.f32.mrb[155].mxu1  ;;  %9592 = vmatprep.subr.bf16.mxu0 %v14326_v21  ;;  %v9135_v7 = vmax.f32 %v9119_v42, 0.0  ;;  %v14347_v21 = vld [vmem:[%s20237_s16 + $0x84] ss:$8 sps:$4 sm:$0xff]   ;;  %v14345_v57 = vld [vmem:[%s20237_s16 + $0x80] ss:$8 sps:$4 sm:$0xff]  }
 0xcb9   :  { %v9122_v39 = vadd.f32 %v19336_v18, %v9071_v35  ;;  %v9136_v45 = vmax.f32 %v9120_v28, 0.0  ;;  %v14440_v35 = vld [vmem:[%s20239_s18 + $0x174] ss:$8 sps:$4 sm:$0xff]  }
 0xcba   :  { %v9137_v8 = vmax.f32 %v9121_v51, 0.0  ;;  %v14435_v51 = vld [vmem:[%s20239_s18 + $0x160] ss:$8 sps:$4 sm:$0xff]   ;;  %v14356_v42 = vld [vmem:[%s20237_s16 + $0xb4] ss:$8 sps:$4 sm:$0xff]  }
 0xcbb   :  { %v9138_v1 = vmax.f32 %v9122_v39, 0.0  ;;  %9593 = vmatpush1.bf16.msra.mxu0 %v14324_v2  ;;  %v14350_v2 = vld [vmem:[%s20237_s16 + $0x94] ss:$8 sps:$4 sm:$0xff]   ;;  %v14353_v39 = vld [vmem:[%s20237_s16 + $0xa4] ss:$8 sps:$4 sm:$0xff]  }
 0xcbc   :  { %v19373_v16 = vpack.c.bf16 %v9137_v8, %v9133_v5  ;;  %9594 = vmatprep.subr.bf16.mxu0 %v14329_v41  ;;  %v14339_v5 = vld [vmem:[%s20237_s16 + $0x60] ss:$8 sps:$4 sm:$0xff]   ;;  %v14348_v41 = vld [vmem:[%s20237_s16 + $0x90] ss:$8 sps:$4 sm:$0xff]   ;;  %v14446_v28 = vld [vmem:[%s20239_s18 + $0x194] ss:$8 sps:$4 sm:$0xff]  }
 0xcbd   :  { %v19379_v3 = vpack.c.bf16 %v9138_v1, %v9134_v37  ;;  %v9075_v38 = vpop.f32.mrb[156].mxu1  ;;  %v14434_v37 = vld [vmem:[%s20239_s18 + $0x154] ss:$8 sps:$4 sm:$0xff]  }
 0xcbe   :  { %v9123_v32 = vadd.f32 %v19330_v31, %v9075_v38  ;;  %v9077_v24 = vpop.f32.mrb[157].mxu1  ;;  %v14354_v38 = vld [vmem:[%s20237_s16 + $0xb0] ss:$8 sps:$4 sm:$0xff]  }
 0xcbf   :  { %v9124_v23 = vadd.f32 %v19336_v18, %v9077_v24  ;;  %9595 = vmatpush1.bf16.msra.mxu0 %v14327_v36  ;;  %v9079_v11 = vpop.f32.mrb[158].mxu1  ;;  %v14351_v36 = vld [vmem:[%s20237_s16 + $0xa0] ss:$8 sps:$4 sm:$0xff]   ;;  %v14444_v24 = vld [vmem:[%s20239_s18 + $0x190] ss:$8 sps:$4 sm:$0xff]  }
 0xcc0   :  { %v9139_v34 = vmax.f32 %v9123_v32, 0.0  ;;  %v9125_v9 = vadd.f32 %v19330_v31, %v9079_v11  ;;  %v9081_v52 = vpop.f32.mrb[159].mxu1  ;;  %9596 = vmatprep.subr.bf16.mxu0 %v14332_v10  ;;  %v14425_v31 = vld [vmem:[%s20239_s18 + $0x124] ss:$8 sps:$4 sm:$0xff]   ;;  %v14441_v10 = vld [vmem:[%s20239_s18 + $0x180] ss:$8 sps:$4 sm:$0xff]  }
 0xcc1   :  { %v9140_v54 = vmax.f32 %v9124_v23, 0.0  ;;  %v9126_v27 = vadd.f32 %v19336_v18, %v9081_v52  ;;  %10162 = vmatprep.subr.bf16.mxu1 %v14425_v31  ;;  %v14359_v32 = vld [vmem:[%s20237_s16 + $0xc4] ss:$8 sps:$4 sm:$0xff]   ;;  %v14362_v23 = vld [vmem:[%s20237_s16 + $0xd4] ss:$8 sps:$4 sm:$0xff]  }
 0xcc2   :  { %v9215_v4 = vpack.c.bf16 %v9139_v34, %v9135_v7  ;;  %v9141_v20 = vmax.f32 %v9125_v9, 0.0  ;;  %10163 = vmatpush1.bf16.msra.mxu1 %v14423_v14  ;;  %v14447_v11 = vld [vmem:[%s20239_s18 + $0x1a0] ss:$8 sps:$4 sm:$0xff]   ;;  %v14365_v7 = vld [vmem:[%s20237_s16 + $0xe4] ss:$8 sps:$4 sm:$0xff]  }
 0xcc3   :  { %v9216_v19 = vpack.c.bf16 %v9140_v54, %v9136_v45  ;;  %v9142_v6 = vmax.f32 %v9126_v27, 0.0  ;;  %9597 = vmatpush1.bf16.msra.mxu0 %v14330_v50  ;;  %10164 = vmatprep.subr.bf16.mxu1 %v14428_v26  ;;  %v14452_v50 = vld [vmem:[%s20239_s18 + $0x1b4] ss:$8 sps:$4 sm:$0xff]   ;;  %v14450_v34 = vld [vmem:[%s20239_s18 + $0x1b0] ss:$8 sps:$4 sm:$0xff]   ;;  %v9176_v27 = vpack.c.bf16 %v9129_v15, %v20554_v55 }
 0xcc4   :  { %v19409_v18 = vpack.c.bf16 %v9141_v20, %v9137_v8  ;;  %9598 = vmatprep.subr.bf16.mxu0 %v14335_v33  ;;  %v14438_v8 = vld [vmem:[%s20239_s18 + $0x170] ss:$8 sps:$4 sm:$0xff]   ;;  %v14363_v9 = vld [vmem:[%s20237_s16 + $0xe0] ss:$8 sps:$4 sm:$0xff]   ;;  %v14368_v52 = vld [vmem:[%s20237_s16 + $0xf4] ss:$8 sps:$4 sm:$0xff]  }
 0xcc5   :  { %v19415_v58 = vpack.c.bf16 %v9142_v6, %v9138_v1  ;;  %9419 = vmatprep.mubr.bf16.mxu0 %v9216_v19  ;;  %v14443_v1 = vld [vmem:[%s20239_s18 + $0x184] ss:$8 sps:$4 sm:$0xff]   ;;  %v14366_v33 = vld [vmem:[%s20237_s16 + $0xf0] ss:$8 sps:$4 sm:$0xff]   ;;  %v14369_v54 = vld [vmem:[%s20237_s16 + $0x200] ss:$8 sps:$4 sm:$0xff]  }
 0xcc6   :  { %9420 = vmatmul.mubr.bf16.gmra.mrb[132].mxu0 %v9215_v4  ;;  %10165 = vmatpush1.bf16.msra.mxu1 %v14426_v62  ;;  %v14371_v45 = vld [vmem:[%s20237_s16 + $0x204] ss:$8 sps:$4 sm:$0xff]   ;;  %v14372_v4 = vld [vmem:[%s20237_s16 + $0x210] ss:$8 sps:$4 sm:$0xff]   ;;  %v14380_v15 = vld [vmem:[%s20237_s16 + $0x234] ss:$8 sps:$4 sm:$0xff]  }
 0xcc7   :  { %9599 = vmatpush1.bf16.msra.mxu0 %v14333_v61  ;;  %9622 = vmatprep.mubr.bf16.mxu0 %v9177_v17  ;;  %v14377_v20 = vld [vmem:[%s20237_s16 + $0x224] ss:$8 sps:$4 sm:$0xff]   ;;  %v14381_v19 = vld [vmem:[%s20237_s16 + $0x240] ss:$8 sps:$4 sm:$0xff]   ;;  %v14390_v17 = vld [vmem:[%s20237_s16 + $0x270] ss:$8 sps:$4 sm:$0xff]  }
 0xcc8   :  { %9600 = vmatprep.subr.bf16.mxu0 %v14338_v60  ;;  %10166 = vmatprep.subr.bf16.mxu1 %v14431_v22  ;;  %v14383_v31 = vld [vmem:[%s20237_s16 + $0x244] ss:$8 sps:$4 sm:$0xff]   ;;  %v14387_v61 = vld [vmem:[%s20237_s16 + $0x260] ss:$8 sps:$4 sm:$0xff]   ;;  %v14392_v60 = vld [vmem:[%s20237_s16 + $0x274] ss:$8 sps:$4 sm:$0xff]  }
 0xcc9   :  { %v14389_v6 = vld [vmem:[%s20237_s16 + $0x264] ss:$8 sps:$4 sm:$0xff]   ;;  %v14393_v26 = vld [vmem:[%s20237_s16 + $0x280] ss:$8 sps:$4 sm:$0xff]  }
 0xcca   :  { %10167 = vmatpush1.bf16.msra.mxu1 %v14429_v47  ;;  %v14395_v14 = vld [vmem:[%s20237_s16 + $0x284] ss:$8 sps:$4 sm:$0xff]   ;;  %v14399_v22 = vld [vmem:[%s20237_s16 + $0x2a0] ss:$8 sps:$4 sm:$0xff]  }
 0xccb   :  { %9601 = vmatpush1.bf16.msra.mxu0 %v14336_v29  ;;  %10168 = vmatprep.subr.bf16.mxu1 %v14434_v37  ;;  %v14398_v29 = vld [vmem:[%s20237_s16 + $0x294] ss:$8 sps:$4 sm:$0xff]   ;;  %v14401_v62 = vld [vmem:[%s20237_s16 + $0x2a4] ss:$8 sps:$4 sm:$0xff]   ;;  %v14405_v37 = vld [vmem:[%s20237_s16 + $0x2c0] ss:$8 sps:$4 sm:$0xff]  }
 0xccc   :  { %9602 = vmatprep.subr.bf16.mxu0 %v14341_v53  ;;  %v14396_v53 = vld [vmem:[%s20237_s16 + $0x290] ss:$8 sps:$4 sm:$0xff]   ;;  %v14407_v47 = vld [vmem:[%s20237_s16 + $0x2c4] ss:$8 sps:$4 sm:$0xff]  }
 0xcce   :  { %10169 = vmatpush1.bf16.msra.mxu1 %v14432_v48  ;;  %v14413_v48 = vld [vmem:[%s20237_s16 + $0x2e4] ss:$8 sps:$4 sm:$0xff]  }
 0xccf   :  { %9603 = vmatpush1.bf16.msra.mxu0 %v14339_v5  ;;  %10170 = vmatprep.subr.bf16.mxu1 %v14437_v49  ;;  %v14404_v5 = vld [vmem:[%s20237_s16 + $0x2b4] ss:$8 sps:$4 sm:$0xff]   ;;  %v14411_v49 = vld [vmem:[%s20237_s16 + $0x2e0] ss:$8 sps:$4 sm:$0xff]  }
 0xcd0   :  { %9604 = vmatprep.subr.bf16.mxu0 %v14344_v12  ;;  %v14402_v12 = vld [vmem:[%s20237_s16 + $0x2b0] ss:$8 sps:$4 sm:$0xff]  }
 0xcd2   :  { %10171 = vmatpush1.bf16.msra.mxu1 %v14435_v51  ;;  %v14455_v51 = vld [vmem:[%s20239_s18 + $0x1c4] ss:$8 sps:$4 sm:$0xff]  }
 0xcd3   :  { %9605 = vmatpush1.bf16.msra.mxu0 %v14342_v43  ;;  %10172 = vmatprep.subr.bf16.mxu1 %v14440_v35  ;;  %v14410_v43 = vld [vmem:[%s20237_s16 + $0x2d4] ss:$8 sps:$4 sm:$0xff]   ;;  %v14453_v35 = vld [vmem:[%s20239_s18 + $0x1c0] ss:$8 sps:$4 sm:$0xff]  }
 0xcd4   :  { %9606 = vmatprep.subr.bf16.mxu0 %v14347_v21  ;;  %v14408_v21 = vld [vmem:[%s20237_s16 + $0x2d0] ss:$8 sps:$4 sm:$0xff]  }
 0xcd6   :  { %10173 = vmatpush1.bf16.msra.mxu1 %v14438_v8  ;;  %v14462_v8 = vld [vmem:[%s20239_s18 + $0x1f0] ss:$8 sps:$4 sm:$0xff]  }
 0xcd7   :  { %9607 = vmatpush1.bf16.msra.mxu0 %v14345_v57  ;;  %10174 = vmatprep.subr.bf16.mxu1 %v14443_v1  ;;  %v14416_v57 = vld [vmem:[%s20237_s16 + $0x2f4] ss:$8 sps:$4 sm:$0xff]   ;;  %v14467_v1 = vld [vmem:[%s20239_s18 + $0x4] ss:$8 sps:$4 sm:$0xff]  }
 0xcd8   :  { %9608 = vmatprep.subr.bf16.mxu0 %v14350_v2  ;;  %v14414_v2 = vld [vmem:[%s20237_s16 + $0x2f0] ss:$8 sps:$4 sm:$0xff]  }
 0xcda   :  { %10175 = vmatpush1.bf16.msra.mxu1 %v14441_v10 }
 0xcdb   :  { %9609 = vmatpush1.bf16.msra.mxu0 %v14348_v41  ;;  %10176 = vmatprep.subr.bf16.mxu1 %v14446_v28  ;;  %v14458_v41 = vld [vmem:[%s20239_s18 + $0x1d4] ss:$8 sps:$4 sm:$0xff]  }
 0xcdc   :  { %9610 = vmatprep.subr.bf16.mxu0 %v14353_v39  ;;  %v14464_v39 = vld [vmem:[%s20239_s18 + $0x1f4] ss:$8 sps:$4 sm:$0xff]  }
 0xcde   :  { %10177 = vmatpush1.bf16.msra.mxu1 %v14444_v24 }
 0xcdf   :  { %9611 = vmatpush1.bf16.msra.mxu0 %v14351_v36  ;;  %10178 = vmatprep.subr.bf16.mxu1 %v14449_v40  ;;  %v9143_v36 = vld [vmem:[#allocation10] sm:$0x3] }
 0xce0   :  { %9612 = vmatprep.subr.bf16.mxu0 %v14356_v42  ;;  %v9905_v10 = vrot.slane %v9143_v36, %v20542_v46  ;;  %v9909_v40 = vrot.slane %v9143_v36, %v17757_v30  ;;  %v14602_v36 = vld [vmem:[%s20241_s20 + $0x264] ss:$8 sps:$4 sm:$0xff]  }
 0xce2   :  { %10179 = vmatpush1.bf16.msra.mxu1 %v14447_v11 }
 0xce3   :  { %9613 = vmatpush1.bf16.msra.mxu0 %v14354_v38  ;;  %10180 = vmatprep.subr.bf16.mxu1 %v14452_v50 }
 0xce4   :  { %9614 = vmatprep.subr.bf16.mxu0 %v14359_v32 }
 0xce6   :  { %10181 = vmatpush1.bf16.msra.mxu1 %v14450_v34 }
 0xce7   :  { %9615 = vmatpush1.bf16.msra.mxu0 %v14357_v13  ;;  %10182 = vmatprep.subr.bf16.mxu1 %v14455_v51  ;;  %v14588_v51 = vld [vmem:[%s20241_s20 + $0x240] ss:$8 sps:$4 sm:$0xff]  }
 0xce8   :  { %9616 = vmatprep.subr.bf16.mxu0 %v14362_v23 }
 0xcea   :  { %10183 = vmatpush1.bf16.msra.mxu1 %v14453_v35  ;;  %v14590_v35 = vld [vmem:[%s20241_s20 + $0x244] ss:$8 sps:$4 sm:$0xff]  }
 0xceb   :  { %9617 = vmatpush1.bf16.msra.mxu0 %v14360_v63  ;;  %10184 = vmatprep.subr.bf16.mxu1 %v14458_v41  ;;  %v14485_v41 = vld [vmem:[%s20239_s18 + $0x64] ss:$8 sps:$4 sm:$0xff]  }
 0xcec   :  { %9618 = vmatprep.subr.bf16.mxu0 %v14365_v7 }
 0xcef   :  { %9619 = vmatpush1.bf16.msra.mxu0 %v14363_v9 }
 0xcf0   :  { %9620 = vmatprep.subr.bf16.mxu0 %v14368_v52 }
 0xcf3   :  { %9621 = vmatpush1.bf16.msra.mxu0 %v14366_v33 }
 0xcf4   :  { %9840 = vmatprep.subr.bf16.mxu0 %v14371_v45 }
 0xcf6   :  { %9623 = vmatmul.mubr.bf16.vlgmr.msra.gmra.mrb[128].mxu0 %v9176_v27 }
 0xcf7   :  { %9632 = vmatprep.mubr.bf16.mxu0 %v19379_v3  ;;  %9841 = vmatpush1.bf16.msra.mxu0 %v14369_v54  ;;  %v14378_v3 = vld [vmem:[%s20237_s16 + $0x230] ss:$8 sps:$4 sm:$0xff]  }
 0xcf8   :  { %9842 = vmatprep.subr.bf16.mxu0 %v14374_v59 }
 0xcfb   :  { %9843 = vmatpush1.bf16.msra.mxu0 %v14372_v4 }
 0xcfc   :  { %9844 = vmatprep.subr.bf16.mxu0 %v14377_v20 }
 0xcfe   :  { %9633 = vmatmul.mubr.bf16.gmra.mrb[132].mxu0 %v19373_v16  ;;  %v14386_v16 = vld [vmem:[%s20237_s16 + $0x254] ss:$8 sps:$4 sm:$0xff]  }
 0xcff   :  { %9845 = vmatpush1.bf16.msra.mxu0 %v14375_v0  ;;  %9872 = vmatprep.mubr.bf16.mxu0 %v19359_v25  ;;  %v14384_v25 = vld [vmem:[%s20237_s16 + $0x250] ss:$8 sps:$4 sm:$0xff]  }
 0xd00   :  { %9846 = vmatprep.subr.bf16.mxu0 %v14380_v15 }
 0xd03   :  { %9847 = vmatpush1.bf16.msra.mxu0 %v14378_v3 }
 0xd04   :  { %9848 = vmatprep.subr.bf16.mxu0 %v14383_v31 }
 0xd07   :  { %9849 = vmatpush1.bf16.msra.mxu0 %v14381_v19 }
 0xd08   :  { %9850 = vmatprep.subr.bf16.mxu0 %v14386_v16  ;;  %v14465_v16 = vld [vmem:[%s20239_s18] ss:$8 sps:$4 sm:$0xff]  }
 0xd0b   :  { %9851 = vmatpush1.bf16.msra.mxu0 %v14384_v25 }
 0xd0c   :  { %9852 = vmatprep.subr.bf16.mxu0 %v14389_v6  ;;  %v14470_v6 = vld [vmem:[%s20239_s18 + $0x14] ss:$8 sps:$4 sm:$0xff]  }
 0xd0f   :  { %9853 = vmatpush1.bf16.msra.mxu0 %v14387_v61 }
 0xd10   :  { %9854 = vmatprep.subr.bf16.mxu0 %v14392_v60 }
 0xd13   :  { %9855 = vmatpush1.bf16.msra.mxu0 %v14390_v17  ;;  %v14468_v17 = vld [vmem:[%s20239_s18 + $0x10] ss:$8 sps:$4 sm:$0xff]  }
 0xd14   :  { %9856 = vmatprep.subr.bf16.mxu0 %v14395_v14  ;;  %v14564_v14 = vld [vmem:[%s20241_s20 + $0x200] ss:$8 sps:$4 sm:$0xff]  }
 0xd17   :  { %9857 = vmatpush1.bf16.msra.mxu0 %v14393_v26  ;;  %v14566_v26 = vld [vmem:[%s20241_s20 + $0x204] ss:$8 sps:$4 sm:$0xff]  }
 0xd18   :  { %9858 = vmatprep.subr.bf16.mxu0 %v14398_v29  ;;  %v14473_v29 = vld [vmem:[%s20239_s18 + $0x24] ss:$8 sps:$4 sm:$0xff]  }
 0xd1b   :  { %9859 = vmatpush1.bf16.msra.mxu0 %v14396_v53  ;;  %v14471_v53 = vld [vmem:[%s20239_s18 + $0x20] ss:$8 sps:$4 sm:$0xff]  }
 0xd1c   :  { %9860 = vmatprep.subr.bf16.mxu0 %v14401_v62  ;;  %v14570_v62 = vld [vmem:[%s20241_s20 + $0x210] ss:$8 sps:$4 sm:$0xff]  }
 0xd1f   :  { %9861 = vmatpush1.bf16.msra.mxu0 %v14399_v22  ;;  %v14572_v22 = vld [vmem:[%s20241_s20 + $0x214] ss:$8 sps:$4 sm:$0xff]  }
 0xd20   :  { %9862 = vmatprep.subr.bf16.mxu0 %v14404_v5  ;;  %v14476_v5 = vld [vmem:[%s20239_s18 + $0x34] ss:$8 sps:$4 sm:$0xff]  }
 0xd23   :  { %9863 = vmatpush1.bf16.msra.mxu0 %v14402_v12  ;;  %v14474_v12 = vld [vmem:[%s20239_s18 + $0x30] ss:$8 sps:$4 sm:$0xff]  }
 0xd24   :  { %9864 = vmatprep.subr.bf16.mxu0 %v14407_v47  ;;  %v14576_v47 = vld [vmem:[%s20241_s20 + $0x220] ss:$8 sps:$4 sm:$0xff]  }
 0xd27   :  { %9865 = vmatpush1.bf16.msra.mxu0 %v14405_v37  ;;  %v14578_v37 = vld [vmem:[%s20241_s20 + $0x224] ss:$8 sps:$4 sm:$0xff]  }
 0xd28   :  { %9866 = vmatprep.subr.bf16.mxu0 %v14410_v43  ;;  %v14479_v43 = vld [vmem:[%s20239_s18 + $0x44] ss:$8 sps:$4 sm:$0xff]  }
 0xd2b   :  { %9867 = vmatpush1.bf16.msra.mxu0 %v14408_v21  ;;  %v14477_v21 = vld [vmem:[%s20239_s18 + $0x40] ss:$8 sps:$4 sm:$0xff]  }
 0xd2c   :  { %9868 = vmatprep.subr.bf16.mxu0 %v14413_v48  ;;  %v14582_v48 = vld [vmem:[%s20241_s20 + $0x230] ss:$8 sps:$4 sm:$0xff]  }
 0xd2f   :  { %9869 = vmatpush1.bf16.msra.mxu0 %v14411_v49  ;;  %v14584_v49 = vld [vmem:[%s20241_s20 + $0x234] ss:$8 sps:$4 sm:$0xff]  }
 0xd30   :  { %9870 = vmatprep.subr.bf16.mxu0 %v14416_v57  ;;  %v14482_v57 = vld [vmem:[%s20239_s18 + $0x54] ss:$8 sps:$4 sm:$0xff]  }
 0xd33   :  { %9871 = vmatpush1.bf16.msra.mxu0 %v14414_v2  ;;  %v14480_v2 = vld [vmem:[%s20239_s18 + $0x50] ss:$8 sps:$4 sm:$0xff]  }
 0xd34   :  { %10896 = vmatprep.subr.bf16.mxu0 %v14566_v26  ;;  %v14513_v26 = vld [vmem:[%s20239_s18 + $0x200] ss:$8 sps:$4 sm:$0xff]  }
 0xd36   :  { %9873 = vmatmul.mubr.bf16.vlgmr.msra.gmra.mrb[128].mxu0 %v19354_v44  ;;  %v14456_v44 = vld [vmem:[%s20239_s18 + $0x1d0] ss:$8 sps:$4 sm:$0xff]  }
 0xd37   :  { %9882 = vmatprep.mubr.bf16.mxu0 %v19415_v58  ;;  %10185 = vmatpush1.bf16.msra.mxu1 %v14456_v44  ;;  %v14459_v58 = vld [vmem:[%s20239_s18 + $0x1e0] ss:$8 sps:$4 sm:$0xff]  }
 0xd38   :  { %10897 = vmatpush1.bf16.msra.mxu0 %v14564_v14  ;;  %v14483_v44 = vld [vmem:[%s20239_s18 + $0x60] ss:$8 sps:$4 sm:$0xff]   ;;  %v14515_v14 = vld [vmem:[%s20239_s18 + $0x204] ss:$8 sps:$4 sm:$0xff]  }
 0xd39   :  { %10898 = vmatprep.subr.bf16.mxu0 %v14572_v22  ;;  %v14521_v22 = vld [vmem:[%s20239_s18 + $0x224] ss:$8 sps:$4 sm:$0xff]  }
 0xd3c   :  { %10899 = vmatpush1.bf16.msra.mxu0 %v14570_v62  ;;  %v14516_v62 = vld [vmem:[%s20239_s18 + $0x210] ss:$8 sps:$4 sm:$0xff]  }
 0xd3d   :  { %10900 = vmatprep.subr.bf16.mxu0 %v14578_v37  ;;  %v14533_v37 = vld [vmem:[%s20239_s18 + $0x264] ss:$8 sps:$4 sm:$0xff]  }
 0xd3e   :  { %9883 = vmatmul.mubr.bf16.gmra.mrb[132].mxu0 %v19409_v18  ;;  %v14461_v18 = vld [vmem:[%s20239_s18 + $0x1e4] ss:$8 sps:$4 sm:$0xff]  }
 0xd3f   :  { %10186 = vmatprep.subr.bf16.mxu1 %v14461_v18  ;;  %v14594_v18 = vld [vmem:[%s20241_s20 + $0x250] ss:$8 sps:$4 sm:$0xff]  }
 0xd40   :  { %10187 = vmatpush1.bf16.msra.mxu1 %v14459_v58  ;;  %10901 = vmatpush1.bf16.msra.mxu0 %v14576_v47  ;;  %v14596_v58 = vld [vmem:[%s20241_s20 + $0x254] ss:$8 sps:$4 sm:$0xff]   ;;  %v14528_v47 = vld [vmem:[%s20239_s18 + $0x250] ss:$8 sps:$4 sm:$0xff]  }
 0xd41   :  { %10188 = vmatprep.subr.bf16.mxu1 %v14464_v39  ;;  %10902 = vmatprep.subr.bf16.mxu0 %v14584_v49  ;;  %v14488_v39 = vld [vmem:[%s20239_s18 + $0x74] ss:$8 sps:$4 sm:$0xff]   ;;  %v14539_v49 = vld [vmem:[%s20239_s18 + $0x284] ss:$8 sps:$4 sm:$0xff]  }
 0xd44   :  { %10189 = vmatpush1.bf16.msra.mxu1 %v14462_v8  ;;  %10903 = vmatpush1.bf16.msra.mxu0 %v14582_v48  ;;  %v14486_v8 = vld [vmem:[%s20239_s18 + $0x70] ss:$8 sps:$4 sm:$0xff]  }
 0xd45   :  { %10361 = vmatprep.subr.bf16.mxu1 %v14467_v1  ;;  %10904 = vmatprep.subr.bf16.mxu0 %v14590_v35  ;;  %v14600_v1 = vld [vmem:[%s20241_s20 + $0x260] ss:$8 sps:$4 sm:$0xff]   ;;  %v14534_v48 = vld [vmem:[%s20239_s18 + $0x270] ss:$8 sps:$4 sm:$0xff]   ;;  %v14545_v35 = vld [vmem:[%s20239_s18 + $0x2a4] ss:$8 sps:$4 sm:$0xff]  }
 0xd48   :  { %10905 = vmatpush1.bf16.msra.mxu0 %v14588_v51  ;;  %v14540_v51 = vld [vmem:[%s20239_s18 + $0x290] ss:$8 sps:$4 sm:$0xff]  }
 0xd49   :  { %10906 = vmatprep.subr.bf16.mxu0 %v14596_v58  ;;  %v14551_v58 = vld [vmem:[%s20239_s18 + $0x2c4] ss:$8 sps:$4 sm:$0xff]  }
 0xd4c   :  { %10907 = vmatpush1.bf16.msra.mxu0 %v14594_v18  ;;  %v14546_v18 = vld [vmem:[%s20239_s18 + $0x2b0] ss:$8 sps:$4 sm:$0xff]  }
 0xd4d   :  { %10908 = vmatprep.subr.bf16.mxu0 %v14602_v36  ;;  %v14557_v36 = vld [vmem:[%s20239_s18 + $0x2e4] ss:$8 sps:$4 sm:$0xff]  }
 0xd50   :  { %10909 = vmatpush1.bf16.msra.mxu0 %v14600_v1  ;;  %v14552_v1 = vld [vmem:[%s20239_s18 + $0x2d0] ss:$8 sps:$4 sm:$0xff]  }
 0xe09   :  { %v9874_v42 = vpop.f32.mrb[128].mxu0 }
 0xe0a   :  { %v9876_v28 = vpop.f32.mrb[129].mxu0  ;;  %v9912_v13 = vadd.f32 %v9905_v10, %v9874_v42  ;;  %v14491_v42 = vld [vmem:[%s20239_s18 + $0x84] ss:$8 sps:$4 sm:$0xff]  }
 0xe0b   :  { %v9878_v38 = vpop.f32.mrb[130].mxu0  ;;  %v9913_v23 = vadd.f32 %v9909_v40, %v9876_v28  ;;  %v14606_v28 = vld [vmem:[%s20241_s20 + $0x270] ss:$8 sps:$4 sm:$0xff]  }
 0xe0c   :  { %v19670_v32 = vadd.f32 %v9905_v10, %v9878_v38  ;;  %v9880_v24 = vpop.f32.mrb[131].mxu0  ;;  %v9920_v52 = vmax.f32 %v9912_v13, 0.0  ;;  %v14608_v38 = vld [vmem:[%s20241_s20 + $0x274] ss:$8 sps:$4 sm:$0xff]   ;;  %v14612_v13 = vld [vmem:[%s20241_s20 + $0x280] ss:$8 sps:$4 sm:$0xff]  }
 0xe0d   :  { %v9915_v11 = vadd.f32 %v9909_v40, %v9880_v24  ;;  %v9921_v27 = vmax.f32 %v9913_v23, 0.0  ;;  %v14494_v24 = vld [vmem:[%s20239_s18 + $0x94] ss:$8 sps:$4 sm:$0xff]   ;;  %10910 = vmatprep.subr.bf16.mxu0 %v14608_v38  ;;  %v14614_v23 = vld [vmem:[%s20241_s20 + $0x284] ss:$8 sps:$4 sm:$0xff]  }
 0xe0e   :  { %v9922_v0 = vmax.f32 %v19670_v32, 0.0  ;;  %10911 = vmatpush1.bf16.msra.mxu0 %v14606_v28  ;;  %v14524_v32 = vld [vmem:[%s20239_s18 + $0x234] ss:$8 sps:$4 sm:$0xff]   ;;  %v14558_v28 = vld [vmem:[%s20239_s18 + $0x2f0] ss:$8 sps:$4 sm:$0xff]  }
 0xe0f   :  { %v9923_v59 = vmax.f32 %v9915_v11, 0.0  ;;  %v14497_v11 = vld [vmem:[%s20239_s18 + $0xa4] ss:$8 sps:$4 sm:$0xff]   ;;  %10912 = vmatprep.subr.bf16.mxu0 %v14614_v23 }
 0xe10   :  { %v14563_v38 = vld [vmem:[%s20241_s20 + $0x104] ss:$8 sps:$4 sm:$0xff]  }
 0xe11   :  { %v9884_v50 = vpop.f32.mrb[132].mxu0  ;;  %v9962_v61 = vpack.c.bf16 %v9923_v59, %v20554_v55  ;;  %v14575_v23 = vld [vmem:[%s20241_s20 + $0x124] ss:$8 sps:$4 sm:$0xff]  }
 0xe12   :  { %v9916_v63 = vadd.f32 %v9905_v10, %v9884_v50  ;;  %v9886_v7 = vpop.f32.mrb[133].mxu0  ;;  %10913 = vmatpush1.bf16.msra.mxu0 %v14612_v13  ;;  %v14495_v50 = vld [vmem:[%s20239_s18 + $0xa0] ss:$8 sps:$4 sm:$0xff]   ;;  %v14567_v13 = vld [vmem:[%s20241_s20 + $0x110] ss:$8 sps:$4 sm:$0xff]  }
 0xe13   :  { %v9917_v34 = vadd.f32 %v9909_v40, %v9886_v7  ;;  %v9888_v9 = vpop.f32.mrb[134].mxu0  ;;  %v14620_v7 = vld [vmem:[%s20241_s20 + $0x294] ss:$8 sps:$4 sm:$0xff]  }
 0xe14   :  { %v9924_v33 = vmax.f32 %v9916_v63, 0.0  ;;  %v9918_v45 = vadd.f32 %v9905_v10, %v9888_v9  ;;  %v9890_v54 = vpop.f32.mrb[135].mxu0  ;;  %v14489_v10 = vld [vmem:[%s20239_s18 + $0x80] ss:$8 sps:$4 sm:$0xff]   ;;  %v14618_v63 = vld [vmem:[%s20241_s20 + $0x290] ss:$8 sps:$4 sm:$0xff]   ;;  %10914 = vmatprep.subr.bf16.mxu0 %v14620_v7 }
 0xe15   :  { %v9925_v4 = vmax.f32 %v9917_v34, 0.0  ;;  %v9919_v20 = vadd.f32 %v9909_v40, %v9890_v54  ;;  %v14492_v40 = vld [vmem:[%s20239_s18 + $0x90] ss:$8 sps:$4 sm:$0xff]   ;;  %v14500_v34 = vld [vmem:[%s20239_s18 + $0xb4] ss:$8 sps:$4 sm:$0xff]  }
 0xe16   :  { %v9996_v15 = vpack.c.bf16 %v9924_v33, %v9920_v52  ;;  %v9926_v3 = vmax.f32 %v9918_v45, 0.0  ;;  %10915 = vmatpush1.bf16.msra.mxu0 %v14618_v63  ;;  %v14498_v9 = vld [vmem:[%s20239_s18 + $0xb0] ss:$8 sps:$4 sm:$0xff]   ;;  %v14624_v52 = vld [vmem:[%s20241_s20 + $0x2a0] ss:$8 sps:$4 sm:$0xff]  }
 0xe17   :  { %v9997_v31 = vpack.c.bf16 %v9925_v4, %v9921_v27  ;;  %v9927_v19 = vmax.f32 %v9919_v20, 0.0  ;;  %v14626_v33 = vld [vmem:[%s20241_s20 + $0x2a4] ss:$8 sps:$4 sm:$0xff]   ;;  %v14501_v54 = vld [vmem:[%s20239_s18 + $0xc0] ss:$8 sps:$4 sm:$0xff]  }
 0xe18   :  { %v19679_v25 = vpack.c.bf16 %v9926_v3, %v9922_v0  ;;  %v14503_v45 = vld [vmem:[%s20239_s18 + $0xc4] ss:$8 sps:$4 sm:$0xff]   ;;  %10916 = vmatprep.subr.bf16.mxu0 %v14626_v33  ;;  %v14630_v27 = vld [vmem:[%s20241_s20 + $0x2b0] ss:$8 sps:$4 sm:$0xff]   ;;  %v14506_v4 = vld [vmem:[%s20239_s18 + $0xd4] ss:$8 sps:$4 sm:$0xff]  }
 0xe19   :  { %v19685_v60 = vpack.c.bf16 %v9927_v19, %v9923_v59  ;;  %10190 = vmatprep.mubr.bf16.mxu1 %v9997_v31  ;;  %v14632_v59 = vld [vmem:[%s20241_s20 + $0x2b4] ss:$8 sps:$4 sm:$0xff]   ;;  %v14504_v20 = vld [vmem:[%s20239_s18 + $0xd0] ss:$8 sps:$4 sm:$0xff]   ;;  %v14638_v3 = vld [vmem:[%s20241_s20 + $0x2c4] ss:$8 sps:$4 sm:$0xff]  }
 0xe1a   :  { %10191 = vmatmul.mubr.bf16.vlgmr.msra.gmra.mrb[160].mxu1 %v9996_v15  ;;  %10917 = vmatpush1.bf16.msra.mxu0 %v14624_v52  ;;  %v14636_v15 = vld [vmem:[%s20241_s20 + $0x2c0] ss:$8 sps:$4 sm:$0xff]   ;;  %v14509_v31 = vld [vmem:[%s20239_s18 + $0xe4] ss:$8 sps:$4 sm:$0xff]  }
 0xe1b   :  { %10362 = vmatpush1.bf16.msra.mxu1 %v14465_v16  ;;  %10393 = vmatprep.mubr.bf16.mxu1 %v9962_v61  ;;  %v14507_v19 = vld [vmem:[%s20239_s18 + $0xe0] ss:$8 sps:$4 sm:$0xff]   ;;  %v14642_v16 = vld [vmem:[%s20241_s20 + $0x2d0] ss:$8 sps:$4 sm:$0xff]   ;;  %v14512_v61 = vld [vmem:[%s20239_s18 + $0xf4] ss:$8 sps:$4 sm:$0xff]  }
 0xe1c   :  { %10363 = vmatprep.subr.bf16.mxu1 %v14470_v6  ;;  %10918 = vmatprep.subr.bf16.mxu0 %v14632_v59  ;;  %v14644_v6 = vld [vmem:[%s20241_s20 + $0x2d4] ss:$8 sps:$4 sm:$0xff]   ;;  %v14587_v63 = vld [vmem:[%s20241_s20 + $0x144] ss:$8 sps:$4 sm:$0xff]   ;;  %v14585_v7 = vld [vmem:[%s20241_s20 + $0x140] ss:$8 sps:$4 sm:$0xff]  }
 0xe1d   :  { %v14599_v52 = vld [vmem:[%s20241_s20 + $0x164] ss:$8 sps:$4 sm:$0xff]   ;;  %v14597_v33 = vld [vmem:[%s20241_s20 + $0x160] ss:$8 sps:$4 sm:$0xff]  }
 0xe1e   :  { %10919 = vmatpush1.bf16.msra.mxu0 %v14630_v27  ;;  %v14611_v27 = vld [vmem:[%s20241_s20 + $0x184] ss:$8 sps:$4 sm:$0xff]   ;;  %v14609_v59 = vld [vmem:[%s20241_s20 + $0x180] ss:$8 sps:$4 sm:$0xff]  }
 0xe1f   :  { %10364 = vmatpush1.bf16.msra.mxu1 %v14468_v17  ;;  %10920 = vmatprep.subr.bf16.mxu0 %v14638_v3  ;;  %v14510_v17 = vld [vmem:[%s20239_s18 + $0xf0] ss:$8 sps:$4 sm:$0xff]   ;;  %v14621_v3 = vld [vmem:[%s20241_s20 + $0x1a0] ss:$8 sps:$4 sm:$0xff]  }
 0xe20   :  { %10365 = vmatprep.subr.bf16.mxu1 %v14473_v29  ;;  %v9961_v29 = vpack.c.bf16 %v9922_v0, %v20554_v55  ;;  %v14519_v55 = vld [vmem:[%s20239_s18 + $0x220] ss:$8 sps:$4 sm:$0xff]   ;;  %v14522_v0 = vld [vmem:[%s20239_s18 + $0x230] ss:$8 sps:$4 sm:$0xff]  }
 0xe22   :  { %10921 = vmatpush1.bf16.msra.mxu0 %v14636_v15  ;;  %v14623_v15 = vld [vmem:[%s20241_s20 + $0x1a4] ss:$8 sps:$4 sm:$0xff]  }
 0xe23   :  { %10366 = vmatpush1.bf16.msra.mxu1 %v14471_v53  ;;  %10922 = vmatprep.subr.bf16.mxu0 %v14644_v6  ;;  %v14518_v53 = vld [vmem:[%s20239_s18 + $0x214] ss:$8 sps:$4 sm:$0xff]   ;;  %v14633_v6 = vld [vmem:[%s20241_s20 + $0x1c0] ss:$8 sps:$4 sm:$0xff]  }
 0xe24   :  { %10367 = vmatprep.subr.bf16.mxu1 %v14476_v5  ;;  %v14525_v5 = vld [vmem:[%s20239_s18 + $0x240] ss:$8 sps:$4 sm:$0xff]  }
 0xe26   :  { %10923 = vmatpush1.bf16.msra.mxu0 %v14642_v16  ;;  %v14635_v16 = vld [vmem:[%s20241_s20 + $0x1c4] ss:$8 sps:$4 sm:$0xff]  }
 0xe27   :  { %10368 = vmatpush1.bf16.msra.mxu1 %v14474_v12  ;;  %v14530_v12 = vld [vmem:[%s20239_s18 + $0x254] ss:$8 sps:$4 sm:$0xff]  }
 0xe28   :  { %10369 = vmatprep.subr.bf16.mxu1 %v14479_v43  ;;  %v14531_v43 = vld [vmem:[%s20239_s18 + $0x260] ss:$8 sps:$4 sm:$0xff]  }
 0xe2b   :  { %10370 = vmatpush1.bf16.msra.mxu1 %v14477_v21  ;;  %v14536_v21 = vld [vmem:[%s20239_s18 + $0x274] ss:$8 sps:$4 sm:$0xff]  }
 0xe2c   :  { %10371 = vmatprep.subr.bf16.mxu1 %v14482_v57  ;;  %v14537_v57 = vld [vmem:[%s20239_s18 + $0x280] ss:$8 sps:$4 sm:$0xff]  }
 0xe2f   :  { %10372 = vmatpush1.bf16.msra.mxu1 %v14480_v2  ;;  %v14542_v2 = vld [vmem:[%s20239_s18 + $0x294] ss:$8 sps:$4 sm:$0xff]  }
 0xe30   :  { %10373 = vmatprep.subr.bf16.mxu1 %v14485_v41  ;;  %v14543_v41 = vld [vmem:[%s20239_s18 + $0x2a0] ss:$8 sps:$4 sm:$0xff]  }
 0xe33   :  { %10374 = vmatpush1.bf16.msra.mxu1 %v14483_v44  ;;  %v14548_v44 = vld [vmem:[%s20239_s18 + $0x2b4] ss:$8 sps:$4 sm:$0xff]  }
 0xe34   :  { %10375 = vmatprep.subr.bf16.mxu1 %v14488_v39  ;;  %v14549_v39 = vld [vmem:[%s20239_s18 + $0x2c0] ss:$8 sps:$4 sm:$0xff]  }
 0xe37   :  { %10376 = vmatpush1.bf16.msra.mxu1 %v14486_v8  ;;  %v14554_v8 = vld [vmem:[%s20239_s18 + $0x2d4] ss:$8 sps:$4 sm:$0xff]  }
 0xe38   :  { %10377 = vmatprep.subr.bf16.mxu1 %v14491_v42  ;;  %v14555_v42 = vld [vmem:[%s20239_s18 + $0x2e0] ss:$8 sps:$4 sm:$0xff]  }
 0xe3b   :  { %10378 = vmatpush1.bf16.msra.mxu1 %v14489_v10  ;;  %v14560_v10 = vld [vmem:[%s20239_s18 + $0x2f4] ss:$8 sps:$4 sm:$0xff]  }
 0xe3c   :  { %10379 = vmatprep.subr.bf16.mxu1 %v14494_v24  ;;  %v14561_v24 = vld [vmem:[%s20241_s20 + $0x100] ss:$8 sps:$4 sm:$0xff]  }
 0xe3f   :  { %10380 = vmatpush1.bf16.msra.mxu1 %v14492_v40  ;;  %v14569_v40 = vld [vmem:[%s20241_s20 + $0x114] ss:$8 sps:$4 sm:$0xff]  }
 0xe40   :  { %10381 = vmatprep.subr.bf16.mxu1 %v14497_v11  ;;  %v14573_v11 = vld [vmem:[%s20241_s20 + $0x120] ss:$8 sps:$4 sm:$0xff]  }
 0xe43   :  { %10382 = vmatpush1.bf16.msra.mxu1 %v14495_v50  ;;  %v14579_v50 = vld [vmem:[%s20241_s20 + $0x130] ss:$8 sps:$4 sm:$0xff]  }
 0xe44   :  { %10383 = vmatprep.subr.bf16.mxu1 %v14500_v34  ;;  %v14593_v34 = vld [vmem:[%s20241_s20 + $0x154] ss:$8 sps:$4 sm:$0xff]  }
 0xe47   :  { %10384 = vmatpush1.bf16.msra.mxu1 %v14498_v9  ;;  %v14591_v9 = vld [vmem:[%s20241_s20 + $0x150] ss:$8 sps:$4 sm:$0xff]  }
 0xe48   :  { %10385 = vmatprep.subr.bf16.mxu1 %v14503_v45  ;;  %v14605_v45 = vld [vmem:[%s20241_s20 + $0x174] ss:$8 sps:$4 sm:$0xff]  }
 0xe4b   :  { %10386 = vmatpush1.bf16.msra.mxu1 %v14501_v54  ;;  %v14603_v54 = vld [vmem:[%s20241_s20 + $0x170] ss:$8 sps:$4 sm:$0xff]  }
 0xe4c   :  { %10387 = vmatprep.subr.bf16.mxu1 %v14506_v4  ;;  %v14617_v4 = vld [vmem:[%s20241_s20 + $0x194] ss:$8 sps:$4 sm:$0xff]  }
 0xe4f   :  { %10388 = vmatpush1.bf16.msra.mxu1 %v14504_v20  ;;  %v14615_v20 = vld [vmem:[%s20241_s20 + $0x190] ss:$8 sps:$4 sm:$0xff]  }
 0xe50   :  { %10389 = vmatprep.subr.bf16.mxu1 %v14509_v31  ;;  %v14629_v31 = vld [vmem:[%s20241_s20 + $0x1b4] ss:$8 sps:$4 sm:$0xff]  }
 0xe53   :  { %10390 = vmatpush1.bf16.msra.mxu1 %v14507_v19  ;;  %v14627_v19 = vld [vmem:[%s20241_s20 + $0x1b0] ss:$8 sps:$4 sm:$0xff]  }
 0xe54   :  { %10391 = vmatprep.subr.bf16.mxu1 %v14512_v61  ;;  %v14641_v61 = vld [vmem:[%s20241_s20 + $0x1d4] ss:$8 sps:$4 sm:$0xff]  }
 0xe57   :  { %10392 = vmatpush1.bf16.msra.mxu1 %v14510_v17  ;;  %v14639_v17 = vld [vmem:[%s20241_s20 + $0x1d0] ss:$8 sps:$4 sm:$0xff]  }
 0xe58   :  { %10599 = vmatprep.subr.bf16.mxu1 %v14515_v14  ;;  %v14647_v14 = vld [vmem:[%s20241_s20 + $0x1e4] ss:$8 sps:$4 sm:$0xff]  }
 0xe5a   :  { %10394 = vmatmul.mubr.bf16.vlgmr.msra.gmra.mrb[160].mxu1 %v9961_v29  ;;  %v14650_v29 = vld [vmem:[%s20241_s20 + $0x2e4] ss:$8 sps:$4 sm:$0xff]  }
 0xe5b   :  { %10600 = vmatpush1.bf16.msra.mxu1 %v14513_v26  ;;  %10631 = vmatprep.mubr.bf16.mxu1 %v19685_v60  ;;  %v14527_v60 = vld [vmem:[%s20239_s18 + $0x244] ss:$8 sps:$4 sm:$0xff]   ;;  %v14645_v26 = vld [vmem:[%s20241_s20 + $0x1e0] ss:$8 sps:$4 sm:$0xff]  }
 0xe5c   :  { %10601 = vmatprep.subr.bf16.mxu1 %v14518_v53  ;;  %v14648_v53 = vld [vmem:[%s20241_s20 + $0x2e0] ss:$8 sps:$4 sm:$0xff]   ;;  %10924 = vmatprep.subr.bf16.mxu0 %v14650_v29 }
 0xe5d   :  { %10925 = vmatpush1.bf16.msra.mxu0 %v14648_v53  ;;  %v14709_v29 = vld [vmem:[%s20245_s24 + $0x20] sm:$0xff]   ;;  %v14710_v53 = vld [vmem:[%s20245_s24 + $0x28] sm:$0xff]  }
 0xe5f   :  { %10602 = vmatpush1.bf16.msra.mxu1 %v14516_v62  ;;  %v14653_v62 = vld [vmem:[%s20241_s20 + $0x1f4] ss:$8 sps:$4 sm:$0xff]  }
 0xe60   :  { %10603 = vmatprep.subr.bf16.mxu1 %v14521_v22  ;;  %v14651_v22 = vld [vmem:[%s20241_s20 + $0x1f0] ss:$8 sps:$4 sm:$0xff]  }
 0xe63   :  { %10604 = vmatpush1.bf16.msra.mxu1 %v14519_v55  ;;  %v14656_v55 = vld [vmem:[%s20241_s20 + $0x2f4] ss:$8 sps:$4 sm:$0xff]  }
 0xe64   :  { %10605 = vmatprep.subr.bf16.mxu1 %v14524_v32  ;;  %v14654_v32 = vld [vmem:[%s20241_s20 + $0x2f0] ss:$8 sps:$4 sm:$0xff]   ;;  %10926 = vmatprep.subr.bf16.mxu0 %v14656_v55  ;;  %v10665_v55 = vld [vmem:[#allocation13] sm:$0x3] }
 0xe65   :  { %10927 = vmatpush1.bf16.msra.mxu0 %v14654_v32 }
 0xe67   :  { %10606 = vmatpush1.bf16.msra.mxu1 %v14522_v0  ;;  %v14659_v0 = vld [vmem:[%s20243_s22 + $0x4] ss:$8 sps:$4 sm:$0xff]  }
 0xe68   :  { %10607 = vmatprep.subr.bf16.mxu1 %v14527_v60  ;;  %11359 = vmatprep.subr.bf16.mxu0 %v14659_v0  ;;  %v9928_v60 = vld [vmem:[#allocation11] sm:$0x3] }
 0xe6b   :  { %10608 = vmatpush1.bf16.msra.mxu1 %v14525_v5  ;;  %v10650_v5 = vrot.slane %v9928_v60, %v20542_v46 }
 0xe6c   :  { %10609 = vmatprep.subr.bf16.mxu1 %v14530_v12  ;;  %v10654_v12 = vrot.slane %v9928_v60, %v17757_v30  ;;  %v11142_v60 = vrot.slane %v10665_v55, %v20542_v46 }
 0xe6f   :  { %10610 = vmatpush1.bf16.msra.mxu1 %v14528_v47 }
 0xe70   :  { %10611 = vmatprep.subr.bf16.mxu1 %v14533_v37 }
 0xe73   :  { %10612 = vmatpush1.bf16.msra.mxu1 %v14531_v43 }
 0xe74   :  { %10613 = vmatprep.subr.bf16.mxu1 %v14536_v21 }
 0xe77   :  { %10614 = vmatpush1.bf16.msra.mxu1 %v14534_v48 }
 0xe78   :  { %10615 = vmatprep.subr.bf16.mxu1 %v14539_v49 }
 0xe7b   :  { %10616 = vmatpush1.bf16.msra.mxu1 %v14537_v57 }
 0xe7c   :  { %10617 = vmatprep.subr.bf16.mxu1 %v14542_v2 }
 0xe7f   :  { %10618 = vmatpush1.bf16.msra.mxu1 %v14540_v51 }
 0xe80   :  { %10619 = vmatprep.subr.bf16.mxu1 %v14545_v35 }
 0xe83   :  { %10620 = vmatpush1.bf16.msra.mxu1 %v14543_v41 }
 0xe84   :  { %10621 = vmatprep.subr.bf16.mxu1 %v14548_v44 }
 0xe87   :  { %10622 = vmatpush1.bf16.msra.mxu1 %v14546_v18 }
 0xe88   :  { %10623 = vmatprep.subr.bf16.mxu1 %v14551_v58 }
 0xe8b   :  { %10624 = vmatpush1.bf16.msra.mxu1 %v14549_v39 }
 0xe8c   :  { %10625 = vmatprep.subr.bf16.mxu1 %v14554_v8  ;;  %v14657_v8 = vld [vmem:[%s20243_s22] ss:$8 sps:$4 sm:$0xff]  }
 0xe8f   :  { %10626 = vmatpush1.bf16.msra.mxu1 %v14552_v1 }
 0xe90   :  { %10627 = vmatprep.subr.bf16.mxu1 %v14557_v36  ;;  %v14662_v36 = vld [vmem:[%s20243_s22 + $0x14] ss:$8 sps:$4 sm:$0xff]  }
 0xe93   :  { %10628 = vmatpush1.bf16.msra.mxu1 %v14555_v42  ;;  %v14660_v42 = vld [vmem:[%s20243_s22 + $0x10] ss:$8 sps:$4 sm:$0xff]  }
 0xe94   :  { %10629 = vmatprep.subr.bf16.mxu1 %v14560_v10  ;;  %v14665_v10 = vld [vmem:[%s20243_s22 + $0x24] ss:$8 sps:$4 sm:$0xff]  }
 0xe97   :  { %10630 = vmatpush1.bf16.msra.mxu1 %v14558_v28  ;;  %v14663_v28 = vld [vmem:[%s20243_s22 + $0x20] ss:$8 sps:$4 sm:$0xff]  }
 0xe98   :  { %11097 = vmatprep.subr.bf16.mxu1 %v14563_v38  ;;  %v14668_v38 = vld [vmem:[%s20243_s22 + $0x34] ss:$8 sps:$4 sm:$0xff]  }
 0xe9a   :  { %10632 = vmatmul.mubr.bf16.vlgmr.msra.gmra.mrb[160].mxu1 %v19679_v25  ;;  %v14581_v25 = vld [vmem:[%s20241_s20 + $0x134] ss:$8 sps:$4 sm:$0xff]  }
 0xe9b   :  { %11098 = vmatpush1.bf16.msra.mxu1 %v14561_v24  ;;  %v14666_v24 = vld [vmem:[%s20243_s22 + $0x30] ss:$8 sps:$4 sm:$0xff]  }
 0xe9c   :  { %11099 = vmatprep.subr.bf16.mxu1 %v14569_v40  ;;  %v14671_v40 = vld [vmem:[%s20243_s22 + $0x44] ss:$8 sps:$4 sm:$0xff]  }
 0xe9f   :  { %11100 = vmatpush1.bf16.msra.mxu1 %v14567_v13  ;;  %v14669_v13 = vld [vmem:[%s20243_s22 + $0x40] ss:$8 sps:$4 sm:$0xff]  }
 0xea0   :  { %11101 = vmatprep.subr.bf16.mxu1 %v14575_v23  ;;  %v14674_v23 = vld [vmem:[%s20243_s22 + $0x54] ss:$8 sps:$4 sm:$0xff]  }
 0xea3   :  { %11102 = vmatpush1.bf16.msra.mxu1 %v14573_v11  ;;  %v14672_v11 = vld [vmem:[%s20243_s22 + $0x50] ss:$8 sps:$4 sm:$0xff]  }
 0xea4   :  { %11103 = vmatprep.subr.bf16.mxu1 %v14581_v25  ;;  %v14677_v25 = vld [vmem:[%s20243_s22 + $0x64] ss:$8 sps:$4 sm:$0xff]  }
 0xea7   :  { %11104 = vmatpush1.bf16.msra.mxu1 %v14579_v50  ;;  %v14675_v50 = vld [vmem:[%s20243_s22 + $0x60] ss:$8 sps:$4 sm:$0xff]  }
 0xea8   :  { %11105 = vmatprep.subr.bf16.mxu1 %v14587_v63  ;;  %v14680_v63 = vld [vmem:[%s20243_s22 + $0x74] ss:$8 sps:$4 sm:$0xff]  }
 0xeab   :  { %11106 = vmatpush1.bf16.msra.mxu1 %v14585_v7  ;;  %v14678_v7 = vld [vmem:[%s20243_s22 + $0x70] ss:$8 sps:$4 sm:$0xff]  }
 0xeac   :  { %11107 = vmatprep.subr.bf16.mxu1 %v14593_v34  ;;  %v14683_v34 = vld [vmem:[%s20243_s22 + $0x84] ss:$8 sps:$4 sm:$0xff]  }
 0xeaf   :  { %11108 = vmatpush1.bf16.msra.mxu1 %v14591_v9  ;;  %v14681_v9 = vld [vmem:[%s20243_s22 + $0x80] ss:$8 sps:$4 sm:$0xff]  }
 0xeb0   :  { %11109 = vmatprep.subr.bf16.mxu1 %v14599_v52  ;;  %v14686_v52 = vld [vmem:[%s20243_s22 + $0x94] ss:$8 sps:$4 sm:$0xff]  }
 0xeb3   :  { %11110 = vmatpush1.bf16.msra.mxu1 %v14597_v33  ;;  %v14684_v33 = vld [vmem:[%s20243_s22 + $0x90] ss:$8 sps:$4 sm:$0xff]  }
 0xeb4   :  { %11111 = vmatprep.subr.bf16.mxu1 %v14605_v45  ;;  %v14689_v45 = vld [vmem:[%s20243_s22 + $0xa4] ss:$8 sps:$4 sm:$0xff]  }
 0xeb7   :  { %11112 = vmatpush1.bf16.msra.mxu1 %v14603_v54  ;;  %v14687_v54 = vld [vmem:[%s20243_s22 + $0xa0] ss:$8 sps:$4 sm:$0xff]  }
 0xeb8   :  { %11113 = vmatprep.subr.bf16.mxu1 %v14611_v27  ;;  %v14692_v27 = vld [vmem:[%s20243_s22 + $0xb4] ss:$8 sps:$4 sm:$0xff]  }
 0xebb   :  { %11114 = vmatpush1.bf16.msra.mxu1 %v14609_v59  ;;  %v14690_v59 = vld [vmem:[%s20243_s22 + $0xb0] ss:$8 sps:$4 sm:$0xff]  }
 0xebc   :  { %11115 = vmatprep.subr.bf16.mxu1 %v14617_v4  ;;  %v14695_v4 = vld [vmem:[%s20243_s22 + $0xc4] ss:$8 sps:$4 sm:$0xff]  }
 0xebf   :  { %11116 = vmatpush1.bf16.msra.mxu1 %v14615_v20  ;;  %v14693_v20 = vld [vmem:[%s20243_s22 + $0xc0] ss:$8 sps:$4 sm:$0xff]  }
 0xec0   :  { %11117 = vmatprep.subr.bf16.mxu1 %v14623_v15  ;;  %v14698_v15 = vld [vmem:[%s20243_s22 + $0xd4] ss:$8 sps:$4 sm:$0xff]  }
 0xec3   :  { %11118 = vmatpush1.bf16.msra.mxu1 %v14621_v3  ;;  %v14696_v3 = vld [vmem:[%s20243_s22 + $0xd0] ss:$8 sps:$4 sm:$0xff]  }
 0xec4   :  { %11119 = vmatprep.subr.bf16.mxu1 %v14629_v31  ;;  %v14701_v31 = vld [vmem:[%s20243_s22 + $0xe4] ss:$8 sps:$4 sm:$0xff]  }
 0xec7   :  { %11120 = vmatpush1.bf16.msra.mxu1 %v14627_v19  ;;  %v14699_v19 = vld [vmem:[%s20243_s22 + $0xe0] ss:$8 sps:$4 sm:$0xff]  }
 0xec8   :  { %11121 = vmatprep.subr.bf16.mxu1 %v14635_v16  ;;  %v14704_v16 = vld [vmem:[%s20243_s22 + $0xf4] ss:$8 sps:$4 sm:$0xff]  }
 0xecb   :  { %11122 = vmatpush1.bf16.msra.mxu1 %v14633_v6  ;;  %v14702_v6 = vld [vmem:[%s20243_s22 + $0xf0] ss:$8 sps:$4 sm:$0xff]  }
 0xecc   :  { %11123 = vmatprep.subr.bf16.mxu1 %v14641_v61  ;;  %v14705_v61 = vld [vmem:[%s20245_s24] sm:$0xff]  }
 0xecf   :  { %11124 = vmatpush1.bf16.msra.mxu1 %v14639_v17  ;;  %v14706_v17 = vld [vmem:[%s20245_s24 + $0x8] sm:$0xff]  }
 0xed0   :  { %11125 = vmatprep.subr.bf16.mxu1 %v14647_v14  ;;  %v14707_v14 = vld [vmem:[%s20245_s24 + $0x10] sm:$0xff]  }
 0xed3   :  { %11126 = vmatpush1.bf16.msra.mxu1 %v14645_v26  ;;  %v14708_v26 = vld [vmem:[%s20245_s24 + $0x18] sm:$0xff]  }
 0xed4   :  { %11127 = vmatprep.subr.bf16.mxu1 %v14653_v62  ;;  %v14711_v62 = vld [vmem:[%s20245_s24 + $0x30] sm:$0xff]  }
 0xed7   :  { %11128 = vmatpush1.bf16.msra.mxu1 %v14651_v22  ;;  %v14712_v22 = vld [vmem:[%s20245_s24 + $0x38] sm:$0xff]  }
 0xed8   :  { %11493 = vmatprep.subr.bf16.mxu1 %v20537_v56 }
 0xf6d   :  { %v10633_v47 = vpop.f32.mrb[160].mxu1 }
 0xf6e   :  { %v10657_v37 = vadd.f32 %v10650_v5, %v10633_v47  ;;  %v10635_v43 = vpop.f32.mrb[161].mxu1  ;;  %v11146_v47 = vrot.slane %v10665_v55, %v17757_v30 }
 0xf6f   :  { %v10658_v21 = vadd.f32 %v10654_v12, %v10635_v43  ;;  %v10637_v48 = vpop.f32.mrb[162].mxu1 }
 0xf70   :  { %v10661_v49 = vmax.f32 %v10657_v37, 0.0  ;;  %v10659_v57 = vadd.f32 %v10650_v5, %v10637_v48  ;;  %v10639_v2 = vpop.f32.mrb[163].mxu1 }
 0xf71   :  { %v10662_v51 = vmax.f32 %v10658_v21, 0.0  ;;  %v10660_v35 = vadd.f32 %v10654_v12, %v10639_v2 }
 0xf72   :  { %v10663_v41 = vmax.f32 %v10659_v57, 0.0  ;;  %v10699_v58 = vpack.c.bf16 %v10661_v49, %v10661_v49 }
 0xf73   :  { %v10700_v44 = vpack.c.bf16 %v10662_v51, %v10662_v51  ;;  %v10664_v18 = vmax.f32 %v10660_v35, 0.0 }
 0xf74   :  { %v10734_v1 = vpack.c.bf16 %v10663_v41, %v10663_v41 }
 0xf75   :  { %v10735_v39 = vpack.c.bf16 %v10664_v18, %v10664_v18  ;;  %11129 = vmatprep.mubr.bf16.mxu1 %v10700_v44 }
 0xf76   :  { %11130 = vmatmul.mubr.bf16.vlgmr.msra.gmra.mrb[164].mxu1 %v10699_v58  ;;  %v14713_v58 = vld [vmem:[%s20245_s24 + $0x40] sm:$0xff]  }
 0xf77   :  { %10928 = vmatprep.mubr.bf16.mxu0 %v10735_v39  ;;  %11494 = vmatpush1.bf16.msra.mxu1 %v14705_v61  ;;  %v14714_v39 = vld [vmem:[%s20245_s24 + $0x48] ss:$0 sps:$4 sm:$0x77]   ;;  %s14966_s24 = smov [#allocation17]  }
 0xf78   :  { %10929 = vmatmul.mubr.bf16.vlgmr.msra.gmra.mrb[136].mxu0 %v10734_v1  ;;  %11495 = vmatprep.subr.bf16.mxu1 %v20537_v56  ;;  %v11187_v1 = vld [vmem:[#allocation14] sm:$0x3]  ;;  %s11541_s3 = sshll.u32 %s14966_s24, 4  ;;  %s11542_s3 = int_to_ptr.vmem [resolvable:$true] %s11541_s3 }
 0xf79   :  { %11360 = vmatpush1.bf16.msra.mxu0 %v14657_v8  ;;  %v11491_v8 = vsel %vm11489_vm9, %v14714_v39, 0  ;;  %s14917_s11 = scalar_lea.vmem %s11542_s3, 32  ;;  %p14922_p3 = scmp.lt.s32.totalorder %s11542_s3, %s11542_s3 }
 0xf7a   :  { %11361 = vmatprep.subr.bf16.mxu0 %v14662_v36  ;;  %v11192_v36 = vrot.slane %v11187_v1, %v20542_v46  ;;  %p14918_p2 = scmp.ne.s32.totalorder %s11542_s3, %s14917_s11  ;;  %p14923_p4 = scmp.lt.s32.totalorder %s14917_s11, %s14917_s11 }
 0xf7b   :  { %11496 = vmatpush1.bf16.msra.mxu1 %v14706_v17 }
 0xf7c   :  { %11497 = vmatprep.subr.bf16.mxu1 %v20537_v56  ;;  %p14924_p5 = por %p14923_p4, %p14922_p3 }
 0xf7d   :  { %11362 = vmatpush1.bf16.msra.mxu0 %v14660_v42  ;;  %v11196_v42 = vrot.slane %v11187_v1, %v17757_v30 }
 0xf7e   :  { %11363 = vmatprep.subr.bf16.mxu0 %v14665_v10  ;;  %p14925_p6 = pnand %p14924_p5, %p14918_p2 }
 0xf7f   :  { %11498 = vmatpush1.bf16.msra.mxu1 %v14707_v14 }
 0xf80   :  { %11499 = vmatprep.subr.bf16.mxu1 %v20537_v56 }
 0xf81   :  { %11364 = vmatpush1.bf16.msra.mxu0 %v14663_v28 }
 0xf82   :  { %11365 = vmatprep.subr.bf16.mxu0 %v14668_v38 }
 0xf83   :  { %11500 = vmatpush1.bf16.msra.mxu1 %v14708_v26 }
 0xf84   :  { %11501 = vmatprep.subr.bf16.mxu1 %v20537_v56 }
 0xf85   :  { %11366 = vmatpush1.bf16.msra.mxu0 %v14666_v24 }
 0xf86   :  { %11367 = vmatprep.subr.bf16.mxu0 %v14671_v40 }
 0xf87   :  { %11502 = vmatpush1.bf16.msra.mxu1 %v14709_v29 }
 0xf88   :  { %11503 = vmatprep.subr.bf16.mxu1 %v20537_v56 }
 0xf89   :  { %11368 = vmatpush1.bf16.msra.mxu0 %v14669_v13 }
 0xf8a   :  { %11369 = vmatprep.subr.bf16.mxu0 %v14674_v23 }
 0xf8b   :  { %11504 = vmatpush1.bf16.msra.mxu1 %v14710_v53 }
 0xf8c   :  { %11505 = vmatprep.subr.bf16.mxu1 %v20537_v56 }
 0xf8d   :  { %11370 = vmatpush1.bf16.msra.mxu0 %v14672_v11  ;;  %v12879_v11 = vld [vmem:[#allocation16] ss:$0 sm:$0xff] }
 0xf8e   :  { %11371 = vmatprep.subr.bf16.mxu0 %v14677_v25 }
 0xf8f   :  { %11506 = vmatpush1.bf16.msra.mxu1 %v14711_v62 }
 0xf90   :  { %11507 = vmatprep.subr.bf16.mxu1 %v20537_v56 }
 0xf91   :  { %11372 = vmatpush1.bf16.msra.mxu0 %v14675_v50 }
 0xf92   :  { %11373 = vmatprep.subr.bf16.mxu0 %v14680_v63 }
 0xf93   :  { %11508 = vmatpush1.bf16.msra.mxu1 %v14712_v22 }
 0xf94   :  { %11509 = vmatprep.subr.bf16.mxu1 %v20537_v56 }
 0xf95   :  { %11374 = vmatpush1.bf16.msra.mxu0 %v14678_v7 }
 0xf96   :  { %11375 = vmatprep.subr.bf16.mxu0 %v14683_v34 }
 0xf97   :  { %11510 = vmatpush1.bf16.msra.mxu1 %v14713_v58 }
 0xf98   :  { %11511 = vmatprep.subr.bf16.mxu1 %v20537_v56 }
 0xf99   :  { %11376 = vmatpush1.bf16.msra.mxu0 %v14681_v9 }
 0xf9a   :  { %11377 = vmatprep.subr.bf16.mxu0 %v14686_v52 }
 0xf9b   :  { %11512 = vmatpush1.bf16.msra.mxu1 %v11491_v8 }
 0xf9d   :  { %11378 = vmatpush1.bf16.msra.mxu0 %v14684_v33 }
 0xf9e   :  { %11379 = vmatprep.subr.bf16.mxu0 %v14689_v45 }
 0xfa1   :  { %11380 = vmatpush1.bf16.msra.mxu0 %v14687_v54 }
 0xfa2   :  { %11381 = vmatprep.subr.bf16.mxu0 %v14692_v27 }
 0xfa5   :  { %11382 = vmatpush1.bf16.msra.mxu0 %v14690_v59 }
 0xfa6   :  { %11383 = vmatprep.subr.bf16.mxu0 %v14695_v4 }
 0xfa9   :  { %11384 = vmatpush1.bf16.msra.mxu0 %v14693_v20 }
 0xfaa   :  { %11385 = vmatprep.subr.bf16.mxu0 %v14698_v15 }
 0xfad   :  { %11386 = vmatpush1.bf16.msra.mxu0 %v14696_v3 }
 0xfae   :  { %11387 = vmatprep.subr.bf16.mxu0 %v14701_v31 }
 0xfb1   :  { %11388 = vmatpush1.bf16.msra.mxu0 %v14699_v19 }
 0xfb2   :  { %11389 = vmatprep.subr.bf16.mxu0 %v14704_v16 }
 0xfb5   :  { %11390 = vmatpush1.bf16.msra.mxu0 %v14702_v6 }
0x1049   :  { %v11131_v32 = vpop.f32.mrb[164].mxu1 }
0x104a   :  { %v11133_v0 = vpop.f32.mrb[165].mxu1 }
0x104b   :  { %v10930_v5 = vpop.f32.mrb[136].mxu0  ;;  %v11135_v12 = vpop.f32.mrb[166].mxu1 }
0x104c   :  { %v11132_v37 = vadd.f32 %v11131_v32, %v10930_v5  ;;  %v10932_v43 = vpop.f32.mrb[137].mxu0  ;;  %v11136_v21 = vpop.f32.mrb[167].mxu1 }
0x104d   :  { %v11134_v48 = vadd.f32 %v11133_v0, %v10932_v43  ;;  %v10934_v49 = vpop.f32.mrb[138].mxu0 }
0x104e   :  { %v11149_v57 = vadd.f32 %v11142_v60, %v11132_v37  ;;  %v10935_v2 = vpop.f32.mrb[139].mxu0 }
0x104f   :  { %v11150_v51 = vadd.f32 %v11146_v47, %v11134_v48 }
0x1050   :  { %v11151_v35 = vmax.f32 %v11149_v57, 0.0 }
0x1051   :  { %v11152_v41 = vmax.f32 %v11150_v51, 0.0 }
0x1052   :  { %v11153_v18 = vpack.c.bf16 %v11151_v35, %v11151_v35 }
0x1053   :  { %v11154_v44 = vpack.c.bf16 %v11152_v41, %v11152_v41 }
0x1055   :  { %11391 = vmatprep.mubr.bf16.mxu0 %v11154_v44 }
0x1056   :  { %11392 = vmatmul.mubr.bf16.vlgmr.msra.gmra.mrb[140].mxu0 %v11153_v18 }
0x1129   :  { %v11393_v10 = vpop.f32.mrb[140].mxu0 }
0x112a   :  { %v11394_v28 = vadd.f32 %v11393_v10, %v11192_v36  ;;  %v11395_v38 = vpop.f32.mrb[141].mxu0 }
0x112b   :  { %v11396_v24 = vadd.f32 %v11395_v38, %v11196_v42  ;;  %v11397_v40 = vpop.f32.mrb[142].mxu0 }
0x112c   :  { %v11398_v13 = vpop.f32.mrb[143].mxu0  ;;  %v11400_v23 = vpack.c.bf16 %v11394_v28, %v11394_v28 }
0x112d   :  { %v11401_v56 = vpack.c.bf16 %v11396_v24, %v11396_v24 }
0x112f   :  { %12890 = vmatprep.mubr.msk.bf16.mxu1 %vm11485_vm10, %v11401_v56 }
0x1130   :  { %11526 = vmatmul.mubr.bf16.vlgmr.msra.gmra.mrb[168].mxu1 %v11400_v23 }
0x1203   :  { %v11527_v25 = vpop.f32.mrb[168].mxu1 }
0x1204   :  { %v11528_v50 = vadd.f32 %v12879_v11, %v11527_v25  ;;  %v11529_v46 = vpop.f32.mrb[169].mxu1 }
0x1205   :  { %v11530_v30 = vpop.f32.mrb[170].mxu1 }
0x1206   :  { %v11531_v63 = vpop.f32.mrb[171].mxu1  ;;  %11534 = vst.msk [vmem:[#allocation17] sm:$0x3] %vm11533_vm11, %v11528_v50 }
0x1207   :  { %14928 = shalt.err (!%p14925_p6)
}
0x1208   :  { %s14929_s14 = scalar_lea.hbm %s20247_s26, 32 }
0x1209   :  { %p14930_p7 = scmp.ne.s32.totalorder %s20247_s26, %s14929_s14  ;;  %p14933_p8 = scmp.lt.u32.totalorder %s14929_s14, %s20247_s26 }
0x120b   :  { %p14935_p9 = pnand %p14933_p8, %p14930_p7 }
0x120d   :  { %14938 = shalt.err (!%p14935_p9)
}
0x120e   :  { %11544 = dma.vmem_to_hbm [thread:$0]  %s11542_s3, 32, %s20247_s26, [#allocation4]  }
0x120f   :  { %14949 = dma.done.wait [#allocation4], 32  }
0x1210   :  { %14950 = vsyncadd [#allocation4], 4294967264 }
0x1211   :  { %11548 = vsyncpa [#allocation3], 1 }
0x1212   :  { %11549 = vsyncpa [#allocation6], 1 }
0x1213   :  { %11550 = vsyncpa [#allocation9], 1 }
0x1214   :  { %11551 = vsyncpa [#allocation12], 1 }
0x1215   :  { %11552 = vsyncpa [#allocation15], 1 }
0x1216   :  { %11553 = vsyncpa [#allocation4], 1 }

</bundles_post_ra>
